<compile_context>
chip_gen: v7x
topology: tpu7x:2x2x1
jax: 0.10.0
libtpu: 0.0.40
codegen_flags: <defaults>
</compile_context>

<pallas_src>
import jax
import jax.numpy as jnp
from jax.experimental import pallas as pl
from jax.experimental.pallas import tpu as pltpu


# Scaled-down VGG16 "features": 13 convs in blocks [2,2,3,3,3]; pool after blocks 1-4.
_CONV_CHANNELS = [8, 8, 16, 16, 32, 32, 32, 32, 32, 32, 32, 32, 32]
_BLOCK_SIZES = (2, 2, 3, 3, 3)


def _build_plan(in_channels, h0, w0):
    """Per-conv dicts {cin, cout, h, w, pool}.  The PyTorch loop breaks right
    after conv_13, so the pool after block 5 never executes."""
    plan = []
    cin, h, w = in_channels, h0, w0
    idx = 0
    for nconv in _BLOCK_SIZES:
        for _ in range(nconv):
            cout = _CONV_CHANNELS[idx]
            idx += 1
            plan.append({"cin": cin, "cout": cout, "h": h, "w": w, "pool": False})
            cin = cout
        if idx < len(_CONV_CHANNELS):          # pools after blocks 1-4 only
            plan[-1]["pool"] = True
            h, w = h // 2, w // 2
    return plan


def _group_outputs(plan):
    """Coalesce per-layer outputs into lane-concatenated slabs, grouped by Cout."""
    groups = []           # [cout, total_lanes]
    layer_slot = []       # per layer: (group_index, lane_offset)
    for p in plan:
        if not groups or groups[-1][0] != p["cout"]:
            groups.append([p["cout"], 0])
        gi = len(groups) - 1
        layer_slot.append((gi, groups[gi][1]))
        groups[gi][1] += p["h"] * p["w"]
    return [tuple(g) for g in groups], layer_slot


# ------------------------------ in-kernel ops -------------------------------

def _conv3x3_fused(a, w_ref, b_ref, buf_ref, stack_ref, cin, cout, h, w):
    """One 3x3 conv (stride 1, pad 1) as a single K = 9*Cin MXU matmul.

    a         : (Cin, H*W) f32 value (channels-first, flat spatial)
    w_ref     : (Cout, 9*Cin) ref, tap-major columns: (dy*3+dx)*Cin + ci
    b_ref     : (Cout, 1) ref
    buf_ref   : VMEM scratch used as a zero-padded flat image
    stack_ref : VMEM scratch holding the 9 shifted (masked) neighbour slices
    returns   : (Cout, H*W) pre-activation (conv + bias)
    """
    hw = h * w

    # Padded flat image: zero ONLY the two (W+1)-wide guard bands; the data
    # region is fully overwritten every layer.
    buf_ref[0:cin, 0:w + 1] = jnp.zeros((cin, w + 1), jnp.float32)
    buf_ref[0:cin, w + 1 + hw:hw + 2 * w + 2] = jnp.zeros((cin, w + 1), jnp.float32)
    buf_ref[0:cin, w + 1:w + 1 + hw] = a

    # Column-border masks, built once per layer and folded into the stacking copy.
    col = jax.lax.broadcasted_iota(jnp.int32, (cin, hw), 1) % w
    mask_l = (col != 0).astype(jnp.float32)        # valid output cols for dx == 0 taps
    mask_r = (col != (w - 1)).astype(jnp.float32)  # valid output cols for dx == 2 taps

    # Stack the 9 shifted neighbour slices into (9*Cin, H*W)   (stores have slack).
    for dy in range(3):
        for dx in range(3):
            k = dy * 3 + dx
            xs = buf_ref[0:cin, dy * w + dx:dy * w + dx + hw]
            if dx == 0:
                xs = xs * mask_l                   # kill row-wrap contributions
            elif dx == 2:
                xs = xs * mask_r
            stack_ref[k * cin:(k + 1) * cin, 0:hw] = xs

    # Single MXU matmul over the fused K = 9*Cin contraction.
    return jnp.dot(w_ref[...], stack_ref[0:9 * cin, 0:hw],
                   preferred_element_type=jnp.float32) + b_ref[...]


def _avgpool2x2(a, pool_ref, prow_ref, c, h, w):
    """AvgPool2d(2,2) on a channels-first flat activation.

    Vertical 2-row pair-add on contiguous slices + a tiny (W, W/2)
    horizontal-compaction matmul per output row.  O(H*W) work and O(W^2)
    constants (no O((H*W)^2) pooling matrix)."""
    hw = h * w
    ho, wo = h // 2, w // 2
    pool_ref[0:c, 0:hw] = a
    prow = prow_ref[...]                                   # (W, W/2), entries 0.25
    for yo in range(ho):
        top = pool_ref[0:c, (2 * yo) * w:(2 * yo) * w + w]
        bot = pool_ref[0:c, (2 * yo + 1) * w:(2 * yo + 1) * w + w]
        pool_ref[0:c, hw + yo * wo:hw + (yo + 1) * wo] = jnp.dot(
            top + bot, prow, preferred_element_type=jnp.float32)
    return pool_ref[0:c, hw:hw + ho * wo]


def _make_kernel(plan, layer_slot, n_groups):
    n_conv = len(plan)
    n_pools = sum(1 for p in plan if p["pool"])

    def kernel(*refs):
        x_ref, mean_ref, invstd_ref = refs[0], refs[1], refs[2]
        w_refs = refs[3:3 + n_conv]
        b_refs = refs[3 + n_conv:3 + 2 * n_conv]
        p_refs = refs[3 + 2 * n_conv:3 + 2 * n_conv + n_pools]
        out_refs = refs[3 + 2 * n_conv + n_pools:3 + 2 * n_conv + n_pools + n_groups]
        buf_ref, stack_ref, pool_ref = refs[-3], refs[-2], refs[-1]

        # Input normalization: (x - mean) / std   (channels in sublanes).
        a = (x_ref[...] - mean_ref[...]) * invstd_ref[...]

        pool_i = 0
        for li, p in enumerate(plan):
            cin, cout, h, w = p["cin"], p["cout"], p["h"], p["w"]
            pre = _conv3x3_fused(a, w_refs[li], b_refs[li], buf_ref, stack_ref,
                                 cin, cout, h, w)
            gi, off = layer_slot[li]
            out_refs[gi][:, off:off + h * w] = pre     # module stores PRE-ReLU output
            if li == n_conv - 1:
                break                                  # same break as the PyTorch loop
            a = jnp.maximum(pre, 0.0)                  # ReLU feeding next conv (VMEM-resident)
            if p["pool"]:
                a = _avgpool2x2(a, pool_ref, p_refs[pool_i], cout, h, w)
                pool_i += 1

    return kernel


# ------------------------------ host-side glue ------------------------------

def _hpool_matrix(w):
    """(W, W/2) matrix with 0.25 at [x, x//2]; combined with a vertical pair-add
    it implements AvgPool2d(2,2) one output row at a time."""
    wo = w // 2
    x = jnp.arange(w)[:, None]
    xo = jnp.arange(wo)[None, :]
    return jnp.where((x // 2) == xo, 0.25, 0.0).astype(jnp.float32)


def vgg_style_transfer_forward(x_nchw, params, mean, std):
    """Mirror of VGGStyleTransferModel.forward: {'conv_i': pre-ReLU conv (NCHW)}."""
    x = x_nchw.astype(jnp.float32)
    n, c0, h0, w0 = x.shape

    # Pad input channels to a sublane multiple (3 -> 8) with zero weights/means.
    c_pad = -(-c0 // 8) * 8
    plan = _build_plan(c_pad, h0, w0)
    groups, layer_slot = _group_outputs(plan)
    n_conv = len(plan)

    x_flat = jnp.pad(x.reshape(n, c0, h0 * w0), ((0, 0), (0, c_pad - c0), (0, 0)))
    mean2 = jnp.pad(mean.astype(jnp.float32).reshape(c0, 1), ((0, c_pad - c0), (0, 0)))
    invstd2 = jnp.pad((1.0 / std.astype(jnp.float32)).reshape(c0, 1),
                      ((0, c_pad - c0), (0, 0)))

    w_list, b_list = [], []
    for i, p in enumerate(plan, start=1):
        w_oihw, bias = params[f"conv_{i}"]
        cout, cin = p["cout"], p["cin"]
        wf = w_oihw.astype(jnp.float32)
        if wf.shape[1] < cin:                                   # conv_1 Cin zero-pad
            wf = jnp.pad(wf, ((0, 0), (0, cin - wf.shape[1]), (0, 0), (0, 0)))
        # (Cout, Cin, 3, 3) -> (Cout, 3, 3, Cin) -> (Cout, 9*Cin): tap-major K.
        w_list.append(jnp.transpose(wf, (0, 2, 3, 1)).reshape(cout, 9 * cin))
        b_list.append(bias.astype(jnp.float32).reshape(cout, 1))

    prow_list = [_hpool_matrix(p["w"]) for p in plan if p["pool"]]

    # ---- specs: everything VMEM-resident; batch is the only grid axis ----
    in_specs = [pl.BlockSpec((None, c_pad, h0 * w0), lambda b: (b, 0, 0)),
                pl.BlockSpec((c_pad, 1), lambda b: (0, 0)),
                pl.BlockSpec((c_pad, 1), lambda b: (0, 0))]
    in_specs += [pl.BlockSpec(wt.shape, lambda b: (0, 0)) for wt in w_list]
    in_specs += [pl.BlockSpec(bt.shape, lambda b: (0, 0)) for bt in b_list]
    in_specs += [pl.BlockSpec(pm.shape, lambda b: (0, 0)) for pm in prow_list]

    out_specs = tuple(pl.BlockSpec((None, cout, lanes), lambda b: (b, 0, 0))
                      for (cout, lanes) in groups)
    out_shape = tuple(jax.ShapeDtypeStruct((n, cout, lanes), jnp.float32)
                      for (cout, lanes) in groups)

    max_cin = max(p["cin"] for p in plan)
    max_hw = max(p["h"] * p["w"] for p in plan)
    max_buf = max(p["h"] * p["w"] + 2 * p["w"] + 2 for p in plan)
    max_pool_c = max((p["cout"] for p in plan if p["pool"]), default=1)
    max_pool_buf = max((p["h"] * p["w"] + (p["h"] // 2) * (p["w"] // 2)
                        for p in plan if p["pool"]), default=1)

    outs = pl.pallas_call(
        _make_kernel(plan, layer_slot, len(groups)),
        out_shape=out_shape,
        grid=(n,),
        in_specs=in_specs,
        out_specs=out_specs,
        scratch_shapes=[pltpu.VMEM((max_cin, max_buf), jnp.float32),      # padded flat image
                        pltpu.VMEM((9 * max_cin, max_hw), jnp.float32),   # 9-tap stack (K axis)
                        pltpu.VMEM((max_pool_c, max_pool_buf), jnp.float32)],  # pool scratch
        compiler_params=pltpu.CompilerParams(
            dimension_semantics=("parallel",)),
    )(x_flat, mean2, invstd2, *w_list, *b_list, *prow_list)

    # Free host-side splits of the coalesced slabs back into per-layer NCHW views.
    layers = {}
    for i, (p, (gi, off)) in enumerate(zip(plan, layer_slot), start=1):
        hw = p["h"] * p["w"]
        layers[f"conv_{i}"] = outs[gi][:, :, off:off + hw].reshape(
            n, p["cout"], p["h"], p["w"])
    return layers


# ------------------------------ params & reference --------------------------

def init_params(key, in_channels=3):
    """Deterministic He-style init for the 13 conv layers."""
    params = {}
    cin = in_channels
    for idx, cout in enumerate(_CONV_CHANNELS, start=1):
        key, kw, kb = jax.random.split(key, 3)
        fan_in = 9 * cin
        w = jax.random.normal(kw, (cout, cin, 3, 3), jnp.float32) * jnp.sqrt(2.0 / fan_in)
        b = 0.01 * jax.random.normal(kb, (cout,), jnp.float32)
        params[f"conv_{idx}"] = (w, b)
        cin = cout
    return params


def _reference_forward(x, params, mean, std):
    """Pure-JAX/XLA reference of the same module semantics (for validation)."""
    a = (x - mean.reshape(1, -1, 1, 1)) / std.reshape(1, -1, 1, 1)
    layers = {}
    i = 0
    for nconv in _BLOCK_SIZES:
        for _ in range(nconv):
            i += 1
            w, b = params[f"conv_{i}"]
            pre = jax.lax.conv_general_dilated(
                a, w, (1, 1), ((1, 1), (1, 1)),
                dimension_numbers=("NCHW", "OIHW", "NCHW"),
                precision=jax.lax.Precision.HIGHEST) + b.reshape(1, -1, 1, 1)
            layers[f"conv_{i}"] = pre
            if i == 13:
                return layers
            a = jnp.maximum(pre, 0.0)
        nb, cb, hb, wb = a.shape
        a = a.reshape(nb, cb, hb // 2, 2, wb // 2, 2).mean(axis=(3, 5))  # AvgPool2d(2,2)
    return layers


# ----------------------------------- main -----------------------------------

if __name__ == "__main__":
    key = jax.random.PRNGKey(0)
    k_x, k_p = jax.random.split(key)

    # small image batch (N, C, H, W) = (2, 3, 16, 16), values in [0, 1]
    x = jax.random.uniform(k_x, (2, 3, 16, 16), jnp.float32)
    mean = jnp.array([0.485, 0.456, 0.406], jnp.float32)
    std = jnp.array([0.229, 0.224, 0.225], jnp.float32)
    params = init_params(k_p, in_channels=3)

    fwd = jax.jit(vgg_style_transfer_forward)
    layers = fwd(x, params, mean, std)
    jax.block_until_ready(layers)

    assert set(layers.keys()) == {f"conv_{i}" for i in range(1, 14)}
    assert layers["conv_1"].shape == (2, 8, 16, 16)
    assert layers["conv_13"].shape == (2, 32, 1, 1)

    # numerical check against the pure-JAX reference
    ref = _reference_forward(x, params, mean, std)
    for k in layers:
        assert bool(jnp.allclose(layers[k], ref[k], rtol=1e-2, atol=1e-2)), (
            f"mismatch in {k}")

    print("KERNEL_OK")
</pallas_src>

<mosaic_0001>
module attributes {stable_mosaic.version = 11 : i64} {
  func.func @kernel(%arg0: i32, %arg1: memref<1x8x256xf32, #tpu.memory_space<vmem>>, %arg2: memref<8x1xf32, #tpu.memory_space<vmem>>, %arg3: memref<8x1xf32, #tpu.memory_space<vmem>>, %arg4: memref<8x72xf32, #tpu.memory_space<vmem>>, %arg5: memref<8x72xf32, #tpu.memory_space<vmem>>, %arg6: memref<16x72xf32, #tpu.memory_space<vmem>>, %arg7: memref<16x144xf32, #tpu.memory_space<vmem>>, %arg8: memref<32x144xf32, #tpu.memory_space<vmem>>, %arg9: memref<32x288xf32, #tpu.memory_space<vmem>>, %arg10: memref<32x288xf32, #tpu.memory_space<vmem>>, %arg11: memref<32x288xf32, #tpu.memory_space<vmem>>, %arg12: memref<32x288xf32, #tpu.memory_space<vmem>>, %arg13: memref<32x288xf32, #tpu.memory_space<vmem>>, %arg14: memref<32x288xf32, #tpu.memory_space<vmem>>, %arg15: memref<32x288xf32, #tpu.memory_space<vmem>>, %arg16: memref<32x288xf32, #tpu.memory_space<vmem>>, %arg17: memref<8x1xf32, #tpu.memory_space<vmem>>, %arg18: memref<8x1xf32, #tpu.memory_space<vmem>>, %arg19: memref<16x1xf32, #tpu.memory_space<vmem>>, %arg20: memref<16x1xf32, #tpu.memory_space<vmem>>, %arg21: memref<32x1xf32, #tpu.memory_space<vmem>>, %arg22: memref<32x1xf32, #tpu.memory_space<vmem>>, %arg23: memref<32x1xf32, #tpu.memory_space<vmem>>, %arg24: memref<32x1xf32, #tpu.memory_space<vmem>>, %arg25: memref<32x1xf32, #tpu.memory_space<vmem>>, %arg26: memref<32x1xf32, #tpu.memory_space<vmem>>, %arg27: memref<32x1xf32, #tpu.memory_space<vmem>>, %arg28: memref<32x1xf32, #tpu.memory_space<vmem>>, %arg29: memref<32x1xf32, #tpu.memory_space<vmem>>, %arg30: memref<16x8xf32, #tpu.memory_space<vmem>>, %arg31: memref<8x4xf32, #tpu.memory_space<vmem>>, %arg32: memref<4x2xf32, #tpu.memory_space<vmem>>, %arg33: memref<2x1xf32, #tpu.memory_space<vmem>>, %arg34: memref<1x8x512xf32, #tpu.memory_space<vmem>>, %arg35: memref<1x16x128xf32, #tpu.memory_space<vmem>>, %arg36: memref<1x32x63xf32, #tpu.memory_space<vmem>>, %arg37: memref<32x290xf32, #tpu.memory_space<vmem>>, %arg38: memref<288x256xf32, #tpu.memory_space<vmem>>, %arg39: memref<32x320xf32, #tpu.memory_space<vmem>>) attributes {dimension_semantics = [#tpu.dimension_semantics<parallel>], iteration_bounds = array<i64: 2>, scalar_prefetch = 0 : i64, scratch_operands = 3 : i64, tpu.core_type = #tpu.core_type<tc>, window_params = [{transform_indices = @transform_0, window_bounds = array<i64: 1, 8, 256>}, {pipeline_mode = #tpu.pipeline_mode<synchronous>, transform_indices = @transform_1, window_bounds = array<i64: 8, 1>}, {pipeline_mode = #tpu.pipeline_mode<synchronous>, transform_indices = @transform_2, window_bounds = array<i64: 8, 1>}, {pipeline_mode = #tpu.pipeline_mode<synchronous>, transform_indices = @transform_3, window_bounds = array<i64: 8, 72>}, {pipeline_mode = #tpu.pipeline_mode<synchronous>, transform_indices = @transform_4, window_bounds = array<i64: 8, 72>}, {pipeline_mode = #tpu.pipeline_mode<synchronous>, transform_indices = @transform_5, window_bounds = array<i64: 16, 72>}, {pipeline_mode = #tpu.pipeline_mode<synchronous>, transform_indices = @transform_6, window_bounds = array<i64: 16, 144>}, {pipeline_mode = #tpu.pipeline_mode<synchronous>, transform_indices = @transform_7, window_bounds = array<i64: 32, 144>}, {pipeline_mode = #tpu.pipeline_mode<synchronous>, transform_indices = @transform_8, window_bounds = array<i64: 32, 288>}, {pipeline_mode = #tpu.pipeline_mode<synchronous>, transform_indices = @transform_9, window_bounds = array<i64: 32, 288>}, {pipeline_mode = #tpu.pipeline_mode<synchronous>, transform_indices = @transform_10, window_bounds = array<i64: 32, 288>}, {pipeline_mode = #tpu.pipeline_mode<synchronous>, transform_indices = @transform_11, window_bounds = array<i64: 32, 288>}, {pipeline_mode = #tpu.pipeline_mode<synchronous>, transform_indices = @transform_12, window_bounds = array<i64: 32, 288>}, {pipeline_mode = #tpu.pipeline_mode<synchronous>, transform_indices = @transform_13, window_bounds = array<i64: 32, 288>}, {pipeline_mode = #tpu.pipeline_mode<synchronous>, transform_indices = @transform_14, window_bounds = array<i64: 32, 288>}, {pipeline_mode = #tpu.pipeline_mode<synchronous>, transform_indices = @transform_15, window_bounds = array<i64: 32, 288>}, {pipeline_mode = #tpu.pipeline_mode<synchronous>, transform_indices = @transform_16, window_bounds = array<i64: 8, 1>}, {pipeline_mode = #tpu.pipeline_mode<synchronous>, transform_indices = @transform_17, window_bounds = array<i64: 8, 1>}, {pipeline_mode = #tpu.pipeline_mode<synchronous>, transform_indices = @transform_18, window_bounds = array<i64: 16, 1>}, {pipeline_mode = #tpu.pipeline_mode<synchronous>, transform_indices = @transform_19, window_bounds = array<i64: 16, 1>}, {pipeline_mode = #tpu.pipeline_mode<synchronous>, transform_indices = @transform_20, window_bounds = array<i64: 32, 1>}, {pipeline_mode = #tpu.pipeline_mode<synchronous>, transform_indices = @transform_21, window_bounds = array<i64: 32, 1>}, {pipeline_mode = #tpu.pipeline_mode<synchronous>, transform_indices = @transform_22, window_bounds = array<i64: 32, 1>}, {pipeline_mode = #tpu.pipeline_mode<synchronous>, transform_indices = @transform_23, window_bounds = array<i64: 32, 1>}, {pipeline_mode = #tpu.pipeline_mode<synchronous>, transform_indices = @transform_24, window_bounds = array<i64: 32, 1>}, {pipeline_mode = #tpu.pipeline_mode<synchronous>, transform_indices = @transform_25, window_bounds = array<i64: 32, 1>}, {pipeline_mode = #tpu.pipeline_mode<synchronous>, transform_indices = @transform_26, window_bounds = array<i64: 32, 1>}, {pipeline_mode = #tpu.pipeline_mode<synchronous>, transform_indices = @transform_27, window_bounds = array<i64: 32, 1>}, {pipeline_mode = #tpu.pipeline_mode<synchronous>, transform_indices = @transform_28, window_bounds = array<i64: 32, 1>}, {pipeline_mode = #tpu.pipeline_mode<synchronous>, transform_indices = @transform_29, window_bounds = array<i64: 16, 8>}, {pipeline_mode = #tpu.pipeline_mode<synchronous>, transform_indices = @transform_30, window_bounds = array<i64: 8, 4>}, {pipeline_mode = #tpu.pipeline_mode<synchronous>, transform_indices = @transform_31, window_bounds = array<i64: 4, 2>}, {pipeline_mode = #tpu.pipeline_mode<synchronous>, transform_indices = @transform_32, window_bounds = array<i64: 2, 1>}, {transform_indices = @transform_33, window_bounds = array<i64: 1, 8, 512>}, {transform_indices = @transform_34, window_bounds = array<i64: 1, 16, 128>}, {transform_indices = @transform_35, window_bounds = array<i64: 1, 32, 63>}]} {
    %c0 = arith.constant 0 : index
    %c0_0 = arith.constant 0 : index
    %c0_1 = arith.constant 0 : index
    %0 = vector.load %arg1[%c0, %c0_0, %c0_1] : memref<1x8x256xf32, #tpu.memory_space<vmem>>, vector<1x8x256xf32>
    %1 = vector.shape_cast %0 : vector<1x8x256xf32> to vector<8x256xf32>
    %c0_2 = arith.constant 0 : index
    %c0_3 = arith.constant 0 : index
    %2 = vector.load %arg2[%c0_2, %c0_3] : memref<8x1xf32, #tpu.memory_space<vmem>>, vector<8x1xf32>
    %3 = vector.broadcast %2 : vector<8x1xf32> to vector<8x256xf32>
    %4 = arith.subf %1, %3 : vector<8x256xf32>
    %c0_4 = arith.constant 0 : index
    %c0_5 = arith.constant 0 : index
    %5 = vector.load %arg3[%c0_4, %c0_5] : memref<8x1xf32, #tpu.memory_space<vmem>>, vector<8x1xf32>
    %6 = vector.broadcast %5 : vector<8x1xf32> to vector<8x256xf32>
    %7 = arith.mulf %4, %6 : vector<8x256xf32>
    %cst = arith.constant 0.000000e+00 : f32
    %8 = vector.broadcast %cst : f32 to vector<8x17xf32>
    %c0_6 = arith.constant 0 : index
    %c0_7 = arith.constant 0 : index
    %9 = vector.load %arg37[%c0_6, %c0_7] : memref<32x290xf32, #tpu.memory_space<vmem>>, vector<8x17xf32>
    tpu.vector_store %arg37[%c0_6, %c0_7], %8 {strides = array<i32>} : memref<32x290xf32, #tpu.memory_space<vmem>>, vector<8x17xf32>,
    %cst_8 = arith.constant 0.000000e+00 : f32
    %10 = vector.broadcast %cst_8 : f32 to vector<8x17xf32>
    %c0_9 = arith.constant 0 : index
    %c273 = arith.constant 273 : index
    %11 = vector.load %arg37[%c0_9, %c273] : memref<32x290xf32, #tpu.memory_space<vmem>>, vector<8x17xf32>
    tpu.vector_store %arg37[%c0_9, %c273], %10 {strides = array<i32>} : memref<32x290xf32, #tpu.memory_space<vmem>>, vector<8x17xf32>,
    %c0_10 = arith.constant 0 : index
    %c17 = arith.constant 17 : index
    %12 = vector.load %arg37[%c0_10, %c17] : memref<32x290xf32, #tpu.memory_space<vmem>>, vector<8x256xf32>
    tpu.vector_store %arg37[%c0_10, %c17], %7 {strides = array<i32>} : memref<32x290xf32, #tpu.memory_space<vmem>>, vector<8x256xf32>,
    %13 = tpu.iota {dimensions = array<i32: 1>} : vector<8x256xi32>
    %c16_i32 = arith.constant 16 : i32
    %c0_i32 = arith.constant 0 : i32
    %14 = arith.cmpi eq, %c16_i32, %c0_i32 : i32
    %c1_i32 = arith.constant 1 : i32
    %15 = arith.select %14, %c1_i32, %c16_i32 : i32
    %16 = vector.broadcast %15 : i32 to vector<8x256xi32>
    %17 = arith.remsi %13, %16 : vector<8x256xi32>
    %c0_i32_11 = arith.constant 0 : i32
    %18 = vector.broadcast %c0_i32_11 : i32 to vector<8x256xi32>
    %19 = arith.cmpi ne, %17, %18 : vector<8x256xi32>
    %c0_i32_12 = arith.constant 0 : i32
    %20 = vector.broadcast %c0_i32_12 : i32 to vector<8x256xi32>
    %21 = arith.cmpi slt, %17, %20 : vector<8x256xi32>
    %c0_i32_13 = arith.constant 0 : i32
    %22 = arith.cmpi slt, %15, %c0_i32_13 : i32
    %23 = vector.broadcast %22 : i1 to vector<8x256xi1>
    %24 = vector.broadcast %23 : vector<8x256xi1> to vector<8x256xi1>
    %25 = arith.xori %21, %24 : vector<8x256xi1>
    %26 = arith.andi %25, %19 : vector<8x256xi1>
    %27 = vector.broadcast %15 : i32 to vector<8x256xi32>
    %28 = arith.addi %17, %27 : vector<8x256xi32>
    %29 = arith.select %26, %28, %17 : vector<8x256xi1>, vector<8x256xi32>
    %c0_i32_14 = arith.constant 0 : i32
    %30 = vector.broadcast %c0_i32_14 : i32 to vector<8x256xi32>
    %31 = arith.cmpi ne, %29, %30 : vector<8x256xi32>
    %32 = arith.extui %31 : vector<8x256xi1> to vector<8x256xi32>
    %33 = arith.sitofp %32 : vector<8x256xi32> to vector<8x256xf32>
    %c15_i32 = arith.constant 15 : i32
    %34 = vector.broadcast %c15_i32 : i32 to vector<8x256xi32>
    %35 = arith.cmpi ne, %29, %34 : vector<8x256xi32>
    %36 = arith.extui %35 : vector<8x256xi1> to vector<8x256xi32>
    %37 = arith.sitofp %36 : vector<8x256xi32> to vector<8x256xf32>
    %c0_15 = arith.constant 0 : index
    %c0_16 = arith.constant 0 : index
    %38 = vector.load %arg37[%c0_15, %c0_16] : memref<32x290xf32, #tpu.memory_space<vmem>>, vector<8x256xf32>
    %39 = arith.mulf %38, %33 : vector<8x256xf32>
    %c0_17 = arith.constant 0 : index
    %c0_18 = arith.constant 0 : index
    %40 = vector.load %arg38[%c0_17, %c0_18] : memref<288x256xf32, #tpu.memory_space<vmem>>, vector<8x256xf32>
    tpu.vector_store %arg38[%c0_17, %c0_18], %39 {strides = array<i32>} : memref<288x256xf32, #tpu.memory_space<vmem>>, vector<8x256xf32>,
    %c0_19 = arith.constant 0 : index
    %c1 = arith.constant 1 : index
    %41 = vector.load %arg37[%c0_19, %c1] : memref<32x290xf32, #tpu.memory_space<vmem>>, vector<8x256xf32>
    %c8 = arith.constant 8 : index
    %c0_20 = arith.constant 0 : index
    %42 = vector.load %arg38[%c8, %c0_20] : memref<288x256xf32, #tpu.memory_space<vmem>>, vector<8x256xf32>
    tpu.vector_store %arg38[%c8, %c0_20], %41 {strides = array<i32>} : memref<288x256xf32, #tpu.memory_space<vmem>>, vector<8x256xf32>,
    %c0_21 = arith.constant 0 : index
    %c2 = arith.constant 2 : index
    %43 = vector.load %arg37[%c0_21, %c2] : memref<32x290xf32, #tpu.memory_space<vmem>>, vector<8x256xf32>
    %44 = arith.mulf %43, %37 : vector<8x256xf32>
    %c16 = arith.constant 16 : index
    %c0_22 = arith.constant 0 : index
    %45 = vector.load %arg38[%c16, %c0_22] : memref<288x256xf32, #tpu.memory_space<vmem>>, vector<8x256xf32>
    tpu.vector_store %arg38[%c16, %c0_22], %44 {strides = array<i32>} : memref<288x256xf32, #tpu.memory_space<vmem>>, vector<8x256xf32>,
    %c0_23 = arith.constant 0 : index
    %c16_24 = arith.constant 16 : index
    %46 = vector.load %arg37[%c0_23, %c16_24] : memref<32x290xf32, #tpu.memory_space<vmem>>, vector<8x256xf32>
    %47 = arith.mulf %46, %33 : vector<8x256xf32>
    %c24 = arith.constant 24 : index
    %c0_25 = arith.constant 0 : index
    %48 = vector.load %arg38[%c24, %c0_25] : memref<288x256xf32, #tpu.memory_space<vmem>>, vector<8x256xf32>
    tpu.vector_store %arg38[%c24, %c0_25], %47 {strides = array<i32>} : memref<288x256xf32, #tpu.memory_space<vmem>>, vector<8x256xf32>,
    %c0_26 = arith.constant 0 : index
    %c17_27 = arith.constant 17 : index
    %49 = vector.load %arg37[%c0_26, %c17_27] : memref<32x290xf32, #tpu.memory_space<vmem>>, vector<8x256xf32>
    %c32 = arith.constant 32 : index
    %c0_28 = arith.constant 0 : index
    %50 = vector.load %arg38[%c32, %c0_28] : memref<288x256xf32, #tpu.memory_space<vmem>>, vector<8x256xf32>
    tpu.vector_store %arg38[%c32, %c0_28], %49 {strides = array<i32>} : memref<288x256xf32, #tpu.memory_space<vmem>>, vector<8x256xf32>,
    %c0_29 = arith.constant 0 : index
    %c18 = arith.constant 18 : index
    %51 = vector.load %arg37[%c0_29, %c18] : memref<32x290xf32, #tpu.memory_space<vmem>>, vector<8x256xf32>
    %52 = arith.mulf %51, %37 : vector<8x256xf32>
    %c40 = arith.constant 40 : index
    %c0_30 = arith.constant 0 : index
    %53 = vector.load %arg38[%c40, %c0_30] : memref<288x256xf32, #tpu.memory_space<vmem>>, vector<8x256xf32>
    tpu.vector_store %arg38[%c40, %c0_30], %52 {strides = array<i32>} : memref<288x256xf32, #tpu.memory_space<vmem>>, vector<8x256xf32>,
    %c0_31 = arith.constant 0 : index
    %c32_32 = arith.constant 32 : index
    %54 = vector.load %arg37[%c0_31, %c32_32] : memref<32x290xf32, #tpu.memory_space<vmem>>, vector<8x256xf32>
    %55 = arith.mulf %54, %33 : vector<8x256xf32>
    %c48 = arith.constant 48 : index
    %c0_33 = arith.constant 0 : index
    %56 = vector.load %arg38[%c48, %c0_33] : memref<288x256xf32, #tpu.memory_space<vmem>>, vector<8x256xf32>
    tpu.vector_store %arg38[%c48, %c0_33], %55 {strides = array<i32>} : memref<288x256xf32, #tpu.memory_space<vmem>>, vector<8x256xf32>,
    %c0_34 = arith.constant 0 : index
    %c33 = arith.constant 33 : index
    %57 = vector.load %arg37[%c0_34, %c33] : memref<32x290xf32, #tpu.memory_space<vmem>>, vector<8x256xf32>
    %c56 = arith.constant 56 : index
    %c0_35 = arith.constant 0 : index
    %58 = vector.load %arg38[%c56, %c0_35] : memref<288x256xf32, #tpu.memory_space<vmem>>, vector<8x256xf32>
    tpu.vector_store %arg38[%c56, %c0_35], %57 {strides = array<i32>} : memref<288x256xf32, #tpu.memory_space<vmem>>, vector<8x256xf32>,
    %c0_36 = arith.constant 0 : index
    %c34 = arith.constant 34 : index
    %59 = vector.load %arg37[%c0_36, %c34] : memref<32x290xf32, #tpu.memory_space<vmem>>, vector<8x256xf32>
    %60 = arith.mulf %59, %37 : vector<8x256xf32>
    %c64 = arith.constant 64 : index
    %c0_37 = arith.constant 0 : index
    %61 = vector.load %arg38[%c64, %c0_37] : memref<288x256xf32, #tpu.memory_space<vmem>>, vector<8x256xf32>
    tpu.vector_store %arg38[%c64, %c0_37], %60 {strides = array<i32>} : memref<288x256xf32, #tpu.memory_space<vmem>>, vector<8x256xf32>,
    %c0_38 = arith.constant 0 : index
    %c0_39 = arith.constant 0 : index
    %62 = vector.load %arg4[%c0_38, %c0_39] : memref<8x72xf32, #tpu.memory_space<vmem>>, vector<8x72xf32>
    %c0_40 = arith.constant 0 : index
    %c0_41 = arith.constant 0 : index
    %63 = vector.load %arg38[%c0_40, %c0_41] : memref<288x256xf32, #tpu.memory_space<vmem>>, vector<72x256xf32>
    %cst_42 = arith.constant dense<0.000000e+00> : vector<8x256xf32>
    %64 = tpu.matmul %62, %63, %cst_42 {dimension_numbers = #tpu.dot_dimension_numbers<[1], [0], [0], [1], [0, 0, 1, 1], [], []>} : vector<8x72xf32>, vector<72x256xf32>, vector<8x256xf32> -> vector<8x256xf32>
    %c0_43 = arith.constant 0 : index
    %c0_44 = arith.constant 0 : index
    %65 = vector.load %arg17[%c0_43, %c0_44] : memref<8x1xf32, #tpu.memory_space<vmem>>, vector<8x1xf32>
    %66 = vector.broadcast %65 : vector<8x1xf32> to vector<8x256xf32>
    %67 = arith.addf %64, %66 : vector<8x256xf32>
    %c0_45 = arith.constant 0 : index
    %c0_46 = arith.constant 0 : index
    %c0_47 = arith.constant 0 : index
    %68 = vector.load %arg34[%c0_45, %c0_46, %c0_47] : memref<1x8x512xf32, #tpu.memory_space<vmem>>, vector<1x8x256xf32>
    %69 = vector.shape_cast %68 : vector<1x8x256xf32> to vector<8x256xf32>
    %70 = vector.shape_cast %67 : vector<8x256xf32> to vector<1x8x256xf32>
    tpu.vector_store %arg34[%c0_45, %c0_46, %c0_47], %70 {strides = array<i32>} : memref<1x8x512xf32, #tpu.memory_space<vmem>>, vector<1x8x256xf32>,
    %cst_48 = arith.constant 0.000000e+00 : f32
    %71 = vector.broadcast %cst_48 : f32 to vector<8x256xf32>
    %72 = arith.maximumf %67, %71 : vector<8x256xf32>
    %cst_49 = arith.constant 0.000000e+00 : f32
    %73 = vector.broadcast %cst_49 : f32 to vector<8x17xf32>
    %c0_50 = arith.constant 0 : index
    %c0_51 = arith.constant 0 : index
    %74 = vector.load %arg37[%c0_50, %c0_51] : memref<32x290xf32, #tpu.memory_space<vmem>>, vector<8x17xf32>
    tpu.vector_store %arg37[%c0_50, %c0_51], %73 {strides = array<i32>} : memref<32x290xf32, #tpu.memory_space<vmem>>, vector<8x17xf32>,
    %cst_52 = arith.constant 0.000000e+00 : f32
    %75 = vector.broadcast %cst_52 : f32 to vector<8x17xf32>
    %c0_53 = arith.constant 0 : index
    %c273_54 = arith.constant 273 : index
    %76 = vector.load %arg37[%c0_53, %c273_54] : memref<32x290xf32, #tpu.memory_space<vmem>>, vector<8x17xf32>
    tpu.vector_store %arg37[%c0_53, %c273_54], %75 {strides = array<i32>} : memref<32x290xf32, #tpu.memory_space<vmem>>, vector<8x17xf32>,
    %c0_55 = arith.constant 0 : index
    %c17_56 = arith.constant 17 : index
    %77 = vector.load %arg37[%c0_55, %c17_56] : memref<32x290xf32, #tpu.memory_space<vmem>>, vector<8x256xf32>
    tpu.vector_store %arg37[%c0_55, %c17_56], %72 {strides = array<i32>} : memref<32x290xf32, #tpu.memory_space<vmem>>, vector<8x256xf32>,
    %78 = tpu.iota {dimensions = array<i32: 1>} : vector<8x256xi32>
    %c16_i32_57 = arith.constant 16 : i32
    %c0_i32_58 = arith.constant 0 : i32
    %79 = arith.cmpi eq, %c16_i32_57, %c0_i32_58 : i32
    %c1_i32_59 = arith.constant 1 : i32
    %80 = arith.select %79, %c1_i32_59, %c16_i32_57 : i32
    %81 = vector.broadcast %80 : i32 to vector<8x256xi32>
    %82 = arith.remsi %78, %81 : vector<8x256xi32>
    %c0_i32_60 = arith.constant 0 : i32
    %83 = vector.broadcast %c0_i32_60 : i32 to vector<8x256xi32>
    %84 = arith.cmpi ne, %82, %83 : vector<8x256xi32>
    %c0_i32_61 = arith.constant 0 : i32
    %85 = vector.broadcast %c0_i32_61 : i32 to vector<8x256xi32>
    %86 = arith.cmpi slt, %82, %85 : vector<8x256xi32>
    %c0_i32_62 = arith.constant 0 : i32
    %87 = arith.cmpi slt, %80, %c0_i32_62 : i32
    %88 = vector.broadcast %87 : i1 to vector<8x256xi1>
    %89 = vector.broadcast %88 : vector<8x256xi1> to vector<8x256xi1>
    %90 = arith.xori %86, %89 : vector<8x256xi1>
    %91 = arith.andi %90, %84 : vector<8x256xi1>
    %92 = vector.broadcast %80 : i32 to vector<8x256xi32>
    %93 = arith.addi %82, %92 : vector<8x256xi32>
    %94 = arith.select %91, %93, %82 : vector<8x256xi1>, vector<8x256xi32>
    %c0_i32_63 = arith.constant 0 : i32
    %95 = vector.broadcast %c0_i32_63 : i32 to vector<8x256xi32>
    %96 = arith.cmpi ne, %94, %95 : vector<8x256xi32>
    %97 = arith.extui %96 : vector<8x256xi1> to vector<8x256xi32>
    %98 = arith.sitofp %97 : vector<8x256xi32> to vector<8x256xf32>
    %c15_i32_64 = arith.constant 15 : i32
    %99 = vector.broadcast %c15_i32_64 : i32 to vector<8x256xi32>
    %100 = arith.cmpi ne, %94, %99 : vector<8x256xi32>
    %101 = arith.extui %100 : vector<8x256xi1> to vector<8x256xi32>
    %102 = arith.sitofp %101 : vector<8x256xi32> to vector<8x256xf32>
    %c0_65 = arith.constant 0 : index
    %c0_66 = arith.constant 0 : index
    %103 = vector.load %arg37[%c0_65, %c0_66] : memref<32x290xf32, #tpu.memory_space<vmem>>, vector<8x256xf32>
    %104 = arith.mulf %103, %98 : vector<8x256xf32>
    %c0_67 = arith.constant 0 : index
    %c0_68 = arith.constant 0 : index
    %105 = vector.load %arg38[%c0_67, %c0_68] : memref<288x256xf32, #tpu.memory_space<vmem>>, vector<8x256xf32>
    tpu.vector_store %arg38[%c0_67, %c0_68], %104 {strides = array<i32>} : memref<288x256xf32, #tpu.memory_space<vmem>>, vector<8x256xf32>,
    %c0_69 = arith.constant 0 : index
    %c1_70 = arith.constant 1 : index
    %106 = vector.load %arg37[%c0_69, %c1_70] : memref<32x290xf32, #tpu.memory_space<vmem>>, vector<8x256xf32>
    %c8_71 = arith.constant 8 : index
    %c0_72 = arith.constant 0 : index
    %107 = vector.load %arg38[%c8_71, %c0_72] : memref<288x256xf32, #tpu.memory_space<vmem>>, vector<8x256xf32>
    tpu.vector_store %arg38[%c8_71, %c0_72], %106 {strides = array<i32>} : memref<288x256xf32, #tpu.memory_space<vmem>>, vector<8x256xf32>,
    %c0_73 = arith.constant 0 : index
    %c2_74 = arith.constant 2 : index
    %108 = vector.load %arg37[%c0_73, %c2_74] : memref<32x290xf32, #tpu.memory_space<vmem>>, vector<8x256xf32>
    %109 = arith.mulf %108, %102 : vector<8x256xf32>
    %c16_75 = arith.constant 16 : index
    %c0_76 = arith.constant 0 : index
    %110 = vector.load %arg38[%c16_75, %c0_76] : memref<288x256xf32, #tpu.memory_space<vmem>>, vector<8x256xf32>
    tpu.vector_store %arg38[%c16_75, %c0_76], %109 {strides = array<i32>} : memref<288x256xf32, #tpu.memory_space<vmem>>, vector<8x256xf32>,
    %c0_77 = arith.constant 0 : index
    %c16_78 = arith.constant 16 : index
    %111 = vector.load %arg37[%c0_77, %c16_78] : memref<32x290xf32, #tpu.memory_space<vmem>>, vector<8x256xf32>
    %112 = arith.mulf %111, %98 : vector<8x256xf32>
    %c24_79 = arith.constant 24 : index
    %c0_80 = arith.constant 0 : index
    %113 = vector.load %arg38[%c24_79, %c0_80] : memref<288x256xf32, #tpu.memory_space<vmem>>, vector<8x256xf32>
    tpu.vector_store %arg38[%c24_79, %c0_80], %112 {strides = array<i32>} : memref<288x256xf32, #tpu.memory_space<vmem>>, vector<8x256xf32>,
    %c0_81 = arith.constant 0 : index
    %c17_82 = arith.constant 17 : index
    %114 = vector.load %arg37[%c0_81, %c17_82] : memref<32x290xf32, #tpu.memory_space<vmem>>, vector<8x256xf32>
    %c32_83 = arith.constant 32 : index
    %c0_84 = arith.constant 0 : index
    %115 = vector.load %arg38[%c32_83, %c0_84] : memref<288x256xf32, #tpu.memory_space<vmem>>, vector<8x256xf32>
    tpu.vector_store %arg38[%c32_83, %c0_84], %114 {strides = array<i32>} : memref<288x256xf32, #tpu.memory_space<vmem>>, vector<8x256xf32>,
    %c0_85 = arith.constant 0 : index
    %c18_86 = arith.constant 18 : index
    %116 = vector.load %arg37[%c0_85, %c18_86] : memref<32x290xf32, #tpu.memory_space<vmem>>, vector<8x256xf32>
    %117 = arith.mulf %116, %102 : vector<8x256xf32>
    %c40_87 = arith.constant 40 : index
    %c0_88 = arith.constant 0 : index
    %118 = vector.load %arg38[%c40_87, %c0_88] : memref<288x256xf32, #tpu.memory_space<vmem>>, vector<8x256xf32>
    tpu.vector_store %arg38[%c40_87, %c0_88], %117 {strides = array<i32>} : memref<288x256xf32, #tpu.memory_space<vmem>>, vector<8x256xf32>,
    %c0_89 = arith.constant 0 : index
    %c32_90 = arith.constant 32 : index
    %119 = vector.load %arg37[%c0_89, %c32_90] : memref<32x290xf32, #tpu.memory_space<vmem>>, vector<8x256xf32>
    %120 = arith.mulf %119, %98 : vector<8x256xf32>
    %c48_91 = arith.constant 48 : index
    %c0_92 = arith.constant 0 : index
    %121 = vector.load %arg38[%c48_91, %c0_92] : memref<288x256xf32, #tpu.memory_space<vmem>>, vector<8x256xf32>
    tpu.vector_store %arg38[%c48_91, %c0_92], %120 {strides = array<i32>} : memref<288x256xf32, #tpu.memory_space<vmem>>, vector<8x256xf32>,
    %c0_93 = arith.constant 0 : index
    %c33_94 = arith.constant 33 : index
    %122 = vector.load %arg37[%c0_93, %c33_94] : memref<32x290xf32, #tpu.memory_space<vmem>>, vector<8x256xf32>
    %c56_95 = arith.constant 56 : index
    %c0_96 = arith.constant 0 : index
    %123 = vector.load %arg38[%c56_95, %c0_96] : memref<288x256xf32, #tpu.memory_space<vmem>>, vector<8x256xf32>
    tpu.vector_store %arg38[%c56_95, %c0_96], %122 {strides = array<i32>} : memref<288x256xf32, #tpu.memory_space<vmem>>, vector<8x256xf32>,
    %c0_97 = arith.constant 0 : index
    %c34_98 = arith.constant 34 : index
    %124 = vector.load %arg37[%c0_97, %c34_98] : memref<32x290xf32, #tpu.memory_space<vmem>>, vector<8x256xf32>
    %125 = arith.mulf %124, %102 : vector<8x256xf32>
    %c64_99 = arith.constant 64 : index
    %c0_100 = arith.constant 0 : index
    %126 = vector.load %arg38[%c64_99, %c0_100] : memref<288x256xf32, #tpu.memory_space<vmem>>, vector<8x256xf32>
    tpu.vector_store %arg38[%c64_99, %c0_100], %125 {strides = array<i32>} : memref<288x256xf32, #tpu.memory_space<vmem>>, vector<8x256xf32>,
    %c0_101 = arith.constant 0 : index
    %c0_102 = arith.constant 0 : index
    %127 = vector.load %arg5[%c0_101, %c0_102] : memref<8x72xf32, #tpu.memory_space<vmem>>, vector<8x72xf32>
    %c0_103 = arith.constant 0 : index
    %c0_104 = arith.constant 0 : index
    %128 = vector.load %arg38[%c0_103, %c0_104] : memref<288x256xf32, #tpu.memory_space<vmem>>, vector<72x256xf32>
    %cst_105 = arith.constant dense<0.000000e+00> : vector<8x256xf32>
    %129 = tpu.matmul %127, %128, %cst_105 {dimension_numbers = #tpu.dot_dimension_numbers<[1], [0], [0], [1], [0, 0, 1, 1], [], []>} : vector<8x72xf32>, vector<72x256xf32>, vector<8x256xf32> -> vector<8x256xf32>
    %c0_106 = arith.constant 0 : index
    %c0_107 = arith.constant 0 : index
    %130 = vector.load %arg18[%c0_106, %c0_107] : memref<8x1xf32, #tpu.memory_space<vmem>>, vector<8x1xf32>
    %131 = vector.broadcast %130 : vector<8x1xf32> to vector<8x256xf32>
    %132 = arith.addf %129, %131 : vector<8x256xf32>
    %c0_108 = arith.constant 0 : index
    %c0_109 = arith.constant 0 : index
    %c256 = arith.constant 256 : index
    %133 = vector.load %arg34[%c0_108, %c0_109, %c256] : memref<1x8x512xf32, #tpu.memory_space<vmem>>, vector<1x8x256xf32>
    %134 = vector.shape_cast %133 : vector<1x8x256xf32> to vector<8x256xf32>
    %135 = vector.shape_cast %132 : vector<8x256xf32> to vector<1x8x256xf32>
    tpu.vector_store %arg34[%c0_108, %c0_109, %c256], %135 {strides = array<i32>} : memref<1x8x512xf32, #tpu.memory_space<vmem>>, vector<1x8x256xf32>,
    %cst_110 = arith.constant 0.000000e+00 : f32
    %136 = vector.broadcast %cst_110 : f32 to vector<8x256xf32>
    %137 = arith.maximumf %132, %136 : vector<8x256xf32>
    %c0_111 = arith.constant 0 : index
    %c0_112 = arith.constant 0 : index
    %138 = vector.load %arg39[%c0_111, %c0_112] : memref<32x320xf32, #tpu.memory_space<vmem>>, vector<8x256xf32>
    tpu.vector_store %arg39[%c0_111, %c0_112], %137 {strides = array<i32>} : memref<32x320xf32, #tpu.memory_space<vmem>>, vector<8x256xf32>,
    %c0_113 = arith.constant 0 : index
    %c0_114 = arith.constant 0 : index
    %139 = vector.load %arg30[%c0_113, %c0_114] : memref<16x8xf32, #tpu.memory_space<vmem>>, vector<16x8xf32>
    %c0_115 = arith.constant 0 : index
    %c0_116 = arith.constant 0 : index
    %140 = vector.load %arg39[%c0_115, %c0_116] : memref<32x320xf32, #tpu.memory_space<vmem>>, vector<8x16xf32>
    %c0_117 = arith.constant 0 : index
    %c16_118 = arith.constant 16 : index
    %141 = vector.load %arg39[%c0_117, %c16_118] : memref<32x320xf32, #tpu.memory_space<vmem>>, vector<8x16xf32>
    %142 = arith.addf %140, %141 : vector<8x16xf32>
    %cst_119 = arith.constant dense<0.000000e+00> : vector<8x8xf32>
    %143 = tpu.matmul %142, %139, %cst_119 {dimension_numbers = #tpu.dot_dimension_numbers<[1], [0], [0], [1], [0, 0, 1, 1], [], []>} : vector<8x16xf32>, vector<16x8xf32>, vector<8x8xf32> -> vector<8x8xf32>
    %c0_120 = arith.constant 0 : index
    %c256_121 = arith.constant 256 : index
    %144 = vector.load %arg39[%c0_120, %c256_121] : memref<32x320xf32, #tpu.memory_space<vmem>>, vector<8x8xf32>
    tpu.vector_store %arg39[%c0_120, %c256_121], %143 {strides = array<i32>} : memref<32x320xf32, #tpu.memory_space<vmem>>, vector<8x8xf32>,
    %c0_122 = arith.constant 0 : index
    %c32_123 = arith.constant 32 : index
    %145 = vector.load %arg39[%c0_122, %c32_123] : memref<32x320xf32, #tpu.memory_space<vmem>>, vector<8x16xf32>
    %c0_124 = arith.constant 0 : index
    %c48_125 = arith.constant 48 : index
    %146 = vector.load %arg39[%c0_124, %c48_125] : memref<32x320xf32, #tpu.memory_space<vmem>>, vector<8x16xf32>
    %147 = arith.addf %145, %146 : vector<8x16xf32>
    %cst_126 = arith.constant dense<0.000000e+00> : vector<8x8xf32>
    %148 = tpu.matmul %147, %139, %cst_126 {dimension_numbers = #tpu.dot_dimension_numbers<[1], [0], [0], [1], [0, 0, 1, 1], [], []>} : vector<8x16xf32>, vector<16x8xf32>, vector<8x8xf32> -> vector<8x8xf32>
    %c0_127 = arith.constant 0 : index
    %c264 = arith.constant 264 : index
    %149 = vector.load %arg39[%c0_127, %c264] : memref<32x320xf32, #tpu.memory_space<vmem>>, vector<8x8xf32>
    tpu.vector_store %arg39[%c0_127, %c264], %148 {strides = array<i32>} : memref<32x320xf32, #tpu.memory_space<vmem>>, vector<8x8xf32>,
    %c0_128 = arith.constant 0 : index
    %c64_129 = arith.constant 64 : index
    %150 = vector.load %arg39[%c0_128, %c64_129] : memref<32x320xf32, #tpu.memory_space<vmem>>, vector<8x16xf32>
    %c0_130 = arith.constant 0 : index
    %c80 = arith.constant 80 : index
    %151 = vector.load %arg39[%c0_130, %c80] : memref<32x320xf32, #tpu.memory_space<vmem>>, vector<8x16xf32>
    %152 = arith.addf %150, %151 : vector<8x16xf32>
    %cst_131 = arith.constant dense<0.000000e+00> : vector<8x8xf32>
    %153 = tpu.matmul %152, %139, %cst_131 {dimension_numbers = #tpu.dot_dimension_numbers<[1], [0], [0], [1], [0, 0, 1, 1], [], []>} : vector<8x16xf32>, vector<16x8xf32>, vector<8x8xf32> -> vector<8x8xf32>
    %c0_132 = arith.constant 0 : index
    %c272 = arith.constant 272 : index
    %154 = vector.load %arg39[%c0_132, %c272] : memref<32x320xf32, #tpu.memory_space<vmem>>, vector<8x8xf32>
    tpu.vector_store %arg39[%c0_132, %c272], %153 {strides = array<i32>} : memref<32x320xf32, #tpu.memory_space<vmem>>, vector<8x8xf32>,
    %c0_133 = arith.constant 0 : index
    %c96 = arith.constant 96 : index
    %155 = vector.load %arg39[%c0_133, %c96] : memref<32x320xf32, #tpu.memory_space<vmem>>, vector<8x16xf32>
    %c0_134 = arith.constant 0 : index
    %c112 = arith.constant 112 : index
    %156 = vector.load %arg39[%c0_134, %c112] : memref<32x320xf32, #tpu.memory_space<vmem>>, vector<8x16xf32>
    %157 = arith.addf %155, %156 : vector<8x16xf32>
    %cst_135 = arith.constant dense<0.000000e+00> : vector<8x8xf32>
    %158 = tpu.matmul %157, %139, %cst_135 {dimension_numbers = #tpu.dot_dimension_numbers<[1], [0], [0], [1], [0, 0, 1, 1], [], []>} : vector<8x16xf32>, vector<16x8xf32>, vector<8x8xf32> -> vector<8x8xf32>
    %c0_136 = arith.constant 0 : index
    %c280 = arith.constant 280 : index
    %159 = vector.load %arg39[%c0_136, %c280] : memref<32x320xf32, #tpu.memory_space<vmem>>, vector<8x8xf32>
    tpu.vector_store %arg39[%c0_136, %c280], %158 {strides = array<i32>} : memref<32x320xf32, #tpu.memory_space<vmem>>, vector<8x8xf32>,
    %c0_137 = arith.constant 0 : index
    %c128 = arith.constant 128 : index
    %160 = vector.load %arg39[%c0_137, %c128] : memref<32x320xf32, #tpu.memory_space<vmem>>, vector<8x16xf32>
    %c0_138 = arith.constant 0 : index
    %c144 = arith.constant 144 : index
    %161 = vector.load %arg39[%c0_138, %c144] : memref<32x320xf32, #tpu.memory_space<vmem>>, vector<8x16xf32>
    %162 = arith.addf %160, %161 : vector<8x16xf32>
    %cst_139 = arith.constant dense<0.000000e+00> : vector<8x8xf32>
    %163 = tpu.matmul %162, %139, %cst_139 {dimension_numbers = #tpu.dot_dimension_numbers<[1], [0], [0], [1], [0, 0, 1, 1], [], []>} : vector<8x16xf32>, vector<16x8xf32>, vector<8x8xf32> -> vector<8x8xf32>
    %c0_140 = arith.constant 0 : index
    %c288 = arith.constant 288 : index
    %164 = vector.load %arg39[%c0_140, %c288] : memref<32x320xf32, #tpu.memory_space<vmem>>, vector<8x8xf32>
    tpu.vector_store %arg39[%c0_140, %c288], %163 {strides = array<i32>} : memref<32x320xf32, #tpu.memory_space<vmem>>, vector<8x8xf32>,
    %c0_141 = arith.constant 0 : index
    %c160 = arith.constant 160 : index
    %165 = vector.load %arg39[%c0_141, %c160] : memref<32x320xf32, #tpu.memory_space<vmem>>, vector<8x16xf32>
    %c0_142 = arith.constant 0 : index
    %c176 = arith.constant 176 : index
    %166 = vector.load %arg39[%c0_142, %c176] : memref<32x320xf32, #tpu.memory_space<vmem>>, vector<8x16xf32>
    %167 = arith.addf %165, %166 : vector<8x16xf32>
    %cst_143 = arith.constant dense<0.000000e+00> : vector<8x8xf32>
    %168 = tpu.matmul %167, %139, %cst_143 {dimension_numbers = #tpu.dot_dimension_numbers<[1], [0], [0], [1], [0, 0, 1, 1], [], []>} : vector<8x16xf32>, vector<16x8xf32>, vector<8x8xf32> -> vector<8x8xf32>
    %c0_144 = arith.constant 0 : index
    %c296 = arith.constant 296 : index
    %169 = vector.load %arg39[%c0_144, %c296] : memref<32x320xf32, #tpu.memory_space<vmem>>, vector<8x8xf32>
    tpu.vector_store %arg39[%c0_144, %c296], %168 {strides = array<i32>} : memref<32x320xf32, #tpu.memory_space<vmem>>, vector<8x8xf32>,
    %c0_145 = arith.constant 0 : index
    %c192 = arith.constant 192 : index
    %170 = vector.load %arg39[%c0_145, %c192] : memref<32x320xf32, #tpu.memory_space<vmem>>, vector<8x16xf32>
    %c0_146 = arith.constant 0 : index
    %c208 = arith.constant 208 : index
    %171 = vector.load %arg39[%c0_146, %c208] : memref<32x320xf32, #tpu.memory_space<vmem>>, vector<8x16xf32>
    %172 = arith.addf %170, %171 : vector<8x16xf32>
    %cst_147 = arith.constant dense<0.000000e+00> : vector<8x8xf32>
    %173 = tpu.matmul %172, %139, %cst_147 {dimension_numbers = #tpu.dot_dimension_numbers<[1], [0], [0], [1], [0, 0, 1, 1], [], []>} : vector<8x16xf32>, vector<16x8xf32>, vector<8x8xf32> -> vector<8x8xf32>
    %c0_148 = arith.constant 0 : index
    %c304 = arith.constant 304 : index
    %174 = vector.load %arg39[%c0_148, %c304] : memref<32x320xf32, #tpu.memory_space<vmem>>, vector<8x8xf32>
    tpu.vector_store %arg39[%c0_148, %c304], %173 {strides = array<i32>} : memref<32x320xf32, #tpu.memory_space<vmem>>, vector<8x8xf32>,
    %c0_149 = arith.constant 0 : index
    %c224 = arith.constant 224 : index
    %175 = vector.load %arg39[%c0_149, %c224] : memref<32x320xf32, #tpu.memory_space<vmem>>, vector<8x16xf32>
    %c0_150 = arith.constant 0 : index
    %c240 = arith.constant 240 : index
    %176 = vector.load %arg39[%c0_150, %c240] : memref<32x320xf32, #tpu.memory_space<vmem>>, vector<8x16xf32>
    %177 = arith.addf %175, %176 : vector<8x16xf32>
    %cst_151 = arith.constant dense<0.000000e+00> : vector<8x8xf32>
    %178 = tpu.matmul %177, %139, %cst_151 {dimension_numbers = #tpu.dot_dimension_numbers<[1], [0], [0], [1], [0, 0, 1, 1], [], []>} : vector<8x16xf32>, vector<16x8xf32>, vector<8x8xf32> -> vector<8x8xf32>
    %c0_152 = arith.constant 0 : index
    %c312 = arith.constant 312 : index
    %179 = vector.load %arg39[%c0_152, %c312] : memref<32x320xf32, #tpu.memory_space<vmem>>, vector<8x8xf32>
    tpu.vector_store %arg39[%c0_152, %c312], %178 {strides = array<i32>} : memref<32x320xf32, #tpu.memory_space<vmem>>, vector<8x8xf32>,
    %c0_153 = arith.constant 0 : index
    %c256_154 = arith.constant 256 : index
    %180 = vector.load %arg39[%c0_153, %c256_154] : memref<32x320xf32, #tpu.memory_space<vmem>>, vector<8x64xf32>
    %cst_155 = arith.constant 0.000000e+00 : f32
    %181 = vector.broadcast %cst_155 : f32 to vector<8x9xf32>
    %c0_156 = arith.constant 0 : index
    %c0_157 = arith.constant 0 : index
    %182 = vector.load %arg37[%c0_156, %c0_157] : memref<32x290xf32, #tpu.memory_space<vmem>>, vector<8x9xf32>
    tpu.vector_store %arg37[%c0_156, %c0_157], %181 {strides = array<i32>} : memref<32x290xf32, #tpu.memory_space<vmem>>, vector<8x9xf32>,
    %cst_158 = arith.constant 0.000000e+00 : f32
    %183 = vector.broadcast %cst_158 : f32 to vector<8x9xf32>
    %c0_159 = arith.constant 0 : index
    %c73 = arith.constant 73 : index
    %184 = vector.load %arg37[%c0_159, %c73] : memref<32x290xf32, #tpu.memory_space<vmem>>, vector<8x9xf32>
    tpu.vector_store %arg37[%c0_159, %c73], %183 {strides = array<i32>} : memref<32x290xf32, #tpu.memory_space<vmem>>, vector<8x9xf32>,
    %c0_160 = arith.constant 0 : index
    %c9 = arith.constant 9 : index
    %185 = vector.load %arg37[%c0_160, %c9] : memref<32x290xf32, #tpu.memory_space<vmem>>, vector<8x64xf32>
    tpu.vector_store %arg37[%c0_160, %c9], %180 {strides = array<i32>} : memref<32x290xf32, #tpu.memory_space<vmem>>, vector<8x64xf32>,
    %186 = tpu.iota {dimensions = array<i32: 1>} : vector<8x64xi32>
    %c8_i32 = arith.constant 8 : i32
    %c0_i32_161 = arith.constant 0 : i32
    %187 = arith.cmpi eq, %c8_i32, %c0_i32_161 : i32
    %c1_i32_162 = arith.constant 1 : i32
    %188 = arith.select %187, %c1_i32_162, %c8_i32 : i32
    %189 = vector.broadcast %188 : i32 to vector<8x64xi32>
    %190 = arith.remsi %186, %189 : vector<8x64xi32>
    %c0_i32_163 = arith.constant 0 : i32
    %191 = vector.broadcast %c0_i32_163 : i32 to vector<8x64xi32>
    %192 = arith.cmpi ne, %190, %191 : vector<8x64xi32>
    %c0_i32_164 = arith.constant 0 : i32
    %193 = vector.broadcast %c0_i32_164 : i32 to vector<8x64xi32>
    %194 = arith.cmpi slt, %190, %193 : vector<8x64xi32>
    %c0_i32_165 = arith.constant 0 : i32
    %195 = arith.cmpi slt, %188, %c0_i32_165 : i32
    %196 = vector.broadcast %195 : i1 to vector<8x64xi1>
    %197 = vector.broadcast %196 : vector<8x64xi1> to vector<8x64xi1>
    %198 = arith.xori %194, %197 : vector<8x64xi1>
    %199 = arith.andi %198, %192 : vector<8x64xi1>
    %200 = vector.broadcast %188 : i32 to vector<8x64xi32>
    %201 = arith.addi %190, %200 : vector<8x64xi32>
    %202 = arith.select %199, %201, %190 : vector<8x64xi1>, vector<8x64xi32>
    %c0_i32_166 = arith.constant 0 : i32
    %203 = vector.broadcast %c0_i32_166 : i32 to vector<8x64xi32>
    %204 = arith.cmpi ne, %202, %203 : vector<8x64xi32>
    %205 = arith.extui %204 : vector<8x64xi1> to vector<8x64xi32>
    %206 = arith.sitofp %205 : vector<8x64xi32> to vector<8x64xf32>
    %c7_i32 = arith.constant 7 : i32
    %207 = vector.broadcast %c7_i32 : i32 to vector<8x64xi32>
    %208 = arith.cmpi ne, %202, %207 : vector<8x64xi32>
    %209 = arith.extui %208 : vector<8x64xi1> to vector<8x64xi32>
    %210 = arith.sitofp %209 : vector<8x64xi32> to vector<8x64xf32>
    %c0_167 = arith.constant 0 : index
    %c0_168 = arith.constant 0 : index
    %211 = vector.load %arg37[%c0_167, %c0_168] : memref<32x290xf32, #tpu.memory_space<vmem>>, vector<8x64xf32>
    %212 = arith.mulf %211, %206 : vector<8x64xf32>
    %c0_169 = arith.constant 0 : index
    %c0_170 = arith.constant 0 : index
    %213 = vector.load %arg38[%c0_169, %c0_170] : memref<288x256xf32, #tpu.memory_space<vmem>>, vector<8x64xf32>
    tpu.vector_store %arg38[%c0_169, %c0_170], %212 {strides = array<i32>} : memref<288x256xf32, #tpu.memory_space<vmem>>, vector<8x64xf32>,
    %c0_171 = arith.constant 0 : index
    %c1_172 = arith.constant 1 : index
    %214 = vector.load %arg37[%c0_171, %c1_172] : memref<32x290xf32, #tpu.memory_space<vmem>>, vector<8x64xf32>
    %c8_173 = arith.constant 8 : index
    %c0_174 = arith.constant 0 : index
    %215 = vector.load %arg38[%c8_173, %c0_174] : memref<288x256xf32, #tpu.memory_space<vmem>>, vector<8x64xf32>
    tpu.vector_store %arg38[%c8_173, %c0_174], %214 {strides = array<i32>} : memref<288x256xf32, #tpu.memory_space<vmem>>, vector<8x64xf32>,
    %c0_175 = arith.constant 0 : index
    %c2_176 = arith.constant 2 : index
    %216 = vector.load %arg37[%c0_175, %c2_176] : memref<32x290xf32, #tpu.memory_space<vmem>>, vector<8x64xf32>
    %217 = arith.mulf %216, %210 : vector<8x64xf32>
    %c16_177 = arith.constant 16 : index
    %c0_178 = arith.constant 0 : index
    %218 = vector.load %arg38[%c16_177, %c0_178] : memref<288x256xf32, #tpu.memory_space<vmem>>, vector<8x64xf32>
    tpu.vector_store %arg38[%c16_177, %c0_178], %217 {strides = array<i32>} : memref<288x256xf32, #tpu.memory_space<vmem>>, vector<8x64xf32>,
    %c0_179 = arith.constant 0 : index
    %c8_180 = arith.constant 8 : index
    %219 = vector.load %arg37[%c0_179, %c8_180] : memref<32x290xf32, #tpu.memory_space<vmem>>, vector<8x64xf32>
    %220 = arith.mulf %219, %206 : vector<8x64xf32>
    %c24_181 = arith.constant 24 : index
    %c0_182 = arith.constant 0 : index
    %221 = vector.load %arg38[%c24_181, %c0_182] : memref<288x256xf32, #tpu.memory_space<vmem>>, vector<8x64xf32>
    tpu.vector_store %arg38[%c24_181, %c0_182], %220 {strides = array<i32>} : memref<288x256xf32, #tpu.memory_space<vmem>>, vector<8x64xf32>,
    %c0_183 = arith.constant 0 : index
    %c9_184 = arith.constant 9 : index
    %222 = vector.load %arg37[%c0_183, %c9_184] : memref<32x290xf32, #tpu.memory_space<vmem>>, vector<8x64xf32>
    %c32_185 = arith.constant 32 : index
    %c0_186 = arith.constant 0 : index
    %223 = vector.load %arg38[%c32_185, %c0_186] : memref<288x256xf32, #tpu.memory_space<vmem>>, vector<8x64xf32>
    tpu.vector_store %arg38[%c32_185, %c0_186], %222 {strides = array<i32>} : memref<288x256xf32, #tpu.memory_space<vmem>>, vector<8x64xf32>,
    %c0_187 = arith.constant 0 : index
    %c10 = arith.constant 10 : index
    %224 = vector.load %arg37[%c0_187, %c10] : memref<32x290xf32, #tpu.memory_space<vmem>>, vector<8x64xf32>
    %225 = arith.mulf %224, %210 : vector<8x64xf32>
    %c40_188 = arith.constant 40 : index
    %c0_189 = arith.constant 0 : index
    %226 = vector.load %arg38[%c40_188, %c0_189] : memref<288x256xf32, #tpu.memory_space<vmem>>, vector<8x64xf32>
    tpu.vector_store %arg38[%c40_188, %c0_189], %225 {strides = array<i32>} : memref<288x256xf32, #tpu.memory_space<vmem>>, vector<8x64xf32>,
    %c0_190 = arith.constant 0 : index
    %c16_191 = arith.constant 16 : index
    %227 = vector.load %arg37[%c0_190, %c16_191] : memref<32x290xf32, #tpu.memory_space<vmem>>, vector<8x64xf32>
    %228 = arith.mulf %227, %206 : vector<8x64xf32>
    %c48_192 = arith.constant 48 : index
    %c0_193 = arith.constant 0 : index
    %229 = vector.load %arg38[%c48_192, %c0_193] : memref<288x256xf32, #tpu.memory_space<vmem>>, vector<8x64xf32>
    tpu.vector_store %arg38[%c48_192, %c0_193], %228 {strides = array<i32>} : memref<288x256xf32, #tpu.memory_space<vmem>>, vector<8x64xf32>,
    %c0_194 = arith.constant 0 : index
    %c17_195 = arith.constant 17 : index
    %230 = vector.load %arg37[%c0_194, %c17_195] : memref<32x290xf32, #tpu.memory_space<vmem>>, vector<8x64xf32>
    %c56_196 = arith.constant 56 : index
    %c0_197 = arith.constant 0 : index
    %231 = vector.load %arg38[%c56_196, %c0_197] : memref<288x256xf32, #tpu.memory_space<vmem>>, vector<8x64xf32>
    tpu.vector_store %arg38[%c56_196, %c0_197], %230 {strides = array<i32>} : memref<288x256xf32, #tpu.memory_space<vmem>>, vector<8x64xf32>,
    %c0_198 = arith.constant 0 : index
    %c18_199 = arith.constant 18 : index
    %232 = vector.load %arg37[%c0_198, %c18_199] : memref<32x290xf32, #tpu.memory_space<vmem>>, vector<8x64xf32>
    %233 = arith.mulf %232, %210 : vector<8x64xf32>
    %c64_200 = arith.constant 64 : index
    %c0_201 = arith.constant 0 : index
    %234 = vector.load %arg38[%c64_200, %c0_201] : memref<288x256xf32, #tpu.memory_space<vmem>>, vector<8x64xf32>
    tpu.vector_store %arg38[%c64_200, %c0_201], %233 {strides = array<i32>} : memref<288x256xf32, #tpu.memory_space<vmem>>, vector<8x64xf32>,
    %c0_202 = arith.constant 0 : index
    %c0_203 = arith.constant 0 : index
    %235 = vector.load %arg6[%c0_202, %c0_203] : memref<16x72xf32, #tpu.memory_space<vmem>>, vector<16x72xf32>
    %c0_204 = arith.constant 0 : index
    %c0_205 = arith.constant 0 : index
    %236 = vector.load %arg38[%c0_204, %c0_205] : memref<288x256xf32, #tpu.memory_space<vmem>>, vector<72x64xf32>
    %cst_206 = arith.constant dense<0.000000e+00> : vector<16x64xf32>
    %237 = tpu.matmul %235, %236, %cst_206 {dimension_numbers = #tpu.dot_dimension_numbers<[1], [0], [0], [1], [0, 0, 1, 1], [], []>} : vector<16x72xf32>, vector<72x64xf32>, vector<16x64xf32> -> vector<16x64xf32>
    %c0_207 = arith.constant 0 : index
    %c0_208 = arith.constant 0 : index
    %238 = vector.load %arg19[%c0_207, %c0_208] : memref<16x1xf32, #tpu.memory_space<vmem>>, vector<16x1xf32>
    %239 = vector.broadcast %238 : vector<16x1xf32> to vector<16x64xf32>
    %240 = arith.addf %237, %239 : vector<16x64xf32>
    %c0_209 = arith.constant 0 : index
    %c0_210 = arith.constant 0 : index
    %c0_211 = arith.constant 0 : index
    %241 = vector.load %arg35[%c0_209, %c0_210, %c0_211] : memref<1x16x128xf32, #tpu.memory_space<vmem>>, vector<1x16x64xf32>
    %242 = vector.shape_cast %241 : vector<1x16x64xf32> to vector<16x64xf32>
    %243 = vector.shape_cast %240 : vector<16x64xf32> to vector<1x16x64xf32>
    tpu.vector_store %arg35[%c0_209, %c0_210, %c0_211], %243 {strides = array<i32>} : memref<1x16x128xf32, #tpu.memory_space<vmem>>, vector<1x16x64xf32>,
    %cst_212 = arith.constant 0.000000e+00 : f32
    %244 = vector.broadcast %cst_212 : f32 to vector<16x64xf32>
    %245 = arith.maximumf %240, %244 : vector<16x64xf32>
    %cst_213 = arith.constant 0.000000e+00 : f32
    %246 = vector.broadcast %cst_213 : f32 to vector<16x9xf32>
    %c0_214 = arith.constant 0 : index
    %c0_215 = arith.constant 0 : index
    %247 = vector.load %arg37[%c0_214, %c0_215] : memref<32x290xf32, #tpu.memory_space<vmem>>, vector<16x9xf32>
    tpu.vector_store %arg37[%c0_214, %c0_215], %246 {strides = array<i32>} : memref<32x290xf32, #tpu.memory_space<vmem>>, vector<16x9xf32>,
    %cst_216 = arith.constant 0.000000e+00 : f32
    %248 = vector.broadcast %cst_216 : f32 to vector<16x9xf32>
    %c0_217 = arith.constant 0 : index
    %c73_218 = arith.constant 73 : index
    %249 = vector.load %arg37[%c0_217, %c73_218] : memref<32x290xf32, #tpu.memory_space<vmem>>, vector<16x9xf32>
    tpu.vector_store %arg37[%c0_217, %c73_218], %248 {strides = array<i32>} : memref<32x290xf32, #tpu.memory_space<vmem>>, vector<16x9xf32>,
    %c0_219 = arith.constant 0 : index
    %c9_220 = arith.constant 9 : index
    %250 = vector.load %arg37[%c0_219, %c9_220] : memref<32x290xf32, #tpu.memory_space<vmem>>, vector<16x64xf32>
    tpu.vector_store %arg37[%c0_219, %c9_220], %245 {strides = array<i32>} : memref<32x290xf32, #tpu.memory_space<vmem>>, vector<16x64xf32>,
    %251 = tpu.iota {dimensions = array<i32: 1>} : vector<16x64xi32>
    %c8_i32_221 = arith.constant 8 : i32
    %c0_i32_222 = arith.constant 0 : i32
    %252 = arith.cmpi eq, %c8_i32_221, %c0_i32_222 : i32
    %c1_i32_223 = arith.constant 1 : i32
    %253 = arith.select %252, %c1_i32_223, %c8_i32_221 : i32
    %254 = vector.broadcast %253 : i32 to vector<16x64xi32>
    %255 = arith.remsi %251, %254 : vector<16x64xi32>
    %c0_i32_224 = arith.constant 0 : i32
    %256 = vector.broadcast %c0_i32_224 : i32 to vector<16x64xi32>
    %257 = arith.cmpi ne, %255, %256 : vector<16x64xi32>
    %c0_i32_225 = arith.constant 0 : i32
    %258 = vector.broadcast %c0_i32_225 : i32 to vector<16x64xi32>
    %259 = arith.cmpi slt, %255, %258 : vector<16x64xi32>
    %c0_i32_226 = arith.constant 0 : i32
    %260 = arith.cmpi slt, %253, %c0_i32_226 : i32
    %261 = vector.broadcast %260 : i1 to vector<16x64xi1>
    %262 = vector.broadcast %261 : vector<16x64xi1> to vector<16x64xi1>
    %263 = arith.xori %259, %262 : vector<16x64xi1>
    %264 = arith.andi %263, %257 : vector<16x64xi1>
    %265 = vector.broadcast %253 : i32 to vector<16x64xi32>
    %266 = arith.addi %255, %265 : vector<16x64xi32>
    %267 = arith.select %264, %266, %255 : vector<16x64xi1>, vector<16x64xi32>
    %c0_i32_227 = arith.constant 0 : i32
    %268 = vector.broadcast %c0_i32_227 : i32 to vector<16x64xi32>
    %269 = arith.cmpi ne, %267, %268 : vector<16x64xi32>
    %270 = arith.extui %269 : vector<16x64xi1> to vector<16x64xi32>
    %271 = arith.sitofp %270 : vector<16x64xi32> to vector<16x64xf32>
    %c7_i32_228 = arith.constant 7 : i32
    %272 = vector.broadcast %c7_i32_228 : i32 to vector<16x64xi32>
    %273 = arith.cmpi ne, %267, %272 : vector<16x64xi32>
    %274 = arith.extui %273 : vector<16x64xi1> to vector<16x64xi32>
    %275 = arith.sitofp %274 : vector<16x64xi32> to vector<16x64xf32>
    %c0_229 = arith.constant 0 : index
    %c0_230 = arith.constant 0 : index
    %276 = vector.load %arg37[%c0_229, %c0_230] : memref<32x290xf32, #tpu.memory_space<vmem>>, vector<16x64xf32>
    %277 = arith.mulf %276, %271 : vector<16x64xf32>
    %c0_231 = arith.constant 0 : index
    %c0_232 = arith.constant 0 : index
    %278 = vector.load %arg38[%c0_231, %c0_232] : memref<288x256xf32, #tpu.memory_space<vmem>>, vector<16x64xf32>
    tpu.vector_store %arg38[%c0_231, %c0_232], %277 {strides = array<i32>} : memref<288x256xf32, #tpu.memory_space<vmem>>, vector<16x64xf32>,
    %c0_233 = arith.constant 0 : index
    %c1_234 = arith.constant 1 : index
    %279 = vector.load %arg37[%c0_233, %c1_234] : memref<32x290xf32, #tpu.memory_space<vmem>>, vector<16x64xf32>
    %c16_235 = arith.constant 16 : index
    %c0_236 = arith.constant 0 : index
    %280 = vector.load %arg38[%c16_235, %c0_236] : memref<288x256xf32, #tpu.memory_space<vmem>>, vector<16x64xf32>
    tpu.vector_store %arg38[%c16_235, %c0_236], %279 {strides = array<i32>} : memref<288x256xf32, #tpu.memory_space<vmem>>, vector<16x64xf32>,
    %c0_237 = arith.constant 0 : index
    %c2_238 = arith.constant 2 : index
    %281 = vector.load %arg37[%c0_237, %c2_238] : memref<32x290xf32, #tpu.memory_space<vmem>>, vector<16x64xf32>
    %282 = arith.mulf %281, %275 : vector<16x64xf32>
    %c32_239 = arith.constant 32 : index
    %c0_240 = arith.constant 0 : index
    %283 = vector.load %arg38[%c32_239, %c0_240] : memref<288x256xf32, #tpu.memory_space<vmem>>, vector<16x64xf32>
    tpu.vector_store %arg38[%c32_239, %c0_240], %282 {strides = array<i32>} : memref<288x256xf32, #tpu.memory_space<vmem>>, vector<16x64xf32>,
    %c0_241 = arith.constant 0 : index
    %c8_242 = arith.constant 8 : index
    %284 = vector.load %arg37[%c0_241, %c8_242] : memref<32x290xf32, #tpu.memory_space<vmem>>, vector<16x64xf32>
    %285 = arith.mulf %284, %271 : vector<16x64xf32>
    %c48_243 = arith.constant 48 : index
    %c0_244 = arith.constant 0 : index
    %286 = vector.load %arg38[%c48_243, %c0_244] : memref<288x256xf32, #tpu.memory_space<vmem>>, vector<16x64xf32>
    tpu.vector_store %arg38[%c48_243, %c0_244], %285 {strides = array<i32>} : memref<288x256xf32, #tpu.memory_space<vmem>>, vector<16x64xf32>,
    %c0_245 = arith.constant 0 : index
    %c9_246 = arith.constant 9 : index
    %287 = vector.load %arg37[%c0_245, %c9_246] : memref<32x290xf32, #tpu.memory_space<vmem>>, vector<16x64xf32>
    %c64_247 = arith.constant 64 : index
    %c0_248 = arith.constant 0 : index
    %288 = vector.load %arg38[%c64_247, %c0_248] : memref<288x256xf32, #tpu.memory_space<vmem>>, vector<16x64xf32>
    tpu.vector_store %arg38[%c64_247, %c0_248], %287 {strides = array<i32>} : memref<288x256xf32, #tpu.memory_space<vmem>>, vector<16x64xf32>,
    %c0_249 = arith.constant 0 : index
    %c10_250 = arith.constant 10 : index
    %289 = vector.load %arg37[%c0_249, %c10_250] : memref<32x290xf32, #tpu.memory_space<vmem>>, vector<16x64xf32>
    %290 = arith.mulf %289, %275 : vector<16x64xf32>
    %c80_251 = arith.constant 80 : index
    %c0_252 = arith.constant 0 : index
    %291 = vector.load %arg38[%c80_251, %c0_252] : memref<288x256xf32, #tpu.memory_space<vmem>>, vector<16x64xf32>
    tpu.vector_store %arg38[%c80_251, %c0_252], %290 {strides = array<i32>} : memref<288x256xf32, #tpu.memory_space<vmem>>, vector<16x64xf32>,
    %c0_253 = arith.constant 0 : index
    %c16_254 = arith.constant 16 : index
    %292 = vector.load %arg37[%c0_253, %c16_254] : memref<32x290xf32, #tpu.memory_space<vmem>>, vector<16x64xf32>
    %293 = arith.mulf %292, %271 : vector<16x64xf32>
    %c96_255 = arith.constant 96 : index
    %c0_256 = arith.constant 0 : index
    %294 = vector.load %arg38[%c96_255, %c0_256] : memref<288x256xf32, #tpu.memory_space<vmem>>, vector<16x64xf32>
    tpu.vector_store %arg38[%c96_255, %c0_256], %293 {strides = array<i32>} : memref<288x256xf32, #tpu.memory_space<vmem>>, vector<16x64xf32>,
    %c0_257 = arith.constant 0 : index
    %c17_258 = arith.constant 17 : index
    %295 = vector.load %arg37[%c0_257, %c17_258] : memref<32x290xf32, #tpu.memory_space<vmem>>, vector<16x64xf32>
    %c112_259 = arith.constant 112 : index
    %c0_260 = arith.constant 0 : index
    %296 = vector.load %arg38[%c112_259, %c0_260] : memref<288x256xf32, #tpu.memory_space<vmem>>, vector<16x64xf32>
    tpu.vector_store %arg38[%c112_259, %c0_260], %295 {strides = array<i32>} : memref<288x256xf32, #tpu.memory_space<vmem>>, vector<16x64xf32>,
    %c0_261 = arith.constant 0 : index
    %c18_262 = arith.constant 18 : index
    %297 = vector.load %arg37[%c0_261, %c18_262] : memref<32x290xf32, #tpu.memory_space<vmem>>, vector<16x64xf32>
    %298 = arith.mulf %297, %275 : vector<16x64xf32>
    %c128_263 = arith.constant 128 : index
    %c0_264 = arith.constant 0 : index
    %299 = vector.load %arg38[%c128_263, %c0_264] : memref<288x256xf32, #tpu.memory_space<vmem>>, vector<16x64xf32>
    tpu.vector_store %arg38[%c128_263, %c0_264], %298 {strides = array<i32>} : memref<288x256xf32, #tpu.memory_space<vmem>>, vector<16x64xf32>,
    %c0_265 = arith.constant 0 : index
    %c0_266 = arith.constant 0 : index
    %300 = vector.load %arg7[%c0_265, %c0_266] : memref<16x144xf32, #tpu.memory_space<vmem>>, vector<16x144xf32>
    %c0_267 = arith.constant 0 : index
    %c0_268 = arith.constant 0 : index
    %301 = vector.load %arg38[%c0_267, %c0_268] : memref<288x256xf32, #tpu.memory_space<vmem>>, vector<144x64xf32>
    %cst_269 = arith.constant dense<0.000000e+00> : vector<16x64xf32>
    %302 = tpu.matmul %300, %301, %cst_269 {dimension_numbers = #tpu.dot_dimension_numbers<[1], [0], [0], [1], [0, 0, 1, 1], [], []>} : vector<16x144xf32>, vector<144x64xf32>, vector<16x64xf32> -> vector<16x64xf32>
    %c0_270 = arith.constant 0 : index
    %c0_271 = arith.constant 0 : index
    %303 = vector.load %arg20[%c0_270, %c0_271] : memref<16x1xf32, #tpu.memory_space<vmem>>, vector<16x1xf32>
    %304 = vector.broadcast %303 : vector<16x1xf32> to vector<16x64xf32>
    %305 = arith.addf %302, %304 : vector<16x64xf32>
    %c0_272 = arith.constant 0 : index
    %c0_273 = arith.constant 0 : index
    %c64_274 = arith.constant 64 : index
    %306 = vector.load %arg35[%c0_272, %c0_273, %c64_274] : memref<1x16x128xf32, #tpu.memory_space<vmem>>, vector<1x16x64xf32>
    %307 = vector.shape_cast %306 : vector<1x16x64xf32> to vector<16x64xf32>
    %308 = vector.shape_cast %305 : vector<16x64xf32> to vector<1x16x64xf32>
    tpu.vector_store %arg35[%c0_272, %c0_273, %c64_274], %308 {strides = array<i32>} : memref<1x16x128xf32, #tpu.memory_space<vmem>>, vector<1x16x64xf32>,
    %cst_275 = arith.constant 0.000000e+00 : f32
    %309 = vector.broadcast %cst_275 : f32 to vector<16x64xf32>
    %310 = arith.maximumf %305, %309 : vector<16x64xf32>
    %c0_276 = arith.constant 0 : index
    %c0_277 = arith.constant 0 : index
    %311 = vector.load %arg39[%c0_276, %c0_277] : memref<32x320xf32, #tpu.memory_space<vmem>>, vector<16x64xf32>
    tpu.vector_store %arg39[%c0_276, %c0_277], %310 {strides = array<i32>} : memref<32x320xf32, #tpu.memory_space<vmem>>, vector<16x64xf32>,
    %c0_278 = arith.constant 0 : index
    %c0_279 = arith.constant 0 : index
    %312 = vector.load %arg31[%c0_278, %c0_279] : memref<8x4xf32, #tpu.memory_space<vmem>>, vector<8x4xf32>
    %c0_280 = arith.constant 0 : index
    %c0_281 = arith.constant 0 : index
    %313 = vector.load %arg39[%c0_280, %c0_281] : memref<32x320xf32, #tpu.memory_space<vmem>>, vector<16x8xf32>
    %c0_282 = arith.constant 0 : index
    %c8_283 = arith.constant 8 : index
    %314 = vector.load %arg39[%c0_282, %c8_283] : memref<32x320xf32, #tpu.memory_space<vmem>>, vector<16x8xf32>
    %315 = arith.addf %313, %314 : vector<16x8xf32>
    %cst_284 = arith.constant dense<0.000000e+00> : vector<16x4xf32>
    %316 = tpu.matmul %315, %312, %cst_284 {dimension_numbers = #tpu.dot_dimension_numbers<[1], [0], [0], [1], [0, 0, 1, 1], [], []>} : vector<16x8xf32>, vector<8x4xf32>, vector<16x4xf32> -> vector<16x4xf32>
    %c0_285 = arith.constant 0 : index
    %c64_286 = arith.constant 64 : index
    %317 = vector.load %arg39[%c0_285, %c64_286] : memref<32x320xf32, #tpu.memory_space<vmem>>, vector<16x4xf32>
    tpu.vector_store %arg39[%c0_285, %c64_286], %316 {strides = array<i32>} : memref<32x320xf32, #tpu.memory_space<vmem>>, vector<16x4xf32>,
    %c0_287 = arith.constant 0 : index
    %c16_288 = arith.constant 16 : index
    %318 = vector.load %arg39[%c0_287, %c16_288] : memref<32x320xf32, #tpu.memory_space<vmem>>, vector<16x8xf32>
    %c0_289 = arith.constant 0 : index
    %c24_290 = arith.constant 24 : index
    %319 = vector.load %arg39[%c0_289, %c24_290] : memref<32x320xf32, #tpu.memory_space<vmem>>, vector<16x8xf32>
    %320 = arith.addf %318, %319 : vector<16x8xf32>
    %cst_291 = arith.constant dense<0.000000e+00> : vector<16x4xf32>
    %321 = tpu.matmul %320, %312, %cst_291 {dimension_numbers = #tpu.dot_dimension_numbers<[1], [0], [0], [1], [0, 0, 1, 1], [], []>} : vector<16x8xf32>, vector<8x4xf32>, vector<16x4xf32> -> vector<16x4xf32>
    %c0_292 = arith.constant 0 : index
    %c68 = arith.constant 68 : index
    %322 = vector.load %arg39[%c0_292, %c68] : memref<32x320xf32, #tpu.memory_space<vmem>>, vector<16x4xf32>
    tpu.vector_store %arg39[%c0_292, %c68], %321 {strides = array<i32>} : memref<32x320xf32, #tpu.memory_space<vmem>>, vector<16x4xf32>,
    %c0_293 = arith.constant 0 : index
    %c32_294 = arith.constant 32 : index
    %323 = vector.load %arg39[%c0_293, %c32_294] : memref<32x320xf32, #tpu.memory_space<vmem>>, vector<16x8xf32>
    %c0_295 = arith.constant 0 : index
    %c40_296 = arith.constant 40 : index
    %324 = vector.load %arg39[%c0_295, %c40_296] : memref<32x320xf32, #tpu.memory_space<vmem>>, vector<16x8xf32>
    %325 = arith.addf %323, %324 : vector<16x8xf32>
    %cst_297 = arith.constant dense<0.000000e+00> : vector<16x4xf32>
    %326 = tpu.matmul %325, %312, %cst_297 {dimension_numbers = #tpu.dot_dimension_numbers<[1], [0], [0], [1], [0, 0, 1, 1], [], []>} : vector<16x8xf32>, vector<8x4xf32>, vector<16x4xf32> -> vector<16x4xf32>
    %c0_298 = arith.constant 0 : index
    %c72 = arith.constant 72 : index
    %327 = vector.load %arg39[%c0_298, %c72] : memref<32x320xf32, #tpu.memory_space<vmem>>, vector<16x4xf32>
    tpu.vector_store %arg39[%c0_298, %c72], %326 {strides = array<i32>} : memref<32x320xf32, #tpu.memory_space<vmem>>, vector<16x4xf32>,
    %c0_299 = arith.constant 0 : index
    %c48_300 = arith.constant 48 : index
    %328 = vector.load %arg39[%c0_299, %c48_300] : memref<32x320xf32, #tpu.memory_space<vmem>>, vector<16x8xf32>
    %c0_301 = arith.constant 0 : index
    %c56_302 = arith.constant 56 : index
    %329 = vector.load %arg39[%c0_301, %c56_302] : memref<32x320xf32, #tpu.memory_space<vmem>>, vector<16x8xf32>
    %330 = arith.addf %328, %329 : vector<16x8xf32>
    %cst_303 = arith.constant dense<0.000000e+00> : vector<16x4xf32>
    %331 = tpu.matmul %330, %312, %cst_303 {dimension_numbers = #tpu.dot_dimension_numbers<[1], [0], [0], [1], [0, 0, 1, 1], [], []>} : vector<16x8xf32>, vector<8x4xf32>, vector<16x4xf32> -> vector<16x4xf32>
    %c0_304 = arith.constant 0 : index
    %c76 = arith.constant 76 : index
    %332 = vector.load %arg39[%c0_304, %c76] : memref<32x320xf32, #tpu.memory_space<vmem>>, vector<16x4xf32>
    tpu.vector_store %arg39[%c0_304, %c76], %331 {strides = array<i32>} : memref<32x320xf32, #tpu.memory_space<vmem>>, vector<16x4xf32>,
    %c0_305 = arith.constant 0 : index
    %c64_306 = arith.constant 64 : index
    %333 = vector.load %arg39[%c0_305, %c64_306] : memref<32x320xf32, #tpu.memory_space<vmem>>, vector<16x16xf32>
    %cst_307 = arith.constant 0.000000e+00 : f32
    %334 = vector.broadcast %cst_307 : f32 to vector<16x5xf32>
    %c0_308 = arith.constant 0 : index
    %c0_309 = arith.constant 0 : index
    %335 = vector.load %arg37[%c0_308, %c0_309] : memref<32x290xf32, #tpu.memory_space<vmem>>, vector<16x5xf32>
    tpu.vector_store %arg37[%c0_308, %c0_309], %334 {strides = array<i32>} : memref<32x290xf32, #tpu.memory_space<vmem>>, vector<16x5xf32>,
    %cst_310 = arith.constant 0.000000e+00 : f32
    %336 = vector.broadcast %cst_310 : f32 to vector<16x5xf32>
    %c0_311 = arith.constant 0 : index
    %c21 = arith.constant 21 : index
    %337 = vector.load %arg37[%c0_311, %c21] : memref<32x290xf32, #tpu.memory_space<vmem>>, vector<16x5xf32>
    tpu.vector_store %arg37[%c0_311, %c21], %336 {strides = array<i32>} : memref<32x290xf32, #tpu.memory_space<vmem>>, vector<16x5xf32>,
    %c0_312 = arith.constant 0 : index
    %c5 = arith.constant 5 : index
    %338 = vector.load %arg37[%c0_312, %c5] : memref<32x290xf32, #tpu.memory_space<vmem>>, vector<16x16xf32>
    tpu.vector_store %arg37[%c0_312, %c5], %333 {strides = array<i32>} : memref<32x290xf32, #tpu.memory_space<vmem>>, vector<16x16xf32>,
    %339 = tpu.iota {dimensions = array<i32: 1>} : vector<16x16xi32>
    %c4_i32 = arith.constant 4 : i32
    %c0_i32_313 = arith.constant 0 : i32
    %340 = arith.cmpi eq, %c4_i32, %c0_i32_313 : i32
    %c1_i32_314 = arith.constant 1 : i32
    %341 = arith.select %340, %c1_i32_314, %c4_i32 : i32
    %342 = vector.broadcast %341 : i32 to vector<16x16xi32>
    %343 = arith.remsi %339, %342 : vector<16x16xi32>
    %c0_i32_315 = arith.constant 0 : i32
    %344 = vector.broadcast %c0_i32_315 : i32 to vector<16x16xi32>
    %345 = arith.cmpi ne, %343, %344 : vector<16x16xi32>
    %c0_i32_316 = arith.constant 0 : i32
    %346 = vector.broadcast %c0_i32_316 : i32 to vector<16x16xi32>
    %347 = arith.cmpi slt, %343, %346 : vector<16x16xi32>
    %c0_i32_317 = arith.constant 0 : i32
    %348 = arith.cmpi slt, %341, %c0_i32_317 : i32
    %349 = vector.broadcast %348 : i1 to vector<16x16xi1>
    %350 = vector.broadcast %349 : vector<16x16xi1> to vector<16x16xi1>
    %351 = arith.xori %347, %350 : vector<16x16xi1>
    %352 = arith.andi %351, %345 : vector<16x16xi1>
    %353 = vector.broadcast %341 : i32 to vector<16x16xi32>
    %354 = arith.addi %343, %353 : vector<16x16xi32>
    %355 = arith.select %352, %354, %343 : vector<16x16xi1>, vector<16x16xi32>
    %c0_i32_318 = arith.constant 0 : i32
    %356 = vector.broadcast %c0_i32_318 : i32 to vector<16x16xi32>
    %357 = arith.cmpi ne, %355, %356 : vector<16x16xi32>
    %358 = arith.extui %357 : vector<16x16xi1> to vector<16x16xi32>
    %359 = arith.sitofp %358 : vector<16x16xi32> to vector<16x16xf32>
    %c3_i32 = arith.constant 3 : i32
    %360 = vector.broadcast %c3_i32 : i32 to vector<16x16xi32>
    %361 = arith.cmpi ne, %355, %360 : vector<16x16xi32>
    %362 = arith.extui %361 : vector<16x16xi1> to vector<16x16xi32>
    %363 = arith.sitofp %362 : vector<16x16xi32> to vector<16x16xf32>
    %c0_319 = arith.constant 0 : index
    %c0_320 = arith.constant 0 : index
    %364 = vector.load %arg37[%c0_319, %c0_320] : memref<32x290xf32, #tpu.memory_space<vmem>>, vector<16x16xf32>
    %365 = arith.mulf %364, %359 : vector<16x16xf32>
    %c0_321 = arith.constant 0 : index
    %c0_322 = arith.constant 0 : index
    %366 = vector.load %arg38[%c0_321, %c0_322] : memref<288x256xf32, #tpu.memory_space<vmem>>, vector<16x16xf32>
    tpu.vector_store %arg38[%c0_321, %c0_322], %365 {strides = array<i32>} : memref<288x256xf32, #tpu.memory_space<vmem>>, vector<16x16xf32>,
    %c0_323 = arith.constant 0 : index
    %c1_324 = arith.constant 1 : index
    %367 = vector.load %arg37[%c0_323, %c1_324] : memref<32x290xf32, #tpu.memory_space<vmem>>, vector<16x16xf32>
    %c16_325 = arith.constant 16 : index
    %c0_326 = arith.constant 0 : index
    %368 = vector.load %arg38[%c16_325, %c0_326] : memref<288x256xf32, #tpu.memory_space<vmem>>, vector<16x16xf32>
    tpu.vector_store %arg38[%c16_325, %c0_326], %367 {strides = array<i32>} : memref<288x256xf32, #tpu.memory_space<vmem>>, vector<16x16xf32>,
    %c0_327 = arith.constant 0 : index
    %c2_328 = arith.constant 2 : index
    %369 = vector.load %arg37[%c0_327, %c2_328] : memref<32x290xf32, #tpu.memory_space<vmem>>, vector<16x16xf32>
    %370 = arith.mulf %369, %363 : vector<16x16xf32>
    %c32_329 = arith.constant 32 : index
    %c0_330 = arith.constant 0 : index
    %371 = vector.load %arg38[%c32_329, %c0_330] : memref<288x256xf32, #tpu.memory_space<vmem>>, vector<16x16xf32>
    tpu.vector_store %arg38[%c32_329, %c0_330], %370 {strides = array<i32>} : memref<288x256xf32, #tpu.memory_space<vmem>>, vector<16x16xf32>,
    %c0_331 = arith.constant 0 : index
    %c4 = arith.constant 4 : index
    %372 = vector.load %arg37[%c0_331, %c4] : memref<32x290xf32, #tpu.memory_space<vmem>>, vector<16x16xf32>
    %373 = arith.mulf %372, %359 : vector<16x16xf32>
    %c48_332 = arith.constant 48 : index
    %c0_333 = arith.constant 0 : index
    %374 = vector.load %arg38[%c48_332, %c0_333] : memref<288x256xf32, #tpu.memory_space<vmem>>, vector<16x16xf32>
    tpu.vector_store %arg38[%c48_332, %c0_333], %373 {strides = array<i32>} : memref<288x256xf32, #tpu.memory_space<vmem>>, vector<16x16xf32>,
    %c0_334 = arith.constant 0 : index
    %c5_335 = arith.constant 5 : index
    %375 = vector.load %arg37[%c0_334, %c5_335] : memref<32x290xf32, #tpu.memory_space<vmem>>, vector<16x16xf32>
    %c64_336 = arith.constant 64 : index
    %c0_337 = arith.constant 0 : index
    %376 = vector.load %arg38[%c64_336, %c0_337] : memref<288x256xf32, #tpu.memory_space<vmem>>, vector<16x16xf32>
    tpu.vector_store %arg38[%c64_336, %c0_337], %375 {strides = array<i32>} : memref<288x256xf32, #tpu.memory_space<vmem>>, vector<16x16xf32>,
    %c0_338 = arith.constant 0 : index
    %c6 = arith.constant 6 : index
    %377 = vector.load %arg37[%c0_338, %c6] : memref<32x290xf32, #tpu.memory_space<vmem>>, vector<16x16xf32>
    %378 = arith.mulf %377, %363 : vector<16x16xf32>
    %c80_339 = arith.constant 80 : index
    %c0_340 = arith.constant 0 : index
    %379 = vector.load %arg38[%c80_339, %c0_340] : memref<288x256xf32, #tpu.memory_space<vmem>>, vector<16x16xf32>
    tpu.vector_store %arg38[%c80_339, %c0_340], %378 {strides = array<i32>} : memref<288x256xf32, #tpu.memory_space<vmem>>, vector<16x16xf32>,
    %c0_341 = arith.constant 0 : index
    %c8_342 = arith.constant 8 : index
    %380 = vector.load %arg37[%c0_341, %c8_342] : memref<32x290xf32, #tpu.memory_space<vmem>>, vector<16x16xf32>
    %381 = arith.mulf %380, %359 : vector<16x16xf32>
    %c96_343 = arith.constant 96 : index
    %c0_344 = arith.constant 0 : index
    %382 = vector.load %arg38[%c96_343, %c0_344] : memref<288x256xf32, #tpu.memory_space<vmem>>, vector<16x16xf32>
    tpu.vector_store %arg38[%c96_343, %c0_344], %381 {strides = array<i32>} : memref<288x256xf32, #tpu.memory_space<vmem>>, vector<16x16xf32>,
    %c0_345 = arith.constant 0 : index
    %c9_346 = arith.constant 9 : index
    %383 = vector.load %arg37[%c0_345, %c9_346] : memref<32x290xf32, #tpu.memory_space<vmem>>, vector<16x16xf32>
    %c112_347 = arith.constant 112 : index
    %c0_348 = arith.constant 0 : index
    %384 = vector.load %arg38[%c112_347, %c0_348] : memref<288x256xf32, #tpu.memory_space<vmem>>, vector<16x16xf32>
    tpu.vector_store %arg38[%c112_347, %c0_348], %383 {strides = array<i32>} : memref<288x256xf32, #tpu.memory_space<vmem>>, vector<16x16xf32>,
    %c0_349 = arith.constant 0 : index
    %c10_350 = arith.constant 10 : index
    %385 = vector.load %arg37[%c0_349, %c10_350] : memref<32x290xf32, #tpu.memory_space<vmem>>, vector<16x16xf32>
    %386 = arith.mulf %385, %363 : vector<16x16xf32>
    %c128_351 = arith.constant 128 : index
    %c0_352 = arith.constant 0 : index
    %387 = vector.load %arg38[%c128_351, %c0_352] : memref<288x256xf32, #tpu.memory_space<vmem>>, vector<16x16xf32>
    tpu.vector_store %arg38[%c128_351, %c0_352], %386 {strides = array<i32>} : memref<288x256xf32, #tpu.memory_space<vmem>>, vector<16x16xf32>,
    %c0_353 = arith.constant 0 : index
    %c0_354 = arith.constant 0 : index
    %388 = vector.load %arg8[%c0_353, %c0_354] : memref<32x144xf32, #tpu.memory_space<vmem>>, vector<32x144xf32>
    %c0_355 = arith.constant 0 : index
    %c0_356 = arith.constant 0 : index
    %389 = vector.load %arg38[%c0_355, %c0_356] : memref<288x256xf32, #tpu.memory_space<vmem>>, vector<144x16xf32>
    %cst_357 = arith.constant dense<0.000000e+00> : vector<32x16xf32>
    %390 = tpu.matmul %388, %389, %cst_357 {dimension_numbers = #tpu.dot_dimension_numbers<[1], [0], [0], [1], [0, 0, 1, 1], [], []>} : vector<32x144xf32>, vector<144x16xf32>, vector<32x16xf32> -> vector<32x16xf32>
    %c0_358 = arith.constant 0 : index
    %c0_359 = arith.constant 0 : index
    %391 = vector.load %arg21[%c0_358, %c0_359] : memref<32x1xf32, #tpu.memory_space<vmem>>, vector<32x1xf32>
    %392 = vector.broadcast %391 : vector<32x1xf32> to vector<32x16xf32>
    %393 = arith.addf %390, %392 : vector<32x16xf32>
    %c0_360 = arith.constant 0 : index
    %c0_361 = arith.constant 0 : index
    %c0_362 = arith.constant 0 : index
    %394 = vector.load %arg36[%c0_360, %c0_361, %c0_362] : memref<1x32x63xf32, #tpu.memory_space<vmem>>, vector<1x32x16xf32>
    %395 = vector.shape_cast %394 : vector<1x32x16xf32> to vector<32x16xf32>
    %396 = vector.shape_cast %393 : vector<32x16xf32> to vector<1x32x16xf32>
    tpu.vector_store %arg36[%c0_360, %c0_361, %c0_362], %396 {strides = array<i32>} : memref<1x32x63xf32, #tpu.memory_space<vmem>>, vector<1x32x16xf32>,
    %cst_363 = arith.constant 0.000000e+00 : f32
    %397 = vector.broadcast %cst_363 : f32 to vector<32x16xf32>
    %398 = arith.maximumf %393, %397 : vector<32x16xf32>
    %cst_364 = arith.constant 0.000000e+00 : f32
    %399 = vector.broadcast %cst_364 : f32 to vector<32x5xf32>
    %c0_365 = arith.constant 0 : index
    %c0_366 = arith.constant 0 : index
    %400 = vector.load %arg37[%c0_365, %c0_366] : memref<32x290xf32, #tpu.memory_space<vmem>>, vector<32x5xf32>
    tpu.vector_store %arg37[%c0_365, %c0_366], %399 {strides = array<i32>} : memref<32x290xf32, #tpu.memory_space<vmem>>, vector<32x5xf32>,
    %cst_367 = arith.constant 0.000000e+00 : f32
    %401 = vector.broadcast %cst_367 : f32 to vector<32x5xf32>
    %c0_368 = arith.constant 0 : index
    %c21_369 = arith.constant 21 : index
    %402 = vector.load %arg37[%c0_368, %c21_369] : memref<32x290xf32, #tpu.memory_space<vmem>>, vector<32x5xf32>
    tpu.vector_store %arg37[%c0_368, %c21_369], %401 {strides = array<i32>} : memref<32x290xf32, #tpu.memory_space<vmem>>, vector<32x5xf32>,
    %c0_370 = arith.constant 0 : index
    %c5_371 = arith.constant 5 : index
    %403 = vector.load %arg37[%c0_370, %c5_371] : memref<32x290xf32, #tpu.memory_space<vmem>>, vector<32x16xf32>
    tpu.vector_store %arg37[%c0_370, %c5_371], %398 {strides = array<i32>} : memref<32x290xf32, #tpu.memory_space<vmem>>, vector<32x16xf32>,
    %404 = tpu.iota {dimensions = array<i32: 1>} : vector<32x16xi32>
    %c4_i32_372 = arith.constant 4 : i32
    %c0_i32_373 = arith.constant 0 : i32
    %405 = arith.cmpi eq, %c4_i32_372, %c0_i32_373 : i32
    %c1_i32_374 = arith.constant 1 : i32
    %406 = arith.select %405, %c1_i32_374, %c4_i32_372 : i32
    %407 = vector.broadcast %406 : i32 to vector<32x16xi32>
    %408 = arith.remsi %404, %407 : vector<32x16xi32>
    %c0_i32_375 = arith.constant 0 : i32
    %409 = vector.broadcast %c0_i32_375 : i32 to vector<32x16xi32>
    %410 = arith.cmpi ne, %408, %409 : vector<32x16xi32>
    %c0_i32_376 = arith.constant 0 : i32
    %411 = vector.broadcast %c0_i32_376 : i32 to vector<32x16xi32>
    %412 = arith.cmpi slt, %408, %411 : vector<32x16xi32>
    %c0_i32_377 = arith.constant 0 : i32
    %413 = arith.cmpi slt, %406, %c0_i32_377 : i32
    %414 = vector.broadcast %413 : i1 to vector<32x16xi1>
    %415 = vector.broadcast %414 : vector<32x16xi1> to vector<32x16xi1>
    %416 = arith.xori %412, %415 : vector<32x16xi1>
    %417 = arith.andi %416, %410 : vector<32x16xi1>
    %418 = vector.broadcast %406 : i32 to vector<32x16xi32>
    %419 = arith.addi %408, %418 : vector<32x16xi32>
    %420 = arith.select %417, %419, %408 : vector<32x16xi1>, vector<32x16xi32>
    %c0_i32_378 = arith.constant 0 : i32
    %421 = vector.broadcast %c0_i32_378 : i32 to vector<32x16xi32>
    %422 = arith.cmpi ne, %420, %421 : vector<32x16xi32>
    %423 = arith.extui %422 : vector<32x16xi1> to vector<32x16xi32>
    %424 = arith.sitofp %423 : vector<32x16xi32> to vector<32x16xf32>
    %c3_i32_379 = arith.constant 3 : i32
    %425 = vector.broadcast %c3_i32_379 : i32 to vector<32x16xi32>
    %426 = arith.cmpi ne, %420, %425 : vector<32x16xi32>
    %427 = arith.extui %426 : vector<32x16xi1> to vector<32x16xi32>
    %428 = arith.sitofp %427 : vector<32x16xi32> to vector<32x16xf32>
    %c0_380 = arith.constant 0 : index
    %c0_381 = arith.constant 0 : index
    %429 = vector.load %arg37[%c0_380, %c0_381] : memref<32x290xf32, #tpu.memory_space<vmem>>, vector<32x16xf32>
    %430 = arith.mulf %429, %424 : vector<32x16xf32>
    %c0_382 = arith.constant 0 : index
    %c0_383 = arith.constant 0 : index
    %431 = vector.load %arg38[%c0_382, %c0_383] : memref<288x256xf32, #tpu.memory_space<vmem>>, vector<32x16xf32>
    tpu.vector_store %arg38[%c0_382, %c0_383], %430 {strides = array<i32>} : memref<288x256xf32, #tpu.memory_space<vmem>>, vector<32x16xf32>,
    %c0_384 = arith.constant 0 : index
    %c1_385 = arith.constant 1 : index
    %432 = vector.load %arg37[%c0_384, %c1_385] : memref<32x290xf32, #tpu.memory_space<vmem>>, vector<32x16xf32>
    %c32_386 = arith.constant 32 : index
    %c0_387 = arith.constant 0 : index
    %433 = vector.load %arg38[%c32_386, %c0_387] : memref<288x256xf32, #tpu.memory_space<vmem>>, vector<32x16xf32>
    tpu.vector_store %arg38[%c32_386, %c0_387], %432 {strides = array<i32>} : memref<288x256xf32, #tpu.memory_space<vmem>>, vector<32x16xf32>,
    %c0_388 = arith.constant 0 : index
    %c2_389 = arith.constant 2 : index
    %434 = vector.load %arg37[%c0_388, %c2_389] : memref<32x290xf32, #tpu.memory_space<vmem>>, vector<32x16xf32>
    %435 = arith.mulf %434, %428 : vector<32x16xf32>
    %c64_390 = arith.constant 64 : index
    %c0_391 = arith.constant 0 : index
    %436 = vector.load %arg38[%c64_390, %c0_391] : memref<288x256xf32, #tpu.memory_space<vmem>>, vector<32x16xf32>
    tpu.vector_store %arg38[%c64_390, %c0_391], %435 {strides = array<i32>} : memref<288x256xf32, #tpu.memory_space<vmem>>, vector<32x16xf32>,
    %c0_392 = arith.constant 0 : index
    %c4_393 = arith.constant 4 : index
    %437 = vector.load %arg37[%c0_392, %c4_393] : memref<32x290xf32, #tpu.memory_space<vmem>>, vector<32x16xf32>
    %438 = arith.mulf %437, %424 : vector<32x16xf32>
    %c96_394 = arith.constant 96 : index
    %c0_395 = arith.constant 0 : index
    %439 = vector.load %arg38[%c96_394, %c0_395] : memref<288x256xf32, #tpu.memory_space<vmem>>, vector<32x16xf32>
    tpu.vector_store %arg38[%c96_394, %c0_395], %438 {strides = array<i32>} : memref<288x256xf32, #tpu.memory_space<vmem>>, vector<32x16xf32>,
    %c0_396 = arith.constant 0 : index
    %c5_397 = arith.constant 5 : index
    %440 = vector.load %arg37[%c0_396, %c5_397] : memref<32x290xf32, #tpu.memory_space<vmem>>, vector<32x16xf32>
    %c128_398 = arith.constant 128 : index
    %c0_399 = arith.constant 0 : index
    %441 = vector.load %arg38[%c128_398, %c0_399] : memref<288x256xf32, #tpu.memory_space<vmem>>, vector<32x16xf32>
    tpu.vector_store %arg38[%c128_398, %c0_399], %440 {strides = array<i32>} : memref<288x256xf32, #tpu.memory_space<vmem>>, vector<32x16xf32>,
    %c0_400 = arith.constant 0 : index
    %c6_401 = arith.constant 6 : index
    %442 = vector.load %arg37[%c0_400, %c6_401] : memref<32x290xf32, #tpu.memory_space<vmem>>, vector<32x16xf32>
    %443 = arith.mulf %442, %428 : vector<32x16xf32>
    %c160_402 = arith.constant 160 : index
    %c0_403 = arith.constant 0 : index
    %444 = vector.load %arg38[%c160_402, %c0_403] : memref<288x256xf32, #tpu.memory_space<vmem>>, vector<32x16xf32>
    tpu.vector_store %arg38[%c160_402, %c0_403], %443 {strides = array<i32>} : memref<288x256xf32, #tpu.memory_space<vmem>>, vector<32x16xf32>,
    %c0_404 = arith.constant 0 : index
    %c8_405 = arith.constant 8 : index
    %445 = vector.load %arg37[%c0_404, %c8_405] : memref<32x290xf32, #tpu.memory_space<vmem>>, vector<32x16xf32>
    %446 = arith.mulf %445, %424 : vector<32x16xf32>
    %c192_406 = arith.constant 192 : index
    %c0_407 = arith.constant 0 : index
    %447 = vector.load %arg38[%c192_406, %c0_407] : memref<288x256xf32, #tpu.memory_space<vmem>>, vector<32x16xf32>
    tpu.vector_store %arg38[%c192_406, %c0_407], %446 {strides = array<i32>} : memref<288x256xf32, #tpu.memory_space<vmem>>, vector<32x16xf32>,
    %c0_408 = arith.constant 0 : index
    %c9_409 = arith.constant 9 : index
    %448 = vector.load %arg37[%c0_408, %c9_409] : memref<32x290xf32, #tpu.memory_space<vmem>>, vector<32x16xf32>
    %c224_410 = arith.constant 224 : index
    %c0_411 = arith.constant 0 : index
    %449 = vector.load %arg38[%c224_410, %c0_411] : memref<288x256xf32, #tpu.memory_space<vmem>>, vector<32x16xf32>
    tpu.vector_store %arg38[%c224_410, %c0_411], %448 {strides = array<i32>} : memref<288x256xf32, #tpu.memory_space<vmem>>, vector<32x16xf32>,
    %c0_412 = arith.constant 0 : index
    %c10_413 = arith.constant 10 : index
    %450 = vector.load %arg37[%c0_412, %c10_413] : memref<32x290xf32, #tpu.memory_space<vmem>>, vector<32x16xf32>
    %451 = arith.mulf %450, %428 : vector<32x16xf32>
    %c256_414 = arith.constant 256 : index
    %c0_415 = arith.constant 0 : index
    %452 = vector.load %arg38[%c256_414, %c0_415] : memref<288x256xf32, #tpu.memory_space<vmem>>, vector<32x16xf32>
    tpu.vector_store %arg38[%c256_414, %c0_415], %451 {strides = array<i32>} : memref<288x256xf32, #tpu.memory_space<vmem>>, vector<32x16xf32>,
    %c0_416 = arith.constant 0 : index
    %c0_417 = arith.constant 0 : index
    %453 = vector.load %arg9[%c0_416, %c0_417] : memref<32x288xf32, #tpu.memory_space<vmem>>, vector<32x288xf32>
    %c0_418 = arith.constant 0 : index
    %c0_419 = arith.constant 0 : index
    %454 = vector.load %arg38[%c0_418, %c0_419] : memref<288x256xf32, #tpu.memory_space<vmem>>, vector<288x16xf32>
    %cst_420 = arith.constant dense<0.000000e+00> : vector<32x16xf32>
    %455 = tpu.matmul %453, %454, %cst_420 {dimension_numbers = #tpu.dot_dimension_numbers<[1], [0], [0], [1], [0, 0, 1, 1], [], []>} : vector<32x288xf32>, vector<288x16xf32>, vector<32x16xf32> -> vector<32x16xf32>
    %c0_421 = arith.constant 0 : index
    %c0_422 = arith.constant 0 : index
    %456 = vector.load %arg22[%c0_421, %c0_422] : memref<32x1xf32, #tpu.memory_space<vmem>>, vector<32x1xf32>
    %457 = vector.broadcast %456 : vector<32x1xf32> to vector<32x16xf32>
    %458 = arith.addf %455, %457 : vector<32x16xf32>
    %c0_423 = arith.constant 0 : index
    %c0_424 = arith.constant 0 : index
    %c16_425 = arith.constant 16 : index
    %459 = vector.load %arg36[%c0_423, %c0_424, %c16_425] : memref<1x32x63xf32, #tpu.memory_space<vmem>>, vector<1x32x16xf32>
    %460 = vector.shape_cast %459 : vector<1x32x16xf32> to vector<32x16xf32>
    %461 = vector.shape_cast %458 : vector<32x16xf32> to vector<1x32x16xf32>
    tpu.vector_store %arg36[%c0_423, %c0_424, %c16_425], %461 {strides = array<i32>} : memref<1x32x63xf32, #tpu.memory_space<vmem>>, vector<1x32x16xf32>,
    %cst_426 = arith.constant 0.000000e+00 : f32
    %462 = vector.broadcast %cst_426 : f32 to vector<32x16xf32>
    %463 = arith.maximumf %458, %462 : vector<32x16xf32>
    %cst_427 = arith.constant 0.000000e+00 : f32
    %464 = vector.broadcast %cst_427 : f32 to vector<32x5xf32>
    %c0_428 = arith.constant 0 : index
    %c0_429 = arith.constant 0 : index
    %465 = vector.load %arg37[%c0_428, %c0_429] : memref<32x290xf32, #tpu.memory_space<vmem>>, vector<32x5xf32>
    tpu.vector_store %arg37[%c0_428, %c0_429], %464 {strides = array<i32>} : memref<32x290xf32, #tpu.memory_space<vmem>>, vector<32x5xf32>,
    %cst_430 = arith.constant 0.000000e+00 : f32
    %466 = vector.broadcast %cst_430 : f32 to vector<32x5xf32>
    %c0_431 = arith.constant 0 : index
    %c21_432 = arith.constant 21 : index
    %467 = vector.load %arg37[%c0_431, %c21_432] : memref<32x290xf32, #tpu.memory_space<vmem>>, vector<32x5xf32>
    tpu.vector_store %arg37[%c0_431, %c21_432], %466 {strides = array<i32>} : memref<32x290xf32, #tpu.memory_space<vmem>>, vector<32x5xf32>,
    %c0_433 = arith.constant 0 : index
    %c5_434 = arith.constant 5 : index
    %468 = vector.load %arg37[%c0_433, %c5_434] : memref<32x290xf32, #tpu.memory_space<vmem>>, vector<32x16xf32>
    tpu.vector_store %arg37[%c0_433, %c5_434], %463 {strides = array<i32>} : memref<32x290xf32, #tpu.memory_space<vmem>>, vector<32x16xf32>,
    %469 = tpu.iota {dimensions = array<i32: 1>} : vector<32x16xi32>
    %c4_i32_435 = arith.constant 4 : i32
    %c0_i32_436 = arith.constant 0 : i32
    %470 = arith.cmpi eq, %c4_i32_435, %c0_i32_436 : i32
    %c1_i32_437 = arith.constant 1 : i32
    %471 = arith.select %470, %c1_i32_437, %c4_i32_435 : i32
    %472 = vector.broadcast %471 : i32 to vector<32x16xi32>
    %473 = arith.remsi %469, %472 : vector<32x16xi32>
    %c0_i32_438 = arith.constant 0 : i32
    %474 = vector.broadcast %c0_i32_438 : i32 to vector<32x16xi32>
    %475 = arith.cmpi ne, %473, %474 : vector<32x16xi32>
    %c0_i32_439 = arith.constant 0 : i32
    %476 = vector.broadcast %c0_i32_439 : i32 to vector<32x16xi32>
    %477 = arith.cmpi slt, %473, %476 : vector<32x16xi32>
    %c0_i32_440 = arith.constant 0 : i32
    %478 = arith.cmpi slt, %471, %c0_i32_440 : i32
    %479 = vector.broadcast %478 : i1 to vector<32x16xi1>
    %480 = vector.broadcast %479 : vector<32x16xi1> to vector<32x16xi1>
    %481 = arith.xori %477, %480 : vector<32x16xi1>
    %482 = arith.andi %481, %475 : vector<32x16xi1>
    %483 = vector.broadcast %471 : i32 to vector<32x16xi32>
    %484 = arith.addi %473, %483 : vector<32x16xi32>
    %485 = arith.select %482, %484, %473 : vector<32x16xi1>, vector<32x16xi32>
    %c0_i32_441 = arith.constant 0 : i32
    %486 = vector.broadcast %c0_i32_441 : i32 to vector<32x16xi32>
    %487 = arith.cmpi ne, %485, %486 : vector<32x16xi32>
    %488 = arith.extui %487 : vector<32x16xi1> to vector<32x16xi32>
    %489 = arith.sitofp %488 : vector<32x16xi32> to vector<32x16xf32>
    %c3_i32_442 = arith.constant 3 : i32
    %490 = vector.broadcast %c3_i32_442 : i32 to vector<32x16xi32>
    %491 = arith.cmpi ne, %485, %490 : vector<32x16xi32>
    %492 = arith.extui %491 : vector<32x16xi1> to vector<32x16xi32>
    %493 = arith.sitofp %492 : vector<32x16xi32> to vector<32x16xf32>
    %c0_443 = arith.constant 0 : index
    %c0_444 = arith.constant 0 : index
    %494 = vector.load %arg37[%c0_443, %c0_444] : memref<32x290xf32, #tpu.memory_space<vmem>>, vector<32x16xf32>
    %495 = arith.mulf %494, %489 : vector<32x16xf32>
    %c0_445 = arith.constant 0 : index
    %c0_446 = arith.constant 0 : index
    %496 = vector.load %arg38[%c0_445, %c0_446] : memref<288x256xf32, #tpu.memory_space<vmem>>, vector<32x16xf32>
    tpu.vector_store %arg38[%c0_445, %c0_446], %495 {strides = array<i32>} : memref<288x256xf32, #tpu.memory_space<vmem>>, vector<32x16xf32>,
    %c0_447 = arith.constant 0 : index
    %c1_448 = arith.constant 1 : index
    %497 = vector.load %arg37[%c0_447, %c1_448] : memref<32x290xf32, #tpu.memory_space<vmem>>, vector<32x16xf32>
    %c32_449 = arith.constant 32 : index
    %c0_450 = arith.constant 0 : index
    %498 = vector.load %arg38[%c32_449, %c0_450] : memref<288x256xf32, #tpu.memory_space<vmem>>, vector<32x16xf32>
    tpu.vector_store %arg38[%c32_449, %c0_450], %497 {strides = array<i32>} : memref<288x256xf32, #tpu.memory_space<vmem>>, vector<32x16xf32>,
    %c0_451 = arith.constant 0 : index
    %c2_452 = arith.constant 2 : index
    %499 = vector.load %arg37[%c0_451, %c2_452] : memref<32x290xf32, #tpu.memory_space<vmem>>, vector<32x16xf32>
    %500 = arith.mulf %499, %493 : vector<32x16xf32>
    %c64_453 = arith.constant 64 : index
    %c0_454 = arith.constant 0 : index
    %501 = vector.load %arg38[%c64_453, %c0_454] : memref<288x256xf32, #tpu.memory_space<vmem>>, vector<32x16xf32>
    tpu.vector_store %arg38[%c64_453, %c0_454], %500 {strides = array<i32>} : memref<288x256xf32, #tpu.memory_space<vmem>>, vector<32x16xf32>,
    %c0_455 = arith.constant 0 : index
    %c4_456 = arith.constant 4 : index
    %502 = vector.load %arg37[%c0_455, %c4_456] : memref<32x290xf32, #tpu.memory_space<vmem>>, vector<32x16xf32>
    %503 = arith.mulf %502, %489 : vector<32x16xf32>
    %c96_457 = arith.constant 96 : index
    %c0_458 = arith.constant 0 : index
    %504 = vector.load %arg38[%c96_457, %c0_458] : memref<288x256xf32, #tpu.memory_space<vmem>>, vector<32x16xf32>
    tpu.vector_store %arg38[%c96_457, %c0_458], %503 {strides = array<i32>} : memref<288x256xf32, #tpu.memory_space<vmem>>, vector<32x16xf32>,
    %c0_459 = arith.constant 0 : index
    %c5_460 = arith.constant 5 : index
    %505 = vector.load %arg37[%c0_459, %c5_460] : memref<32x290xf32, #tpu.memory_space<vmem>>, vector<32x16xf32>
    %c128_461 = arith.constant 128 : index
    %c0_462 = arith.constant 0 : index
    %506 = vector.load %arg38[%c128_461, %c0_462] : memref<288x256xf32, #tpu.memory_space<vmem>>, vector<32x16xf32>
    tpu.vector_store %arg38[%c128_461, %c0_462], %505 {strides = array<i32>} : memref<288x256xf32, #tpu.memory_space<vmem>>, vector<32x16xf32>,
    %c0_463 = arith.constant 0 : index
    %c6_464 = arith.constant 6 : index
    %507 = vector.load %arg37[%c0_463, %c6_464] : memref<32x290xf32, #tpu.memory_space<vmem>>, vector<32x16xf32>
    %508 = arith.mulf %507, %493 : vector<32x16xf32>
    %c160_465 = arith.constant 160 : index
    %c0_466 = arith.constant 0 : index
    %509 = vector.load %arg38[%c160_465, %c0_466] : memref<288x256xf32, #tpu.memory_space<vmem>>, vector<32x16xf32>
    tpu.vector_store %arg38[%c160_465, %c0_466], %508 {strides = array<i32>} : memref<288x256xf32, #tpu.memory_space<vmem>>, vector<32x16xf32>,
    %c0_467 = arith.constant 0 : index
    %c8_468 = arith.constant 8 : index
    %510 = vector.load %arg37[%c0_467, %c8_468] : memref<32x290xf32, #tpu.memory_space<vmem>>, vector<32x16xf32>
    %511 = arith.mulf %510, %489 : vector<32x16xf32>
    %c192_469 = arith.constant 192 : index
    %c0_470 = arith.constant 0 : index
    %512 = vector.load %arg38[%c192_469, %c0_470] : memref<288x256xf32, #tpu.memory_space<vmem>>, vector<32x16xf32>
    tpu.vector_store %arg38[%c192_469, %c0_470], %511 {strides = array<i32>} : memref<288x256xf32, #tpu.memory_space<vmem>>, vector<32x16xf32>,
    %c0_471 = arith.constant 0 : index
    %c9_472 = arith.constant 9 : index
    %513 = vector.load %arg37[%c0_471, %c9_472] : memref<32x290xf32, #tpu.memory_space<vmem>>, vector<32x16xf32>
    %c224_473 = arith.constant 224 : index
    %c0_474 = arith.constant 0 : index
    %514 = vector.load %arg38[%c224_473, %c0_474] : memref<288x256xf32, #tpu.memory_space<vmem>>, vector<32x16xf32>
    tpu.vector_store %arg38[%c224_473, %c0_474], %513 {strides = array<i32>} : memref<288x256xf32, #tpu.memory_space<vmem>>, vector<32x16xf32>,
    %c0_475 = arith.constant 0 : index
    %c10_476 = arith.constant 10 : index
    %515 = vector.load %arg37[%c0_475, %c10_476] : memref<32x290xf32, #tpu.memory_space<vmem>>, vector<32x16xf32>
    %516 = arith.mulf %515, %493 : vector<32x16xf32>
    %c256_477 = arith.constant 256 : index
    %c0_478 = arith.constant 0 : index
    %517 = vector.load %arg38[%c256_477, %c0_478] : memref<288x256xf32, #tpu.memory_space<vmem>>, vector<32x16xf32>
    tpu.vector_store %arg38[%c256_477, %c0_478], %516 {strides = array<i32>} : memref<288x256xf32, #tpu.memory_space<vmem>>, vector<32x16xf32>,
    %c0_479 = arith.constant 0 : index
    %c0_480 = arith.constant 0 : index
    %518 = vector.load %arg10[%c0_479, %c0_480] : memref<32x288xf32, #tpu.memory_space<vmem>>, vector<32x288xf32>
    %c0_481 = arith.constant 0 : index
    %c0_482 = arith.constant 0 : index
    %519 = vector.load %arg38[%c0_481, %c0_482] : memref<288x256xf32, #tpu.memory_space<vmem>>, vector<288x16xf32>
    %cst_483 = arith.constant dense<0.000000e+00> : vector<32x16xf32>
    %520 = tpu.matmul %518, %519, %cst_483 {dimension_numbers = #tpu.dot_dimension_numbers<[1], [0], [0], [1], [0, 0, 1, 1], [], []>} : vector<32x288xf32>, vector<288x16xf32>, vector<32x16xf32> -> vector<32x16xf32>
    %c0_484 = arith.constant 0 : index
    %c0_485 = arith.constant 0 : index
    %521 = vector.load %arg23[%c0_484, %c0_485] : memref<32x1xf32, #tpu.memory_space<vmem>>, vector<32x1xf32>
    %522 = vector.broadcast %521 : vector<32x1xf32> to vector<32x16xf32>
    %523 = arith.addf %520, %522 : vector<32x16xf32>
    %c0_486 = arith.constant 0 : index
    %c0_487 = arith.constant 0 : index
    %c32_488 = arith.constant 32 : index
    %524 = vector.load %arg36[%c0_486, %c0_487, %c32_488] : memref<1x32x63xf32, #tpu.memory_space<vmem>>, vector<1x32x16xf32>
    %525 = vector.shape_cast %524 : vector<1x32x16xf32> to vector<32x16xf32>
    %526 = vector.shape_cast %523 : vector<32x16xf32> to vector<1x32x16xf32>
    tpu.vector_store %arg36[%c0_486, %c0_487, %c32_488], %526 {strides = array<i32>} : memref<1x32x63xf32, #tpu.memory_space<vmem>>, vector<1x32x16xf32>,
    %cst_489 = arith.constant 0.000000e+00 : f32
    %527 = vector.broadcast %cst_489 : f32 to vector<32x16xf32>
    %528 = arith.maximumf %523, %527 : vector<32x16xf32>
    %c0_490 = arith.constant 0 : index
    %c0_491 = arith.constant 0 : index
    %529 = vector.load %arg39[%c0_490, %c0_491] : memref<32x320xf32, #tpu.memory_space<vmem>>, vector<32x16xf32>
    tpu.vector_store %arg39[%c0_490, %c0_491], %528 {strides = array<i32>} : memref<32x320xf32, #tpu.memory_space<vmem>>, vector<32x16xf32>,
    %c0_492 = arith.constant 0 : index
    %c0_493 = arith.constant 0 : index
    %530 = vector.load %arg32[%c0_492, %c0_493] : memref<4x2xf32, #tpu.memory_space<vmem>>, vector<4x2xf32>
    %c0_494 = arith.constant 0 : index
    %c0_495 = arith.constant 0 : index
    %531 = vector.load %arg39[%c0_494, %c0_495] : memref<32x320xf32, #tpu.memory_space<vmem>>, vector<32x4xf32>
    %c0_496 = arith.constant 0 : index
    %c4_497 = arith.constant 4 : index
    %532 = vector.load %arg39[%c0_496, %c4_497] : memref<32x320xf32, #tpu.memory_space<vmem>>, vector<32x4xf32>
    %533 = arith.addf %531, %532 : vector<32x4xf32>
    %cst_498 = arith.constant dense<0.000000e+00> : vector<32x2xf32>
    %534 = tpu.matmul %533, %530, %cst_498 {dimension_numbers = #tpu.dot_dimension_numbers<[1], [0], [0], [1], [0, 0, 1, 1], [], []>} : vector<32x4xf32>, vector<4x2xf32>, vector<32x2xf32> -> vector<32x2xf32>
    %c0_499 = arith.constant 0 : index
    %c16_500 = arith.constant 16 : index
    %535 = vector.load %arg39[%c0_499, %c16_500] : memref<32x320xf32, #tpu.memory_space<vmem>>, vector<32x2xf32>
    tpu.vector_store %arg39[%c0_499, %c16_500], %534 {strides = array<i32>} : memref<32x320xf32, #tpu.memory_space<vmem>>, vector<32x2xf32>,
    %c0_501 = arith.constant 0 : index
    %c8_502 = arith.constant 8 : index
    %536 = vector.load %arg39[%c0_501, %c8_502] : memref<32x320xf32, #tpu.memory_space<vmem>>, vector<32x4xf32>
    %c0_503 = arith.constant 0 : index
    %c12 = arith.constant 12 : index
    %537 = vector.load %arg39[%c0_503, %c12] : memref<32x320xf32, #tpu.memory_space<vmem>>, vector<32x4xf32>
    %538 = arith.addf %536, %537 : vector<32x4xf32>
    %cst_504 = arith.constant dense<0.000000e+00> : vector<32x2xf32>
    %539 = tpu.matmul %538, %530, %cst_504 {dimension_numbers = #tpu.dot_dimension_numbers<[1], [0], [0], [1], [0, 0, 1, 1], [], []>} : vector<32x4xf32>, vector<4x2xf32>, vector<32x2xf32> -> vector<32x2xf32>
    %c0_505 = arith.constant 0 : index
    %c18_506 = arith.constant 18 : index
    %540 = vector.load %arg39[%c0_505, %c18_506] : memref<32x320xf32, #tpu.memory_space<vmem>>, vector<32x2xf32>
    tpu.vector_store %arg39[%c0_505, %c18_506], %539 {strides = array<i32>} : memref<32x320xf32, #tpu.memory_space<vmem>>, vector<32x2xf32>,
    %c0_507 = arith.constant 0 : index
    %c16_508 = arith.constant 16 : index
    %541 = vector.load %arg39[%c0_507, %c16_508] : memref<32x320xf32, #tpu.memory_space<vmem>>, vector<32x4xf32>
    %cst_509 = arith.constant 0.000000e+00 : f32
    %542 = vector.broadcast %cst_509 : f32 to vector<32x3xf32>
    %c0_510 = arith.constant 0 : index
    %c0_511 = arith.constant 0 : index
    %543 = vector.load %arg37[%c0_510, %c0_511] : memref<32x290xf32, #tpu.memory_space<vmem>>, vector<32x3xf32>
    tpu.vector_store %arg37[%c0_510, %c0_511], %542 {strides = array<i32>} : memref<32x290xf32, #tpu.memory_space<vmem>>, vector<32x3xf32>,
    %cst_512 = arith.constant 0.000000e+00 : f32
    %544 = vector.broadcast %cst_512 : f32 to vector<32x3xf32>
    %c0_513 = arith.constant 0 : index
    %c7 = arith.constant 7 : index
    %545 = vector.load %arg37[%c0_513, %c7] : memref<32x290xf32, #tpu.memory_space<vmem>>, vector<32x3xf32>
    tpu.vector_store %arg37[%c0_513, %c7], %544 {strides = array<i32>} : memref<32x290xf32, #tpu.memory_space<vmem>>, vector<32x3xf32>,
    %c0_514 = arith.constant 0 : index
    %c3 = arith.constant 3 : index
    %546 = vector.load %arg37[%c0_514, %c3] : memref<32x290xf32, #tpu.memory_space<vmem>>, vector<32x4xf32>
    tpu.vector_store %arg37[%c0_514, %c3], %541 {strides = array<i32>} : memref<32x290xf32, #tpu.memory_space<vmem>>, vector<32x4xf32>,
    %547 = tpu.iota {dimensions = array<i32: 1>} : vector<32x4xi32>
    %c2_i32 = arith.constant 2 : i32
    %c0_i32_515 = arith.constant 0 : i32
    %548 = arith.cmpi eq, %c2_i32, %c0_i32_515 : i32
    %c1_i32_516 = arith.constant 1 : i32
    %549 = arith.select %548, %c1_i32_516, %c2_i32 : i32
    %550 = vector.broadcast %549 : i32 to vector<32x4xi32>
    %551 = arith.remsi %547, %550 : vector<32x4xi32>
    %c0_i32_517 = arith.constant 0 : i32
    %552 = vector.broadcast %c0_i32_517 : i32 to vector<32x4xi32>
    %553 = arith.cmpi ne, %551, %552 : vector<32x4xi32>
    %c0_i32_518 = arith.constant 0 : i32
    %554 = vector.broadcast %c0_i32_518 : i32 to vector<32x4xi32>
    %555 = arith.cmpi slt, %551, %554 : vector<32x4xi32>
    %c0_i32_519 = arith.constant 0 : i32
    %556 = arith.cmpi slt, %549, %c0_i32_519 : i32
    %557 = vector.broadcast %556 : i1 to vector<32x4xi1>
    %558 = vector.broadcast %557 : vector<32x4xi1> to vector<32x4xi1>
    %559 = arith.xori %555, %558 : vector<32x4xi1>
    %560 = arith.andi %559, %553 : vector<32x4xi1>
    %561 = vector.broadcast %549 : i32 to vector<32x4xi32>
    %562 = arith.addi %551, %561 : vector<32x4xi32>
    %563 = arith.select %560, %562, %551 : vector<32x4xi1>, vector<32x4xi32>
    %c0_i32_520 = arith.constant 0 : i32
    %564 = vector.broadcast %c0_i32_520 : i32 to vector<32x4xi32>
    %565 = arith.cmpi ne, %563, %564 : vector<32x4xi32>
    %566 = arith.extui %565 : vector<32x4xi1> to vector<32x4xi32>
    %567 = arith.sitofp %566 : vector<32x4xi32> to vector<32x4xf32>
    %c1_i32_521 = arith.constant 1 : i32
    %568 = vector.broadcast %c1_i32_521 : i32 to vector<32x4xi32>
    %569 = arith.cmpi ne, %563, %568 : vector<32x4xi32>
    %570 = arith.extui %569 : vector<32x4xi1> to vector<32x4xi32>
    %571 = arith.sitofp %570 : vector<32x4xi32> to vector<32x4xf32>
    %c0_522 = arith.constant 0 : index
    %c0_523 = arith.constant 0 : index
    %572 = vector.load %arg37[%c0_522, %c0_523] : memref<32x290xf32, #tpu.memory_space<vmem>>, vector<32x4xf32>
    %573 = arith.mulf %572, %567 : vector<32x4xf32>
    %c0_524 = arith.constant 0 : index
    %c0_525 = arith.constant 0 : index
    %574 = vector.load %arg38[%c0_524, %c0_525] : memref<288x256xf32, #tpu.memory_space<vmem>>, vector<32x4xf32>
    tpu.vector_store %arg38[%c0_524, %c0_525], %573 {strides = array<i32>} : memref<288x256xf32, #tpu.memory_space<vmem>>, vector<32x4xf32>,
    %c0_526 = arith.constant 0 : index
    %c1_527 = arith.constant 1 : index
    %575 = vector.load %arg37[%c0_526, %c1_527] : memref<32x290xf32, #tpu.memory_space<vmem>>, vector<32x4xf32>
    %c32_528 = arith.constant 32 : index
    %c0_529 = arith.constant 0 : index
    %576 = vector.load %arg38[%c32_528, %c0_529] : memref<288x256xf32, #tpu.memory_space<vmem>>, vector<32x4xf32>
    tpu.vector_store %arg38[%c32_528, %c0_529], %575 {strides = array<i32>} : memref<288x256xf32, #tpu.memory_space<vmem>>, vector<32x4xf32>,
    %c0_530 = arith.constant 0 : index
    %c2_531 = arith.constant 2 : index
    %577 = vector.load %arg37[%c0_530, %c2_531] : memref<32x290xf32, #tpu.memory_space<vmem>>, vector<32x4xf32>
    %578 = arith.mulf %577, %571 : vector<32x4xf32>
    %c64_532 = arith.constant 64 : index
    %c0_533 = arith.constant 0 : index
    %579 = vector.load %arg38[%c64_532, %c0_533] : memref<288x256xf32, #tpu.memory_space<vmem>>, vector<32x4xf32>
    tpu.vector_store %arg38[%c64_532, %c0_533], %578 {strides = array<i32>} : memref<288x256xf32, #tpu.memory_space<vmem>>, vector<32x4xf32>,
    %c0_534 = arith.constant 0 : index
    %c2_535 = arith.constant 2 : index
    %580 = vector.load %arg37[%c0_534, %c2_535] : memref<32x290xf32, #tpu.memory_space<vmem>>, vector<32x4xf32>
    %581 = arith.mulf %580, %567 : vector<32x4xf32>
    %c96_536 = arith.constant 96 : index
    %c0_537 = arith.constant 0 : index
    %582 = vector.load %arg38[%c96_536, %c0_537] : memref<288x256xf32, #tpu.memory_space<vmem>>, vector<32x4xf32>
    tpu.vector_store %arg38[%c96_536, %c0_537], %581 {strides = array<i32>} : memref<288x256xf32, #tpu.memory_space<vmem>>, vector<32x4xf32>,
    %c0_538 = arith.constant 0 : index
    %c3_539 = arith.constant 3 : index
    %583 = vector.load %arg37[%c0_538, %c3_539] : memref<32x290xf32, #tpu.memory_space<vmem>>, vector<32x4xf32>
    %c128_540 = arith.constant 128 : index
    %c0_541 = arith.constant 0 : index
    %584 = vector.load %arg38[%c128_540, %c0_541] : memref<288x256xf32, #tpu.memory_space<vmem>>, vector<32x4xf32>
    tpu.vector_store %arg38[%c128_540, %c0_541], %583 {strides = array<i32>} : memref<288x256xf32, #tpu.memory_space<vmem>>, vector<32x4xf32>,
    %c0_542 = arith.constant 0 : index
    %c4_543 = arith.constant 4 : index
    %585 = vector.load %arg37[%c0_542, %c4_543] : memref<32x290xf32, #tpu.memory_space<vmem>>, vector<32x4xf32>
    %586 = arith.mulf %585, %571 : vector<32x4xf32>
    %c160_544 = arith.constant 160 : index
    %c0_545 = arith.constant 0 : index
    %587 = vector.load %arg38[%c160_544, %c0_545] : memref<288x256xf32, #tpu.memory_space<vmem>>, vector<32x4xf32>
    tpu.vector_store %arg38[%c160_544, %c0_545], %586 {strides = array<i32>} : memref<288x256xf32, #tpu.memory_space<vmem>>, vector<32x4xf32>,
    %c0_546 = arith.constant 0 : index
    %c4_547 = arith.constant 4 : index
    %588 = vector.load %arg37[%c0_546, %c4_547] : memref<32x290xf32, #tpu.memory_space<vmem>>, vector<32x4xf32>
    %589 = arith.mulf %588, %567 : vector<32x4xf32>
    %c192_548 = arith.constant 192 : index
    %c0_549 = arith.constant 0 : index
    %590 = vector.load %arg38[%c192_548, %c0_549] : memref<288x256xf32, #tpu.memory_space<vmem>>, vector<32x4xf32>
    tpu.vector_store %arg38[%c192_548, %c0_549], %589 {strides = array<i32>} : memref<288x256xf32, #tpu.memory_space<vmem>>, vector<32x4xf32>,
    %c0_550 = arith.constant 0 : index
    %c5_551 = arith.constant 5 : index
    %591 = vector.load %arg37[%c0_550, %c5_551] : memref<32x290xf32, #tpu.memory_space<vmem>>, vector<32x4xf32>
    %c224_552 = arith.constant 224 : index
    %c0_553 = arith.constant 0 : index
    %592 = vector.load %arg38[%c224_552, %c0_553] : memref<288x256xf32, #tpu.memory_space<vmem>>, vector<32x4xf32>
    tpu.vector_store %arg38[%c224_552, %c0_553], %591 {strides = array<i32>} : memref<288x256xf32, #tpu.memory_space<vmem>>, vector<32x4xf32>,
    %c0_554 = arith.constant 0 : index
    %c6_555 = arith.constant 6 : index
    %593 = vector.load %arg37[%c0_554, %c6_555] : memref<32x290xf32, #tpu.memory_space<vmem>>, vector<32x4xf32>
    %594 = arith.mulf %593, %571 : vector<32x4xf32>
    %c256_556 = arith.constant 256 : index
    %c0_557 = arith.constant 0 : index
    %595 = vector.load %arg38[%c256_556, %c0_557] : memref<288x256xf32, #tpu.memory_space<vmem>>, vector<32x4xf32>
    tpu.vector_store %arg38[%c256_556, %c0_557], %594 {strides = array<i32>} : memref<288x256xf32, #tpu.memory_space<vmem>>, vector<32x4xf32>,
    %c0_558 = arith.constant 0 : index
    %c0_559 = arith.constant 0 : index
    %596 = vector.load %arg11[%c0_558, %c0_559] : memref<32x288xf32, #tpu.memory_space<vmem>>, vector<32x288xf32>
    %c0_560 = arith.constant 0 : index
    %c0_561 = arith.constant 0 : index
    %597 = vector.load %arg38[%c0_560, %c0_561] : memref<288x256xf32, #tpu.memory_space<vmem>>, vector<288x4xf32>
    %cst_562 = arith.constant dense<0.000000e+00> : vector<32x4xf32>
    %598 = tpu.matmul %596, %597, %cst_562 {dimension_numbers = #tpu.dot_dimension_numbers<[1], [0], [0], [1], [0, 0, 1, 1], [], []>} : vector<32x288xf32>, vector<288x4xf32>, vector<32x4xf32> -> vector<32x4xf32>
    %c0_563 = arith.constant 0 : index
    %c0_564 = arith.constant 0 : index
    %599 = vector.load %arg24[%c0_563, %c0_564] : memref<32x1xf32, #tpu.memory_space<vmem>>, vector<32x1xf32>
    %600 = vector.broadcast %599 : vector<32x1xf32> to vector<32x4xf32>
    %601 = arith.addf %598, %600 : vector<32x4xf32>
    %c0_565 = arith.constant 0 : index
    %c0_566 = arith.constant 0 : index
    %c48_567 = arith.constant 48 : index
    %602 = vector.load %arg36[%c0_565, %c0_566, %c48_567] : memref<1x32x63xf32, #tpu.memory_space<vmem>>, vector<1x32x4xf32>
    %603 = vector.shape_cast %602 : vector<1x32x4xf32> to vector<32x4xf32>
    %604 = vector.shape_cast %601 : vector<32x4xf32> to vector<1x32x4xf32>
    tpu.vector_store %arg36[%c0_565, %c0_566, %c48_567], %604 {strides = array<i32>} : memref<1x32x63xf32, #tpu.memory_space<vmem>>, vector<1x32x4xf32>,
    %cst_568 = arith.constant 0.000000e+00 : f32
    %605 = vector.broadcast %cst_568 : f32 to vector<32x4xf32>
    %606 = arith.maximumf %601, %605 : vector<32x4xf32>
    %cst_569 = arith.constant 0.000000e+00 : f32
    %607 = vector.broadcast %cst_569 : f32 to vector<32x3xf32>
    %c0_570 = arith.constant 0 : index
    %c0_571 = arith.constant 0 : index
    %608 = vector.load %arg37[%c0_570, %c0_571] : memref<32x290xf32, #tpu.memory_space<vmem>>, vector<32x3xf32>
    tpu.vector_store %arg37[%c0_570, %c0_571], %607 {strides = array<i32>} : memref<32x290xf32, #tpu.memory_space<vmem>>, vector<32x3xf32>,
    %cst_572 = arith.constant 0.000000e+00 : f32
    %609 = vector.broadcast %cst_572 : f32 to vector<32x3xf32>
    %c0_573 = arith.constant 0 : index
    %c7_574 = arith.constant 7 : index
    %610 = vector.load %arg37[%c0_573, %c7_574] : memref<32x290xf32, #tpu.memory_space<vmem>>, vector<32x3xf32>
    tpu.vector_store %arg37[%c0_573, %c7_574], %609 {strides = array<i32>} : memref<32x290xf32, #tpu.memory_space<vmem>>, vector<32x3xf32>,
    %c0_575 = arith.constant 0 : index
    %c3_576 = arith.constant 3 : index
    %611 = vector.load %arg37[%c0_575, %c3_576] : memref<32x290xf32, #tpu.memory_space<vmem>>, vector<32x4xf32>
    tpu.vector_store %arg37[%c0_575, %c3_576], %606 {strides = array<i32>} : memref<32x290xf32, #tpu.memory_space<vmem>>, vector<32x4xf32>,
    %612 = tpu.iota {dimensions = array<i32: 1>} : vector<32x4xi32>
    %c2_i32_577 = arith.constant 2 : i32
    %c0_i32_578 = arith.constant 0 : i32
    %613 = arith.cmpi eq, %c2_i32_577, %c0_i32_578 : i32
    %c1_i32_579 = arith.constant 1 : i32
    %614 = arith.select %613, %c1_i32_579, %c2_i32_577 : i32
    %615 = vector.broadcast %614 : i32 to vector<32x4xi32>
    %616 = arith.remsi %612, %615 : vector<32x4xi32>
    %c0_i32_580 = arith.constant 0 : i32
    %617 = vector.broadcast %c0_i32_580 : i32 to vector<32x4xi32>
    %618 = arith.cmpi ne, %616, %617 : vector<32x4xi32>
    %c0_i32_581 = arith.constant 0 : i32
    %619 = vector.broadcast %c0_i32_581 : i32 to vector<32x4xi32>
    %620 = arith.cmpi slt, %616, %619 : vector<32x4xi32>
    %c0_i32_582 = arith.constant 0 : i32
    %621 = arith.cmpi slt, %614, %c0_i32_582 : i32
    %622 = vector.broadcast %621 : i1 to vector<32x4xi1>
    %623 = vector.broadcast %622 : vector<32x4xi1> to vector<32x4xi1>
    %624 = arith.xori %620, %623 : vector<32x4xi1>
    %625 = arith.andi %624, %618 : vector<32x4xi1>
    %626 = vector.broadcast %614 : i32 to vector<32x4xi32>
    %627 = arith.addi %616, %626 : vector<32x4xi32>
    %628 = arith.select %625, %627, %616 : vector<32x4xi1>, vector<32x4xi32>
    %c0_i32_583 = arith.constant 0 : i32
    %629 = vector.broadcast %c0_i32_583 : i32 to vector<32x4xi32>
    %630 = arith.cmpi ne, %628, %629 : vector<32x4xi32>
    %631 = arith.extui %630 : vector<32x4xi1> to vector<32x4xi32>
    %632 = arith.sitofp %631 : vector<32x4xi32> to vector<32x4xf32>
    %c1_i32_584 = arith.constant 1 : i32
    %633 = vector.broadcast %c1_i32_584 : i32 to vector<32x4xi32>
    %634 = arith.cmpi ne, %628, %633 : vector<32x4xi32>
    %635 = arith.extui %634 : vector<32x4xi1> to vector<32x4xi32>
    %636 = arith.sitofp %635 : vector<32x4xi32> to vector<32x4xf32>
    %c0_585 = arith.constant 0 : index
    %c0_586 = arith.constant 0 : index
    %637 = vector.load %arg37[%c0_585, %c0_586] : memref<32x290xf32, #tpu.memory_space<vmem>>, vector<32x4xf32>
    %638 = arith.mulf %637, %632 : vector<32x4xf32>
    %c0_587 = arith.constant 0 : index
    %c0_588 = arith.constant 0 : index
    %639 = vector.load %arg38[%c0_587, %c0_588] : memref<288x256xf32, #tpu.memory_space<vmem>>, vector<32x4xf32>
    tpu.vector_store %arg38[%c0_587, %c0_588], %638 {strides = array<i32>} : memref<288x256xf32, #tpu.memory_space<vmem>>, vector<32x4xf32>,
    %c0_589 = arith.constant 0 : index
    %c1_590 = arith.constant 1 : index
    %640 = vector.load %arg37[%c0_589, %c1_590] : memref<32x290xf32, #tpu.memory_space<vmem>>, vector<32x4xf32>
    %c32_591 = arith.constant 32 : index
    %c0_592 = arith.constant 0 : index
    %641 = vector.load %arg38[%c32_591, %c0_592] : memref<288x256xf32, #tpu.memory_space<vmem>>, vector<32x4xf32>
    tpu.vector_store %arg38[%c32_591, %c0_592], %640 {strides = array<i32>} : memref<288x256xf32, #tpu.memory_space<vmem>>, vector<32x4xf32>,
    %c0_593 = arith.constant 0 : index
    %c2_594 = arith.constant 2 : index
    %642 = vector.load %arg37[%c0_593, %c2_594] : memref<32x290xf32, #tpu.memory_space<vmem>>, vector<32x4xf32>
    %643 = arith.mulf %642, %636 : vector<32x4xf32>
    %c64_595 = arith.constant 64 : index
    %c0_596 = arith.constant 0 : index
    %644 = vector.load %arg38[%c64_595, %c0_596] : memref<288x256xf32, #tpu.memory_space<vmem>>, vector<32x4xf32>
    tpu.vector_store %arg38[%c64_595, %c0_596], %643 {strides = array<i32>} : memref<288x256xf32, #tpu.memory_space<vmem>>, vector<32x4xf32>,
    %c0_597 = arith.constant 0 : index
    %c2_598 = arith.constant 2 : index
    %645 = vector.load %arg37[%c0_597, %c2_598] : memref<32x290xf32, #tpu.memory_space<vmem>>, vector<32x4xf32>
    %646 = arith.mulf %645, %632 : vector<32x4xf32>
    %c96_599 = arith.constant 96 : index
    %c0_600 = arith.constant 0 : index
    %647 = vector.load %arg38[%c96_599, %c0_600] : memref<288x256xf32, #tpu.memory_space<vmem>>, vector<32x4xf32>
    tpu.vector_store %arg38[%c96_599, %c0_600], %646 {strides = array<i32>} : memref<288x256xf32, #tpu.memory_space<vmem>>, vector<32x4xf32>,
    %c0_601 = arith.constant 0 : index
    %c3_602 = arith.constant 3 : index
    %648 = vector.load %arg37[%c0_601, %c3_602] : memref<32x290xf32, #tpu.memory_space<vmem>>, vector<32x4xf32>
    %c128_603 = arith.constant 128 : index
    %c0_604 = arith.constant 0 : index
    %649 = vector.load %arg38[%c128_603, %c0_604] : memref<288x256xf32, #tpu.memory_space<vmem>>, vector<32x4xf32>
    tpu.vector_store %arg38[%c128_603, %c0_604], %648 {strides = array<i32>} : memref<288x256xf32, #tpu.memory_space<vmem>>, vector<32x4xf32>,
    %c0_605 = arith.constant 0 : index
    %c4_606 = arith.constant 4 : index
    %650 = vector.load %arg37[%c0_605, %c4_606] : memref<32x290xf32, #tpu.memory_space<vmem>>, vector<32x4xf32>
    %651 = arith.mulf %650, %636 : vector<32x4xf32>
    %c160_607 = arith.constant 160 : index
    %c0_608 = arith.constant 0 : index
    %652 = vector.load %arg38[%c160_607, %c0_608] : memref<288x256xf32, #tpu.memory_space<vmem>>, vector<32x4xf32>
    tpu.vector_store %arg38[%c160_607, %c0_608], %651 {strides = array<i32>} : memref<288x256xf32, #tpu.memory_space<vmem>>, vector<32x4xf32>,
    %c0_609 = arith.constant 0 : index
    %c4_610 = arith.constant 4 : index
    %653 = vector.load %arg37[%c0_609, %c4_610] : memref<32x290xf32, #tpu.memory_space<vmem>>, vector<32x4xf32>
    %654 = arith.mulf %653, %632 : vector<32x4xf32>
    %c192_611 = arith.constant 192 : index
    %c0_612 = arith.constant 0 : index
    %655 = vector.load %arg38[%c192_611, %c0_612] : memref<288x256xf32, #tpu.memory_space<vmem>>, vector<32x4xf32>
    tpu.vector_store %arg38[%c192_611, %c0_612], %654 {strides = array<i32>} : memref<288x256xf32, #tpu.memory_space<vmem>>, vector<32x4xf32>,
    %c0_613 = arith.constant 0 : index
    %c5_614 = arith.constant 5 : index
    %656 = vector.load %arg37[%c0_613, %c5_614] : memref<32x290xf32, #tpu.memory_space<vmem>>, vector<32x4xf32>
    %c224_615 = arith.constant 224 : index
    %c0_616 = arith.constant 0 : index
    %657 = vector.load %arg38[%c224_615, %c0_616] : memref<288x256xf32, #tpu.memory_space<vmem>>, vector<32x4xf32>
    tpu.vector_store %arg38[%c224_615, %c0_616], %656 {strides = array<i32>} : memref<288x256xf32, #tpu.memory_space<vmem>>, vector<32x4xf32>,
    %c0_617 = arith.constant 0 : index
    %c6_618 = arith.constant 6 : index
    %658 = vector.load %arg37[%c0_617, %c6_618] : memref<32x290xf32, #tpu.memory_space<vmem>>, vector<32x4xf32>
    %659 = arith.mulf %658, %636 : vector<32x4xf32>
    %c256_619 = arith.constant 256 : index
    %c0_620 = arith.constant 0 : index
    %660 = vector.load %arg38[%c256_619, %c0_620] : memref<288x256xf32, #tpu.memory_space<vmem>>, vector<32x4xf32>
    tpu.vector_store %arg38[%c256_619, %c0_620], %659 {strides = array<i32>} : memref<288x256xf32, #tpu.memory_space<vmem>>, vector<32x4xf32>,
    %c0_621 = arith.constant 0 : index
    %c0_622 = arith.constant 0 : index
    %661 = vector.load %arg12[%c0_621, %c0_622] : memref<32x288xf32, #tpu.memory_space<vmem>>, vector<32x288xf32>
    %c0_623 = arith.constant 0 : index
    %c0_624 = arith.constant 0 : index
    %662 = vector.load %arg38[%c0_623, %c0_624] : memref<288x256xf32, #tpu.memory_space<vmem>>, vector<288x4xf32>
    %cst_625 = arith.constant dense<0.000000e+00> : vector<32x4xf32>
    %663 = tpu.matmul %661, %662, %cst_625 {dimension_numbers = #tpu.dot_dimension_numbers<[1], [0], [0], [1], [0, 0, 1, 1], [], []>} : vector<32x288xf32>, vector<288x4xf32>, vector<32x4xf32> -> vector<32x4xf32>
    %c0_626 = arith.constant 0 : index
    %c0_627 = arith.constant 0 : index
    %664 = vector.load %arg25[%c0_626, %c0_627] : memref<32x1xf32, #tpu.memory_space<vmem>>, vector<32x1xf32>
    %665 = vector.broadcast %664 : vector<32x1xf32> to vector<32x4xf32>
    %666 = arith.addf %663, %665 : vector<32x4xf32>
    %c0_628 = arith.constant 0 : index
    %c0_629 = arith.constant 0 : index
    %c52 = arith.constant 52 : index
    %667 = vector.load %arg36[%c0_628, %c0_629, %c52] : memref<1x32x63xf32, #tpu.memory_space<vmem>>, vector<1x32x4xf32>
    %668 = vector.shape_cast %667 : vector<1x32x4xf32> to vector<32x4xf32>
    %669 = vector.shape_cast %666 : vector<32x4xf32> to vector<1x32x4xf32>
    tpu.vector_store %arg36[%c0_628, %c0_629, %c52], %669 {strides = array<i32>} : memref<1x32x63xf32, #tpu.memory_space<vmem>>, vector<1x32x4xf32>,
    %cst_630 = arith.constant 0.000000e+00 : f32
    %670 = vector.broadcast %cst_630 : f32 to vector<32x4xf32>
    %671 = arith.maximumf %666, %670 : vector<32x4xf32>
    %cst_631 = arith.constant 0.000000e+00 : f32
    %672 = vector.broadcast %cst_631 : f32 to vector<32x3xf32>
    %c0_632 = arith.constant 0 : index
    %c0_633 = arith.constant 0 : index
    %673 = vector.load %arg37[%c0_632, %c0_633] : memref<32x290xf32, #tpu.memory_space<vmem>>, vector<32x3xf32>
    tpu.vector_store %arg37[%c0_632, %c0_633], %672 {strides = array<i32>} : memref<32x290xf32, #tpu.memory_space<vmem>>, vector<32x3xf32>,
    %cst_634 = arith.constant 0.000000e+00 : f32
    %674 = vector.broadcast %cst_634 : f32 to vector<32x3xf32>
    %c0_635 = arith.constant 0 : index
    %c7_636 = arith.constant 7 : index
    %675 = vector.load %arg37[%c0_635, %c7_636] : memref<32x290xf32, #tpu.memory_space<vmem>>, vector<32x3xf32>
    tpu.vector_store %arg37[%c0_635, %c7_636], %674 {strides = array<i32>} : memref<32x290xf32, #tpu.memory_space<vmem>>, vector<32x3xf32>,
    %c0_637 = arith.constant 0 : index
    %c3_638 = arith.constant 3 : index
    %676 = vector.load %arg37[%c0_637, %c3_638] : memref<32x290xf32, #tpu.memory_space<vmem>>, vector<32x4xf32>
    tpu.vector_store %arg37[%c0_637, %c3_638], %671 {strides = array<i32>} : memref<32x290xf32, #tpu.memory_space<vmem>>, vector<32x4xf32>,
    %677 = tpu.iota {dimensions = array<i32: 1>} : vector<32x4xi32>
    %c2_i32_639 = arith.constant 2 : i32
    %c0_i32_640 = arith.constant 0 : i32
    %678 = arith.cmpi eq, %c2_i32_639, %c0_i32_640 : i32
    %c1_i32_641 = arith.constant 1 : i32
    %679 = arith.select %678, %c1_i32_641, %c2_i32_639 : i32
    %680 = vector.broadcast %679 : i32 to vector<32x4xi32>
    %681 = arith.remsi %677, %680 : vector<32x4xi32>
    %c0_i32_642 = arith.constant 0 : i32
    %682 = vector.broadcast %c0_i32_642 : i32 to vector<32x4xi32>
    %683 = arith.cmpi ne, %681, %682 : vector<32x4xi32>
    %c0_i32_643 = arith.constant 0 : i32
    %684 = vector.broadcast %c0_i32_643 : i32 to vector<32x4xi32>
    %685 = arith.cmpi slt, %681, %684 : vector<32x4xi32>
    %c0_i32_644 = arith.constant 0 : i32
    %686 = arith.cmpi slt, %679, %c0_i32_644 : i32
    %687 = vector.broadcast %686 : i1 to vector<32x4xi1>
    %688 = vector.broadcast %687 : vector<32x4xi1> to vector<32x4xi1>
    %689 = arith.xori %685, %688 : vector<32x4xi1>
    %690 = arith.andi %689, %683 : vector<32x4xi1>
    %691 = vector.broadcast %679 : i32 to vector<32x4xi32>
    %692 = arith.addi %681, %691 : vector<32x4xi32>
    %693 = arith.select %690, %692, %681 : vector<32x4xi1>, vector<32x4xi32>
    %c0_i32_645 = arith.constant 0 : i32
    %694 = vector.broadcast %c0_i32_645 : i32 to vector<32x4xi32>
    %695 = arith.cmpi ne, %693, %694 : vector<32x4xi32>
    %696 = arith.extui %695 : vector<32x4xi1> to vector<32x4xi32>
    %697 = arith.sitofp %696 : vector<32x4xi32> to vector<32x4xf32>
    %c1_i32_646 = arith.constant 1 : i32
    %698 = vector.broadcast %c1_i32_646 : i32 to vector<32x4xi32>
    %699 = arith.cmpi ne, %693, %698 : vector<32x4xi32>
    %700 = arith.extui %699 : vector<32x4xi1> to vector<32x4xi32>
    %701 = arith.sitofp %700 : vector<32x4xi32> to vector<32x4xf32>
    %c0_647 = arith.constant 0 : index
    %c0_648 = arith.constant 0 : index
    %702 = vector.load %arg37[%c0_647, %c0_648] : memref<32x290xf32, #tpu.memory_space<vmem>>, vector<32x4xf32>
    %703 = arith.mulf %702, %697 : vector<32x4xf32>
    %c0_649 = arith.constant 0 : index
    %c0_650 = arith.constant 0 : index
    %704 = vector.load %arg38[%c0_649, %c0_650] : memref<288x256xf32, #tpu.memory_space<vmem>>, vector<32x4xf32>
    tpu.vector_store %arg38[%c0_649, %c0_650], %703 {strides = array<i32>} : memref<288x256xf32, #tpu.memory_space<vmem>>, vector<32x4xf32>,
    %c0_651 = arith.constant 0 : index
    %c1_652 = arith.constant 1 : index
    %705 = vector.load %arg37[%c0_651, %c1_652] : memref<32x290xf32, #tpu.memory_space<vmem>>, vector<32x4xf32>
    %c32_653 = arith.constant 32 : index
    %c0_654 = arith.constant 0 : index
    %706 = vector.load %arg38[%c32_653, %c0_654] : memref<288x256xf32, #tpu.memory_space<vmem>>, vector<32x4xf32>
    tpu.vector_store %arg38[%c32_653, %c0_654], %705 {strides = array<i32>} : memref<288x256xf32, #tpu.memory_space<vmem>>, vector<32x4xf32>,
    %c0_655 = arith.constant 0 : index
    %c2_656 = arith.constant 2 : index
    %707 = vector.load %arg37[%c0_655, %c2_656] : memref<32x290xf32, #tpu.memory_space<vmem>>, vector<32x4xf32>
    %708 = arith.mulf %707, %701 : vector<32x4xf32>
    %c64_657 = arith.constant 64 : index
    %c0_658 = arith.constant 0 : index
    %709 = vector.load %arg38[%c64_657, %c0_658] : memref<288x256xf32, #tpu.memory_space<vmem>>, vector<32x4xf32>
    tpu.vector_store %arg38[%c64_657, %c0_658], %708 {strides = array<i32>} : memref<288x256xf32, #tpu.memory_space<vmem>>, vector<32x4xf32>,
    %c0_659 = arith.constant 0 : index
    %c2_660 = arith.constant 2 : index
    %710 = vector.load %arg37[%c0_659, %c2_660] : memref<32x290xf32, #tpu.memory_space<vmem>>, vector<32x4xf32>
    %711 = arith.mulf %710, %697 : vector<32x4xf32>
    %c96_661 = arith.constant 96 : index
    %c0_662 = arith.constant 0 : index
    %712 = vector.load %arg38[%c96_661, %c0_662] : memref<288x256xf32, #tpu.memory_space<vmem>>, vector<32x4xf32>
    tpu.vector_store %arg38[%c96_661, %c0_662], %711 {strides = array<i32>} : memref<288x256xf32, #tpu.memory_space<vmem>>, vector<32x4xf32>,
    %c0_663 = arith.constant 0 : index
    %c3_664 = arith.constant 3 : index
    %713 = vector.load %arg37[%c0_663, %c3_664] : memref<32x290xf32, #tpu.memory_space<vmem>>, vector<32x4xf32>
    %c128_665 = arith.constant 128 : index
    %c0_666 = arith.constant 0 : index
    %714 = vector.load %arg38[%c128_665, %c0_666] : memref<288x256xf32, #tpu.memory_space<vmem>>, vector<32x4xf32>
    tpu.vector_store %arg38[%c128_665, %c0_666], %713 {strides = array<i32>} : memref<288x256xf32, #tpu.memory_space<vmem>>, vector<32x4xf32>,
    %c0_667 = arith.constant 0 : index
    %c4_668 = arith.constant 4 : index
    %715 = vector.load %arg37[%c0_667, %c4_668] : memref<32x290xf32, #tpu.memory_space<vmem>>, vector<32x4xf32>
    %716 = arith.mulf %715, %701 : vector<32x4xf32>
    %c160_669 = arith.constant 160 : index
    %c0_670 = arith.constant 0 : index
    %717 = vector.load %arg38[%c160_669, %c0_670] : memref<288x256xf32, #tpu.memory_space<vmem>>, vector<32x4xf32>
    tpu.vector_store %arg38[%c160_669, %c0_670], %716 {strides = array<i32>} : memref<288x256xf32, #tpu.memory_space<vmem>>, vector<32x4xf32>,
    %c0_671 = arith.constant 0 : index
    %c4_672 = arith.constant 4 : index
    %718 = vector.load %arg37[%c0_671, %c4_672] : memref<32x290xf32, #tpu.memory_space<vmem>>, vector<32x4xf32>
    %719 = arith.mulf %718, %697 : vector<32x4xf32>
    %c192_673 = arith.constant 192 : index
    %c0_674 = arith.constant 0 : index
    %720 = vector.load %arg38[%c192_673, %c0_674] : memref<288x256xf32, #tpu.memory_space<vmem>>, vector<32x4xf32>
    tpu.vector_store %arg38[%c192_673, %c0_674], %719 {strides = array<i32>} : memref<288x256xf32, #tpu.memory_space<vmem>>, vector<32x4xf32>,
    %c0_675 = arith.constant 0 : index
    %c5_676 = arith.constant 5 : index
    %721 = vector.load %arg37[%c0_675, %c5_676] : memref<32x290xf32, #tpu.memory_space<vmem>>, vector<32x4xf32>
    %c224_677 = arith.constant 224 : index
    %c0_678 = arith.constant 0 : index
    %722 = vector.load %arg38[%c224_677, %c0_678] : memref<288x256xf32, #tpu.memory_space<vmem>>, vector<32x4xf32>
    tpu.vector_store %arg38[%c224_677, %c0_678], %721 {strides = array<i32>} : memref<288x256xf32, #tpu.memory_space<vmem>>, vector<32x4xf32>,
    %c0_679 = arith.constant 0 : index
    %c6_680 = arith.constant 6 : index
    %723 = vector.load %arg37[%c0_679, %c6_680] : memref<32x290xf32, #tpu.memory_space<vmem>>, vector<32x4xf32>
    %724 = arith.mulf %723, %701 : vector<32x4xf32>
    %c256_681 = arith.constant 256 : index
    %c0_682 = arith.constant 0 : index
    %725 = vector.load %arg38[%c256_681, %c0_682] : memref<288x256xf32, #tpu.memory_space<vmem>>, vector<32x4xf32>
    tpu.vector_store %arg38[%c256_681, %c0_682], %724 {strides = array<i32>} : memref<288x256xf32, #tpu.memory_space<vmem>>, vector<32x4xf32>,
    %c0_683 = arith.constant 0 : index
    %c0_684 = arith.constant 0 : index
    %726 = vector.load %arg13[%c0_683, %c0_684] : memref<32x288xf32, #tpu.memory_space<vmem>>, vector<32x288xf32>
    %c0_685 = arith.constant 0 : index
    %c0_686 = arith.constant 0 : index
    %727 = vector.load %arg38[%c0_685, %c0_686] : memref<288x256xf32, #tpu.memory_space<vmem>>, vector<288x4xf32>
    %cst_687 = arith.constant dense<0.000000e+00> : vector<32x4xf32>
    %728 = tpu.matmul %726, %727, %cst_687 {dimension_numbers = #tpu.dot_dimension_numbers<[1], [0], [0], [1], [0, 0, 1, 1], [], []>} : vector<32x288xf32>, vector<288x4xf32>, vector<32x4xf32> -> vector<32x4xf32>
    %c0_688 = arith.constant 0 : index
    %c0_689 = arith.constant 0 : index
    %729 = vector.load %arg26[%c0_688, %c0_689] : memref<32x1xf32, #tpu.memory_space<vmem>>, vector<32x1xf32>
    %730 = vector.broadcast %729 : vector<32x1xf32> to vector<32x4xf32>
    %731 = arith.addf %728, %730 : vector<32x4xf32>
    %c0_690 = arith.constant 0 : index
    %c0_691 = arith.constant 0 : index
    %c56_692 = arith.constant 56 : index
    %732 = vector.load %arg36[%c0_690, %c0_691, %c56_692] : memref<1x32x63xf32, #tpu.memory_space<vmem>>, vector<1x32x4xf32>
    %733 = vector.shape_cast %732 : vector<1x32x4xf32> to vector<32x4xf32>
    %734 = vector.shape_cast %731 : vector<32x4xf32> to vector<1x32x4xf32>
    tpu.vector_store %arg36[%c0_690, %c0_691, %c56_692], %734 {strides = array<i32>} : memref<1x32x63xf32, #tpu.memory_space<vmem>>, vector<1x32x4xf32>,
    %cst_693 = arith.constant 0.000000e+00 : f32
    %735 = vector.broadcast %cst_693 : f32 to vector<32x4xf32>
    %736 = arith.maximumf %731, %735 : vector<32x4xf32>
    %c0_694 = arith.constant 0 : index
    %c0_695 = arith.constant 0 : index
    %737 = vector.load %arg39[%c0_694, %c0_695] : memref<32x320xf32, #tpu.memory_space<vmem>>, vector<32x4xf32>
    tpu.vector_store %arg39[%c0_694, %c0_695], %736 {strides = array<i32>} : memref<32x320xf32, #tpu.memory_space<vmem>>, vector<32x4xf32>,
    %c0_696 = arith.constant 0 : index
    %c0_697 = arith.constant 0 : index
    %738 = vector.load %arg33[%c0_696, %c0_697] : memref<2x1xf32, #tpu.memory_space<vmem>>, vector<2x1xf32>
    %c0_698 = arith.constant 0 : index
    %c0_699 = arith.constant 0 : index
    %739 = vector.load %arg39[%c0_698, %c0_699] : memref<32x320xf32, #tpu.memory_space<vmem>>, vector<32x2xf32>
    %c0_700 = arith.constant 0 : index
    %c2_701 = arith.constant 2 : index
    %740 = vector.load %arg39[%c0_700, %c2_701] : memref<32x320xf32, #tpu.memory_space<vmem>>, vector<32x2xf32>
    %741 = arith.addf %739, %740 : vector<32x2xf32>
    %cst_702 = arith.constant dense<0.000000e+00> : vector<32x1xf32>
    %742 = tpu.matmul %741, %738, %cst_702 {dimension_numbers = #tpu.dot_dimension_numbers<[1], [0], [0], [1], [0, 0, 1, 1], [], []>} : vector<32x2xf32>, vector<2x1xf32>, vector<32x1xf32> -> vector<32x1xf32>
    %c0_703 = arith.constant 0 : index
    %c4_704 = arith.constant 4 : index
    %743 = vector.load %arg39[%c0_703, %c4_704] : memref<32x320xf32, #tpu.memory_space<vmem>>, vector<32x1xf32>
    tpu.vector_store %arg39[%c0_703, %c4_704], %742 {strides = array<i32>} : memref<32x320xf32, #tpu.memory_space<vmem>>, vector<32x1xf32>,
    %c0_705 = arith.constant 0 : index
    %c4_706 = arith.constant 4 : index
    %744 = vector.load %arg39[%c0_705, %c4_706] : memref<32x320xf32, #tpu.memory_space<vmem>>, vector<32x1xf32>
    %cst_707 = arith.constant 0.000000e+00 : f32
    %745 = vector.broadcast %cst_707 : f32 to vector<32x2xf32>
    %c0_708 = arith.constant 0 : index
    %c0_709 = arith.constant 0 : index
    %746 = vector.load %arg37[%c0_708, %c0_709] : memref<32x290xf32, #tpu.memory_space<vmem>>, vector<32x2xf32>
    tpu.vector_store %arg37[%c0_708, %c0_709], %745 {strides = array<i32>} : memref<32x290xf32, #tpu.memory_space<vmem>>, vector<32x2xf32>,
    %cst_710 = arith.constant 0.000000e+00 : f32
    %747 = vector.broadcast %cst_710 : f32 to vector<32x2xf32>
    %c0_711 = arith.constant 0 : index
    %c3_712 = arith.constant 3 : index
    %748 = vector.load %arg37[%c0_711, %c3_712] : memref<32x290xf32, #tpu.memory_space<vmem>>, vector<32x2xf32>
    tpu.vector_store %arg37[%c0_711, %c3_712], %747 {strides = array<i32>} : memref<32x290xf32, #tpu.memory_space<vmem>>, vector<32x2xf32>,
    %c0_713 = arith.constant 0 : index
    %c2_714 = arith.constant 2 : index
    %749 = vector.load %arg37[%c0_713, %c2_714] : memref<32x290xf32, #tpu.memory_space<vmem>>, vector<32x1xf32>
    tpu.vector_store %arg37[%c0_713, %c2_714], %744 {strides = array<i32>} : memref<32x290xf32, #tpu.memory_space<vmem>>, vector<32x1xf32>,
    %750 = tpu.iota {dimensions = array<i32: 1>} : vector<32x1xi32>
    %c1_i32_715 = arith.constant 1 : i32
    %c0_i32_716 = arith.constant 0 : i32
    %751 = arith.cmpi eq, %c1_i32_715, %c0_i32_716 : i32
    %c1_i32_717 = arith.constant 1 : i32
    %752 = arith.select %751, %c1_i32_717, %c1_i32_715 : i32
    %753 = vector.broadcast %752 : i32 to vector<32x1xi32>
    %754 = arith.remsi %750, %753 : vector<32x1xi32>
    %c0_i32_718 = arith.constant 0 : i32
    %755 = vector.broadcast %c0_i32_718 : i32 to vector<32x1xi32>
    %756 = arith.cmpi ne, %754, %755 : vector<32x1xi32>
    %c0_i32_719 = arith.constant 0 : i32
    %757 = vector.broadcast %c0_i32_719 : i32 to vector<32x1xi32>
    %758 = arith.cmpi slt, %754, %757 : vector<32x1xi32>
    %c0_i32_720 = arith.constant 0 : i32
    %759 = arith.cmpi slt, %752, %c0_i32_720 : i32
    %760 = vector.broadcast %759 : i1 to vector<32x1xi1>
    %761 = vector.broadcast %760 : vector<32x1xi1> to vector<32x1xi1>
    %762 = arith.xori %758, %761 : vector<32x1xi1>
    %763 = arith.andi %762, %756 : vector<32x1xi1>
    %764 = vector.broadcast %752 : i32 to vector<32x1xi32>
    %765 = arith.addi %754, %764 : vector<32x1xi32>
    %766 = arith.select %763, %765, %754 : vector<32x1xi1>, vector<32x1xi32>
    %c0_i32_721 = arith.constant 0 : i32
    %767 = vector.broadcast %c0_i32_721 : i32 to vector<32x1xi32>
    %768 = arith.cmpi ne, %766, %767 : vector<32x1xi32>
    %769 = arith.extui %768 : vector<32x1xi1> to vector<32x1xi32>
    %770 = arith.sitofp %769 : vector<32x1xi32> to vector<32x1xf32>
    %c0_i32_722 = arith.constant 0 : i32
    %771 = vector.broadcast %c0_i32_722 : i32 to vector<32x1xi32>
    %772 = arith.cmpi ne, %766, %771 : vector<32x1xi32>
    %773 = arith.extui %772 : vector<32x1xi1> to vector<32x1xi32>
    %774 = arith.sitofp %773 : vector<32x1xi32> to vector<32x1xf32>
    %c0_723 = arith.constant 0 : index
    %c0_724 = arith.constant 0 : index
    %775 = vector.load %arg37[%c0_723, %c0_724] : memref<32x290xf32, #tpu.memory_space<vmem>>, vector<32x1xf32>
    %776 = arith.mulf %775, %770 : vector<32x1xf32>
    %c0_725 = arith.constant 0 : index
    %c0_726 = arith.constant 0 : index
    %777 = vector.load %arg38[%c0_725, %c0_726] : memref<288x256xf32, #tpu.memory_space<vmem>>, vector<32x1xf32>
    tpu.vector_store %arg38[%c0_725, %c0_726], %776 {strides = array<i32>} : memref<288x256xf32, #tpu.memory_space<vmem>>, vector<32x1xf32>,
    %c0_727 = arith.constant 0 : index
    %c1_728 = arith.constant 1 : index
    %778 = vector.load %arg37[%c0_727, %c1_728] : memref<32x290xf32, #tpu.memory_space<vmem>>, vector<32x1xf32>
    %c32_729 = arith.constant 32 : index
    %c0_730 = arith.constant 0 : index
    %779 = vector.load %arg38[%c32_729, %c0_730] : memref<288x256xf32, #tpu.memory_space<vmem>>, vector<32x1xf32>
    tpu.vector_store %arg38[%c32_729, %c0_730], %778 {strides = array<i32>} : memref<288x256xf32, #tpu.memory_space<vmem>>, vector<32x1xf32>,
    %c0_731 = arith.constant 0 : index
    %c2_732 = arith.constant 2 : index
    %780 = vector.load %arg37[%c0_731, %c2_732] : memref<32x290xf32, #tpu.memory_space<vmem>>, vector<32x1xf32>
    %781 = arith.mulf %780, %774 : vector<32x1xf32>
    %c64_733 = arith.constant 64 : index
    %c0_734 = arith.constant 0 : index
    %782 = vector.load %arg38[%c64_733, %c0_734] : memref<288x256xf32, #tpu.memory_space<vmem>>, vector<32x1xf32>
    tpu.vector_store %arg38[%c64_733, %c0_734], %781 {strides = array<i32>} : memref<288x256xf32, #tpu.memory_space<vmem>>, vector<32x1xf32>,
    %c0_735 = arith.constant 0 : index
    %c1_736 = arith.constant 1 : index
    %783 = vector.load %arg37[%c0_735, %c1_736] : memref<32x290xf32, #tpu.memory_space<vmem>>, vector<32x1xf32>
    %784 = arith.mulf %783, %770 : vector<32x1xf32>
    %c96_737 = arith.constant 96 : index
    %c0_738 = arith.constant 0 : index
    %785 = vector.load %arg38[%c96_737, %c0_738] : memref<288x256xf32, #tpu.memory_space<vmem>>, vector<32x1xf32>
    tpu.vector_store %arg38[%c96_737, %c0_738], %784 {strides = array<i32>} : memref<288x256xf32, #tpu.memory_space<vmem>>, vector<32x1xf32>,
    %c0_739 = arith.constant 0 : index
    %c2_740 = arith.constant 2 : index
    %786 = vector.load %arg37[%c0_739, %c2_740] : memref<32x290xf32, #tpu.memory_space<vmem>>, vector<32x1xf32>
    %c128_741 = arith.constant 128 : index
    %c0_742 = arith.constant 0 : index
    %787 = vector.load %arg38[%c128_741, %c0_742] : memref<288x256xf32, #tpu.memory_space<vmem>>, vector<32x1xf32>
    tpu.vector_store %arg38[%c128_741, %c0_742], %786 {strides = array<i32>} : memref<288x256xf32, #tpu.memory_space<vmem>>, vector<32x1xf32>,
    %c0_743 = arith.constant 0 : index
    %c3_744 = arith.constant 3 : index
    %788 = vector.load %arg37[%c0_743, %c3_744] : memref<32x290xf32, #tpu.memory_space<vmem>>, vector<32x1xf32>
    %789 = arith.mulf %788, %774 : vector<32x1xf32>
    %c160_745 = arith.constant 160 : index
    %c0_746 = arith.constant 0 : index
    %790 = vector.load %arg38[%c160_745, %c0_746] : memref<288x256xf32, #tpu.memory_space<vmem>>, vector<32x1xf32>
    tpu.vector_store %arg38[%c160_745, %c0_746], %789 {strides = array<i32>} : memref<288x256xf32, #tpu.memory_space<vmem>>, vector<32x1xf32>,
    %c0_747 = arith.constant 0 : index
    %c2_748 = arith.constant 2 : index
    %791 = vector.load %arg37[%c0_747, %c2_748] : memref<32x290xf32, #tpu.memory_space<vmem>>, vector<32x1xf32>
    %792 = arith.mulf %791, %770 : vector<32x1xf32>
    %c192_749 = arith.constant 192 : index
    %c0_750 = arith.constant 0 : index
    %793 = vector.load %arg38[%c192_749, %c0_750] : memref<288x256xf32, #tpu.memory_space<vmem>>, vector<32x1xf32>
    tpu.vector_store %arg38[%c192_749, %c0_750], %792 {strides = array<i32>} : memref<288x256xf32, #tpu.memory_space<vmem>>, vector<32x1xf32>,
    %c0_751 = arith.constant 0 : index
    %c3_752 = arith.constant 3 : index
    %794 = vector.load %arg37[%c0_751, %c3_752] : memref<32x290xf32, #tpu.memory_space<vmem>>, vector<32x1xf32>
    %c224_753 = arith.constant 224 : index
    %c0_754 = arith.constant 0 : index
    %795 = vector.load %arg38[%c224_753, %c0_754] : memref<288x256xf32, #tpu.memory_space<vmem>>, vector<32x1xf32>
    tpu.vector_store %arg38[%c224_753, %c0_754], %794 {strides = array<i32>} : memref<288x256xf32, #tpu.memory_space<vmem>>, vector<32x1xf32>,
    %c0_755 = arith.constant 0 : index
    %c4_756 = arith.constant 4 : index
    %796 = vector.load %arg37[%c0_755, %c4_756] : memref<32x290xf32, #tpu.memory_space<vmem>>, vector<32x1xf32>
    %797 = arith.mulf %796, %774 : vector<32x1xf32>
    %c256_757 = arith.constant 256 : index
    %c0_758 = arith.constant 0 : index
    %798 = vector.load %arg38[%c256_757, %c0_758] : memref<288x256xf32, #tpu.memory_space<vmem>>, vector<32x1xf32>
    tpu.vector_store %arg38[%c256_757, %c0_758], %797 {strides = array<i32>} : memref<288x256xf32, #tpu.memory_space<vmem>>, vector<32x1xf32>,
    %c0_759 = arith.constant 0 : index
    %c0_760 = arith.constant 0 : index
    %799 = vector.load %arg14[%c0_759, %c0_760] : memref<32x288xf32, #tpu.memory_space<vmem>>, vector<32x288xf32>
    %c0_761 = arith.constant 0 : index
    %c0_762 = arith.constant 0 : index
    %800 = vector.load %arg38[%c0_761, %c0_762] : memref<288x256xf32, #tpu.memory_space<vmem>>, vector<288x1xf32>
    %cst_763 = arith.constant dense<0.000000e+00> : vector<32x1xf32>
    %801 = tpu.matmul %799, %800, %cst_763 {dimension_numbers = #tpu.dot_dimension_numbers<[1], [0], [0], [1], [0, 0, 1, 1], [], []>} : vector<32x288xf32>, vector<288x1xf32>, vector<32x1xf32> -> vector<32x1xf32>
    %c0_764 = arith.constant 0 : index
    %c0_765 = arith.constant 0 : index
    %802 = vector.load %arg27[%c0_764, %c0_765] : memref<32x1xf32, #tpu.memory_space<vmem>>, vector<32x1xf32>
    %803 = arith.addf %801, %802 : vector<32x1xf32>
    %c0_766 = arith.constant 0 : index
    %c0_767 = arith.constant 0 : index
    %c60 = arith.constant 60 : index
    %804 = vector.load %arg36[%c0_766, %c0_767, %c60] : memref<1x32x63xf32, #tpu.memory_space<vmem>>, vector<1x32x1xf32>
    %805 = vector.shape_cast %804 : vector<1x32x1xf32> to vector<32x1xf32>
    %806 = vector.shape_cast %803 : vector<32x1xf32> to vector<1x32x1xf32>
    tpu.vector_store %arg36[%c0_766, %c0_767, %c60], %806 {strides = array<i32>} : memref<1x32x63xf32, #tpu.memory_space<vmem>>, vector<1x32x1xf32>,
    %cst_768 = arith.constant 0.000000e+00 : f32
    %807 = vector.broadcast %cst_768 : f32 to vector<32x1xf32>
    %808 = arith.maximumf %803, %807 : vector<32x1xf32>
    %cst_769 = arith.constant 0.000000e+00 : f32
    %809 = vector.broadcast %cst_769 : f32 to vector<32x2xf32>
    %c0_770 = arith.constant 0 : index
    %c0_771 = arith.constant 0 : index
    %810 = vector.load %arg37[%c0_770, %c0_771] : memref<32x290xf32, #tpu.memory_space<vmem>>, vector<32x2xf32>
    tpu.vector_store %arg37[%c0_770, %c0_771], %809 {strides = array<i32>} : memref<32x290xf32, #tpu.memory_space<vmem>>, vector<32x2xf32>,
    %cst_772 = arith.constant 0.000000e+00 : f32
    %811 = vector.broadcast %cst_772 : f32 to vector<32x2xf32>
    %c0_773 = arith.constant 0 : index
    %c3_774 = arith.constant 3 : index
    %812 = vector.load %arg37[%c0_773, %c3_774] : memref<32x290xf32, #tpu.memory_space<vmem>>, vector<32x2xf32>
    tpu.vector_store %arg37[%c0_773, %c3_774], %811 {strides = array<i32>} : memref<32x290xf32, #tpu.memory_space<vmem>>, vector<32x2xf32>,
    %c0_775 = arith.constant 0 : index
    %c2_776 = arith.constant 2 : index
    %813 = vector.load %arg37[%c0_775, %c2_776] : memref<32x290xf32, #tpu.memory_space<vmem>>, vector<32x1xf32>
    tpu.vector_store %arg37[%c0_775, %c2_776], %808 {strides = array<i32>} : memref<32x290xf32, #tpu.memory_space<vmem>>, vector<32x1xf32>,
    %814 = tpu.iota {dimensions = array<i32: 1>} : vector<32x1xi32>
    %c1_i32_777 = arith.constant 1 : i32
    %c0_i32_778 = arith.constant 0 : i32
    %815 = arith.cmpi eq, %c1_i32_777, %c0_i32_778 : i32
    %c1_i32_779 = arith.constant 1 : i32
    %816 = arith.select %815, %c1_i32_779, %c1_i32_777 : i32
    %817 = vector.broadcast %816 : i32 to vector<32x1xi32>
    %818 = arith.remsi %814, %817 : vector<32x1xi32>
    %c0_i32_780 = arith.constant 0 : i32
    %819 = vector.broadcast %c0_i32_780 : i32 to vector<32x1xi32>
    %820 = arith.cmpi ne, %818, %819 : vector<32x1xi32>
    %c0_i32_781 = arith.constant 0 : i32
    %821 = vector.broadcast %c0_i32_781 : i32 to vector<32x1xi32>
    %822 = arith.cmpi slt, %818, %821 : vector<32x1xi32>
    %c0_i32_782 = arith.constant 0 : i32
    %823 = arith.cmpi slt, %816, %c0_i32_782 : i32
    %824 = vector.broadcast %823 : i1 to vector<32x1xi1>
    %825 = vector.broadcast %824 : vector<32x1xi1> to vector<32x1xi1>
    %826 = arith.xori %822, %825 : vector<32x1xi1>
    %827 = arith.andi %826, %820 : vector<32x1xi1>
    %828 = vector.broadcast %816 : i32 to vector<32x1xi32>
    %829 = arith.addi %818, %828 : vector<32x1xi32>
    %830 = arith.select %827, %829, %818 : vector<32x1xi1>, vector<32x1xi32>
    %c0_i32_783 = arith.constant 0 : i32
    %831 = vector.broadcast %c0_i32_783 : i32 to vector<32x1xi32>
    %832 = arith.cmpi ne, %830, %831 : vector<32x1xi32>
    %833 = arith.extui %832 : vector<32x1xi1> to vector<32x1xi32>
    %834 = arith.sitofp %833 : vector<32x1xi32> to vector<32x1xf32>
    %c0_i32_784 = arith.constant 0 : i32
    %835 = vector.broadcast %c0_i32_784 : i32 to vector<32x1xi32>
    %836 = arith.cmpi ne, %830, %835 : vector<32x1xi32>
    %837 = arith.extui %836 : vector<32x1xi1> to vector<32x1xi32>
    %838 = arith.sitofp %837 : vector<32x1xi32> to vector<32x1xf32>
    %c0_785 = arith.constant 0 : index
    %c0_786 = arith.constant 0 : index
    %839 = vector.load %arg37[%c0_785, %c0_786] : memref<32x290xf32, #tpu.memory_space<vmem>>, vector<32x1xf32>
    %840 = arith.mulf %839, %834 : vector<32x1xf32>
    %c0_787 = arith.constant 0 : index
    %c0_788 = arith.constant 0 : index
    %841 = vector.load %arg38[%c0_787, %c0_788] : memref<288x256xf32, #tpu.memory_space<vmem>>, vector<32x1xf32>
    tpu.vector_store %arg38[%c0_787, %c0_788], %840 {strides = array<i32>} : memref<288x256xf32, #tpu.memory_space<vmem>>, vector<32x1xf32>,
    %c0_789 = arith.constant 0 : index
    %c1_790 = arith.constant 1 : index
    %842 = vector.load %arg37[%c0_789, %c1_790] : memref<32x290xf32, #tpu.memory_space<vmem>>, vector<32x1xf32>
    %c32_791 = arith.constant 32 : index
    %c0_792 = arith.constant 0 : index
    %843 = vector.load %arg38[%c32_791, %c0_792] : memref<288x256xf32, #tpu.memory_space<vmem>>, vector<32x1xf32>
    tpu.vector_store %arg38[%c32_791, %c0_792], %842 {strides = array<i32>} : memref<288x256xf32, #tpu.memory_space<vmem>>, vector<32x1xf32>,
    %c0_793 = arith.constant 0 : index
    %c2_794 = arith.constant 2 : index
    %844 = vector.load %arg37[%c0_793, %c2_794] : memref<32x290xf32, #tpu.memory_space<vmem>>, vector<32x1xf32>
    %845 = arith.mulf %844, %838 : vector<32x1xf32>
    %c64_795 = arith.constant 64 : index
    %c0_796 = arith.constant 0 : index
    %846 = vector.load %arg38[%c64_795, %c0_796] : memref<288x256xf32, #tpu.memory_space<vmem>>, vector<32x1xf32>
    tpu.vector_store %arg38[%c64_795, %c0_796], %845 {strides = array<i32>} : memref<288x256xf32, #tpu.memory_space<vmem>>, vector<32x1xf32>,
    %c0_797 = arith.constant 0 : index
    %c1_798 = arith.constant 1 : index
    %847 = vector.load %arg37[%c0_797, %c1_798] : memref<32x290xf32, #tpu.memory_space<vmem>>, vector<32x1xf32>
    %848 = arith.mulf %847, %834 : vector<32x1xf32>
    %c96_799 = arith.constant 96 : index
    %c0_800 = arith.constant 0 : index
    %849 = vector.load %arg38[%c96_799, %c0_800] : memref<288x256xf32, #tpu.memory_space<vmem>>, vector<32x1xf32>
    tpu.vector_store %arg38[%c96_799, %c0_800], %848 {strides = array<i32>} : memref<288x256xf32, #tpu.memory_space<vmem>>, vector<32x1xf32>,
    %c0_801 = arith.constant 0 : index
    %c2_802 = arith.constant 2 : index
    %850 = vector.load %arg37[%c0_801, %c2_802] : memref<32x290xf32, #tpu.memory_space<vmem>>, vector<32x1xf32>
    %c128_803 = arith.constant 128 : index
    %c0_804 = arith.constant 0 : index
    %851 = vector.load %arg38[%c128_803, %c0_804] : memref<288x256xf32, #tpu.memory_space<vmem>>, vector<32x1xf32>
    tpu.vector_store %arg38[%c128_803, %c0_804], %850 {strides = array<i32>} : memref<288x256xf32, #tpu.memory_space<vmem>>, vector<32x1xf32>,
    %c0_805 = arith.constant 0 : index
    %c3_806 = arith.constant 3 : index
    %852 = vector.load %arg37[%c0_805, %c3_806] : memref<32x290xf32, #tpu.memory_space<vmem>>, vector<32x1xf32>
    %853 = arith.mulf %852, %838 : vector<32x1xf32>
    %c160_807 = arith.constant 160 : index
    %c0_808 = arith.constant 0 : index
    %854 = vector.load %arg38[%c160_807, %c0_808] : memref<288x256xf32, #tpu.memory_space<vmem>>, vector<32x1xf32>
    tpu.vector_store %arg38[%c160_807, %c0_808], %853 {strides = array<i32>} : memref<288x256xf32, #tpu.memory_space<vmem>>, vector<32x1xf32>,
    %c0_809 = arith.constant 0 : index
    %c2_810 = arith.constant 2 : index
    %855 = vector.load %arg37[%c0_809, %c2_810] : memref<32x290xf32, #tpu.memory_space<vmem>>, vector<32x1xf32>
    %856 = arith.mulf %855, %834 : vector<32x1xf32>
    %c192_811 = arith.constant 192 : index
    %c0_812 = arith.constant 0 : index
    %857 = vector.load %arg38[%c192_811, %c0_812] : memref<288x256xf32, #tpu.memory_space<vmem>>, vector<32x1xf32>
    tpu.vector_store %arg38[%c192_811, %c0_812], %856 {strides = array<i32>} : memref<288x256xf32, #tpu.memory_space<vmem>>, vector<32x1xf32>,
    %c0_813 = arith.constant 0 : index
    %c3_814 = arith.constant 3 : index
    %858 = vector.load %arg37[%c0_813, %c3_814] : memref<32x290xf32, #tpu.memory_space<vmem>>, vector<32x1xf32>
    %c224_815 = arith.constant 224 : index
    %c0_816 = arith.constant 0 : index
    %859 = vector.load %arg38[%c224_815, %c0_816] : memref<288x256xf32, #tpu.memory_space<vmem>>, vector<32x1xf32>
    tpu.vector_store %arg38[%c224_815, %c0_816], %858 {strides = array<i32>} : memref<288x256xf32, #tpu.memory_space<vmem>>, vector<32x1xf32>,
    %c0_817 = arith.constant 0 : index
    %c4_818 = arith.constant 4 : index
    %860 = vector.load %arg37[%c0_817, %c4_818] : memref<32x290xf32, #tpu.memory_space<vmem>>, vector<32x1xf32>
    %861 = arith.mulf %860, %838 : vector<32x1xf32>
    %c256_819 = arith.constant 256 : index
    %c0_820 = arith.constant 0 : index
    %862 = vector.load %arg38[%c256_819, %c0_820] : memref<288x256xf32, #tpu.memory_space<vmem>>, vector<32x1xf32>
    tpu.vector_store %arg38[%c256_819, %c0_820], %861 {strides = array<i32>} : memref<288x256xf32, #tpu.memory_space<vmem>>, vector<32x1xf32>,
    %c0_821 = arith.constant 0 : index
    %c0_822 = arith.constant 0 : index
    %863 = vector.load %arg15[%c0_821, %c0_822] : memref<32x288xf32, #tpu.memory_space<vmem>>, vector<32x288xf32>
    %c0_823 = arith.constant 0 : index
    %c0_824 = arith.constant 0 : index
    %864 = vector.load %arg38[%c0_823, %c0_824] : memref<288x256xf32, #tpu.memory_space<vmem>>, vector<288x1xf32>
    %cst_825 = arith.constant dense<0.000000e+00> : vector<32x1xf32>
    %865 = tpu.matmul %863, %864, %cst_825 {dimension_numbers = #tpu.dot_dimension_numbers<[1], [0], [0], [1], [0, 0, 1, 1], [], []>} : vector<32x288xf32>, vector<288x1xf32>, vector<32x1xf32> -> vector<32x1xf32>
    %c0_826 = arith.constant 0 : index
    %c0_827 = arith.constant 0 : index
    %866 = vector.load %arg28[%c0_826, %c0_827] : memref<32x1xf32, #tpu.memory_space<vmem>>, vector<32x1xf32>
    %867 = arith.addf %865, %866 : vector<32x1xf32>
    %c0_828 = arith.constant 0 : index
    %c0_829 = arith.constant 0 : index
    %c61 = arith.constant 61 : index
    %868 = vector.load %arg36[%c0_828, %c0_829, %c61] : memref<1x32x63xf32, #tpu.memory_space<vmem>>, vector<1x32x1xf32>
    %869 = vector.shape_cast %868 : vector<1x32x1xf32> to vector<32x1xf32>
    %870 = vector.shape_cast %867 : vector<32x1xf32> to vector<1x32x1xf32>
    tpu.vector_store %arg36[%c0_828, %c0_829, %c61], %870 {strides = array<i32>} : memref<1x32x63xf32, #tpu.memory_space<vmem>>, vector<1x32x1xf32>,
    %cst_830 = arith.constant 0.000000e+00 : f32
    %871 = vector.broadcast %cst_830 : f32 to vector<32x1xf32>
    %872 = arith.maximumf %867, %871 : vector<32x1xf32>
    %cst_831 = arith.constant 0.000000e+00 : f32
    %873 = vector.broadcast %cst_831 : f32 to vector<32x2xf32>
    %c0_832 = arith.constant 0 : index
    %c0_833 = arith.constant 0 : index
    %874 = vector.load %arg37[%c0_832, %c0_833] : memref<32x290xf32, #tpu.memory_space<vmem>>, vector<32x2xf32>
    tpu.vector_store %arg37[%c0_832, %c0_833], %873 {strides = array<i32>} : memref<32x290xf32, #tpu.memory_space<vmem>>, vector<32x2xf32>,
    %cst_834 = arith.constant 0.000000e+00 : f32
    %875 = vector.broadcast %cst_834 : f32 to vector<32x2xf32>
    %c0_835 = arith.constant 0 : index
    %c3_836 = arith.constant 3 : index
    %876 = vector.load %arg37[%c0_835, %c3_836] : memref<32x290xf32, #tpu.memory_space<vmem>>, vector<32x2xf32>
    tpu.vector_store %arg37[%c0_835, %c3_836], %875 {strides = array<i32>} : memref<32x290xf32, #tpu.memory_space<vmem>>, vector<32x2xf32>,
    %c0_837 = arith.constant 0 : index
    %c2_838 = arith.constant 2 : index
    %877 = vector.load %arg37[%c0_837, %c2_838] : memref<32x290xf32, #tpu.memory_space<vmem>>, vector<32x1xf32>
    tpu.vector_store %arg37[%c0_837, %c2_838], %872 {strides = array<i32>} : memref<32x290xf32, #tpu.memory_space<vmem>>, vector<32x1xf32>,
    %878 = tpu.iota {dimensions = array<i32: 1>} : vector<32x1xi32>
    %c1_i32_839 = arith.constant 1 : i32
    %c0_i32_840 = arith.constant 0 : i32
    %879 = arith.cmpi eq, %c1_i32_839, %c0_i32_840 : i32
    %c1_i32_841 = arith.constant 1 : i32
    %880 = arith.select %879, %c1_i32_841, %c1_i32_839 : i32
    %881 = vector.broadcast %880 : i32 to vector<32x1xi32>
    %882 = arith.remsi %878, %881 : vector<32x1xi32>
    %c0_i32_842 = arith.constant 0 : i32
    %883 = vector.broadcast %c0_i32_842 : i32 to vector<32x1xi32>
    %884 = arith.cmpi ne, %882, %883 : vector<32x1xi32>
    %c0_i32_843 = arith.constant 0 : i32
    %885 = vector.broadcast %c0_i32_843 : i32 to vector<32x1xi32>
    %886 = arith.cmpi slt, %882, %885 : vector<32x1xi32>
    %c0_i32_844 = arith.constant 0 : i32
    %887 = arith.cmpi slt, %880, %c0_i32_844 : i32
    %888 = vector.broadcast %887 : i1 to vector<32x1xi1>
    %889 = vector.broadcast %888 : vector<32x1xi1> to vector<32x1xi1>
    %890 = arith.xori %886, %889 : vector<32x1xi1>
    %891 = arith.andi %890, %884 : vector<32x1xi1>
    %892 = vector.broadcast %880 : i32 to vector<32x1xi32>
    %893 = arith.addi %882, %892 : vector<32x1xi32>
    %894 = arith.select %891, %893, %882 : vector<32x1xi1>, vector<32x1xi32>
    %c0_i32_845 = arith.constant 0 : i32
    %895 = vector.broadcast %c0_i32_845 : i32 to vector<32x1xi32>
    %896 = arith.cmpi ne, %894, %895 : vector<32x1xi32>
    %897 = arith.extui %896 : vector<32x1xi1> to vector<32x1xi32>
    %898 = arith.sitofp %897 : vector<32x1xi32> to vector<32x1xf32>
    %c0_i32_846 = arith.constant 0 : i32
    %899 = vector.broadcast %c0_i32_846 : i32 to vector<32x1xi32>
    %900 = arith.cmpi ne, %894, %899 : vector<32x1xi32>
    %901 = arith.extui %900 : vector<32x1xi1> to vector<32x1xi32>
    %902 = arith.sitofp %901 : vector<32x1xi32> to vector<32x1xf32>
    %c0_847 = arith.constant 0 : index
    %c0_848 = arith.constant 0 : index
    %903 = vector.load %arg37[%c0_847, %c0_848] : memref<32x290xf32, #tpu.memory_space<vmem>>, vector<32x1xf32>
    %904 = arith.mulf %903, %898 : vector<32x1xf32>
    %c0_849 = arith.constant 0 : index
    %c0_850 = arith.constant 0 : index
    %905 = vector.load %arg38[%c0_849, %c0_850] : memref<288x256xf32, #tpu.memory_space<vmem>>, vector<32x1xf32>
    tpu.vector_store %arg38[%c0_849, %c0_850], %904 {strides = array<i32>} : memref<288x256xf32, #tpu.memory_space<vmem>>, vector<32x1xf32>,
    %c0_851 = arith.constant 0 : index
    %c1_852 = arith.constant 1 : index
    %906 = vector.load %arg37[%c0_851, %c1_852] : memref<32x290xf32, #tpu.memory_space<vmem>>, vector<32x1xf32>
    %c32_853 = arith.constant 32 : index
    %c0_854 = arith.constant 0 : index
    %907 = vector.load %arg38[%c32_853, %c0_854] : memref<288x256xf32, #tpu.memory_space<vmem>>, vector<32x1xf32>
    tpu.vector_store %arg38[%c32_853, %c0_854], %906 {strides = array<i32>} : memref<288x256xf32, #tpu.memory_space<vmem>>, vector<32x1xf32>,
    %c0_855 = arith.constant 0 : index
    %c2_856 = arith.constant 2 : index
    %908 = vector.load %arg37[%c0_855, %c2_856] : memref<32x290xf32, #tpu.memory_space<vmem>>, vector<32x1xf32>
    %909 = arith.mulf %908, %902 : vector<32x1xf32>
    %c64_857 = arith.constant 64 : index
    %c0_858 = arith.constant 0 : index
    %910 = vector.load %arg38[%c64_857, %c0_858] : memref<288x256xf32, #tpu.memory_space<vmem>>, vector<32x1xf32>
    tpu.vector_store %arg38[%c64_857, %c0_858], %909 {strides = array<i32>} : memref<288x256xf32, #tpu.memory_space<vmem>>, vector<32x1xf32>,
    %c0_859 = arith.constant 0 : index
    %c1_860 = arith.constant 1 : index
    %911 = vector.load %arg37[%c0_859, %c1_860] : memref<32x290xf32, #tpu.memory_space<vmem>>, vector<32x1xf32>
    %912 = arith.mulf %911, %898 : vector<32x1xf32>
    %c96_861 = arith.constant 96 : index
    %c0_862 = arith.constant 0 : index
    %913 = vector.load %arg38[%c96_861, %c0_862] : memref<288x256xf32, #tpu.memory_space<vmem>>, vector<32x1xf32>
    tpu.vector_store %arg38[%c96_861, %c0_862], %912 {strides = array<i32>} : memref<288x256xf32, #tpu.memory_space<vmem>>, vector<32x1xf32>,
    %c0_863 = arith.constant 0 : index
    %c2_864 = arith.constant 2 : index
    %914 = vector.load %arg37[%c0_863, %c2_864] : memref<32x290xf32, #tpu.memory_space<vmem>>, vector<32x1xf32>
    %c128_865 = arith.constant 128 : index
    %c0_866 = arith.constant 0 : index
    %915 = vector.load %arg38[%c128_865, %c0_866] : memref<288x256xf32, #tpu.memory_space<vmem>>, vector<32x1xf32>
    tpu.vector_store %arg38[%c128_865, %c0_866], %914 {strides = array<i32>} : memref<288x256xf32, #tpu.memory_space<vmem>>, vector<32x1xf32>,
    %c0_867 = arith.constant 0 : index
    %c3_868 = arith.constant 3 : index
    %916 = vector.load %arg37[%c0_867, %c3_868] : memref<32x290xf32, #tpu.memory_space<vmem>>, vector<32x1xf32>
    %917 = arith.mulf %916, %902 : vector<32x1xf32>
    %c160_869 = arith.constant 160 : index
    %c0_870 = arith.constant 0 : index
    %918 = vector.load %arg38[%c160_869, %c0_870] : memref<288x256xf32, #tpu.memory_space<vmem>>, vector<32x1xf32>
    tpu.vector_store %arg38[%c160_869, %c0_870], %917 {strides = array<i32>} : memref<288x256xf32, #tpu.memory_space<vmem>>, vector<32x1xf32>,
    %c0_871 = arith.constant 0 : index
    %c2_872 = arith.constant 2 : index
    %919 = vector.load %arg37[%c0_871, %c2_872] : memref<32x290xf32, #tpu.memory_space<vmem>>, vector<32x1xf32>
    %920 = arith.mulf %919, %898 : vector<32x1xf32>
    %c192_873 = arith.constant 192 : index
    %c0_874 = arith.constant 0 : index
    %921 = vector.load %arg38[%c192_873, %c0_874] : memref<288x256xf32, #tpu.memory_space<vmem>>, vector<32x1xf32>
    tpu.vector_store %arg38[%c192_873, %c0_874], %920 {strides = array<i32>} : memref<288x256xf32, #tpu.memory_space<vmem>>, vector<32x1xf32>,
    %c0_875 = arith.constant 0 : index
    %c3_876 = arith.constant 3 : index
    %922 = vector.load %arg37[%c0_875, %c3_876] : memref<32x290xf32, #tpu.memory_space<vmem>>, vector<32x1xf32>
    %c224_877 = arith.constant 224 : index
    %c0_878 = arith.constant 0 : index
    %923 = vector.load %arg38[%c224_877, %c0_878] : memref<288x256xf32, #tpu.memory_space<vmem>>, vector<32x1xf32>
    tpu.vector_store %arg38[%c224_877, %c0_878], %922 {strides = array<i32>} : memref<288x256xf32, #tpu.memory_space<vmem>>, vector<32x1xf32>,
    %c0_879 = arith.constant 0 : index
    %c4_880 = arith.constant 4 : index
    %924 = vector.load %arg37[%c0_879, %c4_880] : memref<32x290xf32, #tpu.memory_space<vmem>>, vector<32x1xf32>
    %925 = arith.mulf %924, %902 : vector<32x1xf32>
    %c256_881 = arith.constant 256 : index
    %c0_882 = arith.constant 0 : index
    %926 = vector.load %arg38[%c256_881, %c0_882] : memref<288x256xf32, #tpu.memory_space<vmem>>, vector<32x1xf32>
    tpu.vector_store %arg38[%c256_881, %c0_882], %925 {strides = array<i32>} : memref<288x256xf32, #tpu.memory_space<vmem>>, vector<32x1xf32>,
    %c0_883 = arith.constant 0 : index
    %c0_884 = arith.constant 0 : index
    %927 = vector.load %arg16[%c0_883, %c0_884] : memref<32x288xf32, #tpu.memory_space<vmem>>, vector<32x288xf32>
    %c0_885 = arith.constant 0 : index
    %c0_886 = arith.constant 0 : index
    %928 = vector.load %arg38[%c0_885, %c0_886] : memref<288x256xf32, #tpu.memory_space<vmem>>, vector<288x1xf32>
    %cst_887 = arith.constant dense<0.000000e+00> : vector<32x1xf32>
    %929 = tpu.matmul %927, %928, %cst_887 {dimension_numbers = #tpu.dot_dimension_numbers<[1], [0], [0], [1], [0, 0, 1, 1], [], []>} : vector<32x288xf32>, vector<288x1xf32>, vector<32x1xf32> -> vector<32x1xf32>
    %c0_888 = arith.constant 0 : index
    %c0_889 = arith.constant 0 : index
    %930 = vector.load %arg29[%c0_888, %c0_889] : memref<32x1xf32, #tpu.memory_space<vmem>>, vector<32x1xf32>
    %931 = arith.addf %929, %930 : vector<32x1xf32>
    %c0_890 = arith.constant 0 : index
    %c0_891 = arith.constant 0 : index
    %c62 = arith.constant 62 : index
    %932 = vector.load %arg36[%c0_890, %c0_891, %c62] : memref<1x32x63xf32, #tpu.memory_space<vmem>>, vector<1x32x1xf32>
    %933 = vector.shape_cast %932 : vector<1x32x1xf32> to vector<32x1xf32>
    %934 = vector.shape_cast %931 : vector<32x1xf32> to vector<1x32x1xf32>
    tpu.vector_store %arg36[%c0_890, %c0_891, %c62], %934 {strides = array<i32>} : memref<1x32x63xf32, #tpu.memory_space<vmem>>, vector<1x32x1xf32>,
    return
  }
  func.func @transform_0(%arg0: i32) -> (i32, i32, i32) {
    %c0_i32 = arith.constant 0 : i32
    %c0_i32_0 = arith.constant 0 : i32
    %c0_i32_1 = arith.constant 0 : i32
    return %arg0, %c0_i32, %c0_i32_0 : i32, i32, i32
  }
  func.func @transform_1(%arg0: i32) -> (i32, i32) {
    %c0_i32 = arith.constant 0 : i32
    %c0_i32_0 = arith.constant 0 : i32
    %c0_i32_1 = arith.constant 0 : i32
    return %c0_i32, %c0_i32_0 : i32, i32
  }
  func.func @transform_2(%arg0: i32) -> (i32, i32) {
    %c0_i32 = arith.constant 0 : i32
    %c0_i32_0 = arith.constant 0 : i32
    %c0_i32_1 = arith.constant 0 : i32
    return %c0_i32, %c0_i32_0 : i32, i32
  }
  func.func @transform_3(%arg0: i32) -> (i32, i32) {
    %c0_i32 = arith.constant 0 : i32
    %c0_i32_0 = arith.constant 0 : i32
    %c0_i32_1 = arith.constant 0 : i32
    return %c0_i32, %c0_i32_0 : i32, i32
  }
  func.func @transform_4(%arg0: i32) -> (i32, i32) {
    %c0_i32 = arith.constant 0 : i32
    %c0_i32_0 = arith.constant 0 : i32
    %c0_i32_1 = arith.constant 0 : i32
    return %c0_i32, %c0_i32_0 : i32, i32
  }
  func.func @transform_5(%arg0: i32) -> (i32, i32) {
    %c0_i32 = arith.constant 0 : i32
    %c0_i32_0 = arith.constant 0 : i32
    %c0_i32_1 = arith.constant 0 : i32
    return %c0_i32, %c0_i32_0 : i32, i32
  }
  func.func @transform_6(%arg0: i32) -> (i32, i32) {
    %c0_i32 = arith.constant 0 : i32
    %c0_i32_0 = arith.constant 0 : i32
    %c0_i32_1 = arith.constant 0 : i32
    return %c0_i32, %c0_i32_0 : i32, i32
  }
  func.func @transform_7(%arg0: i32) -> (i32, i32) {
    %c0_i32 = arith.constant 0 : i32
    %c0_i32_0 = arith.constant 0 : i32
    %c0_i32_1 = arith.constant 0 : i32
    return %c0_i32, %c0_i32_0 : i32, i32
  }
  func.func @transform_8(%arg0: i32) -> (i32, i32) {
    %c0_i32 = arith.constant 0 : i32
    %c0_i32_0 = arith.constant 0 : i32
    %c0_i32_1 = arith.constant 0 : i32
    return %c0_i32, %c0_i32_0 : i32, i32
  }
  func.func @transform_9(%arg0: i32) -> (i32, i32) {
    %c0_i32 = arith.constant 0 : i32
    %c0_i32_0 = arith.constant 0 : i32
    %c0_i32_1 = arith.constant 0 : i32
    return %c0_i32, %c0_i32_0 : i32, i32
  }
  func.func @transform_10(%arg0: i32) -> (i32, i32) {
    %c0_i32 = arith.constant 0 : i32
    %c0_i32_0 = arith.constant 0 : i32
    %c0_i32_1 = arith.constant 0 : i32
    return %c0_i32, %c0_i32_0 : i32, i32
  }
  func.func @transform_11(%arg0: i32) -> (i32, i32) {
    %c0_i32 = arith.constant 0 : i32
    %c0_i32_0 = arith.constant 0 : i32
    %c0_i32_1 = arith.constant 0 : i32
    return %c0_i32, %c0_i32_0 : i32, i32
  }
  func.func @transform_12(%arg0: i32) -> (i32, i32) {
    %c0_i32 = arith.constant 0 : i32
    %c0_i32_0 = arith.constant 0 : i32
    %c0_i32_1 = arith.constant 0 : i32
    return %c0_i32, %c0_i32_0 : i32, i32
  }
  func.func @transform_13(%arg0: i32) -> (i32, i32) {
    %c0_i32 = arith.constant 0 : i32
    %c0_i32_0 = arith.constant 0 : i32
    %c0_i32_1 = arith.constant 0 : i32
    return %c0_i32, %c0_i32_0 : i32, i32
  }
  func.func @transform_14(%arg0: i32) -> (i32, i32) {
    %c0_i32 = arith.constant 0 : i32
    %c0_i32_0 = arith.constant 0 : i32
    %c0_i32_1 = arith.constant 0 : i32
    return %c0_i32, %c0_i32_0 : i32, i32
  }
  func.func @transform_15(%arg0: i32) -> (i32, i32) {
    %c0_i32 = arith.constant 0 : i32
    %c0_i32_0 = arith.constant 0 : i32
    %c0_i32_1 = arith.constant 0 : i32
    return %c0_i32, %c0_i32_0 : i32, i32
  }
  func.func @transform_16(%arg0: i32) -> (i32, i32) {
    %c0_i32 = arith.constant 0 : i32
    %c0_i32_0 = arith.constant 0 : i32
    %c0_i32_1 = arith.constant 0 : i32
    return %c0_i32, %c0_i32_0 : i32, i32
  }
  func.func @transform_17(%arg0: i32) -> (i32, i32) {
    %c0_i32 = arith.constant 0 : i32
    %c0_i32_0 = arith.constant 0 : i32
    %c0_i32_1 = arith.constant 0 : i32
    return %c0_i32, %c0_i32_0 : i32, i32
  }
  func.func @transform_18(%arg0: i32) -> (i32, i32) {
    %c0_i32 = arith.constant 0 : i32
    %c0_i32_0 = arith.constant 0 : i32
    %c0_i32_1 = arith.constant 0 : i32
    return %c0_i32, %c0_i32_0 : i32, i32
  }
  func.func @transform_19(%arg0: i32) -> (i32, i32) {
    %c0_i32 = arith.constant 0 : i32
    %c0_i32_0 = arith.constant 0 : i32
    %c0_i32_1 = arith.constant 0 : i32
    return %c0_i32, %c0_i32_0 : i32, i32
  }
  func.func @transform_20(%arg0: i32) -> (i32, i32) {
    %c0_i32 = arith.constant 0 : i32
    %c0_i32_0 = arith.constant 0 : i32
    %c0_i32_1 = arith.constant 0 : i32
    return %c0_i32, %c0_i32_0 : i32, i32
  }
  func.func @transform_21(%arg0: i32) -> (i32, i32) {
    %c0_i32 = arith.constant 0 : i32
    %c0_i32_0 = arith.constant 0 : i32
    %c0_i32_1 = arith.constant 0 : i32
    return %c0_i32, %c0_i32_0 : i32, i32
  }
  func.func @transform_22(%arg0: i32) -> (i32, i32) {
    %c0_i32 = arith.constant 0 : i32
    %c0_i32_0 = arith.constant 0 : i32
    %c0_i32_1 = arith.constant 0 : i32
    return %c0_i32, %c0_i32_0 : i32, i32
  }
  func.func @transform_23(%arg0: i32) -> (i32, i32) {
    %c0_i32 = arith.constant 0 : i32
    %c0_i32_0 = arith.constant 0 : i32
    %c0_i32_1 = arith.constant 0 : i32
    return %c0_i32, %c0_i32_0 : i32, i32
  }
  func.func @transform_24(%arg0: i32) -> (i32, i32) {
    %c0_i32 = arith.constant 0 : i32
    %c0_i32_0 = arith.constant 0 : i32
    %c0_i32_1 = arith.constant 0 : i32
    return %c0_i32, %c0_i32_0 : i32, i32
  }
  func.func @transform_25(%arg0: i32) -> (i32, i32) {
    %c0_i32 = arith.constant 0 : i32
    %c0_i32_0 = arith.constant 0 : i32
    %c0_i32_1 = arith.constant 0 : i32
    return %c0_i32, %c0_i32_0 : i32, i32
  }
  func.func @transform_26(%arg0: i32) -> (i32, i32) {
    %c0_i32 = arith.constant 0 : i32
    %c0_i32_0 = arith.constant 0 : i32
    %c0_i32_1 = arith.constant 0 : i32
    return %c0_i32, %c0_i32_0 : i32, i32
  }
  func.func @transform_27(%arg0: i32) -> (i32, i32) {
    %c0_i32 = arith.constant 0 : i32
    %c0_i32_0 = arith.constant 0 : i32
    %c0_i32_1 = arith.constant 0 : i32
    return %c0_i32, %c0_i32_0 : i32, i32
  }
  func.func @transform_28(%arg0: i32) -> (i32, i32) {
    %c0_i32 = arith.constant 0 : i32
    %c0_i32_0 = arith.constant 0 : i32
    %c0_i32_1 = arith.constant 0 : i32
    return %c0_i32, %c0_i32_0 : i32, i32
  }
  func.func @transform_29(%arg0: i32) -> (i32, i32) {
    %c0_i32 = arith.constant 0 : i32
    %c0_i32_0 = arith.constant 0 : i32
    %c0_i32_1 = arith.constant 0 : i32
    return %c0_i32, %c0_i32_0 : i32, i32
  }
  func.func @transform_30(%arg0: i32) -> (i32, i32) {
    %c0_i32 = arith.constant 0 : i32
    %c0_i32_0 = arith.constant 0 : i32
    %c0_i32_1 = arith.constant 0 : i32
    return %c0_i32, %c0_i32_0 : i32, i32
  }
  func.func @transform_31(%arg0: i32) -> (i32, i32) {
    %c0_i32 = arith.constant 0 : i32
    %c0_i32_0 = arith.constant 0 : i32
    %c0_i32_1 = arith.constant 0 : i32
    return %c0_i32, %c0_i32_0 : i32, i32
  }
  func.func @transform_32(%arg0: i32) -> (i32, i32) {
    %c0_i32 = arith.constant 0 : i32
    %c0_i32_0 = arith.constant 0 : i32
    %c0_i32_1 = arith.constant 0 : i32
    return %c0_i32, %c0_i32_0 : i32, i32
  }
  func.func @transform_33(%arg0: i32) -> (i32, i32, i32) {
    %c0_i32 = arith.constant 0 : i32
    %c0_i32_0 = arith.constant 0 : i32
    %c0_i32_1 = arith.constant 0 : i32
    return %arg0, %c0_i32, %c0_i32_0 : i32, i32, i32
  }
  func.func @transform_34(%arg0: i32) -> (i32, i32, i32) {
    %c0_i32 = arith.constant 0 : i32
    %c0_i32_0 = arith.constant 0 : i32
    %c0_i32_1 = arith.constant 0 : i32
    return %arg0, %c0_i32, %c0_i32_0 : i32, i32, i32
  }
  func.func @transform_35(%arg0: i32) -> (i32, i32, i32) {
    %c0_i32 = arith.constant 0 : i32
    %c0_i32_0 = arith.constant 0 : i32
    %c0_i32_1 = arith.constant 0 : i32
    return %arg0, %c0_i32, %c0_i32_0 : i32, i32, i32
  }
}

</mosaic_0001>

<bundles_post_ra>
// kernel: vgg_style_transfer_forward.1
= control target key start
LH: loop header
LB: loop body
LE: loop exit
PB: predicated region body
PF: predicated region fallthrough
CT: control target
= control target key end

     0   :  { %s9915_s6 = smov 1   ;;  %s9916_s10 = smov 2   ;;  %s12156_s0 = inlined_call_operand.smem [shape: u32[36], index: -1, kind: input, shape index: {}] }
   0x1   :  { %s10005_s5 = sld [smem:[%s12156_s0]]   ;;  %s9917_s14 = smov 3  }
   0x2   :  { %s10010_s9 = sld [smem:[%s12156_s0 + %s9915_s6]]   ;;  %s9918_s18 = smov 4  }
   0x3   :  { %s10015_s13 = sld [smem:[%s12156_s0 + %s9916_s10]]   ;;  %s9919_s22 = smov 5  }
   0x4   :  { %s10020_s17 = sld [smem:[%s12156_s0 + %s9917_s14]]   ;;  %s9920_s26 = smov 6  }
   0x5   :  { %s10025_s21 = sld [smem:[%s12156_s0 + %s9918_s18]]   ;;  %s9921_s30 = smov 7  }
   0x6   :  { %s10030_s25 = sld [smem:[%s12156_s0 + %s9919_s22]]   ;;  %s9922_s4 = smov 8  }
   0x7   :  { %12234 = sst [smem:[#allocation5_spill]] %s10005_s5  ;;  %s9923_s10 = smov 9  }
   0x8   :  { %s10035_s29 = sld [smem:[%s12156_s0 + %s9920_s26]]   ;;  %s9924_s15 = smov 10  }
   0x9   :  { %s10040_s3 = sld [smem:[%s12156_s0 + %s9921_s30]]   ;;  %s9925_s20 = smov 11  }
   0xa   :  { %s10045_s8 = sld [smem:[%s12156_s0 + %s9922_s4]]   ;;  %s9926_s26 = smov 12  }
   0xb   :  { %s10050_s14 = sld [smem:[%s12156_s0 + %s9923_s10]]   ;;  %s9927_s1 = smov 13  }
   0xc   :  { %s10055_s19 = sld [smem:[%s12156_s0 + %s9924_s15]]   ;;  %s9928_s7 = smov 14  }
   0xd   :  { %s10060_s24 = sld [smem:[%s12156_s0 + %s9925_s20]]   ;;  %s9929_s15 = smov 15  }
   0xe   :  { %s10065_s30 = sld [smem:[%s12156_s0 + %s9926_s26]]   ;;  %s9930_s22 = smov 16  }
   0xf   :  { %12235 = sst [smem:[#allocation6_spill]] %s10040_s3  ;;  %s9931_s28 = smov 17  }
  0x10   :  { %12236 = sst [smem:[#allocation7_spill]] %s10045_s8 }
  0x11   :  { %12237 = sst [smem:[#allocation8_spill]] %s10050_s14 }
  0x12   :  { %12238 = sst [smem:[#allocation9_spill]] %s10055_s19 }
  0x13   :  { %12239 = sst [smem:[#allocation10_spill]] %s10060_s24 }
  0x14   :  { %12240 = sst [smem:[#allocation11_spill]] %s10065_s30 }
  0x15   :  { %s10070_s6 = sld [smem:[%s12156_s0 + %s9927_s1]]  }
  0x16   :  { %s10075_s12 = sld [smem:[%s12156_s0 + %s9928_s7]]   ;;  %s9932_s7 = smov 18  }
  0x17   :  { %s10080_s20 = sld [smem:[%s12156_s0 + %s9929_s15]]   ;;  %s9933_s15 = smov 19  }
  0x18   :  { %s10085_s27 = sld [smem:[%s12156_s0 + %s9930_s22]]   ;;  %s9934_s22 = smov 20  }
  0x19   :  { %s10090_s4 = sld [smem:[%s12156_s0 + %s9931_s28]]   ;;  %s9935_s28 = smov 21  }
  0x1a   :  { %s10110_s30 = sld [smem:[%s12156_s0 + %s9935_s28]]   ;;  %s9939_s28 = smov 25  }
  0x1b   :  { %12241 = sst [smem:[#allocation12_spill]] %s10070_s6 }
  0x1c   :  { %12242 = sst [smem:[#allocation13_spill]] %s10075_s12 }
  0x1d   :  { %12243 = sst [smem:[#allocation14_spill]] %s10080_s20 }
  0x1e   :  { %s10095_s12 = sld [smem:[%s12156_s0 + %s9932_s7]]   ;;  %s9936_s7 = smov 22  }
  0x1f   :  { %12244 = sst [smem:[#allocation15_spill]] %s10090_s4 }
  0x20   :  { %s10100_s20 = sld [smem:[%s12156_s0 + %s9933_s15]]   ;;  %s9937_s15 = smov 23  }
  0x21   :  { %s10105_s6 = sld [smem:[%s12156_s0 + %s9934_s22]]   ;;  %s9938_s22 = smov 24  }
  0x22   :  { %12246 = sst [smem:[#allocation17_spill]] %s10110_s30 }
  0x23   :  { %s10115_s24 = sld [smem:[%s12156_s0 + %s9936_s7]]   ;;  %s9940_s7 = smov 26  }
  0x24   :  { %s10120_s19 = sld [smem:[%s12156_s0 + %s9937_s15]]   ;;  %s9941_s15 = smov 27  }
  0x25   :  { %s10125_s14 = sld [smem:[%s12156_s0 + %s9938_s22]]   ;;  %s9942_s22 = smov 28  }
  0x26   :  { %s10130_s30 = sld [smem:[%s12156_s0 + %s9939_s28]]   ;;  %s9943_s28 = smov 29  }
  0x27   :  { %12245 = sst [smem:[#allocation16_spill]] %s10105_s6 }
  0x29   :  { %12247 = sst [smem:[#allocation18_spill]] %s10115_s24 }
  0x2a   :  { %12248 = sst [smem:[#allocation19_spill]] %s10120_s19 }
  0x2b   :  { %12249 = sst [smem:[#allocation20_spill]] %s10125_s14 }
  0x2c   :  { %12250 = sst [smem:[#allocation21_spill]] %s10130_s30 }
  0x2d   :  { %s10135_s24 = sld [smem:[%s12156_s0 + %s9940_s7]]   ;;  %s9944_s7 = smov 30  }
  0x2e   :  { %s10140_s19 = sld [smem:[%s12156_s0 + %s9941_s15]]   ;;  %s9945_s15 = smov 31  }
  0x2f   :  { %s10145_s14 = sld [smem:[%s12156_s0 + %s9942_s22]]   ;;  %s9946_s22 = smov 32  }
  0x30   :  { %s10150_s30 = sld [smem:[%s12156_s0 + %s9943_s28]]   ;;  %s9947_s28 = smov 33  }
  0x31   :  { %s10170_s8 = sld [smem:[%s12156_s0 + %s9947_s28]]  }
  0x33   :  { %12251 = sst [smem:[#allocation22_spill]] %s10135_s24 }
  0x34   :  { %12252 = sst [smem:[#allocation23_spill]] %s10140_s19 }
  0x35   :  { %12253 = sst [smem:[#allocation24_spill]] %s10145_s14 }
  0x36   :  { %s10155_s24 = sld [smem:[%s12156_s0 + %s9944_s7]]   ;;  %s9948_s7 = smov 34  }
  0x37   :  { %s10160_s19 = sld [smem:[%s12156_s0 + %s9945_s15]]   ;;  %s9949_s15 = smov 35  }
  0x38   :  { %s10165_s14 = sld [smem:[%s12156_s0 + %s9946_s22]]   ;;  %s10182_s22 = smov 0  }
  0x39   :  { %12255 = sst [smem:[#allocation26_spill]] %s10170_s8 }
  0x3a   :  { %s10175_s6 = sld [smem:[%s12156_s0 + %s9948_s7]]  }
  0x3d   :  { %12254 = sst [smem:[#allocation25_spill]] %s10160_s19 }
  0x3e   :  { %s10180_s19 = sld [smem:[%s12156_s0 + %s9949_s15]]  }
  0x40   :  { %12256 = sst [smem:[#allocation27_spill]] %s10175_s6 }
  0x41 LB: > { %s12257_s3 = sld [smem:[#allocation6_spill]]  ;;  %s8531_s23 = sadd.s32 4294967295, %s9913_s22   ;;  %s9913_s22 = sphi %s10182_s22, %s82_s22  }
  0x42   : > { %p8535_p0 = scmp.ge.s32.totalorder %s9913_s22, 1  ;;  %p978_p1 = scmp.lt.s32.totalorder %s9913_s22, 3 }
  0x44   : > { %p979_p2 = pnand %p8535_p0, %p978_p1 }
  0x45   : > { %v1098_v0 = vld [vmem:[%s10010_s9] sm:$0xff] (!%p979_p2)  ;;  %v1132_v1 = vlaneseq (!%p979_p2)  ;;  %v9950_v2 = vmov (!%p979_p2), 0   ;;  %v9951_v3 = vmov (!%p979_p2), 0.0   ;;  %s12258_s5 = sld [smem:[#allocation5_spill]] (!%p979_p2)  ;;  %s12177_s0 = smov (!%p979_p2), 2   ;;  %vm1114_vm2 = vcmask (!%p979_p2), 138240  }
  0x46   : > { %982 = sbr.rel (%p979_p2) target bundleno = 11292 (0x2c1c), region = 152  ;;  %9880 = vset.pattern.permute.xlu0 (!%p979_p2), %v9950_v2  ;;  %1486 = vmatprep.mubr.f32.mxu0 (!%p979_p2), %v9951_v3  ;;  %v1106_v5 = vld [vmem:[%s10015_s13] sm:$0xff] (!%p979_p2)  ;;  %s12175_s26 = smov (!%p979_p2), 18   ;;  %1115 = vst.msk [vmem:[#allocation2] sm:$0xff] (!%p979_p2), %vm1114_vm2, %v9951_v3  ;;  %vm1116_vm3 = vcmask (!%p979_p2), 277640   ;;  %vm1128_vm6 = vcmask (!%p979_p2), 1047688  }
  0x47   : > { %1101 = vperm.xlu0 (!%p979_p2), %9880, %v1098_v0   ;;  %v10192_v4 = vand.u32 (!%p979_p2), 127, %v1132_v1  ;;  %9906 = vset.pattern.permute.xlu1 (!%p979_p2), %v9950_v2  ;;  %s9954_s28 = smov (!%p979_p2), 34   ;;  %p1076_p3 = scmp.lt.s32.totalorder (!%p979_p2), %s8531_s23, 1  ;;  %1117 = vst.msk [vmem:[#allocation2 + $0x10] sm:$0xff] (!%p979_p2), %vm1116_vm3, %v9951_v3  ;;  %vm1205_vm7 = vcmask (!%p979_p2), 15360   ;;  %vm1238_vm8 = vcmask (!%p979_p2), 130048  }
  0x48   : > { %1769 = vmatprep.mubr.f32.mxu1 (!%p979_p2), %v9951_v3  ;;  %s9955_s7 = smov (!%p979_p2), 17   ;;  %s12179_s10 = smov (!%p979_p2), 16   ;;  %vm1288_vm9 = vcmask (!%p979_p2), 146432   ;;  %vm1319_vm10 = vcmask (!%p979_p2), 261120   ;;  %vm1369_vm11 = vcmask (!%p979_p2), 277504   ;;  %v1412_v62 = vld [vmem:[%s10085_s27] sm:$0xff] (!%p979_p2) }
  0x49   : > { %v1134_v6 = vadd.s32 (!%p979_p2), 128, %v10192_v4  ;;  %v1139_v7 = vand.u32 (!%p979_p2), 15, %v10192_v4  ;;  %s12181_s11 = smov (!%p979_p2), 32   ;;  %s12204_s15 = smov (!%p979_p2), 127   ;;  %vm1189_vm12 = vcmask (!%p979_p2), 1039360   ;;  %vm1222_vm13 = vcmask (!%p979_p2), 1031168  }
  0x4a   : > { %s12200_s16 = smov (!%p979_p2), 111   ;;  %s9960_s18 = smov (!%p979_p2), 95   ;;  %vm1255_vm14 = vcmask (!%p979_p2), 916480   ;;  %vm1274_vm15 = vcmask (!%p979_p2), 908288  }
  0x4b   : > { %1109 = vperm.xlu0 (!%p979_p2), %9880, %v1106_v5   ;;  %v1146_v8 = vand.u32 (!%p979_p2), 15, %v1134_v6  ;;  %vm1165_vm0 = vcmp.ne.s32.totalorder (!%p979_p2), %v1139_v7, 15  ;;  %vm1159_vm4 = vcmp.ne.s32.totalorder (!%p979_p2), %v1139_v7, 0  ;;  %s12259_s8 = sld [smem:[#allocation26_spill]] (!%p979_p2)  ;;  %s12260_s4 = sld [smem:[#allocation15_spill]] (!%p979_p2) }
  0x4c   : > { %v8546_v9 = vsel (!%p979_p2), %vm1165_vm0, 1.0, %v9951_v3  ;;  %v10218_v19 = vsel (!%p979_p2), %vm1159_vm4, 1.0, %v9951_v3  ;;  %vm1305_vm0 = vcmask (!%p979_p2), 900096   ;;  %vm1386_vm4 = vcmask (!%p979_p2), 769024   ;;  %s12266_s6 = sld [smem:[#allocation27_spill]] (!%p979_p2) }
  0x4d   : > { %vm1166_vm1 = vcmp.ne.s32.totalorder %v1146_v8, 15  ;;  %s12309_s23 = smov (!%p1076_p3, %s8531_s23), 1  ;;  %vm1160_vm5 = vcmp.ne.s32.totalorder %v1146_v8, 0 }
  0x4e   : > { %v8547_v10 = vsel %vm1166_vm1, 1.0, %v9951_v3  ;;  %s12174_s1 = sshll.u32 %s12309_s23, 4  ;;  %v10221_v20 = vsel %vm1160_vm5, 1.0, %v9951_v3  ;;  %vm1355_vm1 = vcmask 777216   ;;  %vm1418_vm5 = vcmask 588800  }
  0x4f   : > { %v9881_v11 = vpack.i.bf16 %v8547_v10, %v8546_v9  ;;  %s1080_s2 = scalar_lea.vmem %s12258_s5, %s12174_s1  ;;  %v9886_v22 = vpack.i.bf16 %v10221_v20, %v10218_v19  ;;  %s12184_s1 = smov 96  }
  0x50   : > { %v1096_v13 = vld [vmem:[%s1080_s2] sm:$0xff]  ;;  %v1097_v15 = vld [vmem:[%s1080_s2 + $0x8] sm:$0xff]  ;;  %s12202_s2 = smov 112   ;;  %s12275_s5 = smov 10  }
  0x51   : > { %9882 = vrot.lane.b32.xlu0 %v9881_v11, %s12177_s0  ;;  %s9965_s0 = smov 94  }
  0x55   : > { %9892 = vrot.lane.b32.xlu0 %v9881_v11, %s12175_s26  ;;  %s12188_s26 = smov 110  }
  0x59   : > { %9902 = vrot.lane.b32.xlu0 %v9881_v11, %s9954_s28  ;;  %s12196_s28 = smov 126  }
  0xc6   : > { %v1102_v12 = vpop.permute.xlu0 %1101 }
  0xc7   : > { %v1104_v14 = vsub.f32 %v1096_v13, %v1102_v12  ;;  %v1105_v18 = vsub.f32 %v1097_v15, %v1102_v12 }
  0xca   : > { %v1110_v16 = vpop.permute.xlu0 %1109 }
  0xcb   : > { %v1112_v17 = vmul.f32 %v1110_v16, %v1104_v14  ;;  %v1113_v21 = vmul.f32 %v1110_v16, %v1105_v18 }
  0xcd   : > { %1120 = vrot.lane.b32.xlu1 %v1112_v17, %s9955_s7 }
  0xce   : > { %v9883_v28 = vpop.permute.xlu0 %9882 }
  0xcf   : > { %v10251_v30 = vunpack.i.h.bf16 %v9883_v28  ;;  %v10259_v33 = vunpack.i.l.bf16 %v9883_v28 }
  0xd1   : > { %1122 = vrot.lane.b32.xlu1 %v1113_v21, %s9955_s7  ;;  %v10283_v42 = vsel %vm1205_vm7, %v10259_v33, %v10251_v30 }
  0xd2   : > { %v9893_v41 = vpop.permute.xlu0 %9892 }
  0xd3   : > { %v10285_v43 = vunpack.i.h.bf16 %v9893_v41  ;;  %v10293_v46 = vunpack.i.l.bf16 %v9893_v41 }
  0xd5   : > { %9887 = vrot.lane.b32.xlu1 %v9886_v22, %s12179_s10  ;;  %v10310_v51 = vsel %vm1288_vm9, %v10293_v46, %v10285_v43  ;;  %s12183_s10 = sshll.u32 %s12309_s23, 5 }
  0xd6   : > { %v9903_v52 = vpop.permute.xlu0 %9902 }
  0xd7   : > { %v10318_v55 = vunpack.i.h.bf16 %v9903_v52  ;;  %v10320_v56 = vunpack.i.l.bf16 %v9903_v52 }
  0xd9   : > { %9897 = vrot.lane.b32.xlu1 %v9886_v22, %s12181_s11  ;;  %v10333_v59 = vsel %vm1369_vm11, %v10320_v56, %v10318_v55  ;;  %s10374_s11 = scalar_lea.vmem %s12259_s8, %s12183_s10  ;;  %s9970_s10 = smov 24   ;;  %vm2473_vm11 = vcmask 72704  }
  0xda   : > { %2684 = vst.msk [vmem:[#allocation2 + $0x18] sm:$0xff] %vm2473_vm11, %v9951_v3  ;;  %s12285_s8 = sld [smem:[#allocation17_spill]] }
 0x13f   : > { %v1121_v23 = vpop.permute.xlu1 %1120 }
 0x140   : > { %1129 = vst.msk [vmem:[#allocation2] sm:$0xff] %vm1128_vm6, %v1121_v23 }
 0x143   : > { %v1123_v24 = vpop.permute.xlu1 %1122 }
 0x144   : > { %1131 = vst.msk [vmem:[#allocation2 + $0x10] sm:$0xff] %vm1114_vm2, %v1123_v24  ;;  %v10249_v29 = vsel %vm1114_vm2, %v1121_v23, %v1123_v24 }
 0x145   : > { %v1211_v44 = vmul.f32 %v10283_v42, %v10249_v29  ;;  %v1294_v54 = vmul.f32 %v10310_v51, %v10249_v29  ;;  %v1375_v61 = vmul.f32 %v10333_v59, %v10249_v29  ;;  %v1174_v9 = vmul.f32 %v10221_v20, %v10249_v29 }
 0x147   : > { %v10230_v25 = vld [vmem:[#allocation2] sm:$0xff]  ;;  %v9888_v27 = vpop.permute.xlu1 %9887 }
 0x148   : > { %1183 = vrot.lane.b32.xlu1 %v10230_v25, %s12204_s15  ;;  %1497 = vst.msk [vmem:[#allocation2] sm:$0xff] %vm1114_vm2, %v9951_v3  ;;  %v10261_v34 = vunpack.i.h.bf16 %v9888_v27  ;;  %v10266_v35 = vunpack.i.l.bf16 %v9888_v27  ;;  %v1210_v37 = vmul.f32 %v10259_v33, %v10230_v25  ;;  %v1293_v49 = vmul.f32 %v10293_v46, %v10230_v25 }
 0x149   : > { %v1374_v63 = vmul.f32 %v10320_v56, %v10230_v25  ;;  %v1173_v10 = vmul.f32 %v10218_v19, %v10230_v25 }
 0x14a   : > { %v1243_v40 = vmul.f32 %v10266_v35, %v10230_v25  ;;  %v10298_v47 = vsel %vm1238_vm8, %v10266_v35, %v10261_v34 }
 0x14b   : > { %v10236_v26 = vld [vmem:[#allocation2 + $0x10] sm:$0xff]  ;;  %v9898_v32 = vpop.permute.xlu1 %9897  ;;  %v1244_v50 = vmul.f32 %v10298_v47, %v10249_v29 }
 0x14c   : > { %1272 = vrot.lane.b32.xlu1 %v10236_v26, %s12200_s16  ;;  %1187 = vrot.lane.b32.xlu0 %v10236_v26, %s12204_s15  ;;  %1498 = vst.msk [vmem:[#allocation2 + $0x10] sm:$0xff] %vm1116_vm3, %v9951_v3  ;;  %v1212_v31 = vmul.f32 %v10251_v30, %v10236_v26  ;;  %v10268_v36 = vunpack.i.l.bf16 %v9898_v32  ;;  %v1245_v38 = vmul.f32 %v10261_v34, %v10236_v26  ;;  %v10302_v48 = vunpack.i.h.bf16 %v9898_v32 }
 0x14d   : > { %v1295_v45 = vmul.f32 %v10285_v43, %v10236_v26  ;;  %v1376_v60 = vmul.f32 %v10318_v55, %v10236_v26  ;;  %vm1336_vm3 = vcmask 785408  }
 0x14e   : > { %v1324_v39 = vmul.f32 %v10268_v36, %v10230_v25  ;;  %v1326_v53 = vmul.f32 %v10302_v48, %v10236_v26  ;;  %v10325_v57 = vsel %vm1319_vm10, %v10268_v36, %v10302_v48 }
 0x14f   : > { %v1325_v58 = vmul.f32 %v10325_v57, %v10249_v29 }
 0x150   : > { %1353 = vrot.lane.b32.xlu1 %v10236_v26, %s9960_s18  ;;  %1268 = vrot.lane.b32.xlu0 %v10230_v25, %s12200_s16 }
 0x154   : > { %1270 = vrot.lane.b32.xlu0 %v10249_v29, %s12200_s16  ;;  %1185 = vrot.lane.b32.xlu1 %v10249_v29, %s12204_s15 }
 0x158   : > { %1351 = vrot.lane.b32.xlu0 %v10249_v29, %s9960_s18  ;;  %1220 = vrot.lane.b32.xlu1 %v1212_v31, %s12196_s28 }
 0x15c   : > { %1216 = vrot.lane.b32.xlu0 %v1210_v37, %s12196_s28  ;;  %1253 = vrot.lane.b32.xlu1 %v1245_v38, %s12202_s2 }
 0x160   : > { %1330 = vrot.lane.b32.xlu0 %v1324_v39, %s12184_s1  ;;  %1249 = vrot.lane.b32.xlu1 %v1243_v40, %s12202_s2 }
 0x164   : > { %1218 = vrot.lane.b32.xlu0 %v1211_v44, %s12196_s28  ;;  %1303 = vrot.lane.b32.xlu1 %v1295_v45, %s12188_s26 }
 0x168   : > { %1299 = vrot.lane.b32.xlu1 %v1293_v49, %s12188_s26  ;;  %1251 = vrot.lane.b32.xlu0 %v1244_v50, %s12202_s2 }
 0x16c   : > { %1334 = vrot.lane.b32.xlu1 %v1326_v53, %s12184_s1  ;;  %1301 = vrot.lane.b32.xlu0 %v1294_v54, %s12188_s26 }
 0x170   : > { %1349 = vrot.lane.b32.xlu1 %v10230_v25, %s9960_s18  ;;  %1332 = vrot.lane.b32.xlu0 %v1325_v58, %s12184_s1 }
 0x174   : > { %1384 = vrot.lane.b32.xlu1 %v1376_v60, %s9965_s0  ;;  %1382 = vrot.lane.b32.xlu0 %v1375_v61, %s9965_s0 }
 0x178   : > { %1380 = vrot.lane.b32.xlu0 %v1374_v63, %s9965_s0  ;;  %1415 = vperm.xlu1 %9906, %v1412_v62  }
 0x1ba   : > { %v1184_v0 = vpop.permute.xlu1 %1183 }
 0x1be   : > { %v1188_v1 = vpop.permute.xlu0 %1187  ;;  %v1273_v2 = vpop.permute.xlu1 %1272 }
 0x1c2   : > { %v1269_v5 = vpop.permute.xlu0 %1268  ;;  %v1354_v6 = vpop.permute.xlu1 %1353 }
 0x1c6   : > { %v1271_v7 = vpop.permute.xlu0 %1270  ;;  %v1186_v8 = vpop.permute.xlu1 %1185 }
 0x1c7   : > { %v1190_v11 = vsel %vm1189_vm12, %v1184_v0, %v1186_v8  ;;  %v1191_v12 = vsel %vm1189_vm12, %v1186_v8, %v1188_v1  ;;  %v1275_v40 = vsel %vm1274_vm15, %v1269_v5, %v1271_v7  ;;  %v1276_v41 = vsel %vm1274_vm15, %v1271_v7, %v1273_v2 }
 0x1c8   : > { %v9344_v13 = vpack.c.bf16 %v1191_v12, %v1174_v9  ;;  %v9346_v14 = vpack.c.bf16 %v1190_v11, %v1173_v10 }
 0x1ca   : > { %v1352_v15 = vpop.permute.xlu0 %1351  ;;  %v1221_v16 = vpop.permute.xlu1 %1220  ;;  %9345 = vmatprep.subr.bf16.mxu0 %v9344_v13 }
 0x1cb   : > { %9347 = vmatpush1.bf16.msra.mxu0 %v9346_v14  ;;  %v1357_v54 = vsel %vm1355_vm1, %v1352_v15, %v1354_v6  ;;  %v1393_v6 = vld [vmem:[%s10020_s17] sm:$0xff] }
 0x1ce   : > { %v1217_v17 = vpop.permute.xlu0 %1216  ;;  %v1254_v18 = vpop.permute.xlu1 %1253 }
 0x1d2   : > { %v1331_v21 = vpop.permute.xlu0 %1330  ;;  %v1250_v22 = vpop.permute.xlu1 %1249 }
 0x1d6   : > { %v1219_v23 = vpop.permute.xlu0 %1218  ;;  %v1304_v24 = vpop.permute.xlu1 %1303 }
 0x1d7   : > { %v1223_v27 = vsel %vm1222_vm13, %v1217_v17, %v1219_v23  ;;  %v1224_v28 = vsel %vm1222_vm13, %v1219_v23, %v1221_v16 }
 0x1da   : > { %v1300_v26 = vpop.permute.xlu1 %1299  ;;  %v1252_v25 = vpop.permute.xlu0 %1251 }
 0x1db   : > { %v1256_v29 = vsel %vm1255_vm14, %v1250_v22, %v1252_v25  ;;  %v1257_v31 = vsel %vm1255_vm14, %v1252_v25, %v1254_v18 }
 0x1dc   : > { %v9348_v32 = vpack.c.bf16 %v1257_v31, %v1224_v28  ;;  %v9350_v37 = vpack.c.bf16 %v1256_v29, %v1223_v27 }
 0x1de   : > { %v1335_v38 = vpop.permute.xlu1 %1334  ;;  %v1302_v39 = vpop.permute.xlu0 %1301  ;;  %9349 = vmatprep.subr.bf16.mxu0 %v9348_v32 }
 0x1df   : > { %v1306_v44 = vsel %vm1305_vm0, %v1300_v26, %v1302_v39  ;;  %v1307_v45 = vsel %vm1305_vm0, %v1302_v39, %v1304_v24  ;;  %9351 = vmatpush1.bf16.msra.mxu0 %v9350_v37 }
 0x1e0   : > { %v9352_v49 = vpack.c.bf16 %v1307_v45, %v1276_v41  ;;  %v9354_v50 = vpack.c.bf16 %v1306_v44, %v1275_v40 }
 0x1e2   : > { %v1350_v52 = vpop.permute.xlu1 %1349  ;;  %v1333_v53 = vpop.permute.xlu0 %1332  ;;  %9353 = vmatprep.subr.bf16.mxu0 %v9352_v49 }
 0x1e3   : > { %v1356_v58 = vsel %vm1355_vm1, %v1350_v52, %v1352_v15  ;;  %v1337_v60 = vsel %vm1336_vm3, %v1331_v21, %v1333_v53  ;;  %v1338_v61 = vsel %vm1336_vm3, %v1333_v53, %v1335_v38  ;;  %9355 = vmatpush1.bf16.msra.mxu0 %v9354_v50 }
 0x1e4   : > { %v9356_v62 = vpack.c.bf16 %v1357_v54, %v1338_v61  ;;  %v9358_v63 = vpack.c.bf16 %v1356_v58, %v1337_v60 }
 0x1e6   : > { %v1385_v0 = vpop.permute.xlu1 %1384  ;;  %v1383_v1 = vpop.permute.xlu0 %1382  ;;  %9357 = vmatprep.subr.bf16.mxu0 %v9356_v62 }
 0x1e7   : > { %v1388_v2 = vsel %vm1386_vm4, %v1383_v1, %v1385_v0  ;;  %9359 = vmatpush1.bf16.msra.mxu0 %v9358_v63 }
 0x1e8   : > { %1438 = vmatprep.subr.mxu0 %v1388_v2 }
 0x1ea   : > { %v1381_v5 = vpop.permute.xlu0 %1380 }
 0x1eb   : > { %v1387_v7 = vsel %vm1386_vm4, %v1381_v5, %v1383_v1 }
 0x1ec   : > { %1439 = vmatpush1.msra.mxu0 %v1387_v7 }
 0x1ed   : > { %8548 = vmatmul.mubr.msk.f32.vlgmr.msra.gmra.mrb[0].mxu0 %vm1418_vm5, %v1393_v6 }
 0x1f7   : > { %v1416_v8 = vpop.permute.xlu1 %1415 }
 0x2c0   : > { %v1488_v9 = vpop.f32.mrb[0].mxu0 }
 0x2c1   : > { %v1489_v10 = vadd.f32 %v1488_v9, %v1416_v8  ;;  %v1490_v11 = vpop.f32.mrb[1].mxu0 }
 0x2c2   : > { %v1491_v12 = vadd.f32 %v1490_v11, %v1416_v8 }
 0x2c3   : > { %1493 = vst [vmem:[%s10374_s11] sm:$0xff] %v1489_v10  ;;  %v1495_v13 = vmax.f32 %v1489_v10, 0.0 }
 0x2c4   : > { %1494 = vst [vmem:[%s10374_s11 + $0x8] sm:$0xff] %v1491_v12  ;;  %v1496_v14 = vmax.f32 %v1491_v12, 0.0 }
 0x2c5   : > { %1501 = vrot.lane.b32.xlu0 %v1495_v13, %s9955_s7 }
 0x2c6   : > { %1503 = vrot.lane.b32.xlu1 %v1496_v14, %s9955_s7  ;;  %s12261_s7 = smov 32  }
 0x337   : > { %v1502_v15 = vpop.permute.xlu0 %1501 }
 0x338   : > { %1509 = vst.msk [vmem:[#allocation2] sm:$0xff] %vm1128_vm6, %v1502_v15  ;;  %v1504_v16 = vpop.permute.xlu1 %1503  ;;  %vm1863_vm6 = vcmask 64512  }
 0x339   : > { %v1505_v17 = vsel %vm1114_vm2, %v1502_v15, %v1504_v16  ;;  %1511 = vst.msk [vmem:[#allocation2 + $0x10] sm:$0xff] %vm1114_vm2, %v1504_v16  ;;  %vm9967_vm2 = vmmov 0  }
 0x33a   : > { %v10384_v18 = vmul.f32 %v10221_v20, %v1505_v17  ;;  %9129 = vmatprep.mubr.msk.f32.mxu0 %vm9967_vm2, %v9951_v3 }
 0x33f   : > { %v1512_v21 = vld [vmem:[#allocation2] sm:$0xff] }
 0x340   : > { %v10387_v22 = vmul.f32 %v10218_v19, %v1512_v21  ;;  %1584 = vrot.lane.b32.xlu1 %v1512_v21, %s12200_s16  ;;  %1524 = vrot.lane.b32.xlu0 %v1512_v21, %s12204_s15  ;;  %v1520_v23 = vld [vmem:[#allocation2 + $0x10] sm:$0xff]  ;;  %v1539_v24 = vmul.f32 %v10259_v33, %v1512_v21  ;;  %v1560_v19 = vmul.f32 %v10266_v35, %v1512_v21 }
 0x341   : > { %v1620_v20 = vmul.f32 %v10268_v36, %v1512_v21  ;;  %v1599_v26 = vmul.f32 %v10293_v46, %v1512_v21  ;;  %v1540_v33 = vmul.f32 %v1505_v17, %v10283_v42  ;;  %v1541_v25 = vmul.f32 %v10251_v30, %v1520_v23  ;;  %2474 = vst.msk [vmem:[#allocation2] sm:$0xff] %vm2473_vm11, %v9951_v3 }
 0x342   : > { %1516 = vst [vmem:[#allocation3] sm:$0xff] %v10387_v22  ;;  %v1561_v35 = vmul.f32 %v1505_v17, %v10298_v47  ;;  %v1562_v27 = vmul.f32 %v10261_v34, %v1520_v23  ;;  %v1600_v36 = vmul.f32 %v1505_v17, %v10310_v51  ;;  %v1601_v46 = vmul.f32 %v10285_v43, %v1520_v23  ;;  %v1696_v51 = vld [vmem:[%s12260_s4] sm:$0xff]  ;;  %s12210_s4 = smov 6  }
 0x343   : > { %v1621_v30 = vmul.f32 %v1505_v17, %v10325_v57  ;;  %v1622_v42 = vmul.f32 %v10302_v48, %v1520_v23  ;;  %v1660_v34 = vmul.f32 %v1505_v17, %v10333_v59  ;;  %v1659_v43 = vmul.f32 %v10320_v56, %v1512_v21 }
 0x344   : > { %1528 = vrot.lane.b32.xlu1 %v1520_v23, %s12204_s15  ;;  %1588 = vrot.lane.b32.xlu0 %v1520_v23, %s12200_s16  ;;  %v1661_v47 = vmul.f32 %v10318_v55, %v1520_v23 }
 0x348   : > { %1545 = vrot.lane.b32.xlu1 %v1539_v24, %s12196_s28  ;;  %1648 = vrot.lane.b32.xlu0 %v1520_v23, %s9960_s18 }
 0x34c   : > { %1586 = vrot.lane.b32.xlu1 %v1505_v17, %s12200_s16  ;;  %1526 = vrot.lane.b32.xlu0 %v1505_v17, %s12204_s15 }
 0x350   : > { %1646 = vrot.lane.b32.xlu1 %v1505_v17, %s9960_s18  ;;  %1566 = vrot.lane.b32.xlu0 %v1560_v19, %s12202_s2 }
 0x354   : > { %1626 = vrot.lane.b32.xlu1 %v1620_v20, %s12184_s1  ;;  %1605 = vrot.lane.b32.xlu0 %v1599_v26, %s12188_s26  ;;  %v1677_v20 = vld [vmem:[%s10025_s21] sm:$0xff] }
 0x358   : > { %1547 = vrot.lane.b32.xlu1 %v1540_v33, %s12196_s28  ;;  %1549 = vrot.lane.b32.xlu0 %v1541_v25, %s12196_s28 }
 0x35c   : > { %1568 = vrot.lane.b32.xlu1 %v1561_v35, %s12202_s2  ;;  %1570 = vrot.lane.b32.xlu0 %v1562_v27, %s12202_s2  ;;  %v9966_v27 = vmov 0.0|0.0  }
 0x35d   : > { %9382 = vmatprep.subr.bf16.mxu0 %v9966_v27 }
 0x360   : > { %1607 = vrot.lane.b32.xlu1 %v1600_v36, %s12188_s26  ;;  %1609 = vrot.lane.b32.xlu0 %v1601_v46, %s12188_s26  ;;  %v1782_v46 = vld [vmem:[%s10150_s30] sm:$0xff]  ;;  %s12190_s26 = smov 56  }
 0x364   : > { %1628 = vrot.lane.b32.xlu1 %v1621_v30, %s12184_s1  ;;  %1630 = vrot.lane.b32.xlu0 %v1622_v42, %s12184_s1  ;;  %v1783_v30 = vld [vmem:[%s10150_s30 + $0x8] sm:$0xff] }
 0x368   : > { %1667 = vrot.lane.b32.xlu1 %v1660_v34, %s9965_s0  ;;  %1644 = vrot.lane.b32.xlu0 %v1512_v21, %s9960_s18  ;;  %v10455_v34 = vpack.c.bf16 %v1783_v30, %v1782_v46  ;;  %s12262_s18 = smov 16  }
 0x36a   : > { %9384 = vmatpush3.bf16.msra.mxu0 %v10455_v34 }
 0x36b   : > { %9388 = vmatprep.subr.bf16.mxu0 %v9966_v27 }
 0x36c   : > { %1665 = vrot.lane.b32.xlu1 %v1659_v43, %s9965_s0  ;;  %1669 = vrot.lane.b32.xlu0 %v1661_v47, %s9965_s0  ;;  %s12186_s0 = smov 64  }
 0x370   : > { %1699 = vperm.xlu0 %9880, %v1696_v51  }
 0x3b2   : > { %v1585_v48 = vpop.permute.xlu1 %1584  ;;  %v1525_v57 = vpop.permute.xlu0 %1524 }
 0x3b6   : > { %v1529_v28 = vpop.permute.xlu1 %1528  ;;  %v1589_v29 = vpop.permute.xlu0 %1588 }
 0x3ba   : > { %v1546_v31 = vpop.permute.xlu1 %1545  ;;  %v1649_v59 = vpop.permute.xlu0 %1648 }
 0x3be   : > { %v1587_v32 = vpop.permute.xlu1 %1586  ;;  %v1527_v37 = vpop.permute.xlu0 %1526 }
 0x3bf   : > { %v1590_v38 = vsel %vm1274_vm15, %v1585_v48, %v1587_v32  ;;  %v1591_v56 = vsel %vm1274_vm15, %v1587_v32, %v1589_v29  ;;  %v1530_v55 = vsel %vm1189_vm12, %v1525_v57, %v1527_v37  ;;  %v1531_v39 = vsel %vm1189_vm12, %v1527_v37, %v1529_v28 }
 0x3c0   : > { %1594 = vst [vmem:[#allocation3 + $0x40] sm:$0xff] %v1590_v38  ;;  %1534 = vst [vmem:[#allocation3 + $0x10] sm:$0xff] %v1530_v55  ;;  %v9360_v40 = vpack.c.bf16 %v1531_v39, %v10384_v18  ;;  %v9362_v41 = vpack.c.bf16 %v1530_v55, %v10387_v22  ;;  %vm2475_vm12 = vcmask 671304   ;;  %vm2124_vm15 = vcmask 261312  }
 0x3c1   : > { %2476 = vst.msk [vmem:[#allocation2] sm:$0xff] %vm2475_vm12, %v9951_v3  ;;  %2686 = vst.msk [vmem:[#allocation2 + $0x18] sm:$0xff] %vm2475_vm12, %v9951_v3 }
 0x3c2   : > { %v1647_v44 = vpop.permute.xlu1 %1646  ;;  %v1567_v45 = vpop.permute.xlu0 %1566  ;;  %9361 = vmatprep.subr.bf16.mxu1 %v9360_v40 }
 0x3c3   : > { %v1651_v49 = vsel %vm1355_vm1, %v1647_v44, %v1649_v59  ;;  %9363 = vmatpush1.bf16.msra.mxu1 %v9362_v41 }
 0x3c6   : > { %v1627_v50 = vpop.permute.xlu1 %1626  ;;  %v1606_v52 = vpop.permute.xlu0 %1605 }
 0x3ca   : > { %v1548_v53 = vpop.permute.xlu1 %1547  ;;  %v1550_v54 = vpop.permute.xlu0 %1549 }
 0x3cb   : > { %v1551_v58 = vsel %vm1222_vm13, %v1546_v31, %v1548_v53  ;;  %v1552_v60 = vsel %vm1222_vm13, %v1548_v53, %v1550_v54  ;;  %vm1950_vm13 = vcmask 130112  }
 0x3cc   : > { %1555 = vst [vmem:[#allocation3 + $0x20] sm:$0xff] %v1551_v58 }
 0x3ce   : > { %v1569_v61 = vpop.permute.xlu1 %1568  ;;  %v1571_v62 = vpop.permute.xlu0 %1570 }
 0x3cf   : > { %v1572_v63 = vsel %vm1255_vm14, %v1567_v45, %v1569_v61  ;;  %v1573_v0 = vsel %vm1255_vm14, %v1569_v61, %v1571_v62  ;;  %vm2037_vm14 = vcmask 195712  }
 0x3d0   : > { %1576 = vst [vmem:[#allocation3 + $0x30] sm:$0xff] %v1572_v63  ;;  %v9364_v1 = vpack.c.bf16 %v1573_v0, %v1552_v60  ;;  %v9366_v2 = vpack.c.bf16 %v1572_v63, %v1551_v58 }
 0x3d2   : > { %v1608_v5 = vpop.permute.xlu1 %1607  ;;  %v1610_v6 = vpop.permute.xlu0 %1609  ;;  %9365 = vmatprep.subr.bf16.mxu1 %v9364_v1 }
 0x3d3   : > { %v1611_v7 = vsel %vm1305_vm0, %v1606_v52, %v1608_v5  ;;  %v1612_v8 = vsel %vm1305_vm0, %v1608_v5, %v1610_v6  ;;  %9367 = vmatpush1.bf16.msra.mxu1 %v9366_v2  ;;  %v2487_v6 = vand.u32 7, %v10192_v4  ;;  %vm2209_vm0 = vcmask 326912  }
 0x3d4   : > { %1615 = vst [vmem:[#allocation3 + $0x50] sm:$0xff] %v1611_v7  ;;  %v9368_v9 = vpack.c.bf16 %v1612_v8, %v1591_v56  ;;  %v9370_v10 = vpack.c.bf16 %v1611_v7, %v1590_v38 }
 0x3d5   : > { %vm2498_vm9 = vcmp.ne.s32.totalorder %v2487_v6, 7 }
 0x3d6   : > { %v1629_v11 = vpop.permute.xlu1 %1628  ;;  %v1631_v12 = vpop.permute.xlu0 %1630  ;;  %9369 = vmatprep.subr.bf16.mxu1 %v9368_v9 }
 0x3d7   : > { %v1632_v13 = vsel %vm1336_vm3, %v1627_v50, %v1629_v11  ;;  %v1633_v14 = vsel %vm1336_vm3, %v1629_v11, %v1631_v12  ;;  %9371 = vmatpush1.bf16.msra.mxu1 %v9370_v10  ;;  %vm2383_vm3 = vcmask 458112  }
 0x3d8   : > { %1636 = vst [vmem:[#allocation3 + $0x60] sm:$0xff] %v1632_v13  ;;  %v9372_v15 = vpack.c.bf16 %v1651_v49, %v1633_v14 }
 0x3da   : > { %v1668_v16 = vpop.permute.xlu1 %1667  ;;  %v1645_v17 = vpop.permute.xlu0 %1644  ;;  %9373 = vmatprep.subr.bf16.mxu1 %v9372_v15 }
 0x3db   : > { %v1650_v18 = vsel %vm1355_vm1, %v1645_v17, %v1647_v44  ;;  %vm2296_vm1 = vcmask 392512  }
 0x3dc   : > { %1654 = vst [vmem:[#allocation3 + $0x70] sm:$0xff] %v1650_v18  ;;  %v9374_v21 = vpack.c.bf16 %v1650_v18, %v1632_v13  ;;  %v8559_v13 = vsel %vm2498_vm9, 1.0, %v9951_v3  ;;  %vm2481_vm9 = vcmask 597064  }
 0x3de   : > { %v1666_v22 = vpop.permute.xlu1 %1665  ;;  %v1670_v23 = vpop.permute.xlu0 %1669  ;;  %9375 = vmatpush1.bf16.msra.mxu1 %v9374_v21 }
 0x3df   : > { %v1671_v24 = vsel %vm1386_vm4, %v1666_v22, %v1668_v16  ;;  %v1672_v19 = vsel %vm1386_vm4, %v1668_v16, %v1670_v23  ;;  %vm2470_vm4 = vcmask 523712  }
 0x3e0   : > { %1675 = vst [vmem:[#allocation3 + $0x80] sm:$0xff] %v1671_v24  ;;  %1721 = vmatprep.subr.mxu1 %v1672_v19 }
 0x3e2   : > { %1722 = vmatpush1.msra.mxu1 %v1671_v24 }
 0x3e3   : > { %8549 = vmatmul.mubr.msk.f32.vlgmr.msra.gmra.mrb[0].mxu1 %vm1418_vm5, %v1677_v20  ;;  %9376 = vmatprep.subr.bf16.mxu1 %v9966_v27 }
 0x3e4   : > { %9378 = vmatpush3.bf16.msra.mxu1 %v10455_v34  ;;  %9115 = vmatprep.mubr.msk.f32.mxu1 %vm9967_vm2, %v9951_v3 }
 0x3e5   : > { %9379 = vmatprep.subr.bf16.mxu1 %v9966_v27 }
 0x3ef   : > { %v1700_v26 = vpop.permute.xlu0 %1699 }
 0x4b6   : > { %v1771_v33 = vpop.f32.mrb[0].mxu1 }
 0x4b7   : > { %v1772_v25 = vadd.f32 %v1771_v33, %v1700_v26  ;;  %v1773_v35 = vpop.f32.mrb[1].mxu1 }
 0x4b8   : > { %v1774_v36 = vadd.f32 %v1773_v35, %v1700_v26 }
 0x4b9   : > { %1776 = vst [vmem:[%s10374_s11 + $0x10] sm:$0xff] %v1772_v25  ;;  %v1778_v42 = vmax.f32 %v1772_v25, 0.0 }
 0x4ba   : > { %1777 = vst [vmem:[%s10374_s11 + $0x18] sm:$0xff] %v1774_v36  ;;  %v1779_v43 = vmax.f32 %v1774_v36, 0.0  ;;  %s12195_s11 = smov 8  }
 0x4bb   : > { %1780 = vst [vmem:[#allocation4] sm:$0xff] %v1778_v42  ;;  %1954 = vrot.lane.b32.xlu0 %v1778_v42, %s12202_s2  ;;  %1867 = vrot.lane.b32.xlu1 %v1778_v42, %s12202_s2 }
 0x4bf   : > { %2213 = vrot.lane.b32.xlu0 %v1779_v43, %s12202_s2  ;;  %2041 = vrot.lane.b32.xlu1 %v1778_v42, %s12202_s2 }
 0x4c3   : > { %2387 = vrot.lane.b32.xlu0 %v1779_v43, %s12202_s2  ;;  %2300 = vrot.lane.b32.xlu1 %v1779_v43, %s12202_s2 }
 0x4c7   : > { %1786 = vrot.lane.b32.xlu1 %v1778_v42, %s12202_s2 }
 0x52d   : > { %v1955_v47 = vpop.permute.xlu0 %1954  ;;  %v1868_v51 = vpop.permute.xlu1 %1867 }
 0x52e   : > { %v1957_v48 = vadd.f32 %v1955_v47, %v1778_v42  ;;  %v1870_v57 = vadd.f32 %v1868_v51, %v1778_v42  ;;  %v2586_v51 = vld [vmem:[%s10095_s12] sm:$0xff] }
 0x530   : > { %1872 = vrot.lane.b32.xlu0 %v1870_v57, %s12184_s1  ;;  %1959 = vrot.lane.b32.xlu1 %v1957_v48, %s12186_s0  ;;  %v2575_v48 = vld [vmem:[%s10030_s25] sm:$0xff]  ;;  %v2587_v57 = vld [vmem:[%s10095_s12 + $0x8] sm:$0xff] }
 0x531   : > { %v2214_v28 = vpop.permute.xlu0 %2213  ;;  %v2042_v29 = vpop.permute.xlu1 %2041 }
 0x532   : > { %v2044_v31 = vadd.f32 %v2042_v29, %v1778_v42  ;;  %v2216_v32 = vadd.f32 %v2214_v28, %v1779_v43 }
 0x534   : > { %2046 = vrot.lane.b32.xlu0 %v2044_v31, %s12261_s7  ;;  %2128 = vrot.lane.b32.xlu1 %v1779_v43, %s12202_s2 }
 0x535   : > { %v2301_v59 = vpop.permute.xlu1 %2300  ;;  %v2388_v38 = vpop.permute.xlu0 %2387 }
 0x536   : > { %v2303_v37 = vadd.f32 %v2301_v59, %v1779_v43  ;;  %v2390_v55 = vadd.f32 %v2388_v38, %v1779_v43 }
 0x538   : > { %2218 = vrot.lane.b32.xlu0 %v2216_v32, %s12184_s1  ;;  %2305 = vrot.lane.b32.xlu1 %v2303_v37, %s12186_s0  ;;  %s9971_s1 = smov 40   ;;  %s12192_s0 = smov 48  }
 0x539   : > { %v1787_v56 = vpop.permute.xlu1 %1786 }
 0x53a   : > { %v1789_v39 = vadd.f32 %v1787_v56, %v1778_v42 }
 0x53c   : > { %2392 = vrot.lane.b32.xlu0 %v2390_v55, %s12261_s7  ;;  %9116 = vmatmul.mubr.msk.f32.vlgmr.msra.gmra.mrb[2].mxu1 %vm1238_vm8, %v1789_v39 }
 0x53d   : > { %9381 = vmatpush3.bf16.msra.mxu1 %v10455_v34  ;;  %9122 = vmatprep.mubr.msk.f32.mxu1 %vm9967_vm2, %v9951_v3 }
 0x53e   : > { %9385 = vmatprep.subr.bf16.mxu1 %v9966_v27 }
 0x5a2   : > { %v1873_v40 = vpop.permute.xlu0 %1872  ;;  %v1960_v41 = vpop.permute.xlu1 %1959 }
 0x5a3   : > { %9123 = vmatmul.mubr.msk.f32.vlgmr.msra.gmra.mrb[4].mxu1 %vm1238_vm8, %v1873_v40  ;;  %9130 = vmatmul.mubr.msk.f32.vlgmr.msra.gmra.mrb[2].mxu0 %vm1238_vm8, %v1960_v41 }
 0x5a4   : > { %9387 = vmatpush3.bf16.msra.mxu1 %v10455_v34  ;;  %9136 = vmatprep.mubr.msk.f32.mxu1 %vm9967_vm2, %v9951_v3 }
 0x5a5   : > { %9390 = vmatpush3.bf16.msra.mxu0 %v10455_v34  ;;  %9391 = vmatprep.subr.bf16.mxu1 %v9966_v27 }
 0x5a6   : > { %v2047_v44 = vpop.permute.xlu0 %2046  ;;  %v2129_v45 = vpop.permute.xlu1 %2128  ;;  %9143 = vmatprep.mubr.msk.f32.mxu0 %vm9967_vm2, %v9951_v3  ;;  %9394 = vmatprep.subr.bf16.mxu0 %v9966_v27 }
 0x5a7   : > { %v2131_v49 = vadd.f32 %v2129_v45, %v1779_v43  ;;  %9137 = vmatmul.mubr.msk.f32.vlgmr.msra.gmra.mrb[6].mxu1 %vm1238_vm8, %v2047_v44 }
 0x5a8   : > { %9393 = vmatpush3.bf16.msra.mxu1 %v10455_v34  ;;  %9150 = vmatprep.mubr.msk.f32.mxu1 %vm9967_vm2, %v9951_v3 }
 0x5a9   : > { %9144 = vmatmul.mubr.msk.f32.vlgmr.msra.gmra.mrb[4].mxu0 %vm1238_vm8, %v2131_v49  ;;  %9397 = vmatprep.subr.bf16.mxu1 %v9966_v27 }
 0x5aa   : > { %v2219_v50 = vpop.permute.xlu0 %2218  ;;  %9396 = vmatpush3.bf16.msra.mxu0 %v10455_v34  ;;  %9157 = vmatprep.mubr.msk.f32.mxu0 %vm9967_vm2, %v9951_v3  ;;  %v2306_v52 = vpop.permute.xlu1 %2305 }
 0x5ab   : > { %9151 = vmatmul.mubr.msk.f32.vlgmr.msra.gmra.mrb[8].mxu1 %vm1238_vm8, %v2219_v50 }
 0x5ac   : > { %9399 = vmatpush3.bf16.msra.mxu1 %v10455_v34  ;;  %9164 = vmatprep.mubr.msk.f32.mxu1 %vm9967_vm2, %v9951_v3  ;;  %vm2495_vm2 = vcmp.ne.s32.totalorder %v2487_v6, 0 }
 0x5ad   : > { %9158 = vmatmul.mubr.msk.f32.vlgmr.msra.gmra.mrb[6].mxu0 %vm1238_vm8, %v2306_v52  ;;  %9416 = vmatprep.subr.bf16.mxu1 %v9966_v27  ;;  %v10532_v24 = vsel %vm2495_vm2, 1.0, %v9951_v3  ;;  %vm4780_vm2 = vcmask 31744  }
 0x5ae   : > { %v2393_v53 = vpop.permute.xlu0 %2392  ;;  %9185 = vmatprep.mubr.msk.f32.mxu0 %vm1418_vm5, %v2575_v48 }
 0x5af   : > { %9165 = vmatmul.mubr.msk.f32.vlgmr.msra.gmra.mrb[10].mxu1 %vm1238_vm8, %v2393_v53 }
 0x60f   : > { %v1859_v54 = vpop.f32.mrb[2].mxu1 }
 0x610   : > { %1864 = vst.msk [vmem:[#allocation4 + $0x10] sm:$0xff] %vm1863_vm6, %v1859_v54  ;;  %v9117_v58 = vpop.f32.mrb[3].mxu1 }
 0x676   : > { %v1942_v60 = vpop.f32.mrb[4].mxu1  ;;  %v2029_v61 = vpop.f32.mrb[2].mxu0 }
 0x677   : > { %1947 = vrot.lane.b32.xlu1 %v1942_v60, %s12195_s11  ;;  %v9124_v62 = vpop.f32.mrb[5].mxu1  ;;  %2034 = vrot.lane.b32.xlu0 %v2029_v61, %s12262_s18  ;;  %v9131_v63 = vpop.f32.mrb[3].mxu0  ;;  %v2576_v61 = vld [vmem:[%s10030_s25 + $0x8] sm:$0xff] }
 0x67a   : > { %v2116_v0 = vpop.f32.mrb[6].mxu1 }
 0x67b   : > { %2121 = vrot.lane.b32.xlu1 %v2116_v0, %s9970_s10  ;;  %v9138_v1 = vpop.f32.mrb[7].mxu1  ;;  %s12263_s10 = smov 2  }
 0x67c   : > { %v2201_v2 = vpop.f32.mrb[4].mxu0 }
 0x67d   : > { %2206 = vrot.lane.b32.xlu0 %v2201_v2, %s12261_s7  ;;  %v9145_v5 = vpop.f32.mrb[5].mxu0 }
 0x67e   : > { %v2288_v7 = vpop.f32.mrb[8].mxu1 }
 0x67f   : > { %2293 = vrot.lane.b32.xlu1 %v2288_v7, %s9971_s1  ;;  %v9152_v8 = vpop.f32.mrb[9].mxu1  ;;  %s12194_s1 = smov 10  }
 0x680   : > { %v2375_v9 = vpop.f32.mrb[6].mxu0 }
 0x681   : > { %2380 = vrot.lane.b32.xlu0 %v2375_v9, %s12192_s0  ;;  %v9159_v10 = vpop.f32.mrb[7].mxu0  ;;  %s9975_s0 = smov 9  }
 0x682   : > { %v2462_v11 = vpop.f32.mrb[10].mxu1 }
 0x683   : > { %2467 = vrot.lane.b32.xlu1 %v2462_v11, %s12190_s26  ;;  %v9166_v12 = vpop.f32.mrb[11].mxu1  ;;  %s12264_s26 = smov 18  }
 0x687   : > { %2513 = vrot.lane.b32.xlu1 %v8559_v13, %s12263_s10 }
 0x68b   : > { %2540 = vrot.lane.b32.xlu1 %v8559_v13, %s12194_s1  ;;  %s12198_s1 = smov 120  }
 0x68f   : > { %2566 = vrot.lane.b32.xlu1 %v8559_v13, %s12264_s26 }
 0x6e9   : > { %v2035_v14 = vpop.permute.xlu0 %2034  ;;  %v1948_v15 = vpop.permute.xlu1 %1947 }
 0x6ea   : > { %1951 = vst.msk [vmem:[#allocation4 + $0x10] sm:$0xff] %vm1950_vm13, %v1948_v15  ;;  %vm2503_vm13 = vcmask 523264  }
 0x6eb   : > { %2038 = vst.msk [vmem:[#allocation4 + $0x10] sm:$0xff] %vm2037_vm14, %v2035_v14  ;;  %vm3370_vm14 = vcmask 39936  }
 0x6ec   : > { %3691 = vst.msk [vmem:[#allocation2 + $0x30] sm:$0xff] %vm3370_vm14, %v9951_v3  ;;  %3692 = vst.msk [vmem:[#allocation2 + $0x48] sm:$0xff] %vm3370_vm14, %v9951_v3 }
 0x6ed   : > { %v2122_v16 = vpop.permute.xlu1 %2121 }
 0x6ee   : > { %2125 = vst.msk [vmem:[#allocation4 + $0x10] sm:$0xff] %vm2124_vm15, %v2122_v16  ;;  %vm3373_vm15 = vcmask 212136  }
 0x6ef   : > { %v2207_v17 = vpop.permute.xlu0 %2206  ;;  %3695 = vst.msk [vmem:[#allocation2 + $0x30] sm:$0xff] %vm3373_vm15, %v9951_v3  ;;  %3696 = vst.msk [vmem:[#allocation2 + $0x48] sm:$0xff] %vm3373_vm15, %v9951_v3 }
 0x6f0   : > { %2210 = vst.msk [vmem:[#allocation4 + $0x10] sm:$0xff] %vm2209_vm0, %v2207_v17 }
 0x6f1   : > { %v2294_v18 = vpop.permute.xlu1 %2293 }
 0x6f2   : > { %2297 = vst.msk [vmem:[#allocation4 + $0x10] sm:$0xff] %vm2296_vm1, %v2294_v18 }
 0x6f3   : > { %v2381_v21 = vpop.permute.xlu0 %2380 }
 0x6f4   : > { %2384 = vst.msk [vmem:[#allocation4 + $0x10] sm:$0xff] %vm2383_vm3, %v2381_v21  ;;  %vm3384_vm3 = vcmask 171048  }
 0x6f5   : > { %v2468_v22 = vpop.permute.xlu1 %2467 }
 0x6f6   : > { %2471 = vst.msk [vmem:[#allocation4 + $0x10] sm:$0xff] %vm2470_vm4, %v2468_v22  ;;  %vm4793_vm4 = vcmask 1043456  }
 0x6f9   : > { %v10539_v20 = vpop.permute.xlu1 %2513 }
 0x6fd   : > { %v2472_v23 = vld [vmem:[#allocation4 + $0x10] sm:$0xff]  ;;  %v10553_v46 = vpop.permute.xlu1 %2540 }
 0x6fe   : > { %2478 = vrot.lane.b32.xlu0 %v2472_v23, %s9975_s0 }
 0x701   : > { %v10562_v43 = vpop.permute.xlu1 %2566 }
 0x702   : > { %2524 = vrot.lane.b32.xlu0 %v10532_v24, %s12195_s11  ;;  %s12206_s11 = smov 119  }
 0x706   : > { %2550 = vrot.lane.b32.xlu0 %v10532_v24, %s12262_s18 }
 0x770   : > { %v2479_v19 = vpop.permute.xlu0 %2478 }
 0x771   : > { %2482 = vst.msk [vmem:[#allocation2] sm:$0xff] %vm2481_vm9, %v2479_v19 }
 0x774   : > { %v10541_v33 = vpop.permute.xlu0 %2524 }
 0x778   : > { %v2501_v26 = vld [vmem:[#allocation2] sm:$0xff]  ;;  %v10556_v30 = vpop.permute.xlu0 %2550 }
 0x779   : > { %v2502_v25 = vmul.f32 %v10532_v24, %v2501_v26  ;;  %2507 = vrot.lane.b32.xlu0 %v2501_v26, %s12204_s15  ;;  %v2516_v35 = vmul.f32 %v10539_v20, %v2501_v26  ;;  %2683 = vst.msk [vmem:[#allocation2] sm:$0xff] %vm2473_vm11, %v9951_v3  ;;  %v2527_v36 = vmul.f32 %v10541_v33, %v2501_v26  ;;  %vm3149_vm11 = vcmask 589344  }
 0x77a   : > { %2685 = vst.msk [vmem:[#allocation2] sm:$0xff] %vm2475_vm12, %v9951_v3  ;;  %v2543_v42 = vmul.f32 %v10553_v46, %v2501_v26  ;;  %v2553_v34 = vmul.f32 %v10556_v30, %v2501_v26  ;;  %v2569_v47 = vmul.f32 %v10562_v43, %v2501_v26  ;;  %vm3257_vm12 = vcmask 622144  }
 0x77b   : > { %2518 = vrot.lane.b32.xlu1 %v2516_v35, %s12196_s28  ;;  %2504 = vst.msk [vmem:[#allocation3] sm:$0xff] %vm2503_vm13, %v2502_v25  ;;  %s12208_s28 = smov 118   ;;  %v2832_v35 = vld [vmem:[%s10100_s20 + $0x8] sm:$0xff] }
 0x77d   : > { %2529 = vrot.lane.b32.xlu0 %v2527_v36, %s12198_s1  ;;  %s12265_s1 = smov 110   ;;  %v2831_v36 = vld [vmem:[%s10100_s20] sm:$0xff] }
 0x77f   : > { %2535 = vrot.lane.b32.xlu1 %v2501_v26, %s12206_s11 }
 0x781   : > { %2545 = vrot.lane.b32.xlu0 %v2543_v42, %s12208_s28 }
 0x782   : > { %v2577_v37 = vld [vmem:[#allocation3] sm:$0xff] }
 0x783   : > { %2555 = vrot.lane.b32.xlu1 %v2553_v34, %s12202_s2 }
 0x785   : > { %2561 = vrot.lane.b32.xlu0 %v2501_v26, %s12200_s16  ;;  %s12267_s16 = sshll.u32 %s12309_s23, 4 }
 0x786   : > { %s10585_s2 = scalar_lea.vmem %s12266_s6, %s12267_s16  ;;  %s12268_s16 = smov 126  }
 0x787   : > { %2571 = vrot.lane.b32.xlu1 %v2569_v47, %s12265_s1  ;;  %s12220_s6 = smov 5  }
 0x789   : > { %2590 = vperm.xlu0 %9880, %v2586_v51  }
 0x78b   : > { %2595 = vperm.xlu1 %9906, %v2587_v57  }
 0x7eb   : > { %v2508_v28 = vpop.permute.xlu0 %2507 }
 0x7ec   : > { %2510 = vst.msk [vmem:[#allocation3 + $0x10] sm:$0xff] %vm2503_vm13, %v2508_v28 }
 0x7ed   : > { %v2519_v29 = vpop.permute.xlu1 %2518 }
 0x7ee   : > { %2521 = vst.msk [vmem:[#allocation3 + $0x20] sm:$0xff] %vm2503_vm13, %v2519_v29 }
 0x7ef   : > { %v2530_v31 = vpop.permute.xlu0 %2529 }
 0x7f0   : > { %2532 = vst.msk [vmem:[#allocation3 + $0x30] sm:$0xff] %vm2503_vm13, %v2530_v31 }
 0x7f1   : > { %v2536_v59 = vpop.permute.xlu1 %2535 }
 0x7f2   : > { %2538 = vst.msk [vmem:[#allocation3 + $0x40] sm:$0xff] %vm2503_vm13, %v2536_v59 }
 0x7f3   : > { %v2546_v32 = vpop.permute.xlu0 %2545  ;;  %v2578_v38 = vld [vmem:[#allocation3 + $0x10] sm:$0xff] }
 0x7f4   : > { %2548 = vst.msk [vmem:[#allocation3 + $0x50] sm:$0xff] %vm2503_vm13, %v2546_v32  ;;  %v9400_v56 = vpack.c.bf16 %v2578_v38, %v2577_v37 }
 0x7f5   : > { %v2556_v55 = vpop.permute.xlu1 %2555  ;;  %v2579_v40 = vld [vmem:[#allocation3 + $0x20] sm:$0xff] }
 0x7f6   : > { %2558 = vst.msk [vmem:[#allocation3 + $0x60] sm:$0xff] %vm2503_vm13, %v2556_v55  ;;  %9401 = vmatprep.subr.bf16.mxu0 %v9400_v56 }
 0x7f7   : > { %9403 = vmatpush3.bf16.msra.mxu0 %v9400_v56  ;;  %v2562_v39 = vpop.permute.xlu0 %2561  ;;  %v2580_v41 = vld [vmem:[#allocation3 + $0x30] sm:$0xff] }
 0x7f8   : > { %2564 = vst.msk [vmem:[#allocation3 + $0x70] sm:$0xff] %vm2503_vm13, %v2562_v39  ;;  %v9404_v44 = vpack.c.bf16 %v2580_v41, %v2579_v40 }
 0x7f9   : > { %v2572_v45 = vpop.permute.xlu1 %2571  ;;  %v2581_v49 = vld [vmem:[#allocation3 + $0x40] sm:$0xff] }
 0x7fa   : > { %2574 = vst.msk [vmem:[#allocation3 + $0x80] sm:$0xff] %vm2503_vm13, %v2572_v45  ;;  %9405 = vmatprep.subr.bf16.mxu0 %v9404_v44 }
 0x7fb   : > { %9407 = vmatpush3.bf16.msra.mxu0 %v9404_v44  ;;  %v2582_v50 = vld [vmem:[#allocation3 + $0x50] sm:$0xff] }
 0x7fc   : > { %v9408_v52 = vpack.c.bf16 %v2582_v50, %v2581_v49 }
 0x7fd   : > { %v2583_v53 = vld [vmem:[#allocation3 + $0x60] sm:$0xff] }
 0x7fe   : > { %9409 = vmatprep.subr.bf16.mxu0 %v9408_v52 }
 0x7ff   : > { %9411 = vmatpush3.bf16.msra.mxu0 %v9408_v52  ;;  %v2584_v54 = vld [vmem:[#allocation3 + $0x70] sm:$0xff] }
 0x800   : > { %v9412_v58 = vpack.c.bf16 %v2584_v54, %v2583_v53 }
 0x801   : > { %v2585_v60 = vld [vmem:[#allocation3 + $0x80] sm:$0xff] }
 0x802   : > { %9413 = vmatprep.subr.bf16.mxu0 %v9412_v58 }
 0x803   : > { %9415 = vmatpush3.bf16.msra.mxu0 %v9412_v58 }
 0x804   : > { %9183 = vmatprep.subr.mxu0 %v2585_v60 }
 0x807   : > { %9184 = vmatpush3.msra.mxu0 %v2585_v60 }
 0x808   : > { %9186 = vmatmul.mubr.msk.f32.vlgmr.msra.gmra.mrb[8].mxu0 %vm1418_vm5, %v2576_v61  ;;  %v2591_v0 = vpop.permute.xlu0 %2590  ;;  %vm3041_vm5 = vcmask 556544  }
 0x80a   : > { %v2596_v62 = vpop.permute.xlu1 %2595 }
 0x8db   : > { %v9187_v63 = vpop.f32.mrb[8].mxu0 }
 0x8dc   : > { %v2676_v1 = vadd.f32 %v9187_v63, %v2596_v62  ;;  %v2670_v2 = vpop.f32.mrb[9].mxu0 }
 0x8dd   : > { %v2671_v5 = vadd.f32 %v2670_v2, %v2591_v0 }
 0x8de   : > { %2680 = vst.msk [vmem:[%s10585_s2 + $0x8] sm:$0xff] %vm2503_vm13, %v2676_v1  ;;  %v2682_v6 = vmax.f32 %v2676_v1, 0.0 }
 0x8df   : > { %2679 = vst.msk [vmem:[%s10585_s2] sm:$0xff] %vm2503_vm13, %v2671_v5  ;;  %v2681_v7 = vmax.f32 %v2671_v5, 0.0 }
 0x8e0   : > { %2691 = vrot.lane.b32.xlu1 %v2682_v6, %s9975_s0 }
 0x8e1   : > { %2689 = vrot.lane.b32.xlu0 %v2681_v7, %s9975_s0  ;;  %s12269_s0 = smov 120  }
 0x952   : > { %v2692_v8 = vpop.permute.xlu1 %2691 }
 0x953   : > { %2696 = vst.msk [vmem:[#allocation2 + $0x18] sm:$0xff] %vm2481_vm9, %v2692_v8  ;;  %v2690_v9 = vpop.permute.xlu0 %2689 }
 0x954   : > { %2695 = vst.msk [vmem:[#allocation2] sm:$0xff] %vm2481_vm9, %v2690_v9  ;;  %v2809_v9 = vld [vmem:[%s10035_s29] sm:$0xff]  ;;  %vm5057_vm9 = vcmask 23552  }
 0x95a   : > { %v2698_v10 = vld [vmem:[#allocation2 + $0x18] sm:$0xff] }
 0x95b   : > { %v2700_v11 = vmul.f32 %v10532_v24, %v2698_v10  ;;  %v2697_v12 = vld [vmem:[#allocation2] sm:$0xff]  ;;  %2709 = vrot.lane.b32.xlu1 %v2698_v10, %s12204_s15  ;;  %v2718_v14 = vmul.f32 %v2698_v10, %v10539_v20  ;;  %v2732_v16 = vmul.f32 %v2698_v10, %v10541_v33  ;;  %v2758_v23 = vmul.f32 %v2698_v10, %v10553_v46 }
 0x95c   : > { %v2699_v13 = vmul.f32 %v10532_v24, %v2697_v12  ;;  %2707 = vrot.lane.b32.xlu0 %v2697_v12, %s12204_s15  ;;  %v2717_v15 = vmul.f32 %v2697_v12, %v10539_v20  ;;  %v2731_v17 = vmul.f32 %v2697_v12, %v10541_v33  ;;  %v2757_v24 = vmul.f32 %v2697_v12, %v10553_v46  ;;  %s12270_s15 = smov 112   ;;  %v2810_v33 = vld [vmem:[%s10035_s29 + $0x8] sm:$0xff] }
 0x95d   : > { %2702 = vst.msk [vmem:[#allocation3 + $0x10] sm:$0xff] %vm2503_vm13, %v2700_v11  ;;  %v2772_v19 = vmul.f32 %v2698_v10, %v10556_v30  ;;  %v2771_v20 = vmul.f32 %v2697_v12, %v10556_v30  ;;  %v2798_v26 = vmul.f32 %v2698_v10, %v10562_v43  ;;  %v2797_v25 = vmul.f32 %v2697_v12, %v10562_v43  ;;  %v2811_v11 = vld [vmem:[%s10035_s29 + $0x10] sm:$0xff] }
 0x95e   : > { %2701 = vst.msk [vmem:[#allocation3] sm:$0xff] %vm2503_vm13, %v2699_v13  ;;  %8562 = vmatprep.mubr.msk.f32.mxu1 %vm1238_vm8, %v2810_v33 }
 0x95f   : > { %2723 = vrot.lane.b32.xlu1 %v2718_v14, %s12268_s16  ;;  %3372 = vst.msk [vmem:[#allocation2 + $0x18] sm:$0xff] %vm3370_vm14, %v9951_v3  ;;  %3371 = vst.msk [vmem:[#allocation2] sm:$0xff] %vm3370_vm14, %v9951_v3 }
 0x960   : > { %2721 = vrot.lane.b32.xlu0 %v2717_v15, %s12268_s16  ;;  %3375 = vst.msk [vmem:[#allocation2 + $0x18] sm:$0xff] %vm3373_vm15, %v9951_v3  ;;  %3374 = vst.msk [vmem:[#allocation2] sm:$0xff] %vm3373_vm15, %v9951_v3 }
 0x963   : > { %2737 = vrot.lane.b32.xlu1 %v2732_v16, %s12269_s0 }
 0x964   : > { %2735 = vrot.lane.b32.xlu0 %v2731_v17, %s12269_s0  ;;  %v2814_v18 = vld [vmem:[#allocation3 + $0x10] sm:$0xff] }
 0x965   : > { %v2813_v21 = vld [vmem:[#allocation3] sm:$0xff] }
 0x966   : > { %v9417_v22 = vpack.c.bf16 %v2814_v18, %v2813_v21  ;;  %v10661_v21 = vld [vmem:[%s10155_s24] sm:$0xff] }
 0x967   : > { %2749 = vrot.lane.b32.xlu1 %v2698_v10, %s12206_s11  ;;  %9188 = vmatprep.subr.mxu0 %v10661_v21 }
 0x968   : > { %2747 = vrot.lane.b32.xlu0 %v2697_v12, %s12206_s11  ;;  %9418 = vmatpush1.bf16.msra.mxu1 %v9417_v22  ;;  %s12271_s11 = smov 111  }
 0x969   : > { %9419 = vmatprep.subr.bf16.mxu1 %v9966_v27  ;;  %9189 = vmatpush3.msra.mxu0 %v10661_v21 }
 0x96a   : > { %9193 = vmatprep.subr.mxu0 %v10661_v21 }
 0x96b   : > { %2763 = vrot.lane.b32.xlu1 %v2758_v23, %s12208_s28 }
 0x96c   : > { %2761 = vrot.lane.b32.xlu0 %v2757_v24, %s12208_s28  ;;  %s12274_s28 = smov 8  }
 0x96f   : > { %2777 = vrot.lane.b32.xlu1 %v2772_v19, %s12270_s15 }
 0x970   : > { %2775 = vrot.lane.b32.xlu0 %v2771_v20, %s12270_s15 }
 0x973   : > { %2789 = vrot.lane.b32.xlu1 %v2698_v10, %s12271_s11  ;;  %v2812_v10 = vld [vmem:[%s10035_s29 + $0x18] sm:$0xff] }
 0x974   : > { %2787 = vrot.lane.b32.xlu0 %v2697_v12, %s12271_s11  ;;  %s12272_s11 = smov 64  }
 0x977   : > { %2803 = vrot.lane.b32.xlu1 %v2798_v26, %s12265_s1 }
 0x978   : > { %2801 = vrot.lane.b32.xlu0 %v2797_v25, %s12265_s1  ;;  %s9979_s1 = smov 68  }
 0x97b   : > { %2840 = vperm.xlu1 %9906, %v2832_v35  }
 0x97c   : > { %2835 = vperm.xlu0 %9880, %v2831_v36  }
 0x9cd   : > { %v2710_v46 = vpop.permute.xlu1 %2709 }
 0x9ce   : > { %2714 = vst.msk [vmem:[#allocation3 + $0x30] sm:$0xff] %vm2503_vm13, %v2710_v46  ;;  %v2708_v30 = vpop.permute.xlu0 %2707 }
 0x9cf   : > { %2713 = vst.msk [vmem:[#allocation3 + $0x20] sm:$0xff] %vm2503_vm13, %v2708_v30 }
 0x9d1   : > { %v2724_v42 = vpop.permute.xlu1 %2723 }
 0x9d2   : > { %2728 = vst.msk [vmem:[#allocation3 + $0x50] sm:$0xff] %vm2503_vm13, %v2724_v42  ;;  %v2722_v34 = vpop.permute.xlu0 %2721 }
 0x9d3   : > { %2727 = vst.msk [vmem:[#allocation3 + $0x40] sm:$0xff] %vm2503_vm13, %v2722_v34 }
 0x9d5   : > { %v2738_v43 = vpop.permute.xlu1 %2737  ;;  %v2816_v47 = vld [vmem:[#allocation3 + $0x30] sm:$0xff] }
 0x9d6   : > { %2742 = vst.msk [vmem:[#allocation3 + $0x70] sm:$0xff] %vm2503_vm13, %v2738_v43  ;;  %v2736_v51 = vpop.permute.xlu0 %2735  ;;  %v2815_v48 = vld [vmem:[#allocation3 + $0x20] sm:$0xff] }
 0x9d7   : > { %2741 = vst.msk [vmem:[#allocation3 + $0x60] sm:$0xff] %vm2503_vm13, %v2736_v51  ;;  %v9420_v57 = vpack.c.bf16 %v2816_v47, %v2815_v48 }
 0x9d9   : > { %v2750_v28 = vpop.permute.xlu1 %2749  ;;  %9421 = vmatpush1.bf16.msra.mxu1 %v9420_v57  ;;  %v2818_v29 = vld [vmem:[#allocation3 + $0x50] sm:$0xff] }
 0x9da   : > { %2754 = vst.msk [vmem:[#allocation3 + $0x90] sm:$0xff] %vm2503_vm13, %v2750_v28  ;;  %v2748_v31 = vpop.permute.xlu0 %2747  ;;  %9422 = vmatprep.subr.bf16.mxu1 %v9966_v27  ;;  %v2817_v59 = vld [vmem:[#allocation3 + $0x40] sm:$0xff] }
 0x9db   : > { %2753 = vst.msk [vmem:[#allocation3 + $0x80] sm:$0xff] %vm2503_vm13, %v2748_v31  ;;  %v9423_v32 = vpack.c.bf16 %v2818_v29, %v2817_v59 }
 0x9dd   : > { %v2764_v37 = vpop.permute.xlu1 %2763  ;;  %9424 = vmatpush1.bf16.msra.mxu1 %v9423_v32  ;;  %v2820_v38 = vld [vmem:[#allocation3 + $0x70] sm:$0xff] }
 0x9de   : > { %2768 = vst.msk [vmem:[#allocation3 + $0xb0] sm:$0xff] %vm2503_vm13, %v2764_v37  ;;  %v2762_v56 = vpop.permute.xlu0 %2761  ;;  %9425 = vmatprep.subr.bf16.mxu1 %v9966_v27  ;;  %v2819_v55 = vld [vmem:[#allocation3 + $0x60] sm:$0xff] }
 0x9df   : > { %2767 = vst.msk [vmem:[#allocation3 + $0xa0] sm:$0xff] %vm2503_vm13, %v2762_v56  ;;  %v9426_v39 = vpack.c.bf16 %v2820_v38, %v2819_v55 }
 0x9e1   : > { %v2778_v40 = vpop.permute.xlu1 %2777  ;;  %9427 = vmatpush1.bf16.msra.mxu1 %v9426_v39  ;;  %v2822_v41 = vld [vmem:[#allocation3 + $0x90] sm:$0xff] }
 0x9e2   : > { %2782 = vst.msk [vmem:[#allocation3 + $0xd0] sm:$0xff] %vm2503_vm13, %v2778_v40  ;;  %v2776_v44 = vpop.permute.xlu0 %2775  ;;  %9428 = vmatprep.subr.bf16.mxu1 %v9966_v27  ;;  %v2821_v45 = vld [vmem:[#allocation3 + $0x80] sm:$0xff] }
 0x9e3   : > { %2781 = vst.msk [vmem:[#allocation3 + $0xc0] sm:$0xff] %vm2503_vm13, %v2776_v44  ;;  %v9429_v49 = vpack.c.bf16 %v2822_v41, %v2821_v45 }
 0x9e5   : > { %v2790_v50 = vpop.permute.xlu1 %2789  ;;  %9430 = vmatpush1.bf16.msra.mxu1 %v9429_v49  ;;  %v2824_v52 = vld [vmem:[#allocation3 + $0xb0] sm:$0xff] }
 0x9e6   : > { %2794 = vst.msk [vmem:[#allocation3 + $0xf0] sm:$0xff] %vm2503_vm13, %v2790_v50  ;;  %v2788_v53 = vpop.permute.xlu0 %2787  ;;  %9431 = vmatprep.subr.bf16.mxu1 %v9966_v27  ;;  %v2823_v54 = vld [vmem:[#allocation3 + $0xa0] sm:$0xff] }
 0x9e7   : > { %2793 = vst.msk [vmem:[#allocation3 + $0xe0] sm:$0xff] %vm2503_vm13, %v2788_v53  ;;  %v9432_v58 = vpack.c.bf16 %v2824_v52, %v2823_v54 }
 0x9e9   : > { %v2804_v60 = vpop.permute.xlu1 %2803  ;;  %9433 = vmatpush1.bf16.msra.mxu1 %v9432_v58  ;;  %v2826_v61 = vld [vmem:[#allocation3 + $0xd0] sm:$0xff] }
 0x9ea   : > { %2808 = vst.msk [vmem:[#allocation3 + $0x110] sm:$0xff] %vm2503_vm13, %v2804_v60  ;;  %v2802_v62 = vpop.permute.xlu0 %2801  ;;  %9434 = vmatprep.subr.bf16.mxu1 %v9966_v27  ;;  %v2825_v63 = vld [vmem:[#allocation3 + $0xc0] sm:$0xff] }
 0x9eb   : > { %2807 = vst.msk [vmem:[#allocation3 + $0x100] sm:$0xff] %vm2503_vm13, %v2802_v62  ;;  %v9435_v0 = vpack.c.bf16 %v2826_v61, %v2825_v63 }
 0x9ed   : > { %9436 = vmatpush1.bf16.msra.mxu1 %v9435_v0  ;;  %v2828_v1 = vld [vmem:[#allocation3 + $0xf0] sm:$0xff] }
 0x9ee   : > { %9437 = vmatprep.subr.bf16.mxu1 %v9966_v27  ;;  %v2827_v2 = vld [vmem:[#allocation3 + $0xe0] sm:$0xff] }
 0x9ef   : > { %v9438_v5 = vpack.c.bf16 %v2828_v1, %v2827_v2 }
 0x9f1   : > { %9439 = vmatpush1.bf16.msra.mxu1 %v9438_v5  ;;  %v2830_v6 = vld [vmem:[#allocation3 + $0x110] sm:$0xff] }
 0x9f2   : > { %9440 = vmatprep.subr.bf16.mxu1 %v9966_v27  ;;  %v2829_v7 = vld [vmem:[#allocation3 + $0x100] sm:$0xff] }
 0x9f3   : > { %v9441_v8 = vpack.c.bf16 %v2830_v6, %v2829_v7 }
 0x9f5   : > { %9442 = vmatpush1.bf16.msra.mxu1 %v9441_v8  ;;  %v3391_v8 = vand.u32 3, %v10192_v4 }
 0x9f7   : > { %vm3399_vm0 = vcmp.ne.s32.totalorder %v3391_v8, 0  ;;  %vm3402_vm1 = vcmp.ne.s32.totalorder %v3391_v8, 3 }
 0x9f8   : > { %2914 = vmatmul.mubr.f32.vlgmr.msra.gmra.mrb[12].mxu1 %v2809_v9 }
 0x9f9   : > { %8563 = vmatprep.mubr.msk.f32.mxu1 %vm1238_vm8, %v2812_v10 }
 0x9fa   : > { %v2841_v17 = vpop.permute.xlu1 %2840 }
 0x9fb   : > { %v2836_v12 = vpop.permute.xlu0 %2835 }
 0x9fc   : > { %2919 = vmatmul.mubr.f32.gmra.mrb[14].mxu1 %v2811_v11  ;;  %v10717_v11 = vsel %vm3399_vm0, 1.0, %v9951_v3  ;;  %vm6834_vm0 = vcmask 39968  }
 0xacb   : > { %v2915_v13 = vpop.f32.mrb[12].mxu1 }
 0xacc   : > { %v10657_v14 = vadd.f32 %v2915_v13, %v2836_v12  ;;  %v2917_v15 = vpop.f32.mrb[13].mxu1  ;;  %v8573_v12 = vsel %vm3402_vm1, 1.0, %v9951_v3  ;;  %vm6868_vm1 = vcmask 23568  }
 0xace   : > { %v2935_v16 = vmax.f32 %v10657_v14, 0.0 }
 0xacf   : > { %v2920_v18 = vpop.f32.mrb[14].mxu1 }
 0xad0   : > { %2937 = vst.msk [vmem:[#allocation4] sm:$0xff] %vm2503_vm13, %v2935_v16  ;;  %v10664_v22 = vadd.f32 %v2920_v18, %v2841_v17  ;;  %v2922_v23 = vpop.f32.mrb[15].mxu1 }
 0xad2   : > { %v2936_v24 = vmax.f32 %v10664_v22, 0.0 }
 0xad4   : > { %2938 = vst.msk [vmem:[#allocation4 + $0x18] sm:$0xff] %vm2503_vm13, %v2936_v24  ;;  %vm5062_vm13 = vcmask 80952  }
 0xad7   : > { %v2940_v19 = vld [vmem:[#allocation4] sm:$0xff] }
 0xad8   : > { %2944 = vrot.lane.b32.xlu0 %v2940_v19, %s12269_s0 }
 0xadb   : > { %v2941_v20 = vld [vmem:[#allocation4 + $0x18] sm:$0xff] }
 0xadc   : > { %2946 = vrot.lane.b32.xlu1 %v2941_v20, %s12269_s0 }
 0xb4a   : > { %v2945_v26 = vpop.permute.xlu0 %2944 }
 0xb4b   : > { %v2950_v33 = vadd.f32 %v2945_v26, %v2940_v19 }
 0xb4d   : > { %9190 = vmatprep.mubr.msk.f32.mxu0 %vm1863_vm6, %v2950_v33 }
 0xb4e   : > { %v2947_v25 = vpop.permute.xlu1 %2946 }
 0xb4f   : > { %v2951_v35 = vadd.f32 %v2947_v25, %v2941_v20 }
 0xb51   : > { %9191 = vmatmul.mubr.msk.f32.vlgmr.msra.gmra.mrb[10].mxu0 %vm1863_vm6, %v2951_v35 }
 0xb52   : > { %9194 = vmatpush3.msra.mxu0 %v10661_v21 }
 0xb53   : > { %9198 = vmatprep.subr.mxu0 %v10661_v21 }
 0xc24   : > { %v9192_v36 = vpop.f32.mrb[10].mxu0 }
 0xc25   : > { %3037 = vrot.lane.b32.xlu1 %v9192_v36, %s12272_s11  ;;  %v3024_v46 = vpop.f32.mrb[11].mxu0 }
 0xc26   : > { %3035 = vrot.lane.b32.xlu0 %v3024_v46, %s12272_s11 }
 0xc97   : > { %v3038_v30 = vpop.permute.xlu1 %3037 }
 0xc98   : > { %3043 = vst.msk [vmem:[#allocation4 + $0x18] sm:$0xff] %vm3041_vm5, %v3038_v30  ;;  %v3036_v42 = vpop.permute.xlu0 %3035 }
 0xc99   : > { %3042 = vst.msk [vmem:[#allocation4] sm:$0xff] %vm3041_vm5, %v3036_v42  ;;  %vm5048_vm5 = vcmask 162960  }
 0xc9f   : > { %v3045_v34 = vld [vmem:[#allocation4 + $0x18] sm:$0xff] }
 0xca0   : > { %3050 = vrot.lane.b32.xlu1 %v3045_v34, %s12269_s0  ;;  %v3044_v43 = vld [vmem:[#allocation4] sm:$0xff] }
 0xca1   : > { %3048 = vrot.lane.b32.xlu0 %v3044_v43, %s12269_s0 }
 0xd12   : > { %v3051_v47 = vpop.permute.xlu1 %3050 }
 0xd13   : > { %v3055_v51 = vadd.f32 %v3051_v47, %v3045_v34  ;;  %v3049_v48 = vpop.permute.xlu0 %3048 }
 0xd14   : > { %v3054_v57 = vadd.f32 %v3049_v48, %v3044_v43 }
 0xd15   : > { %3060 = vrot.lane.b32.xlu1 %v3055_v51, %s12270_s15 }
 0xd16   : > { %3058 = vrot.lane.b32.xlu0 %v3054_v57, %s12270_s15  ;;  %s12273_s15 = smov 96   ;;  %v3535_v57 = vld [vmem:[%s12257_s3 + $0x8] sm:$0xff] }
 0xd87   : > { %v3061_v29 = vpop.permute.xlu1 %3060 }
 0xd88   : > { %v3059_v28 = vpop.permute.xlu0 %3058 }
 0xd89   : > { %9195 = vmatprep.mubr.msk.f32.mxu0 %vm1863_vm6, %v3059_v28 }
 0xd8a   : > { %9196 = vmatmul.mubr.msk.f32.vlgmr.msra.gmra.mrb[12].mxu0 %vm1863_vm6, %v3061_v29 }
 0xd8b   : > { %9199 = vmatpush3.msra.mxu0 %v10661_v21 }
 0xd8c   : > { %9203 = vmatprep.subr.mxu0 %v10661_v21 }
 0xe5d   : > { %v9197_v31 = vpop.f32.mrb[12].mxu0 }
 0xe5e   : > { %3145 = vrot.lane.b32.xlu1 %v9197_v31, %s9979_s1  ;;  %v3132_v59 = vpop.f32.mrb[13].mxu0 }
 0xe5f   : > { %3143 = vrot.lane.b32.xlu0 %v3132_v59, %s9979_s1  ;;  %s9980_s1 = smov 72  }
 0xed0   : > { %v3146_v32 = vpop.permute.xlu1 %3145 }
 0xed1   : > { %3151 = vst.msk [vmem:[#allocation4 + $0x18] sm:$0xff] %vm3149_vm11, %v3146_v32  ;;  %v3144_v37 = vpop.permute.xlu0 %3143 }
 0xed2   : > { %3150 = vst.msk [vmem:[#allocation4] sm:$0xff] %vm3149_vm11, %v3144_v37 }
 0xed8   : > { %v3153_v38 = vld [vmem:[#allocation4 + $0x18] sm:$0xff] }
 0xed9   : > { %3158 = vrot.lane.b32.xlu1 %v3153_v38, %s12269_s0  ;;  %v3152_v56 = vld [vmem:[#allocation4] sm:$0xff] }
 0xeda   : > { %3156 = vrot.lane.b32.xlu0 %v3152_v56, %s12269_s0 }
 0xf4b   : > { %v3159_v55 = vpop.permute.xlu1 %3158 }
 0xf4c   : > { %v3163_v39 = vadd.f32 %v3159_v55, %v3153_v38  ;;  %v3157_v40 = vpop.permute.xlu0 %3156 }
 0xf4d   : > { %v3162_v41 = vadd.f32 %v3157_v40, %v3152_v56 }
 0xf4e   : > { %3168 = vrot.lane.b32.xlu1 %v3163_v39, %s12273_s15 }
 0xf4f   : > { %3166 = vrot.lane.b32.xlu0 %v3162_v41, %s12273_s15  ;;  %s9981_s15 = smov 80  }
 0xfc0   : > { %v3169_v45 = vpop.permute.xlu1 %3168 }
 0xfc1   : > { %v3167_v44 = vpop.permute.xlu0 %3166 }
 0xfc2   : > { %9200 = vmatprep.mubr.msk.f32.mxu0 %vm1863_vm6, %v3167_v44 }
 0xfc3   : > { %9201 = vmatmul.mubr.msk.f32.vlgmr.msra.gmra.mrb[14].mxu0 %vm1863_vm6, %v3169_v45 }
 0xfc4   : > { %9204 = vmatpush3.msra.mxu0 %v10661_v21 }
 0xfc5   : > { %9443 = vmatprep.subr.bf16.mxu0 %v9966_v27 }
0x1096   : > { %v9202_v49 = vpop.f32.mrb[14].mxu0 }
0x1097   : > { %3253 = vrot.lane.b32.xlu1 %v9202_v49, %s9980_s1  ;;  %v3240_v50 = vpop.f32.mrb[15].mxu0 }
0x1098   : > { %3251 = vrot.lane.b32.xlu0 %v3240_v50, %s9980_s1  ;;  %s9982_s1 = smov 76  }
0x1109   : > { %v3254_v52 = vpop.permute.xlu1 %3253 }
0x110a   : > { %3259 = vst.msk [vmem:[#allocation4 + $0x18] sm:$0xff] %vm3257_vm12, %v3254_v52  ;;  %v3252_v53 = vpop.permute.xlu0 %3251 }
0x110b   : > { %3258 = vst.msk [vmem:[#allocation4] sm:$0xff] %vm3257_vm12, %v3252_v53 }
0x1111   : > { %v3261_v54 = vld [vmem:[#allocation4 + $0x18] sm:$0xff] }
0x1112   : > { %3266 = vrot.lane.b32.xlu1 %v3261_v54, %s12269_s0  ;;  %v3260_v58 = vld [vmem:[#allocation4] sm:$0xff] }
0x1113   : > { %3264 = vrot.lane.b32.xlu0 %v3260_v58, %s12269_s0 }
0x1184   : > { %v3267_v60 = vpop.permute.xlu1 %3266 }
0x1185   : > { %v3271_v61 = vadd.f32 %v3267_v60, %v3261_v54  ;;  %v3265_v62 = vpop.permute.xlu0 %3264 }
0x1186   : > { %v3270_v63 = vadd.f32 %v3265_v62, %v3260_v58 }
0x1187   : > { %3276 = vrot.lane.b32.xlu1 %v3271_v61, %s9981_s15 }
0x1188   : > { %3274 = vrot.lane.b32.xlu0 %v3270_v63, %s9981_s15  ;;  %s9983_s15 = smov 69  }
0x11f9   : > { %v3277_v1 = vpop.permute.xlu1 %3276 }
0x11fa   : > { %v3275_v0 = vpop.permute.xlu0 %3274 }
0x11fb   : > { %9205 = vmatprep.mubr.msk.f32.mxu0 %vm1863_vm6, %v3275_v0 }
0x11fc   : > { %9206 = vmatmul.mubr.msk.f32.vlgmr.msra.gmra.mrb[16].mxu0 %vm1863_vm6, %v3277_v1  ;;  %vm3365_vm6 = vcmask 654944  }
0x11fd   : > { %8574 = vmatprep.mubr.msk.f32.mxu0 %vm1238_vm8, %v3535_v57 }
0x12cf   : > { %v9207_v2 = vpop.f32.mrb[16].mxu0 }
0x12d0   : > { %3361 = vrot.lane.b32.xlu1 %v9207_v2, %s9982_s1  ;;  %v3348_v5 = vpop.f32.mrb[17].mxu0 }
0x12d1   : > { %3359 = vrot.lane.b32.xlu0 %v3348_v5, %s9982_s1  ;;  %s12211_s1 = smov 4  }
0x1342   : > { %v3362_v6 = vpop.permute.xlu1 %3361 }
0x1343   : > { %3367 = vst.msk [vmem:[#allocation4 + $0x18] sm:$0xff] %vm3365_vm6, %v3362_v6  ;;  %v3360_v7 = vpop.permute.xlu0 %3359 }
0x1344   : > { %3366 = vst.msk [vmem:[#allocation4] sm:$0xff] %vm3365_vm6, %v3360_v7  ;;  %vm6847_vm6 = vcmask 39960  }
0x134a   : > { %v3369_v9 = vld [vmem:[#allocation4 + $0x18] sm:$0xff] }
0x134b   : > { %3380 = vrot.lane.b32.xlu1 %v3369_v9, %s9983_s15  ;;  %v3368_v10 = vld [vmem:[#allocation4] sm:$0xff] }
0x134c   : > { %3378 = vrot.lane.b32.xlu0 %v3368_v10, %s9983_s15  ;;  %s12276_s15 = smov 127  }
0x134f   : > { %3444 = vrot.lane.b32.xlu1 %v10717_v11, %s12211_s1  ;;  %s12277_s1 = sld [smem:[#allocation16_spill]] }
0x1350   : > { %3426 = vrot.lane.b32.xlu0 %v8573_v12, %s12263_s10 }
0x1353   : > { %3490 = vrot.lane.b32.xlu1 %v10717_v11, %s12274_s28  ;;  %s12217_s28 = smov 123  }
0x1354   : > { %3473 = vrot.lane.b32.xlu0 %v8573_v12, %s12210_s4  ;;  %s12215_s4 = smov 122  }
0x1355   : > { %v3561_v29 = vld [vmem:[%s12277_s1 + $0x8] sm:$0xff]  ;;  %v3560_v31 = vld [vmem:[%s12277_s1] sm:$0xff]  ;;  %v3563_v59 = vld [vmem:[%s12277_s1 + $0x18] sm:$0xff] }
0x1356   : > { %v3562_v32 = vld [vmem:[%s12277_s1 + $0x10] sm:$0xff] }
0x1358   : > { %3519 = vrot.lane.b32.xlu0 %v8573_v12, %s12275_s5  ;;  %s12213_s5 = smov 124  }
0x13bd   : > { %v3381_v13 = vpop.permute.xlu1 %3380 }
0x13be   : > { %3386 = vst.msk [vmem:[#allocation2 + $0x18] sm:$0xff] %vm3384_vm3, %v3381_v13  ;;  %v3379_v15 = vpop.permute.xlu0 %3378 }
0x13bf   : > { %3385 = vst.msk [vmem:[#allocation2] sm:$0xff] %vm3384_vm3, %v3379_v15 }
0x13c1   : > { %v10748_v20 = vpop.permute.xlu1 %3444 }
0x13c2   : > { %v10734_v23 = vpop.permute.xlu0 %3426 }
0x13c5   : > { %v3406_v16 = vld [vmem:[#allocation2 + $0x18] sm:$0xff]  ;;  %v10761_v42 = vpop.permute.xlu1 %3490 }
0x13c6   : > { %v3408_v17 = vmul.f32 %v10717_v11, %v3406_v16  ;;  %v3405_v18 = vld [vmem:[#allocation2] sm:$0xff]  ;;  %3417 = vrot.lane.b32.xlu0 %v3406_v16, %s12276_s15  ;;  %3690 = vst.msk [vmem:[#allocation2 + $0x18] sm:$0xff] %vm3370_vm14, %v9951_v3  ;;  %v3430_v24 = vmul.f32 %v10734_v23, %v3406_v16  ;;  %v3448_v26 = vmul.f32 %v10748_v20, %v3406_v16  ;;  %v10755_v36 = vpop.permute.xlu0 %3473 }
0x13c7   : > { %v3407_v21 = vmul.f32 %v10717_v11, %v3405_v18  ;;  %3415 = vrot.lane.b32.xlu1 %v3405_v18, %s12276_s15  ;;  %3689 = vst.msk [vmem:[#allocation2] sm:$0xff] %vm3370_vm14, %v9951_v3  ;;  %v3429_v19 = vmul.f32 %v10734_v23, %v3405_v18  ;;  %v3447_v33 = vmul.f32 %v10748_v20, %v3405_v18 }
0x13c8   : > { %3694 = vst.msk [vmem:[#allocation2 + $0x18] sm:$0xff] %vm3373_vm15, %v9951_v3  ;;  %3693 = vst.msk [vmem:[#allocation2] sm:$0xff] %vm3373_vm15, %v9951_v3  ;;  %v3477_v30 = vmul.f32 %v10755_v36, %v3406_v16  ;;  %v3476_v34 = vmul.f32 %v10755_v36, %v3405_v18  ;;  %v3494_v43 = vmul.f32 %v10761_v42, %v3406_v16 }
0x13c9   : > { %3410 = vst.msk [vmem:[#allocation3 + $0x10] sm:$0xff] %vm1238_vm8, %v3408_v17  ;;  %3409 = vst.msk [vmem:[#allocation3] sm:$0xff] %vm1238_vm8, %v3407_v21  ;;  %v3493_v47 = vmul.f32 %v10761_v42, %v3405_v18 }
0x13ca   : > { %3435 = vrot.lane.b32.xlu0 %v3430_v24, %s12268_s16  ;;  %v10770_v51 = vpop.permute.xlu0 %3519 }
0x13cb   : > { %3433 = vrot.lane.b32.xlu1 %v3429_v19, %s12268_s16  ;;  %v3523_v48 = vmul.f32 %v10770_v51, %v3406_v16  ;;  %v3522_v28 = vmul.f32 %v10770_v51, %v3405_v18 }
0x13ce   : > { %3453 = vrot.lane.b32.xlu0 %v3448_v26, %s12213_s5 }
0x13cf   : > { %3451 = vrot.lane.b32.xlu1 %v3447_v33, %s12213_s5  ;;  %s12278_s5 = smov 119  }
0x13d0   : > { %v3543_v25 = vld [vmem:[#allocation3 + $0x10] sm:$0xff]  ;;  %v3542_v35 = vld [vmem:[#allocation3] sm:$0xff] }
0x13d1   : > { %v9444_v46 = vpack.c.bf16 %v3543_v25, %v3542_v35  ;;  %v3534_v35 = vld [vmem:[%s12257_s3] sm:$0xff] }
0x13d2   : > { %3465 = vrot.lane.b32.xlu0 %v3406_v16, %s12217_s28 }
0x13d3   : > { %9445 = vmatpush1.bf16.msra.mxu0 %v9444_v46  ;;  %3463 = vrot.lane.b32.xlu1 %v3405_v18, %s12217_s28  ;;  %v3537_v46 = vld [vmem:[%s12257_s3 + $0x18] sm:$0xff]  ;;  %s12280_s28 = sshll.u32 %s12309_s23, 5  ;;  %s12281_s23 = smov 123  }
0x13d4   : > { %9446 = vmatprep.subr.bf16.mxu0 %v9966_v27  ;;  %s10820_s1 = scalar_lea.vmem %s10180_s19, %s12280_s28  ;;  %s12282_s28 = smov 122  }
0x13d6   : > { %3482 = vrot.lane.b32.xlu0 %v3477_v30, %s12215_s4  ;;  %v3536_v30 = vld [vmem:[%s12257_s3 + $0x10] sm:$0xff] }
0x13d7   : > { %3480 = vrot.lane.b32.xlu1 %v3476_v34, %s12215_s4  ;;  %s12279_s4 = smov 118   ;;  %v3539_v34 = vld [vmem:[%s12257_s3 + $0x28] sm:$0xff] }
0x13da   : > { %3499 = vrot.lane.b32.xlu0 %v3494_v43, %s12269_s0  ;;  %v3538_v43 = vld [vmem:[%s12257_s3 + $0x20] sm:$0xff] }
0x13db   : > { %3497 = vrot.lane.b32.xlu1 %v3493_v47, %s12269_s0  ;;  %v3541_v47 = vld [vmem:[%s12257_s3 + $0x38] sm:$0xff] }
0x13de   : > { %3511 = vrot.lane.b32.xlu0 %v3406_v16, %s12278_s5 }
0x13df   : > { %3509 = vrot.lane.b32.xlu1 %v3405_v18, %s12278_s5 }
0x13e2   : > { %3528 = vrot.lane.b32.xlu0 %v3523_v48, %s12279_s4 }
0x13e3   : > { %3526 = vrot.lane.b32.xlu1 %v3522_v28, %s12279_s4 }
0x13e6   : > { %3571 = vperm.xlu0 %9880, %v3561_v29  }
0x13e7   : > { %3566 = vperm.xlu1 %9906, %v3560_v31  }
0x13ea   : > { %3581 = vperm.xlu0 %9880, %v3563_v59  }
0x13eb   : > { %3576 = vperm.xlu1 %9906, %v3562_v32  }
0x1438   : > { %v3418_v37 = vpop.permute.xlu0 %3417 }
0x1439   : > { %3422 = vst.msk [vmem:[#allocation3 + $0x30] sm:$0xff] %vm1238_vm8, %v3418_v37  ;;  %v3416_v38 = vpop.permute.xlu1 %3415 }
0x143a   : > { %3421 = vst.msk [vmem:[#allocation3 + $0x20] sm:$0xff] %vm1238_vm8, %v3416_v38 }
0x143c   : > { %v3436_v56 = vpop.permute.xlu0 %3435 }
0x143d   : > { %3440 = vst.msk [vmem:[#allocation3 + $0x50] sm:$0xff] %vm1238_vm8, %v3436_v56  ;;  %v3434_v55 = vpop.permute.xlu1 %3433 }
0x143e   : > { %3439 = vst.msk [vmem:[#allocation3 + $0x40] sm:$0xff] %vm1238_vm8, %v3434_v55 }
0x1440   : > { %v3454_v39 = vpop.permute.xlu0 %3453  ;;  %v3545_v40 = vld [vmem:[#allocation3 + $0x30] sm:$0xff] }
0x1441   : > { %3458 = vst.msk [vmem:[#allocation3 + $0x70] sm:$0xff] %vm1238_vm8, %v3454_v39  ;;  %v3452_v41 = vpop.permute.xlu1 %3451  ;;  %v3544_v44 = vld [vmem:[#allocation3 + $0x20] sm:$0xff] }
0x1442   : > { %3457 = vst.msk [vmem:[#allocation3 + $0x60] sm:$0xff] %vm1238_vm8, %v3452_v41  ;;  %v9447_v45 = vpack.c.bf16 %v3545_v40, %v3544_v44 }
0x1444   : > { %9448 = vmatpush1.bf16.msra.mxu0 %v9447_v45  ;;  %v3466_v49 = vpop.permute.xlu0 %3465  ;;  %v3547_v50 = vld [vmem:[#allocation3 + $0x50] sm:$0xff] }
0x1445   : > { %3470 = vst.msk [vmem:[#allocation3 + $0x90] sm:$0xff] %vm1238_vm8, %v3466_v49  ;;  %v3464_v52 = vpop.permute.xlu1 %3463  ;;  %9449 = vmatprep.subr.bf16.mxu0 %v9966_v27  ;;  %v3546_v53 = vld [vmem:[#allocation3 + $0x40] sm:$0xff] }
0x1446   : > { %3469 = vst.msk [vmem:[#allocation3 + $0x80] sm:$0xff] %vm1238_vm8, %v3464_v52  ;;  %v9450_v54 = vpack.c.bf16 %v3547_v50, %v3546_v53 }
0x1448   : > { %9451 = vmatpush1.bf16.msra.mxu0 %v9450_v54  ;;  %v3483_v58 = vpop.permute.xlu0 %3482  ;;  %v3549_v60 = vld [vmem:[#allocation3 + $0x70] sm:$0xff] }
0x1449   : > { %3487 = vst.msk [vmem:[#allocation3 + $0xb0] sm:$0xff] %vm1238_vm8, %v3483_v58  ;;  %v3481_v61 = vpop.permute.xlu1 %3480  ;;  %9452 = vmatprep.subr.bf16.mxu0 %v9966_v27  ;;  %v3548_v62 = vld [vmem:[#allocation3 + $0x60] sm:$0xff] }
0x144a   : > { %3486 = vst.msk [vmem:[#allocation3 + $0xa0] sm:$0xff] %vm1238_vm8, %v3481_v61  ;;  %v9453_v63 = vpack.c.bf16 %v3549_v60, %v3548_v62 }
0x144c   : > { %9454 = vmatpush1.bf16.msra.mxu0 %v9453_v63  ;;  %v3500_v0 = vpop.permute.xlu0 %3499  ;;  %v3551_v1 = vld [vmem:[#allocation3 + $0x90] sm:$0xff] }
0x144d   : > { %3504 = vst.msk [vmem:[#allocation3 + $0xd0] sm:$0xff] %vm1238_vm8, %v3500_v0  ;;  %v3498_v2 = vpop.permute.xlu1 %3497  ;;  %9455 = vmatprep.subr.bf16.mxu0 %v9966_v27  ;;  %v3550_v5 = vld [vmem:[#allocation3 + $0x80] sm:$0xff] }
0x144e   : > { %3503 = vst.msk [vmem:[#allocation3 + $0xc0] sm:$0xff] %vm1238_vm8, %v3498_v2  ;;  %v9456_v6 = vpack.c.bf16 %v3551_v1, %v3550_v5 }
0x1450   : > { %9457 = vmatpush1.bf16.msra.mxu0 %v9456_v6  ;;  %v3512_v7 = vpop.permute.xlu0 %3511  ;;  %v3553_v8 = vld [vmem:[#allocation3 + $0xb0] sm:$0xff] }
0x1451   : > { %3516 = vst.msk [vmem:[#allocation3 + $0xf0] sm:$0xff] %vm1238_vm8, %v3512_v7  ;;  %v3510_v9 = vpop.permute.xlu1 %3509  ;;  %9458 = vmatprep.subr.bf16.mxu0 %v9966_v27  ;;  %v3552_v10 = vld [vmem:[#allocation3 + $0xa0] sm:$0xff] }
0x1452   : > { %3515 = vst.msk [vmem:[#allocation3 + $0xe0] sm:$0xff] %vm1238_vm8, %v3510_v9  ;;  %v9459_v12 = vpack.c.bf16 %v3553_v8, %v3552_v10 }
0x1454   : > { %9460 = vmatpush1.bf16.msra.mxu0 %v9459_v12  ;;  %v3529_v13 = vpop.permute.xlu0 %3528  ;;  %v3555_v15 = vld [vmem:[#allocation3 + $0xd0] sm:$0xff] }
0x1455   : > { %3533 = vst.msk [vmem:[#allocation3 + $0x110] sm:$0xff] %vm1238_vm8, %v3529_v13  ;;  %v3527_v16 = vpop.permute.xlu1 %3526  ;;  %9461 = vmatprep.subr.bf16.mxu0 %v9966_v27  ;;  %v3554_v17 = vld [vmem:[#allocation3 + $0xc0] sm:$0xff] }
0x1456   : > { %3532 = vst.msk [vmem:[#allocation3 + $0x100] sm:$0xff] %vm1238_vm8, %v3527_v16  ;;  %v9462_v18 = vpack.c.bf16 %v3555_v15, %v3554_v17 }
0x1458   : > { %9463 = vmatpush1.bf16.msra.mxu0 %v9462_v18  ;;  %v3557_v21 = vld [vmem:[#allocation3 + $0xf0] sm:$0xff] }
0x1459   : > { %9464 = vmatprep.subr.bf16.mxu0 %v9966_v27  ;;  %v3556_v24 = vld [vmem:[#allocation3 + $0xe0] sm:$0xff] }
0x145a   : > { %v9465_v19 = vpack.c.bf16 %v3557_v21, %v3556_v24 }
0x145c   : > { %9466 = vmatpush1.bf16.msra.mxu0 %v9465_v19  ;;  %v3559_v26 = vld [vmem:[#allocation3 + $0x110] sm:$0xff] }
0x145d   : > { %9467 = vmatprep.subr.bf16.mxu0 %v9966_v27  ;;  %v3558_v33 = vld [vmem:[#allocation3 + $0x100] sm:$0xff]  ;;  %v3540_v27 = vld [vmem:[%s12257_s3 + $0x30] sm:$0xff]  ;;  %s12284_s3 = sld [smem:[#allocation7_spill]] }
0x145e   : > { %v9468_v25 = vpack.c.bf16 %v3559_v26, %v3558_v33 }
0x1460   : > { %9469 = vmatpush1.bf16.msra.mxu0 %v9468_v25 }
0x1463   : > { %3661 = vmatmul.mubr.f32.vlgmr.msra.gmra.mrb[18].mxu0 %v3534_v35  ;;  %v3942_v35 = vld [vmem:[%s12284_s3 + $0x8] sm:$0xff] }
0x1464   : > { %8575 = vmatprep.mubr.msk.f32.mxu0 %vm1238_vm8, %v3537_v46  ;;  %4089 = vmatprep.mubr.f32.mxu1 %v3942_v35 }
0x1465   : > { %v3572_v59 = vpop.permute.xlu0 %3571 }
0x1466   : > { %v3567_v48 = vpop.permute.xlu1 %3566 }
0x1467   : > { %3666 = vmatmul.mubr.f32.gmra.mrb[20].mxu0 %v3536_v30 }
0x1468   : > { %8576 = vmatprep.mubr.msk.f32.mxu0 %vm1238_vm8, %v3539_v34 }
0x1469   : > { %v3582_v45 = vpop.permute.xlu0 %3581 }
0x146a   : > { %v3577_v55 = vpop.permute.xlu1 %3576 }
0x146b   : > { %3671 = vmatmul.mubr.f32.gmra.mrb[22].mxu0 %v3538_v43 }
0x146c   : > { %8577 = vmatprep.mubr.msk.f32.mxu0 %vm1238_vm8, %v3541_v47  ;;  %v3989_v47 = vld [vmem:[%s12285_s8] sm:$0xff] }
0x146f   : > { %3676 = vmatmul.mubr.f32.gmra.mrb[24].mxu0 %v3540_v27 }
0x1536   : > { %v3662_v57 = vpop.f32.mrb[18].mxu0 }
0x1537   : > { %v3663_v28 = vadd.f32 %v3662_v57, %v3567_v48  ;;  %v3664_v29 = vpop.f32.mrb[19].mxu0  ;;  %v3991_v48 = vld [vmem:[%s12285_s8 + $0x10] sm:$0xff]  ;;  %v3990_v57 = vld [vmem:[%s12285_s8 + $0x8] sm:$0xff] }
0x1539   : > { %3681 = vst.msk [vmem:[%s10820_s1] sm:$0xff] %vm1238_vm8, %v3663_v28  ;;  %v3685_v31 = vmax.f32 %v3663_v28, 0.0  ;;  %v3992_v28 = vld [vmem:[%s12285_s8 + $0x18] sm:$0xff]  ;;  %s12288_s8 = sld [smem:[#allocation18_spill]] }
0x153a   : > { %v3667_v32 = vpop.f32.mrb[20].mxu0 }
0x153b   : > { %v3668_v37 = vadd.f32 %v3667_v32, %v3572_v59  ;;  %v3669_v38 = vpop.f32.mrb[21].mxu0  ;;  %3701 = vrot.lane.b32.xlu1 %v3685_v31, %s12220_s6 }
0x153d   : > { %3682 = vst.msk [vmem:[%s10820_s1 + $0x8] sm:$0xff] %vm1238_vm8, %v3668_v37  ;;  %v3686_v56 = vmax.f32 %v3668_v37, 0.0 }
0x153e   : > { %v3672_v39 = vpop.f32.mrb[22].mxu0 }
0x153f   : > { %v3673_v40 = vadd.f32 %v3672_v39, %v3577_v55  ;;  %3703 = vrot.lane.b32.xlu0 %v3686_v56, %s12220_s6  ;;  %v3674_v41 = vpop.f32.mrb[23].mxu0 }
0x1541   : > { %3683 = vst.msk [vmem:[%s10820_s1 + $0x10] sm:$0xff] %vm1238_vm8, %v3673_v40  ;;  %v3687_v44 = vmax.f32 %v3673_v40, 0.0 }
0x1542   : > { %v3677_v49 = vpop.f32.mrb[24].mxu0 }
0x1543   : > { %v3678_v50 = vadd.f32 %v3677_v49, %v3582_v45  ;;  %3705 = vrot.lane.b32.xlu1 %v3687_v44, %s12220_s6  ;;  %v3679_v52 = vpop.f32.mrb[25].mxu0 }
0x1545   : > { %3684 = vst.msk [vmem:[%s10820_s1 + $0x18] sm:$0xff] %vm1238_vm8, %v3678_v50  ;;  %v3688_v53 = vmax.f32 %v3678_v50, 0.0 }
0x1547   : > { %3707 = vrot.lane.b32.xlu0 %v3688_v53, %s12220_s6  ;;  %s12283_s6 = smov 124  }
0x15ad   : > { %v3702_v54 = vpop.permute.xlu1 %3701 }
0x15ae   : > { %3713 = vst.msk [vmem:[#allocation2] sm:$0xff] %vm3384_vm3, %v3702_v54 }
0x15b1   : > { %v3704_v58 = vpop.permute.xlu0 %3703 }
0x15b2   : > { %3714 = vst.msk [vmem:[#allocation2 + $0x18] sm:$0xff] %vm3384_vm3, %v3704_v58 }
0x15b5   : > { %v10836_v60 = vld [vmem:[#allocation2] sm:$0xff]  ;;  %v3706_v61 = vpop.permute.xlu1 %3705 }
0x15b6   : > { %v3721_v62 = vmul.f32 %v10717_v11, %v10836_v60  ;;  %3715 = vst.msk [vmem:[#allocation2 + $0x30] sm:$0xff] %vm3384_vm3, %v3706_v61  ;;  %3817 = vrot.lane.b32.xlu1 %v10836_v60, %s12281_s23  ;;  %v3837_v6 = vmul.f32 %v10836_v60, %v10755_v36  ;;  %v3865_v9 = vmul.f32 %v10836_v60, %v10761_v42 }
0x15b7   : > { %4220 = vst.msk [vmem:[#allocation2] sm:$0xff] %vm3370_vm14, %v9951_v3  ;;  %v3757_v12 = vmul.f32 %v10836_v60, %v10734_v23  ;;  %v3785_v17 = vmul.f32 %v10836_v60, %v10748_v20  ;;  %v3917_v46 = vmul.f32 %v10836_v60, %v10770_v51 }
0x15b8   : > { %4224 = vst.msk [vmem:[#allocation2] sm:$0xff] %vm3373_vm15, %v9951_v3 }
0x15b9   : > { %3725 = vst.msk [vmem:[#allocation3] sm:$0xff] %vm1238_vm8, %v3721_v62  ;;  %v10848_v63 = vld [vmem:[#allocation2 + $0x18] sm:$0xff]  ;;  %v3708_v0 = vpop.permute.xlu0 %3707 }
0x15ba   : > { %v3722_v1 = vmul.f32 %v10717_v11, %v10848_v63  ;;  %3716 = vst.msk [vmem:[#allocation2 + $0x48] sm:$0xff] %vm3384_vm3, %v3708_v0  ;;  %3737 = vrot.lane.b32.xlu1 %v10836_v60, %s12276_s15  ;;  %3819 = vrot.lane.b32.xlu0 %v10848_v63, %s12281_s23  ;;  %v3838_v10 = vmul.f32 %v10848_v63, %v10755_v36 }
0x15bb   : > { %4221 = vst.msk [vmem:[#allocation2 + $0x18] sm:$0xff] %vm3370_vm14, %v9951_v3  ;;  %v3866_v13 = vmul.f32 %v10848_v63, %v10761_v42  ;;  %v3758_v15 = vmul.f32 %v10848_v63, %v10734_v23  ;;  %v3786_v24 = vmul.f32 %v10848_v63, %v10748_v20  ;;  %v3918_v43 = vmul.f32 %v10848_v63, %v10770_v51 }
0x15bc   : > { %4225 = vst.msk [vmem:[#allocation2 + $0x18] sm:$0xff] %vm3373_vm15, %v9951_v3 }
0x15bd   : > { %3726 = vst.msk [vmem:[#allocation3 + $0x10] sm:$0xff] %vm1238_vm8, %v3722_v1  ;;  %v3719_v2 = vld [vmem:[#allocation2 + $0x30] sm:$0xff] }
0x15be   : > { %v3723_v5 = vmul.f32 %v10717_v11, %v3719_v2  ;;  %3897 = vrot.lane.b32.xlu1 %v10836_v60, %s12278_s5  ;;  %3739 = vrot.lane.b32.xlu0 %v10848_v63, %s12276_s15  ;;  %4222 = vst.msk [vmem:[#allocation2 + $0x30] sm:$0xff] %vm3370_vm14, %v9951_v3  ;;  %v3839_v16 = vmul.f32 %v3719_v2, %v10755_v36 }
0x15bf   : > { %4226 = vst.msk [vmem:[#allocation2 + $0x30] sm:$0xff] %vm3373_vm15, %v9951_v3  ;;  %v3867_v21 = vmul.f32 %v3719_v2, %v10761_v42  ;;  %v3759_v19 = vmul.f32 %v3719_v2, %v10734_v23  ;;  %v3787_v25 = vmul.f32 %v3719_v2, %v10748_v20  ;;  %v3919_v34 = vmul.f32 %v3719_v2, %v10770_v51 }
0x15c0   : > { %3727 = vst.msk [vmem:[#allocation3 + $0x20] sm:$0xff] %vm1238_vm8, %v3723_v5  ;;  %v3953_v44 = vld [vmem:[#allocation3] sm:$0xff] }
0x15c1   : > { %v3720_v7 = vld [vmem:[#allocation2 + $0x48] sm:$0xff] }
0x15c2   : > { %v3724_v8 = vmul.f32 %v10717_v11, %v3720_v7  ;;  %3845 = vrot.lane.b32.xlu1 %v3837_v6, %s12282_s28  ;;  %3899 = vrot.lane.b32.xlu0 %v10848_v63, %s12278_s5  ;;  %4223 = vst.msk [vmem:[#allocation2 + $0x48] sm:$0xff] %vm3370_vm14, %v9951_v3  ;;  %v3840_v18 = vmul.f32 %v3720_v7, %v10755_v36  ;;  %vm5083_vm14 = vcmask 56344  }
0x15c3   : > { %4227 = vst.msk [vmem:[#allocation2 + $0x48] sm:$0xff] %vm3373_vm15, %v9951_v3  ;;  %v3868_v26 = vmul.f32 %v3720_v7, %v10761_v42  ;;  %v3760_v33 = vmul.f32 %v3720_v7, %v10734_v23  ;;  %v3788_v30 = vmul.f32 %v3720_v7, %v10748_v20  ;;  %v3920_v27 = vmul.f32 %v3720_v7, %v10770_v51 }
0x15c4   : > { %3728 = vst.msk [vmem:[#allocation3 + $0x30] sm:$0xff] %vm1238_vm8, %v3724_v8  ;;  %v3954_v38 = vld [vmem:[#allocation3 + $0x10] sm:$0xff]  ;;  %vm6729_vm15 = vcmask 1041408  }
0x15c5   : > { %v9472_v45 = vpack.c.bf16 %v3954_v38, %v3953_v44 }
0x15c6   : > { %3873 = vrot.lane.b32.xlu1 %v3865_v9, %s12269_s0  ;;  %3847 = vrot.lane.b32.xlu0 %v3838_v10, %s12282_s28 }
0x15c7   : > { %v3955_v9 = vld [vmem:[#allocation3 + $0x20] sm:$0xff] }
0x15ca   : > { %3765 = vrot.lane.b32.xlu1 %v3757_v12, %s12268_s16  ;;  %3875 = vrot.lane.b32.xlu0 %v3866_v13, %s12269_s0 }
0x15cb   : > { %v3956_v0 = vld [vmem:[#allocation3 + $0x30] sm:$0xff] }
0x15cc   : > { %v9476_v10 = vpack.c.bf16 %v3956_v0, %v3955_v9 }
0x15ce   : > { %3821 = vrot.lane.b32.xlu1 %v3719_v2, %s12281_s23  ;;  %3767 = vrot.lane.b32.xlu0 %v3758_v15, %s12268_s16 }
0x15d2   : > { %3741 = vrot.lane.b32.xlu1 %v3719_v2, %s12276_s15  ;;  %3823 = vrot.lane.b32.xlu0 %v3720_v7, %s12281_s23 }
0x15d6   : > { %3849 = vrot.lane.b32.xlu1 %v3839_v16, %s12282_s28  ;;  %3743 = vrot.lane.b32.xlu0 %v3720_v7, %s12276_s15 }
0x15da   : > { %3793 = vrot.lane.b32.xlu1 %v3785_v17, %s12283_s6  ;;  %3851 = vrot.lane.b32.xlu0 %v3840_v18, %s12282_s28 }
0x15de   : > { %3877 = vrot.lane.b32.xlu1 %v3867_v21, %s12269_s0  ;;  %3795 = vrot.lane.b32.xlu0 %v3786_v24, %s12283_s6 }
0x15e2   : > { %3769 = vrot.lane.b32.xlu1 %v3759_v19, %s12268_s16  ;;  %3879 = vrot.lane.b32.xlu0 %v3868_v26, %s12269_s0 }
0x15e6   : > { %3901 = vrot.lane.b32.xlu1 %v3719_v2, %s12278_s5  ;;  %3771 = vrot.lane.b32.xlu0 %v3760_v33, %s12268_s16 }
0x15ea   : > { %3797 = vrot.lane.b32.xlu1 %v3787_v25, %s12283_s6  ;;  %3903 = vrot.lane.b32.xlu0 %v3720_v7, %s12278_s5 }
0x15ee   : > { %3925 = vrot.lane.b32.xlu1 %v3917_v46, %s12279_s4  ;;  %3799 = vrot.lane.b32.xlu0 %v3788_v30, %s12283_s6 }
0x15f2   : > { %3929 = vrot.lane.b32.xlu1 %v3919_v34, %s12279_s4  ;;  %3927 = vrot.lane.b32.xlu0 %v3918_v43, %s12279_s4 }
0x15f6   : > { %3995 = vperm.xlu1 %9906, %v3989_v47   ;;  %3931 = vrot.lane.b32.xlu0 %v3920_v27, %s12279_s4 }
0x15fa   : > { %4005 = vperm.xlu1 %9906, %v3991_v48   ;;  %4000 = vperm.xlu0 %9880, %v3990_v57  }
0x15fe   : > { %4010 = vperm.xlu0 %9880, %v3992_v28  }
0x1628   : > { %v3818_v29 = vpop.permute.xlu1 %3817 }
0x1629   : > { %3829 = vst.msk [vmem:[#allocation3 + $0x100] sm:$0xff] %vm1238_vm8, %v3818_v29 }
0x162c   : > { %v3738_v31 = vpop.permute.xlu1 %3737  ;;  %v3820_v59 = vpop.permute.xlu0 %3819 }
0x162d   : > { %3749 = vst.msk [vmem:[#allocation3 + $0x40] sm:$0xff] %vm1238_vm8, %v3738_v31  ;;  %3830 = vst.msk [vmem:[#allocation3 + $0x110] sm:$0xff] %vm1238_vm8, %v3820_v59 }
0x1630   : > { %v3898_v32 = vpop.permute.xlu1 %3897  ;;  %v3740_v37 = vpop.permute.xlu0 %3739  ;;  %v3969_v39 = vld [vmem:[#allocation3 + $0x100] sm:$0xff] }
0x1631   : > { %3909 = vst.msk [vmem:[#allocation3 + $0x1c0] sm:$0xff] %vm1238_vm8, %v3898_v32  ;;  %3750 = vst.msk [vmem:[#allocation3 + $0x50] sm:$0xff] %vm1238_vm8, %v3740_v37 }
0x1634   : > { %v3846_v56 = vpop.permute.xlu1 %3845  ;;  %v3900_v55 = vpop.permute.xlu0 %3899  ;;  %v3970_v40 = vld [vmem:[#allocation3 + $0x110] sm:$0xff]  ;;  %v3957_v18 = vld [vmem:[#allocation3 + $0x40] sm:$0xff] }
0x1635   : > { %3857 = vst.msk [vmem:[#allocation3 + $0x140] sm:$0xff] %vm1238_vm8, %v3846_v56  ;;  %3910 = vst.msk [vmem:[#allocation3 + $0x1d0] sm:$0xff] %vm1238_vm8, %v3900_v55  ;;  %v9470_v41 = vpack.c.bf16 %v3970_v40, %v3969_v39 }
0x1637   : > { %9471 = vmatprep.subr.bf16.mxu1 %v9470_v41 }
0x1638   : > { %v3874_v49 = vpop.permute.xlu1 %3873  ;;  %9473 = vmatpush3.bf16.msra.mxu1 %v9472_v45  ;;  %v3848_v50 = vpop.permute.xlu0 %3847  ;;  %v3958_v15 = vld [vmem:[#allocation3 + $0x50] sm:$0xff]  ;;  %v3981_v45 = vld [vmem:[#allocation3 + $0x1c0] sm:$0xff] }
0x1639   : > { %3885 = vst.msk [vmem:[#allocation3 + $0x180] sm:$0xff] %vm1238_vm8, %v3874_v49  ;;  %3858 = vst.msk [vmem:[#allocation3 + $0x150] sm:$0xff] %vm1238_vm8, %v3848_v50  ;;  %v9480_v21 = vpack.c.bf16 %v3958_v15, %v3957_v18  ;;  %v3948_v15 = vld [vmem:[%s12284_s3 + $0x38] sm:$0xff]  ;;  %v3951_v18 = vld [vmem:[%s12284_s3 + $0x50] sm:$0xff] }
0x163c   : > { %v3766_v52 = vpop.permute.xlu1 %3765  ;;  %v3876_v53 = vpop.permute.xlu0 %3875  ;;  %v3973_v12 = vld [vmem:[#allocation3 + $0x140] sm:$0xff]  ;;  %v3982_v56 = vld [vmem:[#allocation3 + $0x1d0] sm:$0xff] }
0x163d   : > { %3777 = vst.msk [vmem:[#allocation3 + $0x80] sm:$0xff] %vm1238_vm8, %v3766_v52  ;;  %3886 = vst.msk [vmem:[#allocation3 + $0x190] sm:$0xff] %vm1238_vm8, %v3876_v53  ;;  %v9494_v49 = vpack.c.bf16 %v3982_v56, %v3981_v45 }
0x1640   : > { %v3822_v54 = vpop.permute.xlu1 %3821  ;;  %v3768_v58 = vpop.permute.xlu0 %3767  ;;  %v3974_v7 = vld [vmem:[#allocation3 + $0x150] sm:$0xff]  ;;  %v3977_v43 = vld [vmem:[#allocation3 + $0x180] sm:$0xff] }
0x1641   : > { %3831 = vst.msk [vmem:[#allocation3 + $0x120] sm:$0xff] %vm1238_vm8, %v3822_v54  ;;  %3778 = vst.msk [vmem:[#allocation3 + $0x90] sm:$0xff] %vm1238_vm8, %v3768_v58  ;;  %v9478_v13 = vpack.c.bf16 %v3974_v7, %v3973_v12 }
0x1644   : > { %v3742_v60 = vpop.permute.xlu1 %3741  ;;  %v3824_v61 = vpop.permute.xlu0 %3823  ;;  %v3978_v35 = vld [vmem:[#allocation3 + $0x190] sm:$0xff]  ;;  %v3961_v28 = vld [vmem:[#allocation3 + $0x80] sm:$0xff] }
0x1645   : > { %3751 = vst.msk [vmem:[#allocation3 + $0x60] sm:$0xff] %vm1238_vm8, %v3742_v60  ;;  %3832 = vst.msk [vmem:[#allocation3 + $0x130] sm:$0xff] %vm1238_vm8, %v3824_v61  ;;  %v9486_v47 = vpack.c.bf16 %v3978_v35, %v3977_v43 }
0x1648   : > { %v3850_v62 = vpop.permute.xlu1 %3849  ;;  %v3744_v63 = vpop.permute.xlu0 %3743  ;;  %v3971_v5 = vld [vmem:[#allocation3 + $0x120] sm:$0xff]  ;;  %v3962_v27 = vld [vmem:[#allocation3 + $0x90] sm:$0xff] }
0x1649   : > { %3859 = vst.msk [vmem:[#allocation3 + $0x160] sm:$0xff] %vm1238_vm8, %v3850_v62  ;;  %3752 = vst.msk [vmem:[#allocation3 + $0x70] sm:$0xff] %vm1238_vm8, %v3744_v63  ;;  %v9488_v29 = vpack.c.bf16 %v3962_v27, %v3961_v28 }
0x164c   : > { %v3794_v1 = vpop.permute.xlu1 %3793  ;;  %v3852_v2 = vpop.permute.xlu0 %3851  ;;  %v3972_v6 = vld [vmem:[#allocation3 + $0x130] sm:$0xff]  ;;  %v3959_v30 = vld [vmem:[#allocation3 + $0x60] sm:$0xff] }
0x164d   : > { %3805 = vst.msk [vmem:[#allocation3 + $0xc0] sm:$0xff] %vm1238_vm8, %v3794_v1  ;;  %3860 = vst.msk [vmem:[#allocation3 + $0x170] sm:$0xff] %vm1238_vm8, %v3852_v2  ;;  %v9474_v8 = vpack.c.bf16 %v3972_v6, %v3971_v5  ;;  %v3941_v5 = vld [vmem:[%s12284_s3] sm:$0xff] }
0x164f   : > { %9475 = vmatprep.subr.bf16.mxu1 %v9474_v8  ;;  %v3945_v8 = vld [vmem:[%s12284_s3 + $0x20] sm:$0xff] }
0x1650   : > { %v3878_v16 = vpop.permute.xlu1 %3877  ;;  %9477 = vmatpush3.bf16.msra.mxu1 %v9476_v10  ;;  %v3796_v17 = vpop.permute.xlu0 %3795  ;;  %v3960_v24 = vld [vmem:[#allocation3 + $0x70] sm:$0xff]  ;;  %v3975_v33 = vld [vmem:[#allocation3 + $0x160] sm:$0xff]  ;;  %v3944_v10 = vld [vmem:[%s12284_s3 + $0x18] sm:$0xff] }
0x1651   : > { %3887 = vst.msk [vmem:[#allocation3 + $0x1a0] sm:$0xff] %vm1238_vm8, %v3878_v16  ;;  %3806 = vst.msk [vmem:[#allocation3 + $0xd0] sm:$0xff] %vm1238_vm8, %v3796_v17  ;;  %9479 = vmatprep.subr.bf16.mxu1 %v9478_v13  ;;  %v9484_v34 = vpack.c.bf16 %v3960_v24, %v3959_v30  ;;  %v3947_v17 = vld [vmem:[%s12284_s3 + $0x30] sm:$0xff] }
0x1652   : > { %v3943_v24 = vld [vmem:[%s12284_s3 + $0x10] sm:$0xff] }
0x1654   : > { %v3770_v19 = vpop.permute.xlu1 %3769  ;;  %9481 = vmatpush3.bf16.msra.mxu1 %v9480_v21  ;;  %v3880_v26 = vpop.permute.xlu0 %3879  ;;  %v3976_v25 = vld [vmem:[#allocation3 + $0x170] sm:$0xff]  ;;  %v3965_v54 = vld [vmem:[#allocation3 + $0xc0] sm:$0xff]  ;;  %v3950_v21 = vld [vmem:[%s12284_s3 + $0x48] sm:$0xff] }
0x1655   : > { %3779 = vst.msk [vmem:[#allocation3 + $0xa0] sm:$0xff] %vm1238_vm8, %v3770_v19  ;;  %3888 = vst.msk [vmem:[#allocation3 + $0x1b0] sm:$0xff] %vm1238_vm8, %v3880_v26  ;;  %v9482_v46 = vpack.c.bf16 %v3976_v25, %v3975_v33  ;;  %v3946_v19 = vld [vmem:[%s12284_s3 + $0x28] sm:$0xff]  ;;  %v3949_v26 = vld [vmem:[%s12284_s3 + $0x40] sm:$0xff] }
0x1656   : > { %v3952_v33 = vld [vmem:[%s12284_s3 + $0x58] sm:$0xff]  ;;  %s12286_s3 = smov 5  }
0x1657   : > { %9483 = vmatprep.subr.bf16.mxu1 %v9482_v46 }
0x1658   : > { %v3902_v48 = vpop.permute.xlu1 %3901  ;;  %9485 = vmatpush3.bf16.msra.mxu1 %v9484_v34  ;;  %v3772_v57 = vpop.permute.xlu0 %3771  ;;  %v3979_v32 = vld [vmem:[#allocation3 + $0x1a0] sm:$0xff]  ;;  %v3966_v50 = vld [vmem:[#allocation3 + $0xd0] sm:$0xff] }
0x1659   : > { %3911 = vst.msk [vmem:[#allocation3 + $0x1e0] sm:$0xff] %vm1238_vm8, %v3902_v48  ;;  %3780 = vst.msk [vmem:[#allocation3 + $0xb0] sm:$0xff] %vm1238_vm8, %v3772_v57  ;;  %9487 = vmatprep.subr.bf16.mxu1 %v9486_v47  ;;  %v9496_v61 = vpack.c.bf16 %v3966_v50, %v3965_v54 }
0x165c   : > { %v3798_v31 = vpop.permute.xlu1 %3797  ;;  %9489 = vmatpush3.bf16.msra.mxu1 %v9488_v29  ;;  %v3904_v59 = vpop.permute.xlu0 %3903  ;;  %v3980_v37 = vld [vmem:[#allocation3 + $0x1b0] sm:$0xff]  ;;  %v3963_v40 = vld [vmem:[#allocation3 + $0xa0] sm:$0xff] }
0x165d   : > { %3807 = vst.msk [vmem:[#allocation3 + $0xe0] sm:$0xff] %vm1238_vm8, %v3798_v31  ;;  %3912 = vst.msk [vmem:[#allocation3 + $0x1f0] sm:$0xff] %vm1238_vm8, %v3904_v59  ;;  %v9490_v38 = vpack.c.bf16 %v3980_v37, %v3979_v32 }
0x165f   : > { %9491 = vmatprep.subr.bf16.mxu1 %v9490_v38 }
0x1660   : > { %v3926_v55 = vpop.permute.xlu1 %3925  ;;  %v3800_v39 = vpop.permute.xlu0 %3799  ;;  %v3964_v41 = vld [vmem:[#allocation3 + $0xb0] sm:$0xff]  ;;  %v3983_v58 = vld [vmem:[#allocation3 + $0x1e0] sm:$0xff] }
0x1661   : > { %3937 = vst.msk [vmem:[#allocation3 + $0x200] sm:$0xff] %vm1238_vm8, %v3926_v55  ;;  %3808 = vst.msk [vmem:[#allocation3 + $0xf0] sm:$0xff] %vm1238_vm8, %v3800_v39  ;;  %v9492_v44 = vpack.c.bf16 %v3964_v41, %v3963_v40 }
0x1663   : > { %9493 = vmatpush3.bf16.msra.mxu1 %v9492_v44 }
0x1664   : > { %v3930_v52 = vpop.permute.xlu1 %3929  ;;  %9495 = vmatprep.subr.bf16.mxu1 %v9494_v49  ;;  %v3928_v53 = vpop.permute.xlu0 %3927  ;;  %v3984_v60 = vld [vmem:[#allocation3 + $0x1f0] sm:$0xff]  ;;  %v3967_v0 = vld [vmem:[#allocation3 + $0xe0] sm:$0xff] }
0x1665   : > { %3939 = vst.msk [vmem:[#allocation3 + $0x220] sm:$0xff] %vm1238_vm8, %v3930_v52  ;;  %3938 = vst.msk [vmem:[#allocation3 + $0x210] sm:$0xff] %vm1238_vm8, %v3928_v53  ;;  %v9498_v62 = vpack.c.bf16 %v3984_v60, %v3983_v58 }
0x1667   : > { %9497 = vmatpush3.bf16.msra.mxu1 %v9496_v61 }
0x1668   : > { %9499 = vmatprep.subr.bf16.mxu1 %v9498_v62  ;;  %v3932_v63 = vpop.permute.xlu0 %3931  ;;  %v3968_v1 = vld [vmem:[#allocation3 + $0xf0] sm:$0xff]  ;;  %v3985_v6 = vld [vmem:[#allocation3 + $0x200] sm:$0xff] }
0x1669   : > { %3940 = vst.msk [vmem:[#allocation3 + $0x230] sm:$0xff] %vm1238_vm8, %v3932_v63  ;;  %v9500_v2 = vpack.c.bf16 %v3968_v1, %v3967_v0 }
0x166b   : > { %9501 = vmatpush3.bf16.msra.mxu1 %v9500_v2 }
0x166c   : > { %v3986_v7 = vld [vmem:[#allocation3 + $0x210] sm:$0xff]  ;;  %v3987_v12 = vld [vmem:[#allocation3 + $0x220] sm:$0xff] }
0x166d   : > { %v9502_v9 = vpack.c.bf16 %v3986_v7, %v3985_v6 }
0x166e   : > { %4090 = vmatmul.mubr.f32.vlgmr.msra.gmra.mrb[16].mxu1 %v3941_v5 }
0x166f   : > { %9503 = vmatprep.subr.bf16.mxu1 %v9502_v9  ;;  %4094 = vmatprep.mubr.f32.mxu1 %v3945_v8 }
0x1670   : > { %9505 = vmatpush3.bf16.msra.mxu1 %v9502_v9  ;;  %v3988_v13 = vld [vmem:[#allocation3 + $0x230] sm:$0xff] }
0x1671   : > { %v9506_v16 = vpack.c.bf16 %v3988_v13, %v3987_v12 }
0x1672   : > { %4095 = vmatmul.mubr.f32.gmra.mrb[18].mxu1 %v3944_v10 }
0x1673   : > { %9507 = vmatprep.subr.bf16.mxu1 %v9506_v16  ;;  %4099 = vmatprep.mubr.f32.mxu1 %v3948_v15 }
0x1674   : > { %9509 = vmatpush3.bf16.msra.mxu1 %v9506_v16 }
0x1675   : > { %v3996_v29 = vpop.permute.xlu1 %3995 }
0x1676   : > { %4100 = vmatmul.mubr.f32.gmra.mrb[20].mxu1 %v3947_v17 }
0x1677   : > { %4104 = vmatprep.mubr.f32.mxu1 %v3951_v18 }
0x1679   : > { %v4001_v57 = vpop.permute.xlu0 %4000  ;;  %v4006_v41 = vpop.permute.xlu1 %4005 }
0x167a   : > { %4105 = vmatmul.mubr.f32.gmra.mrb[22].mxu1 %v3950_v21 }
0x167b   : > { %9216 = vmatprep.mubr.msk.f32.mxu1 %vm1319_vm10, %v3943_v24 }
0x167d   : > { %v4011_v39 = vpop.permute.xlu0 %4010 }
0x167e   : > { %9217 = vmatmul.mubr.msk.f32.vlgmr.msra.gmra.mrb[24].mxu1 %vm1319_vm10, %v3946_v19 }
0x167f   : > { %9219 = vmatprep.mubr.msk.f32.mxu1 %vm1319_vm10, %v3949_v26 }
0x1682   : > { %9220 = vmatmul.mubr.msk.f32.gmra.mrb[26].mxu1 %vm1319_vm10, %v3952_v33 }
0x1741   : > { %v8712_v25 = vpop.f32.mrb[16].mxu1 }
0x1742   : > { %v8713_v35 = vpop.f32.mrb[17].mxu1 }
0x1743   : > { %v8714_v46 = vadd.f32 %v8713_v35, %v8712_v25 }
0x1745   : > { %v8715_v30 = vpop.f32.mrb[18].mxu1  ;;  %v4092_v38 = vadd.f32 %v8714_v46, %v3996_v29 }
0x1746   : > { %v8716_v34 = vpop.f32.mrb[19].mxu1 }
0x1747   : > { %v8717_v43 = vadd.f32 %v8716_v34, %v8715_v30 }
0x1749   : > { %v8718_v47 = vpop.f32.mrb[20].mxu1  ;;  %v4097_v32 = vadd.f32 %v8717_v43, %v4001_v57  ;;  %v4523_v57 = vld [vmem:[%s12288_s8 + $0x18] sm:$0xff] }
0x174a   : > { %v8719_v27 = vpop.f32.mrb[21].mxu1 }
0x174b   : > { %v8720_v48 = vadd.f32 %v8719_v27, %v8718_v47 }
0x174d   : > { %v8721_v28 = vpop.f32.mrb[22].mxu1  ;;  %v4102_v52 = vadd.f32 %v8720_v48, %v4006_v41  ;;  %v4520_v48 = vld [vmem:[%s12288_s8] sm:$0xff] }
0x174e   : > { %v8722_v31 = vpop.f32.mrb[23].mxu1 }
0x174f   : > { %v8723_v59 = vadd.f32 %v8722_v31, %v8721_v28  ;;  %v4522_v28 = vld [vmem:[%s12288_s8 + $0x10] sm:$0xff] }
0x1751   : > { %v9218_v37 = vpop.f32.mrb[24].mxu1  ;;  %v4107_v45 = vadd.f32 %v8723_v59, %v4011_v39 }
0x1752   : > { %v10988_v56 = vadd.f32 %v9218_v37, %v4097_v32  ;;  %v4176_v55 = vpop.f32.mrb[25].mxu1 }
0x1753   : > { %v10990_v40 = vadd.f32 %v4176_v55, %v4092_v38 }
0x1754   : > { %v4217_v44 = vmax.f32 %v10988_v56, 0.0 }
0x1755   : > { %v4216_v49 = vmax.f32 %v10990_v40, 0.0  ;;  %v9221_v50 = vpop.f32.mrb[26].mxu1 }
0x1756   : > { %v10994_v53 = vadd.f32 %v9221_v50, %v4107_v45  ;;  %v4186_v54 = vpop.f32.mrb[27].mxu1  ;;  %4234 = vrot.lane.b32.xlu0 %v4217_v44, %s12286_s3 }
0x1757   : > { %v10997_v58 = vadd.f32 %v4186_v54, %v4102_v52  ;;  %4232 = vrot.lane.b32.xlu1 %v4216_v49, %s12286_s3 }
0x1758   : > { %v4219_v60 = vmax.f32 %v10994_v53, 0.0 }
0x1759   : > { %v4218_v61 = vmax.f32 %v10997_v58, 0.0 }
0x175a   : > { %4238 = vrot.lane.b32.xlu0 %v4219_v60, %s12286_s3 }
0x175b   : > { %4236 = vrot.lane.b32.xlu1 %v4218_v61, %s12286_s3  ;;  %s12287_s3 = sld [smem:[#allocation8_spill]] }
0x1761   : > { %v4473_v46 = vld [vmem:[%s12287_s3 + $0x8] sm:$0xff]  ;;  %v4474_v27 = vld [vmem:[%s12287_s3 + $0x10] sm:$0xff] }
0x1762   : > { %4620 = vmatprep.mubr.f32.mxu0 %v4473_v46  ;;  %9230 = vmatprep.mubr.msk.f32.mxu1 %vm1319_vm10, %v4474_v27 }
0x17c8   : > { %v4235_v62 = vpop.permute.xlu0 %4234 }
0x17c9   : > { %4245 = vst.msk [vmem:[#allocation2 + $0x18] sm:$0xff] %vm3384_vm3, %v4235_v62  ;;  %v4233_v63 = vpop.permute.xlu1 %4232 }
0x17ca   : > { %4244 = vst.msk [vmem:[#allocation2] sm:$0xff] %vm3384_vm3, %v4233_v63 }
0x17cc   : > { %v4239_v0 = vpop.permute.xlu0 %4238 }
0x17cd   : > { %4247 = vst.msk [vmem:[#allocation2 + $0x48] sm:$0xff] %vm3384_vm3, %v4239_v0  ;;  %v4237_v1 = vpop.permute.xlu1 %4236 }
0x17ce   : > { %4246 = vst.msk [vmem:[#allocation2 + $0x30] sm:$0xff] %vm3384_vm3, %v4237_v1  ;;  %vm6881_vm3 = vcmask 7168  }
0x17d0   : > { %v4249_v2 = vld [vmem:[#allocation2 + $0x18] sm:$0xff] }
0x17d1   : > { %v4253_v5 = vmul.f32 %v10717_v11, %v4249_v2  ;;  %v4248_v6 = vld [vmem:[#allocation2] sm:$0xff]  ;;  %4350 = vrot.lane.b32.xlu0 %v4249_v2, %s12281_s23  ;;  %v4369_v13 = vmul.f32 %v4249_v2, %v10755_v36  ;;  %v4289_v17 = vmul.f32 %v4249_v2, %v10734_v23  ;;  %5059 = vst.msk [vmem:[#allocation2 + $0x18] sm:$0xff] %vm5057_vm9, %v9951_v3 }
0x17d2   : > { %v4252_v7 = vmul.f32 %v10717_v11, %v4248_v6  ;;  %4348 = vrot.lane.b32.xlu1 %v4248_v6, %s12281_s23  ;;  %v4368_v15 = vmul.f32 %v4248_v6, %v10755_v36  ;;  %v4396_v16 = vmul.f32 %v4248_v6, %v10761_v42  ;;  %v4288_v18 = vmul.f32 %v4248_v6, %v10734_v23 }
0x17d3   : > { %4257 = vst.msk [vmem:[#allocation3 + $0x10] sm:$0xff] %vm1238_vm8, %v4253_v5  ;;  %v4316_v26 = vmul.f32 %v4248_v6, %v10748_v20  ;;  %v4448_v34 = vmul.f32 %v4248_v6, %v10770_v51 }
0x17d4   : > { %4256 = vst.msk [vmem:[#allocation3] sm:$0xff] %vm1238_vm8, %v4252_v7  ;;  %v4251_v8 = vld [vmem:[#allocation2 + $0x48] sm:$0xff] }
0x17d5   : > { %v4255_v9 = vmul.f32 %v10717_v11, %v4251_v8  ;;  %v4250_v10 = vld [vmem:[#allocation2 + $0x30] sm:$0xff]  ;;  %4270 = vrot.lane.b32.xlu0 %v4249_v2, %s12276_s15  ;;  %v4371_v21 = vmul.f32 %v4251_v8, %v10755_v36  ;;  %v4399_v19 = vmul.f32 %v4251_v8, %v10761_v42  ;;  %v4291_v33 = vmul.f32 %v4251_v8, %v10734_v23 }
0x17d6   : > { %v4254_v12 = vmul.f32 %v10717_v11, %v4250_v10  ;;  %4268 = vrot.lane.b32.xlu1 %v4248_v6, %s12276_s15  ;;  %v4397_v11 = vmul.f32 %v4249_v2, %v10761_v42  ;;  %v4370_v24 = vmul.f32 %v4250_v10, %v10755_v36  ;;  %v4398_v25 = vmul.f32 %v4250_v10, %v10761_v42 }
0x17d7   : > { %4259 = vst.msk [vmem:[#allocation3 + $0x30] sm:$0xff] %vm1238_vm8, %v4255_v9  ;;  %v4317_v36 = vmul.f32 %v4249_v2, %v10748_v20  ;;  %v4290_v35 = vmul.f32 %v4250_v10, %v10734_v23  ;;  %v4319_v42 = vmul.f32 %v4251_v8, %v10748_v20  ;;  %v4318_v30 = vmul.f32 %v4250_v10, %v10748_v20  ;;  %v4521_v20 = vld [vmem:[%s12288_s8 + $0x8] sm:$0xff] }
0x17d8   : > { %4258 = vst.msk [vmem:[#allocation3 + $0x20] sm:$0xff] %vm1238_vm8, %v4254_v12  ;;  %v4449_v23 = vmul.f32 %v4249_v2, %v10770_v51  ;;  %v4451_v43 = vmul.f32 %v4251_v8, %v10770_v51  ;;  %v4450_v47 = vmul.f32 %v4250_v10, %v10770_v51 }
0x17d9   : > { %4430 = vrot.lane.b32.xlu0 %v4249_v2, %s12278_s5  ;;  %5058 = vst.msk [vmem:[#allocation2] sm:$0xff] %vm5057_vm9, %v9951_v3  ;;  %5060 = vst.msk [vmem:[#allocation2 + $0x30] sm:$0xff] %vm5057_vm9, %v9951_v3 }
0x17da   : > { %4428 = vrot.lane.b32.xlu1 %v4248_v6, %s12278_s5  ;;  %v4485_v55 = vld [vmem:[#allocation3 + $0x10] sm:$0xff]  ;;  %5061 = vst.msk [vmem:[#allocation2 + $0x48] sm:$0xff] %vm5057_vm9, %v9951_v3 }
0x17db   : > { %v4484_v38 = vld [vmem:[#allocation3] sm:$0xff]  ;;  %5064 = vst.msk [vmem:[#allocation2 + $0x18] sm:$0xff] %vm5062_vm13, %v9951_v3  ;;  %5063 = vst.msk [vmem:[#allocation2] sm:$0xff] %vm5062_vm13, %v9951_v3 }
0x17dc   : > { %v9512_v45 = vpack.c.bf16 %v4485_v55, %v4484_v38  ;;  %5065 = vst.msk [vmem:[#allocation2 + $0x30] sm:$0xff] %vm5062_vm13, %v9951_v3  ;;  %5066 = vst.msk [vmem:[#allocation2 + $0x48] sm:$0xff] %vm5062_vm13, %v9951_v3 }
0x17dd   : > { %4378 = vrot.lane.b32.xlu0 %v4369_v13, %s12282_s28 }
0x17de   : > { %4376 = vrot.lane.b32.xlu1 %v4368_v15, %s12282_s28  ;;  %v4487_v7 = vld [vmem:[#allocation3 + $0x30] sm:$0xff] }
0x17df   : > { %v4486_v6 = vld [vmem:[#allocation3 + $0x20] sm:$0xff] }
0x17e0   : > { %v9516_v15 = vpack.c.bf16 %v4487_v7, %v4486_v6  ;;  %v4472_v6 = vld [vmem:[%s12287_s3] sm:$0xff] }
0x17e1   : > { %4406 = vrot.lane.b32.xlu0 %v4397_v11, %s12269_s0 }
0x17e2   : > { %4404 = vrot.lane.b32.xlu1 %v4396_v16, %s12269_s0 }
0x17e5   : > { %4298 = vrot.lane.b32.xlu0 %v4289_v17, %s12268_s16 }
0x17e6   : > { %4296 = vrot.lane.b32.xlu1 %v4288_v18, %s12268_s16 }
0x17e9   : > { %4354 = vrot.lane.b32.xlu0 %v4251_v8, %s12281_s23 }
0x17ea   : > { %4352 = vrot.lane.b32.xlu1 %v4250_v10, %s12281_s23 }
0x17ed   : > { %4274 = vrot.lane.b32.xlu0 %v4251_v8, %s12276_s15 }
0x17ee   : > { %4272 = vrot.lane.b32.xlu1 %v4250_v10, %s12276_s15 }
0x17f1   : > { %4382 = vrot.lane.b32.xlu0 %v4371_v21, %s12282_s28 }
0x17f2   : > { %4380 = vrot.lane.b32.xlu1 %v4370_v24, %s12282_s28 }
0x17f5   : > { %4410 = vrot.lane.b32.xlu0 %v4399_v19, %s12269_s0 }
0x17f6   : > { %4324 = vrot.lane.b32.xlu1 %v4316_v26, %s12283_s6 }
0x17f9   : > { %4302 = vrot.lane.b32.xlu0 %v4291_v33, %s12268_s16 }
0x17fa   : > { %4408 = vrot.lane.b32.xlu1 %v4398_v25, %s12269_s0 }
0x17fd   : > { %4326 = vrot.lane.b32.xlu0 %v4317_v36, %s12283_s6 }
0x17fe   : > { %4300 = vrot.lane.b32.xlu1 %v4290_v35, %s12268_s16 }
0x1801   : > { %4434 = vrot.lane.b32.xlu0 %v4251_v8, %s12278_s5 }
0x1802   : > { %4432 = vrot.lane.b32.xlu1 %v4250_v10, %s12278_s5  ;;  %s12291_s5 = smov 6  }
0x1805   : > { %4330 = vrot.lane.b32.xlu0 %v4319_v42, %s12283_s6 }
0x1806   : > { %4328 = vrot.lane.b32.xlu1 %v4318_v30, %s12283_s6 }
0x1809   : > { %4458 = vrot.lane.b32.xlu0 %v4449_v23, %s12279_s4 }
0x180a   : > { %4456 = vrot.lane.b32.xlu1 %v4448_v34, %s12279_s4 }
0x180d   : > { %4462 = vrot.lane.b32.xlu0 %v4451_v43, %s12279_s4 }
0x180e   : > { %4460 = vrot.lane.b32.xlu1 %v4450_v47, %s12279_s4  ;;  %s12289_s4 = sld [smem:[#allocation25_spill]] }
0x1811   : > { %4531 = vperm.xlu0 %9880, %v4521_v20  }
0x1812   : > { %4526 = vperm.xlu1 %9906, %v4520_v48  }
0x1815   : > { %4541 = vperm.xlu0 %9880, %v4523_v57  }
0x1816   : > { %4536 = vperm.xlu1 %9906, %v4522_v28  }
0x1843   : > { %v4351_v29 = vpop.permute.xlu0 %4350 }
0x1844   : > { %4361 = vst.msk [vmem:[#allocation3 + $0x110] sm:$0xff] %vm1238_vm8, %v4351_v29  ;;  %v4349_v31 = vpop.permute.xlu1 %4348 }
0x1845   : > { %4360 = vst.msk [vmem:[#allocation3 + $0x100] sm:$0xff] %vm1238_vm8, %v4349_v31 }
0x1847   : > { %v4271_v51 = vpop.permute.xlu0 %4270 }
0x1848   : > { %4281 = vst.msk [vmem:[#allocation3 + $0x50] sm:$0xff] %vm1238_vm8, %v4271_v51  ;;  %v4269_v59 = vpop.permute.xlu1 %4268 }
0x1849   : > { %4280 = vst.msk [vmem:[#allocation3 + $0x40] sm:$0xff] %vm1238_vm8, %v4269_v59 }
0x184b   : > { %v4431_v32 = vpop.permute.xlu0 %4430  ;;  %v4501_v37 = vld [vmem:[#allocation3 + $0x110] sm:$0xff] }
0x184c   : > { %4441 = vst.msk [vmem:[#allocation3 + $0x1d0] sm:$0xff] %vm1238_vm8, %v4431_v32  ;;  %v4429_v39 = vpop.permute.xlu1 %4428  ;;  %v4500_v41 = vld [vmem:[#allocation3 + $0x100] sm:$0xff] }
0x184d   : > { %4440 = vst.msk [vmem:[#allocation3 + $0x1c0] sm:$0xff] %vm1238_vm8, %v4429_v39  ;;  %v9510_v44 = vpack.c.bf16 %v4501_v37, %v4500_v41 }
0x184f   : > { %9511 = vmatprep.subr.bf16.mxu0 %v9510_v44  ;;  %v4379_v49 = vpop.permute.xlu0 %4378  ;;  %v4489_v18 = vld [vmem:[#allocation3 + $0x50] sm:$0xff] }
0x1850   : > { %4389 = vst.msk [vmem:[#allocation3 + $0x150] sm:$0xff] %vm1238_vm8, %v4379_v49  ;;  %v4377_v50 = vpop.permute.xlu1 %4376  ;;  %9513 = vmatpush3.bf16.msra.mxu0 %v9512_v45  ;;  %v4488_v17 = vld [vmem:[#allocation3 + $0x40] sm:$0xff] }
0x1851   : > { %4388 = vst.msk [vmem:[#allocation3 + $0x140] sm:$0xff] %vm1238_vm8, %v4377_v50  ;;  %v9520_v24 = vpack.c.bf16 %v4489_v18, %v4488_v17  ;;  %v4478_v17 = vld [vmem:[%s12287_s3 + $0x30] sm:$0xff]  ;;  %v4477_v18 = vld [vmem:[%s12287_s3 + $0x28] sm:$0xff] }
0x1853   : > { %v4407_v52 = vpop.permute.xlu0 %4406  ;;  %v4513_v37 = vld [vmem:[#allocation3 + $0x1d0] sm:$0xff] }
0x1854   : > { %4417 = vst.msk [vmem:[#allocation3 + $0x190] sm:$0xff] %vm1238_vm8, %v4407_v52  ;;  %v4405_v54 = vpop.permute.xlu1 %4404  ;;  %v4512_v32 = vld [vmem:[#allocation3 + $0x1c0] sm:$0xff] }
0x1855   : > { %4416 = vst.msk [vmem:[#allocation3 + $0x180] sm:$0xff] %vm1238_vm8, %v4405_v54  ;;  %v9534_v44 = vpack.c.bf16 %v4513_v37, %v4512_v32 }
0x1857   : > { %v4299_v60 = vpop.permute.xlu0 %4298  ;;  %v4505_v12 = vld [vmem:[#allocation3 + $0x150] sm:$0xff] }
0x1858   : > { %4309 = vst.msk [vmem:[#allocation3 + $0x90] sm:$0xff] %vm1238_vm8, %v4299_v60  ;;  %v4297_v61 = vpop.permute.xlu1 %4296  ;;  %v4504_v10 = vld [vmem:[#allocation3 + $0x140] sm:$0xff] }
0x1859   : > { %4308 = vst.msk [vmem:[#allocation3 + $0x80] sm:$0xff] %vm1238_vm8, %v4297_v61  ;;  %v9518_v16 = vpack.c.bf16 %v4505_v12, %v4504_v10  ;;  %v4475_v12 = vld [vmem:[%s12287_s3 + $0x18] sm:$0xff] }
0x185b   : > { %v4355_v62 = vpop.permute.xlu0 %4354  ;;  %v4509_v46 = vld [vmem:[#allocation3 + $0x190] sm:$0xff] }
0x185c   : > { %4363 = vst.msk [vmem:[#allocation3 + $0x130] sm:$0xff] %vm1238_vm8, %v4355_v62  ;;  %v4353_v63 = vpop.permute.xlu1 %4352  ;;  %v4508_v42 = vld [vmem:[#allocation3 + $0x180] sm:$0xff] }
0x185d   : > { %4362 = vst.msk [vmem:[#allocation3 + $0x120] sm:$0xff] %vm1238_vm8, %v4353_v63  ;;  %v9526_v43 = vpack.c.bf16 %v4509_v46, %v4508_v42 }
0x185f   : > { %v4275_v0 = vpop.permute.xlu0 %4274  ;;  %v4493_v20 = vld [vmem:[#allocation3 + $0x90] sm:$0xff] }
0x1860   : > { %4283 = vst.msk [vmem:[#allocation3 + $0x70] sm:$0xff] %vm1238_vm8, %v4275_v0  ;;  %v4273_v1 = vpop.permute.xlu1 %4272  ;;  %v4492_v47 = vld [vmem:[#allocation3 + $0x80] sm:$0xff] }
0x1861   : > { %4282 = vst.msk [vmem:[#allocation3 + $0x60] sm:$0xff] %vm1238_vm8, %v4273_v1  ;;  %v9528_v48 = vpack.c.bf16 %v4493_v20, %v4492_v47 }
0x1863   : > { %v4383_v2 = vpop.permute.xlu0 %4382  ;;  %v4503_v5 = vld [vmem:[#allocation3 + $0x130] sm:$0xff] }
0x1864   : > { %4391 = vst.msk [vmem:[#allocation3 + $0x170] sm:$0xff] %vm1238_vm8, %v4383_v2  ;;  %v4381_v8 = vpop.permute.xlu1 %4380  ;;  %v4502_v9 = vld [vmem:[#allocation3 + $0x120] sm:$0xff] }
0x1865   : > { %4390 = vst.msk [vmem:[#allocation3 + $0x160] sm:$0xff] %vm1238_vm8, %v4381_v8  ;;  %v9514_v13 = vpack.c.bf16 %v4503_v5, %v4502_v9  ;;  %v4476_v9 = vld [vmem:[%s12287_s3 + $0x20] sm:$0xff] }
0x1867   : > { %9515 = vmatprep.subr.bf16.mxu0 %v9514_v13  ;;  %v4411_v11 = vpop.permute.xlu0 %4410  ;;  %v4491_v25 = vld [vmem:[#allocation3 + $0x70] sm:$0xff] }
0x1868   : > { %4419 = vst.msk [vmem:[#allocation3 + $0x1b0] sm:$0xff] %vm1238_vm8, %v4411_v11  ;;  %v4325_v21 = vpop.permute.xlu1 %4324  ;;  %9517 = vmatpush3.bf16.msra.mxu0 %v9516_v15  ;;  %v4490_v33 = vld [vmem:[#allocation3 + $0x60] sm:$0xff]  ;;  %v4479_v11 = vld [vmem:[%s12287_s3 + $0x38] sm:$0xff] }
0x1869   : > { %4336 = vst.msk [vmem:[#allocation3 + $0xc0] sm:$0xff] %vm1238_vm8, %v4325_v21  ;;  %9519 = vmatprep.subr.bf16.mxu0 %v9518_v16  ;;  %v9524_v23 = vpack.c.bf16 %v4491_v25, %v4490_v33  ;;  %v4482_v21 = vld [vmem:[%s12287_s3 + $0x50] sm:$0xff] }
0x186b   : > { %v4303_v19 = vpop.permute.xlu0 %4302  ;;  %v4507_v26 = vld [vmem:[#allocation3 + $0x170] sm:$0xff] }
0x186c   : > { %4311 = vst.msk [vmem:[#allocation3 + $0xb0] sm:$0xff] %vm1238_vm8, %v4303_v19  ;;  %v4409_v36 = vpop.permute.xlu1 %4408  ;;  %9521 = vmatpush3.bf16.msra.mxu0 %v9520_v24  ;;  %v4506_v35 = vld [vmem:[#allocation3 + $0x160] sm:$0xff]  ;;  %v4481_v19 = vld [vmem:[%s12287_s3 + $0x48] sm:$0xff] }
0x186d   : > { %4418 = vst.msk [vmem:[#allocation3 + $0x1a0] sm:$0xff] %vm1238_vm8, %v4409_v36  ;;  %v9522_v30 = vpack.c.bf16 %v4507_v26, %v4506_v35  ;;  %v4480_v24 = vld [vmem:[%s12287_s3 + $0x40] sm:$0xff]  ;;  %v4483_v26 = vld [vmem:[%s12287_s3 + $0x58] sm:$0xff]  ;;  %s12295_s3 = sld [smem:[#allocation10_spill]] }
0x186f   : > { %9523 = vmatprep.subr.bf16.mxu0 %v9522_v30  ;;  %v4327_v34 = vpop.permute.xlu0 %4326  ;;  %v4511_v31 = vld [vmem:[#allocation3 + $0x1b0] sm:$0xff] }
0x1870   : > { %4337 = vst.msk [vmem:[#allocation3 + $0xd0] sm:$0xff] %vm1238_vm8, %v4327_v34  ;;  %v4301_v27 = vpop.permute.xlu1 %4300  ;;  %9525 = vmatpush3.bf16.msra.mxu0 %v9524_v23  ;;  %v4496_v54 = vld [vmem:[#allocation3 + $0xc0] sm:$0xff] }
0x1871   : > { %4310 = vst.msk [vmem:[#allocation3 + $0xa0] sm:$0xff] %vm1238_vm8, %v4301_v27  ;;  %9527 = vmatprep.subr.bf16.mxu0 %v9526_v43 }
0x1873   : > { %v4435_v57 = vpop.permute.xlu0 %4434  ;;  %v4495_v39 = vld [vmem:[#allocation3 + $0xb0] sm:$0xff] }
0x1874   : > { %4443 = vst.msk [vmem:[#allocation3 + $0x1f0] sm:$0xff] %vm1238_vm8, %v4435_v57  ;;  %v4433_v28 = vpop.permute.xlu1 %4432  ;;  %9529 = vmatpush3.bf16.msra.mxu0 %v9528_v48  ;;  %v4510_v29 = vld [vmem:[#allocation3 + $0x1a0] sm:$0xff] }
0x1875   : > { %4442 = vst.msk [vmem:[#allocation3 + $0x1e0] sm:$0xff] %vm1238_vm8, %v4433_v28  ;;  %v9530_v51 = vpack.c.bf16 %v4511_v31, %v4510_v29  ;;  %v4755_v29 = vld [vmem:[%s12289_s4] sm:$0xf]  ;;  %s12225_s4 = smov 125  }
0x1877   : > { %9531 = vmatprep.subr.bf16.mxu0 %v9530_v51  ;;  %v4331_v59 = vpop.permute.xlu0 %4330  ;;  %v4497_v45 = vld [vmem:[#allocation3 + $0xd0] sm:$0xff] }
0x1878   : > { %4339 = vst.msk [vmem:[#allocation3 + $0xf0] sm:$0xff] %vm1238_vm8, %v4331_v59  ;;  %v4329_v38 = vpop.permute.xlu1 %4328  ;;  %v4494_v55 = vld [vmem:[#allocation3 + $0xa0] sm:$0xff]  ;;  %v9536_v61 = vpack.c.bf16 %v4497_v45, %v4496_v54 }
0x1879   : > { %4338 = vst.msk [vmem:[#allocation3 + $0xe0] sm:$0xff] %vm1238_vm8, %v4329_v38  ;;  %v9532_v41 = vpack.c.bf16 %v4495_v39, %v4494_v55 }
0x187b   : > { %9533 = vmatpush3.bf16.msra.mxu0 %v9532_v41  ;;  %v4459_v49 = vpop.permute.xlu0 %4458  ;;  %v4515_v50 = vld [vmem:[#allocation3 + $0x1f0] sm:$0xff] }
0x187c   : > { %4469 = vst.msk [vmem:[#allocation3 + $0x210] sm:$0xff] %vm1238_vm8, %v4459_v49  ;;  %v4457_v52 = vpop.permute.xlu1 %4456  ;;  %9535 = vmatprep.subr.bf16.mxu0 %v9534_v44  ;;  %v4514_v60 = vld [vmem:[#allocation3 + $0x1e0] sm:$0xff] }
0x187d   : > { %4468 = vst.msk [vmem:[#allocation3 + $0x200] sm:$0xff] %vm1238_vm8, %v4457_v52  ;;  %v9538_v62 = vpack.c.bf16 %v4515_v50, %v4514_v60 }
0x187f   : > { %9537 = vmatpush3.bf16.msra.mxu0 %v9536_v61  ;;  %v4463_v63 = vpop.permute.xlu0 %4462  ;;  %v4499_v0 = vld [vmem:[#allocation3 + $0xf0] sm:$0xff] }
0x1880   : > { %4471 = vst.msk [vmem:[#allocation3 + $0x230] sm:$0xff] %vm1238_vm8, %v4463_v63  ;;  %v4461_v1 = vpop.permute.xlu1 %4460  ;;  %9539 = vmatprep.subr.bf16.mxu0 %v9538_v62  ;;  %v4498_v2 = vld [vmem:[#allocation3 + $0xe0] sm:$0xff] }
0x1881   : > { %4470 = vst.msk [vmem:[#allocation3 + $0x220] sm:$0xff] %vm1238_vm8, %v4461_v1  ;;  %v9540_v5 = vpack.c.bf16 %v4499_v0, %v4498_v2 }
0x1883   : > { %9541 = vmatpush3.bf16.msra.mxu0 %v9540_v5  ;;  %v4517_v7 = vld [vmem:[#allocation3 + $0x210] sm:$0xff] }
0x1884   : > { %v4516_v8 = vld [vmem:[#allocation3 + $0x200] sm:$0xff] }
0x1885   : > { %v9542_v10 = vpack.c.bf16 %v4517_v7, %v4516_v8 }
0x1886   : > { %4621 = vmatmul.mubr.f32.vlgmr.msra.gmra.mrb[26].mxu0 %v4472_v6 }
0x1887   : > { %9543 = vmatprep.subr.bf16.mxu1 %v9542_v10  ;;  %4625 = vmatprep.mubr.f32.mxu0 %v4476_v9  ;;  %v4519_v13 = vld [vmem:[#allocation3 + $0x230] sm:$0xff] }
0x1888   : > { %9545 = vmatpush3.bf16.msra.mxu1 %v9542_v10  ;;  %v4518_v15 = vld [vmem:[#allocation3 + $0x220] sm:$0xff] }
0x1889   : > { %v9546_v16 = vpack.c.bf16 %v4519_v13, %v4518_v15 }
0x188a   : > { %4626 = vmatmul.mubr.f32.gmra.mrb[28].mxu0 %v4475_v12 }
0x188b   : > { %9547 = vmatprep.subr.bf16.mxu1 %v9546_v16  ;;  %4630 = vmatprep.mubr.f32.mxu0 %v4479_v11 }
0x188c   : > { %9549 = vmatpush3.bf16.msra.mxu1 %v9546_v16 }
0x188d   : > { %9236 = vmatprep.subr.msk.mxu1 %vm4793_vm4, %v4755_v29 }
0x188e   : > { %4631 = vmatmul.mubr.f32.gmra.mrb[30].mxu0 %v4478_v17 }
0x188f   : > { %9231 = vmatmul.mubr.msk.f32.vlgmr.msra.gmra.mrb[28].mxu1 %vm1319_vm10, %v4477_v18  ;;  %4635 = vmatprep.mubr.f32.mxu0 %v4482_v21 }
0x1890   : > { %9233 = vmatprep.mubr.msk.f32.mxu1 %vm1319_vm10, %v4480_v24  ;;  %v4532_v23 = vpop.permute.xlu0 %4531  ;;  %9237 = vmatpush3.msk.msra.mxu1 %vm4793_vm4, %v4755_v29 }
0x1891   : > { %v4527_v42 = vpop.permute.xlu1 %4526  ;;  %9244 = vmatprep.subr.msk.mxu1 %vm4793_vm4, %v4755_v29 }
0x1892   : > { %4636 = vmatmul.mubr.f32.gmra.mrb[32].mxu0 %v4481_v19 }
0x1893   : > { %9234 = vmatmul.mubr.msk.f32.gmra.mrb[30].mxu1 %vm1319_vm10, %v4483_v26 }
0x1894   : > { %v4542_v45 = vpop.permute.xlu0 %4541 }
0x1895   : > { %v4537_v31 = vpop.permute.xlu1 %4536 }
0x1959   : > { %v8764_v33 = vpop.f32.mrb[26].mxu0 }
0x195a   : > { %v8765_v25 = vpop.f32.mrb[27].mxu0 }
0x195b   : > { %v8766_v36 = vadd.f32 %v8765_v25, %v8764_v33 }
0x195d   : > { %v8767_v35 = vpop.f32.mrb[28].mxu0  ;;  %v4623_v27 = vadd.f32 %v8766_v36, %v4527_v42 }
0x195e   : > { %v8768_v46 = vpop.f32.mrb[29].mxu0 }
0x195f   : > { %v8769_v30 = vadd.f32 %v8768_v46, %v8767_v35 }
0x1961   : > { %v8770_v34 = vpop.f32.mrb[30].mxu0  ;;  %v4628_v43 = vadd.f32 %v8769_v30, %v4532_v23 }
0x1962   : > { %v8771_v47 = vpop.f32.mrb[31].mxu0  ;;  %v9232_v20 = vpop.f32.mrb[28].mxu1 }
0x1963   : > { %v8772_v48 = vadd.f32 %v8771_v47, %v8770_v34  ;;  %v11120_v57 = vadd.f32 %v9232_v20, %v4628_v43  ;;  %v4707_v28 = vpop.f32.mrb[29].mxu1 }
0x1964   : > { %v11123_v51 = vadd.f32 %v4707_v28, %v4623_v27 }
0x1965   : > { %v4748_v59 = vmax.f32 %v11120_v57, 0.0  ;;  %v8773_v32 = vpop.f32.mrb[32].mxu0  ;;  %v4633_v37 = vadd.f32 %v8772_v48, %v4537_v31 }
0x1966   : > { %v4747_v38 = vmax.f32 %v11123_v51, 0.0  ;;  %v8774_v55 = vpop.f32.mrb[33].mxu0  ;;  %v9235_v39 = vpop.f32.mrb[30].mxu1 }
0x1967   : > { %4752 = vst.msk [vmem:[#allocation4 + $0x18] sm:$0xff] %vm1238_vm8, %v4748_v59  ;;  %v8775_v41 = vadd.f32 %v8774_v55, %v8773_v32  ;;  %v4717_v44 = vpop.f32.mrb[31].mxu1 }
0x1968   : > { %4751 = vst.msk [vmem:[#allocation4] sm:$0xff] %vm1238_vm8, %v4747_v38  ;;  %v11132_v49 = vadd.f32 %v4717_v44, %v4633_v37 }
0x1969   : > { %v4638_v50 = vadd.f32 %v8775_v41, %v4542_v45 }
0x196a   : > { %v4749_v52 = vmax.f32 %v11132_v49, 0.0 }
0x196b   : > { %v11135_v54 = vadd.f32 %v9235_v39, %v4638_v50  ;;  %v5092_v39 = vand.u32 1, %v10192_v4 }
0x196c   : > { %4753 = vst.msk [vmem:[#allocation4 + $0x30] sm:$0xff] %vm1238_vm8, %v4749_v52 }
0x196d   : > { %v4750_v60 = vmax.f32 %v11135_v54, 0.0  ;;  %vm5100_vm11 = vcmp.ne.s32.totalorder %v5092_v39, 0  ;;  %vm5103_vm12 = vcmp.ne.s32.totalorder %v5092_v39, 1 }
0x196e   : > { %v4757_v61 = vld [vmem:[#allocation4 + $0x18] sm:$0xff]  ;;  %v11187_v50 = vsel %vm5100_vm11, 1.0, %v9951_v3  ;;  %v8597_v52 = vsel %vm5103_vm12, 1.0, %v9951_v3  ;;  %vm8370_vm11 = vcmask 515568  }
0x196f   : > { %4754 = vst.msk [vmem:[#allocation4 + $0x48] sm:$0xff] %vm1238_vm8, %v4750_v60  ;;  %4766 = vrot.lane.b32.xlu0 %v4757_v61, %s12283_s6  ;;  %v4756_v62 = vld [vmem:[#allocation4] sm:$0xff]  ;;  %vm4898_vm8 = vcmask 146560  }
0x1970   : > { %4764 = vrot.lane.b32.xlu1 %v4756_v62, %s12283_s6 }
0x1973   : > { %v4758_v63 = vld [vmem:[#allocation4 + $0x30] sm:$0xff] }
0x1974   : > { %4768 = vrot.lane.b32.xlu1 %v4758_v63, %s12283_s6 }
0x1976   : > { %v4759_v0 = vld [vmem:[#allocation4 + $0x48] sm:$0xff] }
0x1977   : > { %4770 = vrot.lane.b32.xlu0 %v4759_v0, %s12283_s6 }
0x19e1   : > { %v4767_v1 = vpop.permute.xlu0 %4766 }
0x19e2   : > { %v4765_v2 = vpop.permute.xlu1 %4764  ;;  %v4777_v6 = vadd.f32 %v4767_v1, %v4757_v61 }
0x19e3   : > { %v4776_v5 = vadd.f32 %v4765_v2, %v4756_v62 }
0x19e5   : > { %9238 = vmatprep.mubr.msk.f32.mxu1 %vm4780_vm2, %v4776_v5 }
0x19e6   : > { %v4769_v7 = vpop.permute.xlu1 %4768  ;;  %9239 = vmatmul.mubr.msk.f32.vlgmr.msra.gmra.mrb[32].mxu1 %vm4780_vm2, %v4777_v6 }
0x19e7   : > { %v4778_v8 = vadd.f32 %v4769_v7, %v4758_v63  ;;  %9245 = vmatpush3.msk.msra.mxu1 %vm4793_vm4, %v4755_v29  ;;  %vm4211_vm4 = vcmask 261248  }
0x19e9   : > { %9241 = vmatprep.mubr.msk.f32.mxu1 %vm4780_vm2, %v4778_v8  ;;  %v4771_v9 = vpop.permute.xlu0 %4770 }
0x19ea   : > { %v4779_v10 = vadd.f32 %v4771_v9, %v4759_v0 }
0x19ec   : > { %9242 = vmatmul.mubr.msk.f32.gmra.mrb[34].mxu1 %vm4780_vm2, %v4779_v10 }
0x1ab9   : > { %v9240_v12 = vpop.f32.mrb[32].mxu1 }
0x1aba   : > { %4888 = vrot.lane.b32.xlu0 %v9240_v12, %s12262_s18  ;;  %v4863_v13 = vpop.f32.mrb[33].mxu1 }
0x1abb   : > { %4886 = vrot.lane.b32.xlu1 %v4863_v13, %s12262_s18 }
0x1abf   : > { %v9243_v15 = vpop.f32.mrb[34].mxu1 }
0x1ac0   : > { %4892 = vrot.lane.b32.xlu0 %v9243_v15, %s12262_s18  ;;  %v4873_v11 = vpop.f32.mrb[35].mxu1 }
0x1ac1   : > { %4890 = vrot.lane.b32.xlu1 %v4873_v11, %s12262_s18 }
0x1b2c   : > { %v4889_v16 = vpop.permute.xlu0 %4888 }
0x1b2d   : > { %4900 = vst.msk [vmem:[#allocation4 + $0x18] sm:$0xff] %vm4898_vm8, %v4889_v16  ;;  %v4887_v17 = vpop.permute.xlu1 %4886 }
0x1b2e   : > { %4899 = vst.msk [vmem:[#allocation4] sm:$0xff] %vm4898_vm8, %v4887_v17 }
0x1b32   : > { %v4893_v18 = vpop.permute.xlu0 %4892 }
0x1b33   : > { %4902 = vst.msk [vmem:[#allocation4 + $0x48] sm:$0xff] %vm4898_vm8, %v4893_v18  ;;  %v4891_v21 = vpop.permute.xlu1 %4890 }
0x1b34   : > { %4901 = vst.msk [vmem:[#allocation4 + $0x30] sm:$0xff] %vm4898_vm8, %v4891_v21  ;;  %v4904_v24 = vld [vmem:[#allocation4 + $0x18] sm:$0xff]  ;;  %vm5617_vm8 = vcmask 425344  }
0x1b35   : > { %4913 = vrot.lane.b32.xlu0 %v4904_v24, %s12283_s6  ;;  %v4903_v19 = vld [vmem:[#allocation4] sm:$0xff] }
0x1b36   : > { %4911 = vrot.lane.b32.xlu1 %v4903_v19, %s12283_s6 }
0x1b3a   : > { %v4906_v26 = vld [vmem:[#allocation4 + $0x48] sm:$0xff] }
0x1b3b   : > { %4917 = vrot.lane.b32.xlu0 %v4906_v26, %s12283_s6  ;;  %v4905_v33 = vld [vmem:[#allocation4 + $0x30] sm:$0xff] }
0x1b3c   : > { %4915 = vrot.lane.b32.xlu1 %v4905_v33, %s12283_s6 }
0x1ba7   : > { %v4914_v25 = vpop.permute.xlu0 %4913 }
0x1ba8   : > { %v4924_v36 = vadd.f32 %v4914_v25, %v4904_v24  ;;  %v4912_v35 = vpop.permute.xlu1 %4911 }
0x1ba9   : > { %v4923_v42 = vadd.f32 %v4912_v35, %v4903_v19 }
0x1baa   : > { %4933 = vrot.lane.b32.xlu0 %v4924_v36, %s12269_s0 }
0x1bab   : > { %4931 = vrot.lane.b32.xlu1 %v4923_v42, %s12269_s0 }
0x1bad   : > { %v4918_v46 = vpop.permute.xlu0 %4917 }
0x1bae   : > { %v4926_v30 = vadd.f32 %v4918_v46, %v4906_v26  ;;  %v4916_v23 = vpop.permute.xlu1 %4915 }
0x1baf   : > { %v4925_v34 = vadd.f32 %v4916_v23, %v4905_v33 }
0x1bb0   : > { %4937 = vrot.lane.b32.xlu0 %v4926_v30, %s12269_s0 }
0x1bb1   : > { %4935 = vrot.lane.b32.xlu1 %v4925_v34, %s12269_s0  ;;  %s12290_s0 = smov 4  }
0x1c1c   : > { %v4934_v47 = vpop.permute.xlu0 %4933 }
0x1c1d   : > { %v4932_v43 = vpop.permute.xlu1 %4931 }
0x1c1e   : > { %9246 = vmatprep.mubr.msk.f32.mxu1 %vm4780_vm2, %v4932_v43 }
0x1c1f   : > { %9247 = vmatmul.mubr.msk.f32.vlgmr.msra.gmra.mrb[36].mxu1 %vm4780_vm2, %v4934_v47 }
0x1c22   : > { %v4938_v27 = vpop.permute.xlu0 %4937 }
0x1c23   : > { %v4936_v20 = vpop.permute.xlu1 %4935 }
0x1c24   : > { %9249 = vmatprep.mubr.msk.f32.mxu1 %vm4780_vm2, %v4936_v20 }
0x1c25   : > { %9250 = vmatmul.mubr.msk.f32.gmra.mrb[38].mxu1 %vm4780_vm2, %v4938_v27 }
0x1cf2   : > { %v9248_v48 = vpop.f32.mrb[36].mxu1 }
0x1cf3   : > { %5038 = vrot.lane.b32.xlu0 %v9248_v48, %s12264_s26  ;;  %v5013_v28 = vpop.f32.mrb[37].mxu1 }
0x1cf4   : > { %5036 = vrot.lane.b32.xlu1 %v5013_v28, %s12264_s26 }
0x1cf8   : > { %v9251_v29 = vpop.f32.mrb[38].mxu1 }
0x1cf9   : > { %5042 = vrot.lane.b32.xlu0 %v9251_v29, %s12264_s26  ;;  %v5023_v31 = vpop.f32.mrb[39].mxu1 }
0x1cfa   : > { %5040 = vrot.lane.b32.xlu1 %v5023_v31, %s12264_s26  ;;  %s9990_s26 = smov 115  }
0x1d65   : > { %v5039_v59 = vpop.permute.xlu0 %5038 }
0x1d66   : > { %5050 = vst.msk [vmem:[#allocation4 + $0x18] sm:$0xff] %vm5048_vm5, %v5039_v59  ;;  %v5037_v32 = vpop.permute.xlu1 %5036 }
0x1d67   : > { %5049 = vst.msk [vmem:[#allocation4] sm:$0xff] %vm5048_vm5, %v5037_v32 }
0x1d6b   : > { %v5043_v37 = vpop.permute.xlu0 %5042 }
0x1d6c   : > { %5052 = vst.msk [vmem:[#allocation4 + $0x48] sm:$0xff] %vm5048_vm5, %v5043_v37  ;;  %v5041_v38 = vpop.permute.xlu1 %5040 }
0x1d6d   : > { %5051 = vst.msk [vmem:[#allocation4 + $0x30] sm:$0xff] %vm5048_vm5, %v5041_v38  ;;  %v5054_v55 = vld [vmem:[#allocation4 + $0x18] sm:$0xff]  ;;  %vm7859_vm5 = vcmask 507368  }
0x1d6e   : > { %5073 = vrot.lane.b32.xlu0 %v5054_v55, %s9990_s26  ;;  %v5053_v41 = vld [vmem:[#allocation4] sm:$0xff] }
0x1d6f   : > { %5071 = vrot.lane.b32.xlu1 %v5053_v41, %s9990_s26 }
0x1d73   : > { %v5056_v44 = vld [vmem:[#allocation4 + $0x48] sm:$0xff] }
0x1d74   : > { %5077 = vrot.lane.b32.xlu0 %v5056_v44, %s9990_s26  ;;  %v5055_v45 = vld [vmem:[#allocation4 + $0x30] sm:$0xff] }
0x1d75   : > { %5075 = vrot.lane.b32.xlu1 %v5055_v45, %s9990_s26  ;;  %s12292_s26 = sld [smem:[#allocation9_spill]] }
0x1d78   : > { %5265 = vrot.lane.b32.xlu0 %v11187_v50, %s12290_s0 }
0x1d79   : > { %5234 = vrot.lane.b32.xlu1 %v8597_v52, %s12290_s0 }
0x1d7b   : > { %v5348_v30 = vld [vmem:[%s12292_s26 + $0x8] sm:$0xff]  ;;  %v5349_v28 = vld [vmem:[%s12292_s26 + $0x10] sm:$0xff] }
0x1d7c   : > { %5179 = vrot.lane.b32.xlu0 %v11187_v50, %s12263_s10  ;;  %5495 = vmatprep.mubr.f32.mxu0 %v5348_v30 }
0x1d7d   : > { %5147 = vrot.lane.b32.xlu1 %v8597_v52, %s12263_s10  ;;  %9260 = vmatprep.mubr.msk.f32.mxu1 %vm1319_vm10, %v5349_v28 }
0x1d81   : > { %5320 = vrot.lane.b32.xlu1 %v8597_v52, %s12291_s5  ;;  %s12293_s5 = sld [smem:[#allocation19_spill]] }
0x1d87   : > { %v5396_v48 = vld [vmem:[%s12293_s5 + $0x8] sm:$0xff]  ;;  %v5395_v29 = vld [vmem:[%s12293_s5] sm:$0xff]  ;;  %v5398_v31 = vld [vmem:[%s12293_s5 + $0x18] sm:$0xff] }
0x1d88   : > { %v5397_v59 = vld [vmem:[%s12293_s5 + $0x10] sm:$0xff]  ;;  %s12296_s5 = sld [smem:[#allocation20_spill]] }
0x1de0   : > { %v5074_v4 = vpop.permute.xlu0 %5073 }
0x1de1   : > { %5085 = vst.msk [vmem:[#allocation2 + $0x18] sm:$0xff] %vm5083_vm14, %v5074_v4  ;;  %v5072_v60 = vpop.permute.xlu1 %5071 }
0x1de2   : > { %5084 = vst.msk [vmem:[#allocation2] sm:$0xff] %vm5083_vm14, %v5072_v60 }
0x1de6   : > { %v5078_v61 = vpop.permute.xlu0 %5077 }
0x1de7   : > { %5087 = vst.msk [vmem:[#allocation2 + $0x48] sm:$0xff] %vm5083_vm14, %v5078_v61  ;;  %v5076_v62 = vpop.permute.xlu1 %5075 }
0x1de8   : > { %v11200_v63 = vld [vmem:[#allocation2 + $0x18] sm:$0xff]  ;;  %5086 = vst.msk [vmem:[#allocation2 + $0x30] sm:$0xff] %vm5083_vm14, %v5076_v62 }
0x1de9   : > { %v5111_v0 = vmul.f32 %v11187_v50, %v11200_v63  ;;  %v11205_v1 = vld [vmem:[#allocation2] sm:$0xff]  ;;  %5216 = vrot.lane.b32.xlu1 %v11200_v63, %s12225_s4  ;;  %5627 = vst.msk [vmem:[#allocation2 + $0x18] sm:$0xff] %vm5057_vm9, %v9951_v3 }
0x1dea   : > { %v5110_v2 = vmul.f32 %v11187_v50, %v11205_v1  ;;  %5214 = vrot.lane.b32.xlu0 %v11205_v1, %s12225_s4  ;;  %5626 = vst.msk [vmem:[#allocation2] sm:$0xff] %vm5057_vm9, %v9951_v3  ;;  %v11247_v12 = vpop.permute.xlu0 %5265 }
0x1deb   : > { %5631 = vst.msk [vmem:[#allocation2 + $0x18] sm:$0xff] %vm5062_vm13, %v9951_v3  ;;  %5630 = vst.msk [vmem:[#allocation2] sm:$0xff] %vm5062_vm13, %v9951_v3  ;;  %v11231_v9 = vpop.permute.xlu1 %5234  ;;  %v5269_v15 = vmul.f32 %v11247_v12, %v11200_v63  ;;  %v5268_v16 = vmul.f32 %v11247_v12, %v11205_v1 }
0x1dec   : > { %5115 = vst.msk [vmem:[#allocation3 + $0x10] sm:$0xff] %vm4780_vm2, %v5111_v0  ;;  %5114 = vst.msk [vmem:[#allocation3] sm:$0xff] %vm4780_vm2, %v5110_v2  ;;  %v5238_v10 = vmul.f32 %v11231_v9, %v11200_v63  ;;  %v5237_v13 = vmul.f32 %v11231_v9, %v11205_v1 }
0x1ded   : > { %5128 = vrot.lane.b32.xlu1 %v11200_v63, %s12276_s15 }
0x1dee   : > { %v5109_v5 = vld [vmem:[#allocation2 + $0x48] sm:$0xff]  ;;  %5126 = vrot.lane.b32.xlu0 %v11205_v1, %s12276_s15  ;;  %v11273_v19 = vpop.permute.xlu0 %5179 }
0x1def   : > { %v5113_v6 = vmul.f32 %v11187_v50, %v5109_v5  ;;  %v5108_v7 = vld [vmem:[#allocation2 + $0x30] sm:$0xff]  ;;  %5629 = vst.msk [vmem:[#allocation2 + $0x48] sm:$0xff] %vm5057_vm9, %v9951_v3  ;;  %v11255_v11 = vpop.permute.xlu1 %5147  ;;  %v5240_v21 = vmul.f32 %v11231_v9, %v5109_v5  ;;  %v5271_v26 = vmul.f32 %v11247_v12, %v5109_v5  ;;  %v5182_v33 = vmul.f32 %v11273_v19, %v11205_v1 }
0x1df0   : > { %v5112_v8 = vmul.f32 %v11187_v50, %v5108_v7  ;;  %5628 = vst.msk [vmem:[#allocation2 + $0x30] sm:$0xff] %vm5057_vm9, %v9951_v3  ;;  %v5151_v17 = vmul.f32 %v11255_v11, %v11200_v63  ;;  %v5150_v18 = vmul.f32 %v11255_v11, %v11205_v1  ;;  %v5239_v24 = vmul.f32 %v11231_v9, %v5108_v7 }
0x1df1   : > { %5633 = vst.msk [vmem:[#allocation2 + $0x48] sm:$0xff] %vm5062_vm13, %v9951_v3  ;;  %5302 = vrot.lane.b32.xlu1 %v11200_v63, %s12281_s23  ;;  %5632 = vst.msk [vmem:[#allocation2 + $0x30] sm:$0xff] %vm5062_vm13, %v9951_v3  ;;  %v5153_v25 = vmul.f32 %v11255_v11, %v5109_v5  ;;  %v5270_v36 = vmul.f32 %v11247_v12, %v5108_v7  ;;  %v5183_v35 = vmul.f32 %v11273_v19, %v11200_v63 }
0x1df2   : > { %5117 = vst.msk [vmem:[#allocation3 + $0x30] sm:$0xff] %vm4780_vm2, %v5113_v6  ;;  %5116 = vst.msk [vmem:[#allocation3 + $0x20] sm:$0xff] %vm4780_vm2, %v5112_v8  ;;  %5300 = vrot.lane.b32.xlu0 %v11205_v1, %s12281_s23  ;;  %v5152_v42 = vmul.f32 %v11255_v11, %v5108_v7  ;;  %v5185_v46 = vmul.f32 %v11273_v19, %v5109_v5  ;;  %v5184_v34 = vmul.f32 %v11273_v19, %v5108_v7 }
0x1df3   : > { %v11295_v23 = vpop.permute.xlu1 %5320  ;;  %v5359_v44 = vld [vmem:[#allocation3] sm:$0xff]  ;;  %v5360_v45 = vld [vmem:[#allocation3 + $0x10] sm:$0xff] }
0x1df4   : > { %v5324_v43 = vmul.f32 %v11295_v23, %v11200_v63  ;;  %v5323_v47 = vmul.f32 %v11295_v23, %v11205_v1  ;;  %v5326_v20 = vmul.f32 %v11295_v23, %v5109_v5  ;;  %v5325_v27 = vmul.f32 %v11295_v23, %v5108_v7 }
0x1df5   : > { %5247 = vrot.lane.b32.xlu1 %v5238_v10, %s12283_s6  ;;  %v9552_v61 = vpack.c.bf16 %v5360_v45, %v5359_v44 }
0x1df6   : > { %5245 = vrot.lane.b32.xlu0 %v5237_v13, %s12283_s6 }
0x1df9   : > { %5278 = vrot.lane.b32.xlu1 %v5269_v15, %s12283_s6 }
0x1dfa   : > { %5276 = vrot.lane.b32.xlu0 %v5268_v16, %s12283_s6  ;;  %v5361_v16 = vld [vmem:[#allocation3 + $0x20] sm:$0xff] }
0x1dfd   : > { %5160 = vrot.lane.b32.xlu1 %v5151_v17, %s12268_s16  ;;  %v5362_v17 = vld [vmem:[#allocation3 + $0x30] sm:$0xff] }
0x1dfe   : > { %5158 = vrot.lane.b32.xlu0 %v5150_v18, %s12268_s16 }
0x1e01   : > { %5220 = vrot.lane.b32.xlu1 %v5109_v5, %s12225_s4 }
0x1e02   : > { %5218 = vrot.lane.b32.xlu0 %v5108_v7, %s12225_s4  ;;  %s12227_s4 = smov 3  }
0x1e05   : > { %5132 = vrot.lane.b32.xlu1 %v5109_v5, %s12276_s15 }
0x1e06   : > { %5130 = vrot.lane.b32.xlu0 %v5108_v7, %s12276_s15 }
0x1e09   : > { %5251 = vrot.lane.b32.xlu1 %v5240_v21, %s12283_s6 }
0x1e0a   : > { %5249 = vrot.lane.b32.xlu0 %v5239_v24, %s12283_s6 }
0x1e0d   : > { %5282 = vrot.lane.b32.xlu1 %v5271_v26, %s12283_s6 }
0x1e0e   : > { %5190 = vrot.lane.b32.xlu0 %v5182_v33, %s12268_s16 }
0x1e11   : > { %5164 = vrot.lane.b32.xlu1 %v5153_v25, %s12268_s16  ;;  %v9556_v25 = vpack.c.bf16 %v5362_v17, %v5361_v16 }
0x1e12   : > { %5280 = vrot.lane.b32.xlu0 %v5270_v36, %s12283_s6 }
0x1e15   : > { %5192 = vrot.lane.b32.xlu1 %v5183_v35, %s12268_s16 }
0x1e16   : > { %5162 = vrot.lane.b32.xlu0 %v5152_v42, %s12268_s16 }
0x1e19   : > { %5306 = vrot.lane.b32.xlu1 %v5109_v5, %s12281_s23 }
0x1e1a   : > { %5304 = vrot.lane.b32.xlu0 %v5108_v7, %s12281_s23 }
0x1e1d   : > { %5196 = vrot.lane.b32.xlu1 %v5185_v46, %s12268_s16 }
0x1e1e   : > { %5194 = vrot.lane.b32.xlu0 %v5184_v34, %s12268_s16 }
0x1e21   : > { %5333 = vrot.lane.b32.xlu1 %v5324_v43, %s12282_s28 }
0x1e22   : > { %5331 = vrot.lane.b32.xlu0 %v5323_v47, %s12282_s28 }
0x1e25   : > { %5337 = vrot.lane.b32.xlu1 %v5326_v20, %s12282_s28 }
0x1e26   : > { %5335 = vrot.lane.b32.xlu0 %v5325_v27, %s12282_s28 }
0x1e29   : > { %5406 = vperm.xlu1 %9906, %v5396_v48  }
0x1e2a   : > { %5401 = vperm.xlu0 %9880, %v5395_v29  }
0x1e2d   : > { %5416 = vperm.xlu1 %9906, %v5398_v31  }
0x1e2e   : > { %5411 = vperm.xlu0 %9880, %v5397_v59  }
0x1e5b   : > { %v5217_v32 = vpop.permute.xlu1 %5216 }
0x1e5c   : > { %5227 = vst.msk [vmem:[#allocation3 + $0x110] sm:$0xff] %vm4780_vm2, %v5217_v32  ;;  %v5215_v37 = vpop.permute.xlu0 %5214 }
0x1e5d   : > { %5226 = vst.msk [vmem:[#allocation3 + $0x100] sm:$0xff] %vm4780_vm2, %v5215_v37 }
0x1e5f   : > { %v5129_v38 = vpop.permute.xlu1 %5128 }
0x1e60   : > { %5139 = vst.msk [vmem:[#allocation3 + $0x50] sm:$0xff] %vm4780_vm2, %v5129_v38  ;;  %v5127_v55 = vpop.permute.xlu0 %5126 }
0x1e61   : > { %5138 = vst.msk [vmem:[#allocation3 + $0x40] sm:$0xff] %vm4780_vm2, %v5127_v55 }
0x1e63   : > { %v5303_v39 = vpop.permute.xlu1 %5302  ;;  %v5376_v41 = vld [vmem:[#allocation3 + $0x110] sm:$0xff] }
0x1e64   : > { %5313 = vst.msk [vmem:[#allocation3 + $0x1d0] sm:$0xff] %vm4780_vm2, %v5303_v39  ;;  %v5301_v52 = vpop.permute.xlu0 %5300  ;;  %v5375_v4 = vld [vmem:[#allocation3 + $0x100] sm:$0xff] }
0x1e65   : > { %5312 = vst.msk [vmem:[#allocation3 + $0x1c0] sm:$0xff] %vm4780_vm2, %v5301_v52  ;;  %v9550_v60 = vpack.c.bf16 %v5376_v41, %v5375_v4 }
0x1e67   : > { %v5248_v62 = vpop.permute.xlu1 %5247  ;;  %9551 = vmatprep.subr.bf16.mxu0 %v9550_v60  ;;  %v5364_v46 = vld [vmem:[#allocation3 + $0x50] sm:$0xff] }
0x1e68   : > { %5258 = vst.msk [vmem:[#allocation3 + $0x150] sm:$0xff] %vm4780_vm2, %v5248_v62  ;;  %9553 = vmatpush3.bf16.msra.mxu0 %v9552_v61  ;;  %v5246_v63 = vpop.permute.xlu0 %5245  ;;  %v5363_v42 = vld [vmem:[#allocation3 + $0x40] sm:$0xff] }
0x1e69   : > { %5257 = vst.msk [vmem:[#allocation3 + $0x140] sm:$0xff] %vm4780_vm2, %v5246_v63  ;;  %v9560_v34 = vpack.c.bf16 %v5364_v46, %v5363_v42 }
0x1e6b   : > { %v5279_v0 = vpop.permute.xlu1 %5278 }
0x1e6c   : > { %5289 = vst.msk [vmem:[#allocation3 + $0x190] sm:$0xff] %vm4780_vm2, %v5279_v0  ;;  %v5277_v1 = vpop.permute.xlu0 %5276  ;;  %v5387_v63 = vld [vmem:[#allocation3 + $0x1c0] sm:$0xff]  ;;  %v5388_v0 = vld [vmem:[#allocation3 + $0x1d0] sm:$0xff] }
0x1e6d   : > { %5288 = vst.msk [vmem:[#allocation3 + $0x180] sm:$0xff] %vm4780_vm2, %v5277_v1 }
0x1e6f   : > { %v5161_v2 = vpop.permute.xlu1 %5160  ;;  %v5380_v26 = vld [vmem:[#allocation3 + $0x150] sm:$0xff] }
0x1e70   : > { %5171 = vst.msk [vmem:[#allocation3 + $0x90] sm:$0xff] %vm4780_vm2, %v5161_v2  ;;  %v5159_v5 = vpop.permute.xlu0 %5158  ;;  %v5379_v24 = vld [vmem:[#allocation3 + $0x140] sm:$0xff] }
0x1e71   : > { %5170 = vst.msk [vmem:[#allocation3 + $0x80] sm:$0xff] %vm4780_vm2, %v5159_v5  ;;  %v9558_v35 = vpack.c.bf16 %v5380_v26, %v5379_v24 }
0x1e73   : > { %v5221_v6 = vpop.permute.xlu1 %5220  ;;  %v5384_v31 = vld [vmem:[#allocation3 + $0x190] sm:$0xff] }
0x1e74   : > { %5229 = vst.msk [vmem:[#allocation3 + $0x130] sm:$0xff] %vm4780_vm2, %v5221_v6  ;;  %v5219_v7 = vpop.permute.xlu0 %5218  ;;  %v5383_v29 = vld [vmem:[#allocation3 + $0x180] sm:$0xff] }
0x1e75   : > { %5228 = vst.msk [vmem:[#allocation3 + $0x120] sm:$0xff] %vm4780_vm2, %v5219_v7  ;;  %v9566_v38 = vpack.c.bf16 %v5384_v31, %v5383_v29  ;;  %v9574_v7 = vpack.c.bf16 %v5388_v0, %v5387_v63  ;;  %v5352_v29 = vld [vmem:[%s12292_s26 + $0x28] sm:$0xff]  ;;  %v5357_v31 = vld [vmem:[%s12292_s26 + $0x50] sm:$0xff] }
0x1e77   : > { %v5133_v8 = vpop.permute.xlu1 %5132  ;;  %v5368_v39 = vld [vmem:[#allocation3 + $0x90] sm:$0xff] }
0x1e78   : > { %5141 = vst.msk [vmem:[#allocation3 + $0x70] sm:$0xff] %vm4780_vm2, %v5133_v8  ;;  %v5131_v10 = vpop.permute.xlu0 %5130  ;;  %v5367_v55 = vld [vmem:[#allocation3 + $0x80] sm:$0xff] }
0x1e79   : > { %5140 = vst.msk [vmem:[#allocation3 + $0x60] sm:$0xff] %vm4780_vm2, %v5131_v10  ;;  %v9568_v44 = vpack.c.bf16 %v5368_v39, %v5367_v55 }
0x1e7b   : > { %v5252_v13 = vpop.permute.xlu1 %5251  ;;  %v5378_v15 = vld [vmem:[#allocation3 + $0x130] sm:$0xff] }
0x1e7c   : > { %5260 = vst.msk [vmem:[#allocation3 + $0x170] sm:$0xff] %vm4780_vm2, %v5252_v13  ;;  %v5250_v18 = vpop.permute.xlu0 %5249  ;;  %v5377_v21 = vld [vmem:[#allocation3 + $0x120] sm:$0xff] }
0x1e7d   : > { %5259 = vst.msk [vmem:[#allocation3 + $0x160] sm:$0xff] %vm4780_vm2, %v5250_v18  ;;  %v9554_v33 = vpack.c.bf16 %v5378_v15, %v5377_v21 }
0x1e7f   : > { %v5283_v36 = vpop.permute.xlu1 %5282  ;;  %9555 = vmatprep.subr.bf16.mxu0 %v9554_v33  ;;  %v5366_v27 = vld [vmem:[#allocation3 + $0x70] sm:$0xff] }
0x1e80   : > { %5291 = vst.msk [vmem:[#allocation3 + $0x1b0] sm:$0xff] %vm4780_vm2, %v5283_v36  ;;  %9557 = vmatpush3.bf16.msra.mxu0 %v9556_v25  ;;  %v5191_v30 = vpop.permute.xlu0 %5190  ;;  %v5365_v20 = vld [vmem:[#allocation3 + $0x60] sm:$0xff] }
0x1e81   : > { %5202 = vst.msk [vmem:[#allocation3 + $0xc0] sm:$0xff] %vm4780_vm2, %v5191_v30  ;;  %9559 = vmatprep.subr.bf16.mxu0 %v9558_v35  ;;  %v9564_v32 = vpack.c.bf16 %v5366_v27, %v5365_v20  ;;  %v5347_v35 = vld [vmem:[%s12292_s26] sm:$0xff]  ;;  %v5354_v27 = vld [vmem:[%s12292_s26 + $0x38] sm:$0xff] }
0x1e82   : > { %v5351_v30 = vld [vmem:[%s12292_s26 + $0x20] sm:$0xff] }
0x1e83   : > { %v5165_v43 = vpop.permute.xlu1 %5164  ;;  %v5382_v47 = vld [vmem:[#allocation3 + $0x170] sm:$0xff] }
0x1e84   : > { %5173 = vst.msk [vmem:[#allocation3 + $0xb0] sm:$0xff] %vm4780_vm2, %v5165_v43  ;;  %9561 = vmatpush3.bf16.msra.mxu0 %v9560_v34  ;;  %v5281_v48 = vpop.permute.xlu0 %5280  ;;  %v5381_v28 = vld [vmem:[#allocation3 + $0x160] sm:$0xff]  ;;  %v5350_v43 = vld [vmem:[%s12292_s26 + $0x18] sm:$0xff] }
0x1e85   : > { %5290 = vst.msk [vmem:[#allocation3 + $0x1a0] sm:$0xff] %vm4780_vm2, %v5281_v48  ;;  %v9562_v59 = vpack.c.bf16 %v5382_v47, %v5381_v28  ;;  %v5353_v28 = vld [vmem:[%s12292_s26 + $0x30] sm:$0xff] }
0x1e87   : > { %v5193_v37 = vpop.permute.xlu1 %5192  ;;  %9563 = vmatprep.subr.bf16.mxu0 %v9562_v59  ;;  %v5386_v60 = vld [vmem:[#allocation3 + $0x1b0] sm:$0xff]  ;;  %v5355_v59 = vld [vmem:[%s12292_s26 + $0x40] sm:$0xff] }
0x1e88   : > { %5203 = vst.msk [vmem:[#allocation3 + $0xd0] sm:$0xff] %vm4780_vm2, %v5193_v37  ;;  %9565 = vmatpush3.bf16.msra.mxu0 %v9564_v32  ;;  %v5163_v41 = vpop.permute.xlu0 %5162  ;;  %v5371_v16 = vld [vmem:[#allocation3 + $0xc0] sm:$0xff]  ;;  %v5356_v32 = vld [vmem:[%s12292_s26 + $0x48] sm:$0xff]  ;;  %v5358_v37 = vld [vmem:[%s12292_s26 + $0x58] sm:$0xff] }
0x1e89   : > { %5172 = vst.msk [vmem:[#allocation3 + $0xa0] sm:$0xff] %vm4780_vm2, %v5163_v41  ;;  %9567 = vmatprep.subr.bf16.mxu0 %v9566_v38 }
0x1e8b   : > { %v5307_v45 = vpop.permute.xlu1 %5306  ;;  %v5370_v5 = vld [vmem:[#allocation3 + $0xb0] sm:$0xff] }
0x1e8c   : > { %5315 = vst.msk [vmem:[#allocation3 + $0x1f0] sm:$0xff] %vm4780_vm2, %v5307_v45  ;;  %9569 = vmatpush3.bf16.msra.mxu0 %v9568_v44  ;;  %v5305_v52 = vpop.permute.xlu0 %5304  ;;  %v5385_v4 = vld [vmem:[#allocation3 + $0x1a0] sm:$0xff] }
0x1e8d   : > { %5314 = vst.msk [vmem:[#allocation3 + $0x1e0] sm:$0xff] %vm4780_vm2, %v5305_v52  ;;  %v9570_v61 = vpack.c.bf16 %v5386_v60, %v5385_v4 }
0x1e8f   : > { %v5197_v62 = vpop.permute.xlu1 %5196  ;;  %9571 = vmatprep.subr.bf16.mxu0 %v9570_v61  ;;  %v5372_v8 = vld [vmem:[#allocation3 + $0xd0] sm:$0xff] }
0x1e90   : > { %5205 = vst.msk [vmem:[#allocation3 + $0xf0] sm:$0xff] %vm4780_vm2, %v5197_v62  ;;  %v5195_v1 = vpop.permute.xlu0 %5194  ;;  %v5369_v2 = vld [vmem:[#allocation3 + $0xa0] sm:$0xff]  ;;  %v9576_v18 = vpack.c.bf16 %v5372_v8, %v5371_v16 }
0x1e91   : > { %5204 = vst.msk [vmem:[#allocation3 + $0xe0] sm:$0xff] %vm4780_vm2, %v5195_v1  ;;  %v9572_v6 = vpack.c.bf16 %v5370_v5, %v5369_v2 }
0x1e93   : > { %v5334_v10 = vpop.permute.xlu1 %5333  ;;  %9573 = vmatpush3.bf16.msra.mxu0 %v9572_v6  ;;  %v5390_v13 = vld [vmem:[#allocation3 + $0x1f0] sm:$0xff] }
0x1e94   : > { %5344 = vst.msk [vmem:[#allocation3 + $0x210] sm:$0xff] %vm4780_vm2, %v5334_v10  ;;  %9575 = vmatprep.subr.bf16.mxu0 %v9574_v7  ;;  %v5332_v15 = vpop.permute.xlu0 %5331  ;;  %v5389_v17 = vld [vmem:[#allocation3 + $0x1e0] sm:$0xff] }
0x1e95   : > { %5343 = vst.msk [vmem:[#allocation3 + $0x200] sm:$0xff] %vm4780_vm2, %v5332_v15  ;;  %v9578_v21 = vpack.c.bf16 %v5390_v13, %v5389_v17 }
0x1e97   : > { %v5338_v24 = vpop.permute.xlu1 %5337  ;;  %9577 = vmatpush3.bf16.msra.mxu0 %v9576_v18  ;;  %v5374_v26 = vld [vmem:[#allocation3 + $0xf0] sm:$0xff] }
0x1e98   : > { %5346 = vst.msk [vmem:[#allocation3 + $0x230] sm:$0xff] %vm4780_vm2, %v5338_v24  ;;  %9579 = vmatprep.subr.bf16.mxu0 %v9578_v21  ;;  %v5336_v33 = vpop.permute.xlu0 %5335  ;;  %v5373_v25 = vld [vmem:[#allocation3 + $0xe0] sm:$0xff] }
0x1e99   : > { %5345 = vst.msk [vmem:[#allocation3 + $0x220] sm:$0xff] %vm4780_vm2, %v5336_v33  ;;  %v9580_v36 = vpack.c.bf16 %v5374_v26, %v5373_v25 }
0x1e9b   : > { %9581 = vmatpush3.bf16.msra.mxu0 %v9580_v36  ;;  %v5392_v42 = vld [vmem:[#allocation3 + $0x210] sm:$0xff] }
0x1e9c   : > { %v5391_v46 = vld [vmem:[#allocation3 + $0x200] sm:$0xff] }
0x1e9d   : > { %v9582_v34 = vpack.c.bf16 %v5392_v42, %v5391_v46 }
0x1e9e   : > { %5496 = vmatmul.mubr.f32.vlgmr.msra.gmra.mrb[34].mxu0 %v5347_v35 }
0x1e9f   : > { %9583 = vmatprep.subr.bf16.mxu1 %v9582_v34  ;;  %5500 = vmatprep.mubr.f32.mxu0 %v5351_v30  ;;  %v5394_v47 = vld [vmem:[#allocation3 + $0x230] sm:$0xff] }
0x1ea0   : > { %9585 = vmatpush3.bf16.msra.mxu1 %v9582_v34  ;;  %v5393_v20 = vld [vmem:[#allocation3 + $0x220] sm:$0xff] }
0x1ea1   : > { %v9586_v48 = vpack.c.bf16 %v5394_v47, %v5393_v20 }
0x1ea2   : > { %5501 = vmatmul.mubr.f32.gmra.mrb[36].mxu0 %v5350_v43 }
0x1ea3   : > { %9587 = vmatprep.subr.bf16.mxu1 %v9586_v48  ;;  %5505 = vmatprep.mubr.f32.mxu0 %v5354_v27 }
0x1ea4   : > { %9589 = vmatpush3.bf16.msra.mxu1 %v9586_v48 }
0x1ea6   : > { %5506 = vmatmul.mubr.f32.gmra.mrb[38].mxu0 %v5353_v28 }
0x1ea7   : > { %9261 = vmatmul.mubr.msk.f32.vlgmr.msra.gmra.mrb[40].mxu1 %vm1319_vm10, %v5352_v29  ;;  %5510 = vmatprep.mubr.f32.mxu0 %v5357_v31 }
0x1ea8   : > { %9263 = vmatprep.mubr.msk.f32.mxu1 %vm1319_vm10, %v5355_v59  ;;  %v5407_v4 = vpop.permute.xlu1 %5406 }
0x1ea9   : > { %v5402_v44 = vpop.permute.xlu0 %5401 }
0x1eaa   : > { %5511 = vmatmul.mubr.f32.gmra.mrb[40].mxu0 %v5356_v32 }
0x1eab   : > { %9264 = vmatmul.mubr.msk.f32.gmra.mrb[42].mxu1 %vm1319_vm10, %v5358_v37 }
0x1eac   : > { %v5417_v24 = vpop.permute.xlu1 %5416 }
0x1ead   : > { %v5412_v6 = vpop.permute.xlu0 %5411 }
0x1f71   : > { %v8826_v38 = vpop.f32.mrb[34].mxu0 }
0x1f72   : > { %v8827_v55 = vpop.f32.mrb[35].mxu0 }
0x1f73   : > { %v8828_v39 = vadd.f32 %v8827_v55, %v8826_v38 }
0x1f75   : > { %v8829_v41 = vpop.f32.mrb[36].mxu0  ;;  %v5498_v0 = vadd.f32 %v8828_v39, %v5402_v44 }
0x1f76   : > { %v8830_v45 = vpop.f32.mrb[37].mxu0 }
0x1f77   : > { %v8831_v52 = vadd.f32 %v8830_v45, %v8829_v41 }
0x1f79   : > { %v8832_v60 = vpop.f32.mrb[38].mxu0  ;;  %v5503_v61 = vadd.f32 %v8831_v52, %v5407_v4 }
0x1f7a   : > { %v8833_v62 = vpop.f32.mrb[39].mxu0  ;;  %v9262_v63 = vpop.f32.mrb[40].mxu1 }
0x1f7b   : > { %v8834_v1 = vadd.f32 %v8833_v62, %v8832_v60  ;;  %v11361_v2 = vadd.f32 %v9262_v63, %v5503_v61  ;;  %v5582_v5 = vpop.f32.mrb[41].mxu1 }
0x1f7c   : > { %v11363_v7 = vadd.f32 %v5582_v5, %v5498_v0  ;;  %v5879_v0 = vld [vmem:[%s12295_s3 + $0x8] sm:$0xff] }
0x1f7d   : > { %v5623_v8 = vmax.f32 %v11361_v2, 0.0  ;;  %v8835_v10 = vpop.f32.mrb[40].mxu0  ;;  %v5508_v13 = vadd.f32 %v8834_v1, %v5412_v6  ;;  %6026 = vmatprep.mubr.f32.mxu1 %v5879_v0 }
0x1f7e   : > { %v5622_v15 = vmax.f32 %v11363_v7, 0.0  ;;  %v8836_v16 = vpop.f32.mrb[41].mxu0  ;;  %v9265_v17 = vpop.f32.mrb[42].mxu1 }
0x1f7f   : > { %v8837_v18 = vadd.f32 %v8836_v16, %v8835_v10  ;;  %5640 = vrot.lane.b32.xlu1 %v5623_v8, %s12227_s4  ;;  %v5592_v21 = vpop.f32.mrb[43].mxu1  ;;  %v5926_v16 = vld [vmem:[%s12296_s5] sm:$0xff] }
0x1f80   : > { %v11368_v26 = vadd.f32 %v5592_v21, %v5508_v13  ;;  %5638 = vrot.lane.b32.xlu0 %v5622_v15, %s12227_s4  ;;  %v5927_v13 = vld [vmem:[%s12296_s5 + $0x8] sm:$0xff]  ;;  %v5880_v15 = vld [vmem:[%s12295_s3 + $0x10] sm:$0xff] }
0x1f81   : > { %v5513_v33 = vadd.f32 %v8837_v18, %v5417_v24  ;;  %9274 = vmatprep.mubr.msk.f32.mxu0 %vm1319_vm10, %v5880_v15  ;;  %v5928_v18 = vld [vmem:[%s12296_s5 + $0x10] sm:$0xff] }
0x1f82   : > { %v5624_v25 = vmax.f32 %v11368_v26, 0.0 }
0x1f83   : > { %v11372_v36 = vadd.f32 %v9265_v17, %v5513_v33  ;;  %v5929_v17 = vld [vmem:[%s12296_s5 + $0x18] sm:$0xff]  ;;  %s12299_s5 = sld [smem:[#allocation21_spill]] }
0x1f84   : > { %5642 = vrot.lane.b32.xlu0 %v5624_v25, %s12227_s4 }
0x1f85   : > { %v5625_v35 = vmax.f32 %v11372_v36, 0.0 }
0x1f87   : > { %5644 = vrot.lane.b32.xlu1 %v5625_v35, %s12227_s4  ;;  %s12294_s4 = smov 125  }
0x1ff1   : > { %v5641_v42 = vpop.permute.xlu1 %5640 }
0x1ff2   : > { %5651 = vst.msk [vmem:[#allocation2 + $0x18] sm:$0xff] %vm5083_vm14, %v5641_v42  ;;  %v5639_v46 = vpop.permute.xlu0 %5638 }
0x1ff3   : > { %5650 = vst.msk [vmem:[#allocation2] sm:$0xff] %vm5083_vm14, %v5639_v46 }
0x1ff6   : > { %v5643_v30 = vpop.permute.xlu0 %5642 }
0x1ff7   : > { %5652 = vst.msk [vmem:[#allocation2 + $0x30] sm:$0xff] %vm5083_vm14, %v5643_v30 }
0x1ff9   : > { %v11380_v34 = vld [vmem:[#allocation2 + $0x18] sm:$0xff]  ;;  %v5645_v43 = vpop.permute.xlu1 %5644 }
0x1ffa   : > { %v5659_v47 = vmul.f32 %v11187_v50, %v11380_v34  ;;  %v11384_v20 = vld [vmem:[#allocation2] sm:$0xff]  ;;  %5653 = vst.msk [vmem:[#allocation2 + $0x48] sm:$0xff] %vm5083_vm14, %v5645_v43  ;;  %5756 = vrot.lane.b32.xlu1 %v11380_v34, %s12294_s4  ;;  %v5775_v59 = vmul.f32 %v11380_v34, %v11231_v9  ;;  %v5803_v37 = vmul.f32 %v11380_v34, %v11247_v12 }
0x1ffb   : > { %6158 = vst.msk [vmem:[#allocation2 + $0x18] sm:$0xff] %vm5057_vm9, %v9951_v3  ;;  %v5658_v27 = vmul.f32 %v11187_v50, %v11384_v20  ;;  %5754 = vrot.lane.b32.xlu0 %v11384_v20, %s12294_s4  ;;  %6157 = vst.msk [vmem:[#allocation2] sm:$0xff] %vm5057_vm9, %v9951_v3  ;;  %v5774_v32 = vmul.f32 %v11384_v20, %v11231_v9  ;;  %v5802_v38 = vmul.f32 %v11384_v20, %v11247_v12 }
0x1ffc   : > { %6162 = vst.msk [vmem:[#allocation2 + $0x18] sm:$0xff] %vm5062_vm13, %v9951_v3  ;;  %6161 = vst.msk [vmem:[#allocation2] sm:$0xff] %vm5062_vm13, %v9951_v3  ;;  %v5695_v55 = vmul.f32 %v11380_v34, %v11255_v11  ;;  %v5694_v39 = vmul.f32 %v11384_v20, %v11255_v11  ;;  %v5723_v45 = vmul.f32 %v11380_v34, %v11273_v19 }
0x1ffd   : > { %5663 = vst.msk [vmem:[#allocation3 + $0x10] sm:$0xff] %vm4780_vm2, %v5659_v47  ;;  %5662 = vst.msk [vmem:[#allocation3] sm:$0xff] %vm4780_vm2, %v5658_v27  ;;  %v5722_v52 = vmul.f32 %v11384_v20, %v11273_v19  ;;  %v5855_v5 = vmul.f32 %v11380_v34, %v11295_v23  ;;  %v5854_v6 = vmul.f32 %v11384_v20, %v11295_v23 }
0x1ffe   : > { %v5656_v48 = vld [vmem:[#allocation2 + $0x30] sm:$0xff]  ;;  %5676 = vrot.lane.b32.xlu1 %v11380_v34, %s12276_s15 }
0x1fff   : > { %v5660_v28 = vmul.f32 %v11187_v50, %v5656_v48  ;;  %5674 = vrot.lane.b32.xlu0 %v11384_v20, %s12276_s15  ;;  %6159 = vst.msk [vmem:[#allocation2 + $0x30] sm:$0xff] %vm5057_vm9, %v9951_v3  ;;  %v5776_v44 = vmul.f32 %v5656_v48, %v11231_v9  ;;  %v5804_v60 = vmul.f32 %v5656_v48, %v11247_v12 }
0x2000   : > { %6163 = vst.msk [vmem:[#allocation2 + $0x30] sm:$0xff] %vm5062_vm13, %v9951_v3  ;;  %v5696_v62 = vmul.f32 %v5656_v48, %v11255_v11  ;;  %v5724_v1 = vmul.f32 %v5656_v48, %v11273_v19  ;;  %v5856_v10 = vmul.f32 %v5656_v48, %v11295_v23 }
0x2001   : > { %5664 = vst.msk [vmem:[#allocation3 + $0x20] sm:$0xff] %vm4780_vm2, %v5660_v28  ;;  %v5657_v29 = vld [vmem:[#allocation2 + $0x48] sm:$0xff] }
0x2002   : > { %v5661_v31 = vmul.f32 %v11187_v50, %v5657_v29  ;;  %5836 = vrot.lane.b32.xlu1 %v11380_v34, %s12281_s23  ;;  %6160 = vst.msk [vmem:[#allocation2 + $0x48] sm:$0xff] %vm5057_vm9, %v9951_v3  ;;  %v5777_v41 = vmul.f32 %v5657_v29, %v11231_v9  ;;  %v5805_v4 = vmul.f32 %v5657_v29, %v11247_v12  ;;  %vm6679_vm9 = vcmask 490944  }
0x2003   : > { %5834 = vrot.lane.b32.xlu0 %v11384_v20, %s12281_s23  ;;  %6164 = vst.msk [vmem:[#allocation2 + $0x48] sm:$0xff] %vm5062_vm13, %v9951_v3  ;;  %v5697_v61 = vmul.f32 %v5657_v29, %v11255_v11  ;;  %v5725_v63 = vmul.f32 %v5657_v29, %v11273_v19  ;;  %v5857_v8 = vmul.f32 %v5657_v29, %v11295_v23  ;;  %vm7348_vm13 = vcmask 499168  }
0x2004   : > { %5665 = vst.msk [vmem:[#allocation3 + $0x30] sm:$0xff] %vm4780_vm2, %v5661_v31  ;;  %v5890_v46 = vld [vmem:[#allocation3] sm:$0xff]  ;;  %v5891_v30 = vld [vmem:[#allocation3 + $0x10] sm:$0xff] }
0x2005   : > { %v9592_v20 = vpack.c.bf16 %v5891_v30, %v5890_v46 }
0x2006   : > { %5784 = vrot.lane.b32.xlu1 %v5775_v59, %s12283_s6 }
0x2007   : > { %5782 = vrot.lane.b32.xlu0 %v5774_v32, %s12283_s6 }
0x200a   : > { %5812 = vrot.lane.b32.xlu1 %v5803_v37, %s12283_s6 }
0x200b   : > { %5810 = vrot.lane.b32.xlu0 %v5802_v38, %s12283_s6 }
0x200e   : > { %5704 = vrot.lane.b32.xlu1 %v5695_v55, %s12268_s16 }
0x200f   : > { %5702 = vrot.lane.b32.xlu0 %v5694_v39, %s12268_s16 }
0x2012   : > { %5760 = vrot.lane.b32.xlu1 %v5657_v29, %s12294_s4 }
0x2013   : > { %5758 = vrot.lane.b32.xlu0 %v5656_v48, %s12294_s4 }
0x2016   : > { %5680 = vrot.lane.b32.xlu1 %v5657_v29, %s12276_s15 }
0x2017   : > { %5678 = vrot.lane.b32.xlu0 %v5656_v48, %s12276_s15 }
0x201a   : > { %5788 = vrot.lane.b32.xlu1 %v5777_v41, %s12283_s6 }
0x201b   : > { %5786 = vrot.lane.b32.xlu0 %v5776_v44, %s12283_s6  ;;  %v5893_v44 = vld [vmem:[#allocation3 + $0x30] sm:$0xff] }
0x201e   : > { %5732 = vrot.lane.b32.xlu1 %v5723_v45, %s12268_s16 }
0x201f   : > { %5730 = vrot.lane.b32.xlu0 %v5722_v52, %s12268_s16 }
0x2022   : > { %5816 = vrot.lane.b32.xlu1 %v5805_v4, %s12283_s6 }
0x2023   : > { %5814 = vrot.lane.b32.xlu0 %v5804_v60, %s12283_s6 }
0x2026   : > { %5708 = vrot.lane.b32.xlu1 %v5697_v61, %s12268_s16 }
0x2027   : > { %5706 = vrot.lane.b32.xlu0 %v5696_v62, %s12268_s16  ;;  %v5892_v62 = vld [vmem:[#allocation3 + $0x20] sm:$0xff] }
0x202a   : > { %5840 = vrot.lane.b32.xlu1 %v5657_v29, %s12281_s23 }
0x202b   : > { %5838 = vrot.lane.b32.xlu0 %v5656_v48, %s12281_s23 }
0x202e   : > { %5736 = vrot.lane.b32.xlu1 %v5725_v63, %s12268_s16  ;;  %v9596_v63 = vpack.c.bf16 %v5893_v44, %v5892_v62 }
0x202f   : > { %5734 = vrot.lane.b32.xlu0 %v5724_v1, %s12268_s16 }
0x2032   : > { %5864 = vrot.lane.b32.xlu1 %v5855_v5, %s12282_s28 }
0x2033   : > { %5862 = vrot.lane.b32.xlu0 %v5854_v6, %s12282_s28 }
0x2036   : > { %5868 = vrot.lane.b32.xlu1 %v5857_v8, %s12282_s28 }
0x2037   : > { %5866 = vrot.lane.b32.xlu0 %v5856_v10, %s12282_s28 }
0x203a   : > { %5937 = vperm.xlu1 %9906, %v5927_v13  }
0x203b   : > { %5932 = vperm.xlu0 %9880, %v5926_v16  }
0x203e   : > { %5947 = vperm.xlu1 %9906, %v5929_v17  }
0x203f   : > { %5942 = vperm.xlu0 %9880, %v5928_v18  }
0x206c   : > { %v5757_v21 = vpop.permute.xlu1 %5756 }
0x206d   : > { %5767 = vst.msk [vmem:[#allocation3 + $0x110] sm:$0xff] %vm4780_vm2, %v5757_v21  ;;  %v5755_v24 = vpop.permute.xlu0 %5754 }
0x206e   : > { %5766 = vst.msk [vmem:[#allocation3 + $0x100] sm:$0xff] %vm4780_vm2, %v5755_v24 }
0x2070   : > { %v5677_v33 = vpop.permute.xlu1 %5676 }
0x2071   : > { %5687 = vst.msk [vmem:[#allocation3 + $0x50] sm:$0xff] %vm4780_vm2, %v5677_v33  ;;  %v5675_v25 = vpop.permute.xlu0 %5674 }
0x2072   : > { %5686 = vst.msk [vmem:[#allocation3 + $0x40] sm:$0xff] %vm4780_vm2, %v5675_v25 }
0x2074   : > { %v5837_v35 = vpop.permute.xlu1 %5836  ;;  %v5907_v42 = vld [vmem:[#allocation3 + $0x110] sm:$0xff] }
0x2075   : > { %5847 = vst.msk [vmem:[#allocation3 + $0x1d0] sm:$0xff] %vm4780_vm2, %v5837_v35  ;;  %v5835_v34 = vpop.permute.xlu0 %5834  ;;  %v5906_v43 = vld [vmem:[#allocation3 + $0x100] sm:$0xff] }
0x2076   : > { %5846 = vst.msk [vmem:[#allocation3 + $0x1c0] sm:$0xff] %vm4780_vm2, %v5835_v34  ;;  %v9590_v47 = vpack.c.bf16 %v5907_v42, %v5906_v43 }
0x2078   : > { %v5785_v27 = vpop.permute.xlu1 %5784  ;;  %9591 = vmatprep.subr.bf16.mxu1 %v9590_v47  ;;  %v5895_v6 = vld [vmem:[#allocation3 + $0x50] sm:$0xff] }
0x2079   : > { %5795 = vst.msk [vmem:[#allocation3 + $0x150] sm:$0xff] %vm4780_vm2, %v5785_v27  ;;  %9593 = vmatpush3.bf16.msra.mxu1 %v9592_v20  ;;  %v5783_v48 = vpop.permute.xlu0 %5782  ;;  %v5894_v5 = vld [vmem:[#allocation3 + $0x40] sm:$0xff] }
0x207a   : > { %5794 = vst.msk [vmem:[#allocation3 + $0x140] sm:$0xff] %vm4780_vm2, %v5783_v48  ;;  %v9600_v10 = vpack.c.bf16 %v5895_v6, %v5894_v5 }
0x207c   : > { %v5813_v28 = vpop.permute.xlu1 %5812 }
0x207d   : > { %5823 = vst.msk [vmem:[#allocation3 + $0x190] sm:$0xff] %vm4780_vm2, %v5813_v28  ;;  %v5811_v29 = vpop.permute.xlu0 %5810 }
0x207e   : > { %5822 = vst.msk [vmem:[#allocation3 + $0x180] sm:$0xff] %vm4780_vm2, %v5811_v29 }
0x2080   : > { %v5705_v31 = vpop.permute.xlu1 %5704  ;;  %v5911_v60 = vld [vmem:[#allocation3 + $0x150] sm:$0xff] }
0x2081   : > { %5715 = vst.msk [vmem:[#allocation3 + $0x90] sm:$0xff] %vm4780_vm2, %v5705_v31  ;;  %v5703_v59 = vpop.permute.xlu0 %5702  ;;  %v5910_v4 = vld [vmem:[#allocation3 + $0x140] sm:$0xff] }
0x2082   : > { %5714 = vst.msk [vmem:[#allocation3 + $0x80] sm:$0xff] %vm4780_vm2, %v5703_v59  ;;  %v9598_v1 = vpack.c.bf16 %v5911_v60, %v5910_v4 }
0x2084   : > { %v5761_v32 = vpop.permute.xlu1 %5760  ;;  %v5915_v33 = vld [vmem:[#allocation3 + $0x190] sm:$0xff] }
0x2085   : > { %5769 = vst.msk [vmem:[#allocation3 + $0x130] sm:$0xff] %vm4780_vm2, %v5761_v32  ;;  %v5759_v37 = vpop.permute.xlu0 %5758  ;;  %v5914_v24 = vld [vmem:[#allocation3 + $0x180] sm:$0xff] }
0x2086   : > { %5768 = vst.msk [vmem:[#allocation3 + $0x120] sm:$0xff] %vm4780_vm2, %v5759_v37  ;;  %v9606_v46 = vpack.c.bf16 %v5915_v33, %v5914_v24  ;;  %v5918_v32 = vld [vmem:[#allocation3 + $0x1c0] sm:$0xff]  ;;  %v5919_v37 = vld [vmem:[#allocation3 + $0x1d0] sm:$0xff]  ;;  %v5885_v33 = vld [vmem:[%s12295_s3 + $0x38] sm:$0xff] }
0x2088   : > { %v5681_v38 = vpop.permute.xlu1 %5680  ;;  %v5899_v34 = vld [vmem:[#allocation3 + $0x90] sm:$0xff] }
0x2089   : > { %5689 = vst.msk [vmem:[#allocation3 + $0x70] sm:$0xff] %vm4780_vm2, %v5681_v38  ;;  %v5679_v55 = vpop.permute.xlu0 %5678  ;;  %v5898_v30 = vld [vmem:[#allocation3 + $0x80] sm:$0xff] }
0x208a   : > { %5688 = vst.msk [vmem:[#allocation3 + $0x60] sm:$0xff] %vm4780_vm2, %v5679_v55  ;;  %v9608_v47 = vpack.c.bf16 %v5899_v34, %v5898_v30  ;;  %v5886_v30 = vld [vmem:[%s12295_s3 + $0x40] sm:$0xff]  ;;  %v5887_v34 = vld [vmem:[%s12295_s3 + $0x48] sm:$0xff] }
0x208c   : > { %v5789_v39 = vpop.permute.xlu1 %5788  ;;  %v5909_v41 = vld [vmem:[#allocation3 + $0x130] sm:$0xff] }
0x208d   : > { %5797 = vst.msk [vmem:[#allocation3 + $0x170] sm:$0xff] %vm4780_vm2, %v5789_v39  ;;  %v5787_v45 = vpop.permute.xlu0 %5786  ;;  %v5908_v52 = vld [vmem:[#allocation3 + $0x120] sm:$0xff] }
0x208e   : > { %5796 = vst.msk [vmem:[#allocation3 + $0x160] sm:$0xff] %vm4780_vm2, %v5787_v45  ;;  %v9594_v61 = vpack.c.bf16 %v5909_v41, %v5908_v52  ;;  %v9614_v41 = vpack.c.bf16 %v5919_v37, %v5918_v32 }
0x2090   : > { %v5733_v0 = vpop.permute.xlu1 %5732  ;;  %9595 = vmatprep.subr.bf16.mxu1 %v9594_v61  ;;  %v5897_v17 = vld [vmem:[#allocation3 + $0x70] sm:$0xff] }
0x2091   : > { %5743 = vst.msk [vmem:[#allocation3 + $0xd0] sm:$0xff] %vm4780_vm2, %v5733_v0  ;;  %9597 = vmatpush3.bf16.msra.mxu1 %v9596_v63  ;;  %v5731_v8 = vpop.permute.xlu0 %5730  ;;  %v5896_v16 = vld [vmem:[#allocation3 + $0x60] sm:$0xff] }
0x2092   : > { %5742 = vst.msk [vmem:[#allocation3 + $0xc0] sm:$0xff] %vm4780_vm2, %v5731_v8  ;;  %9599 = vmatprep.subr.bf16.mxu1 %v9598_v1  ;;  %v9604_v35 = vpack.c.bf16 %v5897_v17, %v5896_v16  ;;  %v5882_v16 = vld [vmem:[%s12295_s3 + $0x20] sm:$0xff] }
0x2094   : > { %v5817_v13 = vpop.permute.xlu1 %5816  ;;  %v5913_v15 = vld [vmem:[#allocation3 + $0x170] sm:$0xff] }
0x2095   : > { %5825 = vst.msk [vmem:[#allocation3 + $0x1b0] sm:$0xff] %vm4780_vm2, %v5817_v13  ;;  %9601 = vmatpush3.bf16.msra.mxu1 %v9600_v10  ;;  %v5815_v18 = vpop.permute.xlu0 %5814  ;;  %v5912_v21 = vld [vmem:[#allocation3 + $0x160] sm:$0xff] }
0x2096   : > { %5824 = vst.msk [vmem:[#allocation3 + $0x1a0] sm:$0xff] %vm4780_vm2, %v5815_v18  ;;  %v9602_v25 = vpack.c.bf16 %v5913_v15, %v5912_v21  ;;  %v5878_v10 = vld [vmem:[%s12295_s3] sm:$0xff]  ;;  %v5881_v18 = vld [vmem:[%s12295_s3 + $0x18] sm:$0xff] }
0x2098   : > { %v5709_v42 = vpop.permute.xlu1 %5708  ;;  %9603 = vmatprep.subr.bf16.mxu1 %v9602_v25  ;;  %v5903_v45 = vld [vmem:[#allocation3 + $0xd0] sm:$0xff] }
0x2099   : > { %5717 = vst.msk [vmem:[#allocation3 + $0xb0] sm:$0xff] %vm4780_vm2, %v5709_v42  ;;  %9605 = vmatpush3.bf16.msra.mxu1 %v9604_v35  ;;  %v5707_v43 = vpop.permute.xlu0 %5706  ;;  %v5902_v44 = vld [vmem:[#allocation3 + $0xc0] sm:$0xff]  ;;  %v5884_v35 = vld [vmem:[%s12295_s3 + $0x30] sm:$0xff]  ;;  %v5883_v42 = vld [vmem:[%s12295_s3 + $0x28] sm:$0xff] }
0x209a   : > { %5716 = vst.msk [vmem:[#allocation3 + $0xa0] sm:$0xff] %vm4780_vm2, %v5707_v43  ;;  %9607 = vmatprep.subr.bf16.mxu1 %v9606_v46  ;;  %v9616_v62 = vpack.c.bf16 %v5903_v45, %v5902_v44  ;;  %v5888_v46 = vld [vmem:[%s12295_s3 + $0x50] sm:$0xff]  ;;  %v5889_v43 = vld [vmem:[%s12295_s3 + $0x58] sm:$0xff]  ;;  %s12297_s3 = smov 3  }
0x209c   : > { %v5841_v20 = vpop.permute.xlu1 %5840  ;;  %v5917_v27 = vld [vmem:[#allocation3 + $0x1b0] sm:$0xff] }
0x209d   : > { %5849 = vst.msk [vmem:[#allocation3 + $0x1f0] sm:$0xff] %vm4780_vm2, %v5841_v20  ;;  %9609 = vmatpush3.bf16.msra.mxu1 %v9608_v47  ;;  %v5839_v48 = vpop.permute.xlu0 %5838  ;;  %v5916_v28 = vld [vmem:[#allocation3 + $0x1a0] sm:$0xff] }
0x209e   : > { %5848 = vst.msk [vmem:[#allocation3 + $0x1e0] sm:$0xff] %vm4780_vm2, %v5839_v48  ;;  %v9610_v29 = vpack.c.bf16 %v5917_v27, %v5916_v28 }
0x20a0   : > { %v5737_v31 = vpop.permute.xlu1 %5736  ;;  %9611 = vmatprep.subr.bf16.mxu1 %v9610_v29  ;;  %v5901_v59 = vld [vmem:[#allocation3 + $0xb0] sm:$0xff] }
0x20a1   : > { %5745 = vst.msk [vmem:[#allocation3 + $0xf0] sm:$0xff] %vm4780_vm2, %v5737_v31  ;;  %v5735_v38 = vpop.permute.xlu0 %5734  ;;  %v5900_v55 = vld [vmem:[#allocation3 + $0xa0] sm:$0xff] }
0x20a2   : > { %5744 = vst.msk [vmem:[#allocation3 + $0xe0] sm:$0xff] %vm4780_vm2, %v5735_v38  ;;  %v9612_v39 = vpack.c.bf16 %v5901_v59, %v5900_v55 }
0x20a4   : > { %v5865_v52 = vpop.permute.xlu1 %5864  ;;  %9613 = vmatpush3.bf16.msra.mxu1 %v9612_v39  ;;  %v5921_v4 = vld [vmem:[#allocation3 + $0x1f0] sm:$0xff] }
0x20a5   : > { %5875 = vst.msk [vmem:[#allocation3 + $0x210] sm:$0xff] %vm4780_vm2, %v5865_v52  ;;  %9615 = vmatprep.subr.bf16.mxu1 %v9614_v41  ;;  %v5863_v60 = vpop.permute.xlu0 %5862  ;;  %v5920_v61 = vld [vmem:[#allocation3 + $0x1e0] sm:$0xff] }
0x20a6   : > { %5874 = vst.msk [vmem:[#allocation3 + $0x200] sm:$0xff] %vm4780_vm2, %v5863_v60  ;;  %v9618_v63 = vpack.c.bf16 %v5921_v4, %v5920_v61 }
0x20a8   : > { %v5869_v0 = vpop.permute.xlu1 %5868  ;;  %9617 = vmatpush3.bf16.msra.mxu1 %v9616_v62  ;;  %v5905_v1 = vld [vmem:[#allocation3 + $0xf0] sm:$0xff] }
0x20a9   : > { %5877 = vst.msk [vmem:[#allocation3 + $0x230] sm:$0xff] %vm4780_vm2, %v5869_v0  ;;  %9619 = vmatprep.subr.bf16.mxu1 %v9618_v63  ;;  %v5867_v5 = vpop.permute.xlu0 %5866  ;;  %v5904_v6 = vld [vmem:[#allocation3 + $0xe0] sm:$0xff] }
0x20aa   : > { %5876 = vst.msk [vmem:[#allocation3 + $0x220] sm:$0xff] %vm4780_vm2, %v5867_v5  ;;  %v9620_v8 = vpack.c.bf16 %v5905_v1, %v5904_v6 }
0x20ac   : > { %9621 = vmatpush3.bf16.msra.mxu1 %v9620_v8  ;;  %v5923_v13 = vld [vmem:[#allocation3 + $0x210] sm:$0xff] }
0x20ad   : > { %v5922_v15 = vld [vmem:[#allocation3 + $0x200] sm:$0xff] }
0x20ae   : > { %v9622_v17 = vpack.c.bf16 %v5923_v13, %v5922_v15 }
0x20af   : > { %6027 = vmatmul.mubr.f32.vlgmr.msra.gmra.mrb[44].mxu1 %v5878_v10 }
0x20b0   : > { %9623 = vmatprep.subr.bf16.mxu0 %v9622_v17  ;;  %6031 = vmatprep.mubr.f32.mxu1 %v5882_v16  ;;  %v5925_v21 = vld [vmem:[#allocation3 + $0x230] sm:$0xff] }
0x20b1   : > { %9625 = vmatpush3.bf16.msra.mxu0 %v9622_v17  ;;  %v5924_v24 = vld [vmem:[#allocation3 + $0x220] sm:$0xff] }
0x20b2   : > { %v9626_v25 = vpack.c.bf16 %v5925_v21, %v5924_v24 }
0x20b3   : > { %6032 = vmatmul.mubr.f32.gmra.mrb[46].mxu1 %v5881_v18 }
0x20b4   : > { %9627 = vmatprep.subr.bf16.mxu0 %v9626_v25  ;;  %6036 = vmatprep.mubr.f32.mxu1 %v5885_v33 }
0x20b5   : > { %9629 = vmatpush3.bf16.msra.mxu0 %v9626_v25 }
0x20b7   : > { %6037 = vmatmul.mubr.f32.gmra.mrb[48].mxu1 %v5884_v35 }
0x20b8   : > { %9275 = vmatmul.mubr.msk.f32.vlgmr.msra.gmra.mrb[42].mxu0 %vm1319_vm10, %v5883_v42  ;;  %6041 = vmatprep.mubr.f32.mxu1 %v5888_v46 }
0x20b9   : > { %9277 = vmatprep.mubr.msk.f32.mxu0 %vm1319_vm10, %v5886_v30  ;;  %v5938_v59 = vpop.permute.xlu1 %5937 }
0x20ba   : > { %v5933_v28 = vpop.permute.xlu0 %5932 }
0x20bb   : > { %6042 = vmatmul.mubr.f32.gmra.mrb[50].mxu1 %v5887_v34 }
0x20bc   : > { %9278 = vmatmul.mubr.msk.f32.gmra.mrb[44].mxu0 %vm1319_vm10, %v5889_v43 }
0x20bd   : > { %v5948_v8 = vpop.permute.xlu1 %5947 }
0x20be   : > { %v5943_v52 = vpop.permute.xlu0 %5942 }
0x2182   : > { %v8878_v47 = vpop.f32.mrb[44].mxu1 }
0x2183   : > { %v8879_v20 = vpop.f32.mrb[45].mxu1 }
0x2184   : > { %v8880_v27 = vadd.f32 %v8879_v20, %v8878_v47 }
0x2186   : > { %v8881_v48 = vpop.f32.mrb[46].mxu1  ;;  %v6029_v39 = vadd.f32 %v8880_v27, %v5933_v28 }
0x2187   : > { %v8882_v29 = vpop.f32.mrb[47].mxu1 }
0x2188   : > { %v8883_v31 = vadd.f32 %v8882_v29, %v8881_v48 }
0x218a   : > { %v8884_v32 = vpop.f32.mrb[48].mxu1  ;;  %v6034_v37 = vadd.f32 %v8883_v31, %v5938_v59 }
0x218b   : > { %v8885_v38 = vpop.f32.mrb[49].mxu1  ;;  %v9276_v55 = vpop.f32.mrb[42].mxu0 }
0x218c   : > { %v8886_v41 = vadd.f32 %v8885_v38, %v8884_v32  ;;  %v11531_v44 = vadd.f32 %v9276_v55, %v6034_v37  ;;  %v6113_v45 = vpop.f32.mrb[43].mxu0 }
0x218d   : > { %v11533_v4 = vadd.f32 %v6113_v45, %v6029_v39 }
0x218e   : > { %v6154_v60 = vmax.f32 %v11531_v44, 0.0  ;;  %v8887_v61 = vpop.f32.mrb[50].mxu1  ;;  %v6039_v62 = vadd.f32 %v8886_v41, %v5943_v52 }
0x218f   : > { %v6153_v63 = vmax.f32 %v11533_v4, 0.0  ;;  %v8888_v0 = vpop.f32.mrb[51].mxu1  ;;  %v9279_v1 = vpop.f32.mrb[44].mxu0 }
0x2190   : > { %v8889_v5 = vadd.f32 %v8888_v0, %v8887_v61  ;;  %6171 = vrot.lane.b32.xlu1 %v6154_v60, %s12297_s3  ;;  %v6123_v6 = vpop.f32.mrb[45].mxu0  ;;  %v6458_v61 = vld [vmem:[%s12299_s5 + $0x8] sm:$0xff]  ;;  %v6460_v0 = vld [vmem:[%s12299_s5 + $0x18] sm:$0xff] }
0x2191   : > { %v11538_v10 = vadd.f32 %v6123_v6, %v6039_v62  ;;  %6169 = vrot.lane.b32.xlu0 %v6153_v63, %s12297_s3  ;;  %v6457_v63 = vld [vmem:[%s12299_s5] sm:$0xff] }
0x2192   : > { %v6044_v13 = vadd.f32 %v8889_v5, %v5948_v8 }
0x2193   : > { %v6155_v15 = vmax.f32 %v11538_v10, 0.0 }
0x2194   : > { %v11542_v16 = vadd.f32 %v9279_v1, %v6044_v13  ;;  %v6459_v1 = vld [vmem:[%s12299_s5 + $0x10] sm:$0xff] }
0x2195   : > { %6173 = vrot.lane.b32.xlu0 %v6155_v15, %s12297_s3 }
0x2196   : > { %v6156_v17 = vmax.f32 %v11542_v16, 0.0 }
0x2198   : > { %6175 = vrot.lane.b32.xlu1 %v6156_v17, %s12297_s3  ;;  %s12298_s3 = sld [smem:[#allocation11_spill]] }
0x219e   : > { %v6410_v41 = vld [vmem:[%s12298_s3 + $0x8] sm:$0xff]  ;;  %v6411_v62 = vld [vmem:[%s12298_s3 + $0x10] sm:$0xff] }
0x219f   : > { %6557 = vmatprep.mubr.f32.mxu1 %v6410_v41  ;;  %9288 = vmatprep.mubr.msk.f32.mxu0 %vm1319_vm10, %v6411_v62 }
0x2202   : > { %v6172_v18 = vpop.permute.xlu1 %6171 }
0x2203   : > { %6182 = vst.msk [vmem:[#allocation2 + $0x18] sm:$0xff] %vm5083_vm14, %v6172_v18  ;;  %v6170_v21 = vpop.permute.xlu0 %6169 }
0x2204   : > { %6181 = vst.msk [vmem:[#allocation2] sm:$0xff] %vm5083_vm14, %v6170_v21 }
0x2207   : > { %v6174_v24 = vpop.permute.xlu0 %6173 }
0x2208   : > { %6183 = vst.msk [vmem:[#allocation2 + $0x30] sm:$0xff] %vm5083_vm14, %v6174_v24 }
0x220a   : > { %v11550_v33 = vld [vmem:[#allocation2 + $0x18] sm:$0xff]  ;;  %v6176_v25 = vpop.permute.xlu1 %6175 }
0x220b   : > { %v6190_v35 = vmul.f32 %v11187_v50, %v11550_v33  ;;  %v6185_v42 = vld [vmem:[#allocation2] sm:$0xff]  ;;  %6184 = vst.msk [vmem:[#allocation2 + $0x48] sm:$0xff] %vm5083_vm14, %v6176_v25  ;;  %6287 = vrot.lane.b32.xlu1 %v11550_v33, %s12294_s4  ;;  %v6306_v20 = vmul.f32 %v11550_v33, %v11231_v9  ;;  %v6226_v28 = vmul.f32 %v11550_v33, %v11255_v11 }
0x220c   : > { %6844 = vst.msk [vmem:[#allocation2 + $0x18] sm:$0xff] %vm1205_vm7, %v9951_v3  ;;  %v6189_v46 = vmul.f32 %v11187_v50, %v6185_v42  ;;  %6285 = vrot.lane.b32.xlu0 %v6185_v42, %s12294_s4  ;;  %6843 = vst.msk [vmem:[#allocation2] sm:$0xff] %vm1205_vm7, %v9951_v3  ;;  %v6305_v27 = vmul.f32 %v6185_v42, %v11231_v9  ;;  %v6333_v48 = vmul.f32 %v6185_v42, %v11247_v12 }
0x220d   : > { %6194 = vst.msk [vmem:[#allocation3 + $0x10] sm:$0xff] %vm4780_vm2, %v6190_v35  ;;  %v6225_v29 = vmul.f32 %v6185_v42, %v11255_v11  ;;  %v6254_v32 = vmul.f32 %v11550_v33, %v11273_v19  ;;  %v6253_v37 = vmul.f32 %v6185_v42, %v11273_v19  ;;  %v6385_v52 = vmul.f32 %v6185_v42, %v11295_v23 }
0x220e   : > { %6193 = vst.msk [vmem:[#allocation3] sm:$0xff] %vm4780_vm2, %v6189_v46 }
0x220f   : > { %v6187_v30 = vld [vmem:[#allocation2 + $0x30] sm:$0xff]  ;;  %6207 = vrot.lane.b32.xlu1 %v11550_v33, %s12276_s15  ;;  %6849 = vst.msk [vmem:[#allocation2 + $0x18] sm:$0xff] %vm6847_vm6, %v9951_v3  ;;  %6848 = vst.msk [vmem:[#allocation2] sm:$0xff] %vm6847_vm6, %v9951_v3 }
0x2210   : > { %v6191_v34 = vmul.f32 %v11187_v50, %v6187_v30  ;;  %6205 = vrot.lane.b32.xlu0 %v6185_v42, %s12276_s15  ;;  %6845 = vst.msk [vmem:[#allocation2 + $0x30] sm:$0xff] %vm1205_vm7, %v9951_v3  ;;  %v6307_v59 = vmul.f32 %v6187_v30, %v11231_v9  ;;  %v6335_v55 = vmul.f32 %v6187_v30, %v11247_v12 }
0x2211   : > { %v6227_v39 = vmul.f32 %v6187_v30, %v11255_v11  ;;  %v6255_v45 = vmul.f32 %v6187_v30, %v11273_v19  ;;  %6850 = vst.msk [vmem:[#allocation2 + $0x30] sm:$0xff] %vm6847_vm6, %v9951_v3 }
0x2212   : > { %6195 = vst.msk [vmem:[#allocation3 + $0x20] sm:$0xff] %vm4780_vm2, %v6191_v34  ;;  %v6188_v43 = vld [vmem:[#allocation2 + $0x48] sm:$0xff] }
0x2213   : > { %v6192_v47 = vmul.f32 %v11187_v50, %v6188_v43  ;;  %6367 = vrot.lane.b32.xlu1 %v11550_v33, %s12281_s23  ;;  %6846 = vst.msk [vmem:[#allocation2 + $0x48] sm:$0xff] %vm1205_vm7, %v9951_v3  ;;  %v6334_v50 = vmul.f32 %v11550_v33, %v11247_v12  ;;  %v6308_v31 = vmul.f32 %v6188_v43, %v11231_v9 }
0x2214   : > { %6365 = vrot.lane.b32.xlu0 %v6185_v42, %s12281_s23  ;;  %v6336_v38 = vmul.f32 %v6188_v43, %v11247_v12  ;;  %v6228_v9 = vmul.f32 %v6188_v43, %v11255_v11  ;;  %v6256_v12 = vmul.f32 %v6188_v43, %v11273_v19  ;;  %v6386_v11 = vmul.f32 %v11550_v33, %v11295_v23  ;;  %v6422_v18 = vld [vmem:[#allocation3 + $0x10] sm:$0xff] }
0x2215   : > { %6196 = vst.msk [vmem:[#allocation3 + $0x30] sm:$0xff] %vm4780_vm2, %v6192_v47  ;;  %v6388_v60 = vmul.f32 %v6188_v43, %v11295_v23  ;;  %v6387_v19 = vmul.f32 %v6187_v30, %v11295_v23  ;;  %v6421_v17 = vld [vmem:[#allocation3] sm:$0xff] }
0x2216   : > { %v9632_v25 = vpack.c.bf16 %v6422_v18, %v6421_v17  ;;  %6851 = vst.msk [vmem:[#allocation2 + $0x48] sm:$0xff] %vm6847_vm6, %v9951_v3 }
0x2217   : > { %6315 = vrot.lane.b32.xlu1 %v6306_v20, %s12283_s6 }
0x2218   : > { %6313 = vrot.lane.b32.xlu0 %v6305_v27, %s12283_s6 }
0x221b   : > { %6343 = vrot.lane.b32.xlu1 %v6334_v50, %s12283_s6 }
0x221c   : > { %6341 = vrot.lane.b32.xlu0 %v6333_v48, %s12283_s6 }
0x221f   : > { %6235 = vrot.lane.b32.xlu1 %v6226_v28, %s12268_s16 }
0x2220   : > { %6233 = vrot.lane.b32.xlu0 %v6225_v29, %s12268_s16  ;;  %v6424_v29 = vld [vmem:[#allocation3 + $0x30] sm:$0xff] }
0x2223   : > { %6291 = vrot.lane.b32.xlu1 %v6188_v43, %s12294_s4 }
0x2224   : > { %6289 = vrot.lane.b32.xlu0 %v6187_v30, %s12294_s4 }
0x2227   : > { %6211 = vrot.lane.b32.xlu1 %v6188_v43, %s12276_s15 }
0x2228   : > { %6209 = vrot.lane.b32.xlu0 %v6187_v30, %s12276_s15 }
0x222b   : > { %6319 = vrot.lane.b32.xlu1 %v6308_v31, %s12283_s6 }
0x222c   : > { %6317 = vrot.lane.b32.xlu0 %v6307_v59, %s12283_s6 }
0x222f   : > { %6263 = vrot.lane.b32.xlu1 %v6254_v32, %s12268_s16 }
0x2230   : > { %6261 = vrot.lane.b32.xlu0 %v6253_v37, %s12268_s16 }
0x2233   : > { %6347 = vrot.lane.b32.xlu1 %v6336_v38, %s12283_s6 }
0x2234   : > { %6345 = vrot.lane.b32.xlu0 %v6335_v55, %s12283_s6  ;;  %v6423_v55 = vld [vmem:[#allocation3 + $0x20] sm:$0xff] }
0x2237   : > { %6239 = vrot.lane.b32.xlu1 %v6228_v9, %s12268_s16  ;;  %v9636_v9 = vpack.c.bf16 %v6424_v29, %v6423_v55 }
0x2238   : > { %6237 = vrot.lane.b32.xlu0 %v6227_v39, %s12268_s16 }
0x223b   : > { %6371 = vrot.lane.b32.xlu1 %v6188_v43, %s12281_s23 }
0x223c   : > { %6369 = vrot.lane.b32.xlu0 %v6187_v30, %s12281_s23  ;;  %s12300_s23 = sld [smem:[#allocation12_spill]] }
0x223f   : > { %6267 = vrot.lane.b32.xlu1 %v6256_v12, %s12268_s16 }
0x2240   : > { %6265 = vrot.lane.b32.xlu0 %v6255_v45, %s12268_s16 }
0x2243   : > { %6395 = vrot.lane.b32.xlu1 %v6386_v11, %s12282_s28 }
0x2244   : > { %6393 = vrot.lane.b32.xlu0 %v6385_v52, %s12282_s28 }
0x2247   : > { %6399 = vrot.lane.b32.xlu1 %v6388_v60, %s12282_s28 }
0x2248   : > { %6397 = vrot.lane.b32.xlu0 %v6387_v19, %s12282_s28  ;;  %s12301_s28 = sld [smem:[#allocation22_spill]] }
0x224b   : > { %6468 = vperm.xlu1 %9906, %v6458_v61  }
0x224c   : > { %6463 = vperm.xlu0 %9880, %v6457_v63  }
0x224f   : > { %6478 = vperm.xlu1 %9906, %v6460_v0  }
0x2250   : > { %6473 = vperm.xlu0 %9880, %v6459_v1  }
0x227d   : > { %v6288_v5 = vpop.permute.xlu1 %6287 }
0x227e   : > { %6298 = vst.msk [vmem:[#allocation3 + $0x110] sm:$0xff] %vm4780_vm2, %v6288_v5  ;;  %v6286_v6 = vpop.permute.xlu0 %6285 }
0x227f   : > { %6297 = vst.msk [vmem:[#allocation3 + $0x100] sm:$0xff] %vm4780_vm2, %v6286_v6 }
0x2281   : > { %v6208_v23 = vpop.permute.xlu1 %6207 }
0x2282   : > { %6218 = vst.msk [vmem:[#allocation3 + $0x50] sm:$0xff] %vm4780_vm2, %v6208_v23  ;;  %v6206_v8 = vpop.permute.xlu0 %6205 }
0x2283   : > { %6217 = vst.msk [vmem:[#allocation3 + $0x40] sm:$0xff] %vm4780_vm2, %v6206_v8 }
0x2285   : > { %v6368_v13 = vpop.permute.xlu1 %6367  ;;  %v6438_v15 = vld [vmem:[#allocation3 + $0x110] sm:$0xff] }
0x2286   : > { %6378 = vst.msk [vmem:[#allocation3 + $0x1d0] sm:$0xff] %vm4780_vm2, %v6368_v13  ;;  %v6366_v21 = vpop.permute.xlu0 %6365  ;;  %v6437_v24 = vld [vmem:[#allocation3 + $0x100] sm:$0xff] }
0x2287   : > { %6377 = vst.msk [vmem:[#allocation3 + $0x1c0] sm:$0xff] %vm4780_vm2, %v6366_v21  ;;  %v9630_v33 = vpack.c.bf16 %v6438_v15, %v6437_v24 }
0x2289   : > { %v6316_v35 = vpop.permute.xlu1 %6315  ;;  %9631 = vmatprep.subr.bf16.mxu1 %v9630_v33  ;;  %v6426_v45 = vld [vmem:[#allocation3 + $0x50] sm:$0xff] }
0x228a   : > { %6326 = vst.msk [vmem:[#allocation3 + $0x150] sm:$0xff] %vm4780_vm2, %v6316_v35  ;;  %9633 = vmatpush3.bf16.msra.mxu1 %v9632_v25  ;;  %v6314_v42 = vpop.permute.xlu0 %6313  ;;  %v6425_v41 = vld [vmem:[#allocation3 + $0x40] sm:$0xff] }
0x228b   : > { %6325 = vst.msk [vmem:[#allocation3 + $0x140] sm:$0xff] %vm4780_vm2, %v6314_v42  ;;  %v9640_v52 = vpack.c.bf16 %v6426_v45, %v6425_v41  ;;  %v6409_v45 = vld [vmem:[%s12298_s3] sm:$0xff] }
0x228d   : > { %v6344_v46 = vpop.permute.xlu1 %6343 }
0x228e   : > { %6354 = vst.msk [vmem:[#allocation3 + $0x190] sm:$0xff] %vm4780_vm2, %v6344_v46  ;;  %v6342_v30 = vpop.permute.xlu0 %6341 }
0x228f   : > { %6353 = vst.msk [vmem:[#allocation3 + $0x180] sm:$0xff] %vm4780_vm2, %v6342_v30 }
0x2291   : > { %v6236_v34 = vpop.permute.xlu1 %6235  ;;  %v6442_v37 = vld [vmem:[#allocation3 + $0x150] sm:$0xff] }
0x2292   : > { %6246 = vst.msk [vmem:[#allocation3 + $0x90] sm:$0xff] %vm4780_vm2, %v6236_v34  ;;  %v6234_v43 = vpop.permute.xlu0 %6233  ;;  %v6441_v32 = vld [vmem:[#allocation3 + $0x140] sm:$0xff] }
0x2293   : > { %6245 = vst.msk [vmem:[#allocation3 + $0x80] sm:$0xff] %vm4780_vm2, %v6234_v43  ;;  %v9638_v12 = vpack.c.bf16 %v6442_v37, %v6441_v32  ;;  %v6449_v34 = vld [vmem:[#allocation3 + $0x1c0] sm:$0xff]  ;;  %v6450_v43 = vld [vmem:[#allocation3 + $0x1d0] sm:$0xff] }
0x2295   : > { %v6292_v47 = vpop.permute.xlu1 %6291  ;;  %v6446_v5 = vld [vmem:[#allocation3 + $0x190] sm:$0xff] }
0x2296   : > { %6300 = vst.msk [vmem:[#allocation3 + $0x130] sm:$0xff] %vm4780_vm2, %v6292_v47  ;;  %v6290_v20 = vpop.permute.xlu0 %6289  ;;  %v6445_v1 = vld [vmem:[#allocation3 + $0x180] sm:$0xff] }
0x2297   : > { %6299 = vst.msk [vmem:[#allocation3 + $0x120] sm:$0xff] %vm4780_vm2, %v6290_v20  ;;  %v9646_v13 = vpack.c.bf16 %v6446_v5, %v6445_v1  ;;  %v6415_v5 = vld [vmem:[%s12298_s3 + $0x30] sm:$0xff] }
0x2299   : > { %v6212_v27 = vpop.permute.xlu1 %6211  ;;  %v6430_v17 = vld [vmem:[#allocation3 + $0x90] sm:$0xff] }
0x229a   : > { %6220 = vst.msk [vmem:[#allocation3 + $0x70] sm:$0xff] %vm4780_vm2, %v6212_v27  ;;  %v6210_v50 = vpop.permute.xlu0 %6209  ;;  %v6429_v15 = vld [vmem:[#allocation3 + $0x80] sm:$0xff] }
0x229b   : > { %6219 = vst.msk [vmem:[#allocation3 + $0x60] sm:$0xff] %vm4780_vm2, %v6210_v50  ;;  %v9648_v21 = vpack.c.bf16 %v6430_v17, %v6429_v15  ;;  %v9654_v50 = vpack.c.bf16 %v6450_v43, %v6449_v34  ;;  %v6420_v15 = vld [vmem:[%s12298_s3 + $0x58] sm:$0xff] }
0x229d   : > { %v6320_v48 = vpop.permute.xlu1 %6319  ;;  %v6440_v28 = vld [vmem:[#allocation3 + $0x130] sm:$0xff] }
0x229e   : > { %6328 = vst.msk [vmem:[#allocation3 + $0x170] sm:$0xff] %vm4780_vm2, %v6320_v48  ;;  %v6318_v31 = vpop.permute.xlu0 %6317  ;;  %v6439_v59 = vld [vmem:[#allocation3 + $0x120] sm:$0xff] }
0x229f   : > { %6327 = vst.msk [vmem:[#allocation3 + $0x160] sm:$0xff] %vm4780_vm2, %v6318_v31  ;;  %v9634_v38 = vpack.c.bf16 %v6440_v28, %v6439_v59 }
0x22a1   : > { %v6264_v39 = vpop.permute.xlu1 %6263  ;;  %9635 = vmatprep.subr.bf16.mxu1 %v9634_v38  ;;  %v6428_v62 = vld [vmem:[#allocation3 + $0x70] sm:$0xff] }
0x22a2   : > { %6274 = vst.msk [vmem:[#allocation3 + $0xd0] sm:$0xff] %vm4780_vm2, %v6264_v39  ;;  %9637 = vmatpush3.bf16.msra.mxu1 %v9636_v9  ;;  %v6262_v11 = vpop.permute.xlu0 %6261  ;;  %v6427_v61 = vld [vmem:[#allocation3 + $0x60] sm:$0xff] }
0x22a3   : > { %6273 = vst.msk [vmem:[#allocation3 + $0xc0] sm:$0xff] %vm4780_vm2, %v6262_v11  ;;  %9639 = vmatprep.subr.bf16.mxu1 %v9638_v12  ;;  %v9644_v23 = vpack.c.bf16 %v6428_v62, %v6427_v61  ;;  %v6412_v61 = vld [vmem:[%s12298_s3 + $0x18] sm:$0xff] }
0x22a5   : > { %v6348_v60 = vpop.permute.xlu1 %6347  ;;  %v6444_v19 = vld [vmem:[#allocation3 + $0x170] sm:$0xff] }
0x22a6   : > { %6356 = vst.msk [vmem:[#allocation3 + $0x1b0] sm:$0xff] %vm4780_vm2, %v6348_v60  ;;  %9641 = vmatpush3.bf16.msra.mxu1 %v9640_v52  ;;  %v6346_v63 = vpop.permute.xlu0 %6345  ;;  %v6443_v0 = vld [vmem:[#allocation3 + $0x160] sm:$0xff] }
0x22a7   : > { %6355 = vst.msk [vmem:[#allocation3 + $0x1a0] sm:$0xff] %vm4780_vm2, %v6346_v63  ;;  %v9642_v6 = vpack.c.bf16 %v6444_v19, %v6443_v0  ;;  %v6413_v60 = vld [vmem:[%s12298_s3 + $0x20] sm:$0xff]  ;;  %v6416_v0 = vld [vmem:[%s12298_s3 + $0x38] sm:$0xff] }
0x22a9   : > { %v6240_v8 = vpop.permute.xlu1 %6239  ;;  %9643 = vmatprep.subr.bf16.mxu1 %v9642_v6  ;;  %v6434_v28 = vld [vmem:[#allocation3 + $0xd0] sm:$0xff]  ;;  %v6414_v6 = vld [vmem:[%s12298_s3 + $0x28] sm:$0xff] }
0x22aa   : > { %6248 = vst.msk [vmem:[#allocation3 + $0xb0] sm:$0xff] %vm4780_vm2, %v6240_v8  ;;  %9645 = vmatpush3.bf16.msra.mxu1 %v9644_v23  ;;  %v6238_v18 = vpop.permute.xlu0 %6237  ;;  %v6433_v48 = vld [vmem:[#allocation3 + $0xc0] sm:$0xff]  ;;  %v6419_v23 = vld [vmem:[%s12298_s3 + $0x50] sm:$0xff] }
0x22ab   : > { %6247 = vst.msk [vmem:[#allocation3 + $0xa0] sm:$0xff] %vm4780_vm2, %v6238_v18  ;;  %9647 = vmatprep.subr.bf16.mxu1 %v9646_v13  ;;  %v9656_v37 = vpack.c.bf16 %v6434_v28, %v6433_v48  ;;  %v6417_v8 = vld [vmem:[%s12298_s3 + $0x40] sm:$0xff]  ;;  %v6418_v13 = vld [vmem:[%s12298_s3 + $0x48] sm:$0xff]  ;;  %s12303_s3 = sld [smem:[#allocation23_spill]] }
0x22ac   : > { %v6692_v48 = vld [vmem:[%s10165_s14] sm:$0x3] }
0x22ad   : > { %v6372_v24 = vpop.permute.xlu1 %6371  ;;  %v6448_v33 = vld [vmem:[#allocation3 + $0x1b0] sm:$0xff] }
0x22ae   : > { %6380 = vst.msk [vmem:[#allocation3 + $0x1f0] sm:$0xff] %vm4780_vm2, %v6372_v24  ;;  %9649 = vmatpush3.bf16.msra.mxu1 %v9648_v21  ;;  %v6370_v25 = vpop.permute.xlu0 %6369  ;;  %v6447_v35 = vld [vmem:[#allocation3 + $0x1a0] sm:$0xff] }
0x22af   : > { %6379 = vst.msk [vmem:[#allocation3 + $0x1e0] sm:$0xff] %vm4780_vm2, %v6370_v25  ;;  %v9650_v42 = vpack.c.bf16 %v6448_v33, %v6447_v35 }
0x22b1   : > { %v6268_v46 = vpop.permute.xlu1 %6267  ;;  %9651 = vmatprep.subr.bf16.mxu1 %v9650_v42  ;;  %v6432_v30 = vld [vmem:[#allocation3 + $0xb0] sm:$0xff] }
0x22b2   : > { %6276 = vst.msk [vmem:[#allocation3 + $0xf0] sm:$0xff] %vm4780_vm2, %v6268_v46  ;;  %v6266_v47 = vpop.permute.xlu0 %6265  ;;  %v6431_v20 = vld [vmem:[#allocation3 + $0xa0] sm:$0xff] }
0x22b3   : > { %6275 = vst.msk [vmem:[#allocation3 + $0xe0] sm:$0xff] %vm4780_vm2, %v6266_v47  ;;  %v9652_v27 = vpack.c.bf16 %v6432_v30, %v6431_v20 }
0x22b5   : > { %v6396_v29 = vpop.permute.xlu1 %6395  ;;  %9653 = vmatpush3.bf16.msra.mxu1 %v9652_v27  ;;  %v6452_v31 = vld [vmem:[#allocation3 + $0x1f0] sm:$0xff] }
0x22b6   : > { %6406 = vst.msk [vmem:[#allocation3 + $0x210] sm:$0xff] %vm4780_vm2, %v6396_v29  ;;  %9655 = vmatprep.subr.bf16.mxu1 %v9654_v50  ;;  %v6394_v59 = vpop.permute.xlu0 %6393  ;;  %v6451_v32 = vld [vmem:[#allocation3 + $0x1e0] sm:$0xff] }
0x22b7   : > { %6405 = vst.msk [vmem:[#allocation3 + $0x200] sm:$0xff] %vm4780_vm2, %v6394_v59  ;;  %v9658_v38 = vpack.c.bf16 %v6452_v31, %v6451_v32 }
0x22b9   : > { %v6400_v55 = vpop.permute.xlu1 %6399  ;;  %9657 = vmatpush3.bf16.msra.mxu1 %v9656_v37  ;;  %v6436_v9 = vld [vmem:[#allocation3 + $0xf0] sm:$0xff] }
0x22ba   : > { %6408 = vst.msk [vmem:[#allocation3 + $0x230] sm:$0xff] %vm4780_vm2, %v6400_v55  ;;  %9659 = vmatprep.subr.bf16.mxu1 %v9658_v38  ;;  %v6398_v39 = vpop.permute.xlu0 %6397  ;;  %v6435_v12 = vld [vmem:[#allocation3 + $0xe0] sm:$0xff] }
0x22bb   : > { %6407 = vst.msk [vmem:[#allocation3 + $0x220] sm:$0xff] %vm4780_vm2, %v6398_v39  ;;  %v9660_v41 = vpack.c.bf16 %v6436_v9, %v6435_v12 }
0x22bd   : > { %9661 = vmatpush3.bf16.msra.mxu1 %v9660_v41  ;;  %v6454_v11 = vld [vmem:[#allocation3 + $0x210] sm:$0xff] }
0x22be   : > { %v6453_v52 = vld [vmem:[#allocation3 + $0x200] sm:$0xff] }
0x22bf   : > { %v9662_v19 = vpack.c.bf16 %v6454_v11, %v6453_v52 }
0x22c0   : > { %6558 = vmatmul.mubr.f32.vlgmr.msra.gmra.mrb[52].mxu1 %v6409_v45 }
0x22c1   : > { %9663 = vmatprep.subr.bf16.mxu0 %v9662_v19  ;;  %6562 = vmatprep.mubr.f32.mxu1 %v6413_v60  ;;  %v6456_v62 = vld [vmem:[#allocation3 + $0x230] sm:$0xff] }
0x22c2   : > { %9665 = vmatpush3.bf16.msra.mxu0 %v9662_v19  ;;  %v6455_v63 = vld [vmem:[#allocation3 + $0x220] sm:$0xff] }
0x22c3   : > { %v9666_v1 = vpack.c.bf16 %v6456_v62, %v6455_v63 }
0x22c4   : > { %6563 = vmatmul.mubr.f32.gmra.mrb[54].mxu1 %v6412_v61 }
0x22c5   : > { %9667 = vmatprep.subr.bf16.mxu0 %v9666_v1  ;;  %6567 = vmatprep.mubr.f32.mxu1 %v6416_v0 }
0x22c6   : > { %9669 = vmatpush3.bf16.msra.mxu0 %v9666_v1 }
0x22c7   : > { %9294 = vmatprep.subr.msk.mxu0 %vm6729_vm15, %v6692_v48 }
0x22c8   : > { %6568 = vmatmul.mubr.f32.gmra.mrb[56].mxu1 %v6415_v5 }
0x22c9   : > { %9289 = vmatmul.mubr.msk.f32.vlgmr.msra.gmra.mrb[46].mxu0 %vm1319_vm10, %v6414_v6  ;;  %6572 = vmatprep.mubr.f32.mxu1 %v6419_v23 }
0x22ca   : > { %9291 = vmatprep.mubr.msk.f32.mxu0 %vm1319_vm10, %v6417_v8  ;;  %v6469_v42 = vpop.permute.xlu1 %6468  ;;  %9295 = vmatpush3.msk.msra.mxu0 %vm6729_vm15, %v6692_v48 }
0x22cb   : > { %v6464_v33 = vpop.permute.xlu0 %6463 }
0x22cc   : > { %6573 = vmatmul.mubr.f32.gmra.mrb[58].mxu1 %v6418_v13 }
0x22cd   : > { %9292 = vmatmul.mubr.msk.f32.gmra.mrb[48].mxu0 %vm1319_vm10, %v6420_v15 }
0x22ce   : > { %v6479_v12 = vpop.permute.xlu1 %6478 }
0x22cf   : > { %v6474_v28 = vpop.permute.xlu0 %6473 }
0x2393   : > { %v8930_v17 = vpop.f32.mrb[52].mxu1 }
0x2394   : > { %v8931_v18 = vpop.f32.mrb[53].mxu1 }
0x2395   : > { %v8932_v21 = vadd.f32 %v8931_v18, %v8930_v17 }
0x2397   : > { %v8933_v24 = vpop.f32.mrb[54].mxu1  ;;  %v6560_v47 = vadd.f32 %v8932_v21, %v6464_v33 }
0x2398   : > { %v8934_v25 = vpop.f32.mrb[55].mxu1 }
0x2399   : > { %v8935_v35 = vadd.f32 %v8934_v25, %v8933_v24 }
0x239b   : > { %v8936_v46 = vpop.f32.mrb[56].mxu1  ;;  %v6565_v30 = vadd.f32 %v8935_v35, %v6469_v42 }
0x239c   : > { %v8937_v34 = vpop.f32.mrb[57].mxu1  ;;  %v9290_v43 = vpop.f32.mrb[46].mxu0 }
0x239d   : > { %v8938_v20 = vadd.f32 %v8937_v34, %v8936_v46  ;;  %v11682_v27 = vadd.f32 %v9290_v43, %v6565_v30  ;;  %v6644_v50 = vpop.f32.mrb[47].mxu0 }
0x239e   : > { %v11685_v29 = vadd.f32 %v6644_v50, %v6560_v47 }
0x239f   : > { %v6685_v31 = vmax.f32 %v11682_v27, 0.0  ;;  %v8939_v59 = vpop.f32.mrb[58].mxu1  ;;  %v6570_v32 = vadd.f32 %v8938_v20, %v6474_v28 }
0x23a0   : > { %v6684_v37 = vmax.f32 %v11685_v29, 0.0  ;;  %v8940_v38 = vpop.f32.mrb[59].mxu1  ;;  %v9293_v55 = vpop.f32.mrb[48].mxu0 }
0x23a1   : > { %6689 = vst.msk [vmem:[#allocation4 + $0x18] sm:$0xff] %vm4780_vm2, %v6685_v31  ;;  %v8941_v9 = vadd.f32 %v8940_v38, %v8939_v59  ;;  %v6654_v39 = vpop.f32.mrb[49].mxu0 }
0x23a2   : > { %6688 = vst.msk [vmem:[#allocation4] sm:$0xff] %vm4780_vm2, %v6684_v37  ;;  %v11691_v41 = vadd.f32 %v6654_v39, %v6570_v32  ;;  %v7099_v39 = vld [vmem:[%s12300_s23 + $0x8] sm:$0xff] }
0x23a3   : > { %v6575_v45 = vadd.f32 %v8941_v9, %v6479_v12  ;;  %v7100_v12 = vld [vmem:[%s12300_s23 + $0x10] sm:$0xff] }
0x23a4   : > { %v6686_v11 = vmax.f32 %v11691_v41, 0.0  ;;  %9310 = vmatprep.mubr.msk.f32.mxu1 %vm1319_vm10, %v7100_v12 }
0x23a5   : > { %v11694_v52 = vadd.f32 %v9293_v55, %v6575_v45 }
0x23a6   : > { %6690 = vst.msk [vmem:[#allocation4 + $0x30] sm:$0xff] %vm4780_vm2, %v6686_v11 }
0x23a7   : > { %v6687_v60 = vmax.f32 %v11694_v52, 0.0 }
0x23a8   : > { %v6694_v19 = vld [vmem:[#allocation4 + $0x18] sm:$0xff] }
0x23a9   : > { %6691 = vst.msk [vmem:[#allocation4 + $0x48] sm:$0xff] %vm4780_vm2, %v6687_v60  ;;  %6703 = vrot.lane.b32.xlu1 %v6694_v19, %s12268_s16  ;;  %v6693_v61 = vld [vmem:[#allocation4] sm:$0xff]  ;;  %vm4742_vm2 = vcmask 392448  }
0x23aa   : > { %6701 = vrot.lane.b32.xlu0 %v6693_v61, %s12268_s16 }
0x23ad   : > { %v6695_v62 = vld [vmem:[#allocation4 + $0x30] sm:$0xff] }
0x23ae   : > { %6705 = vrot.lane.b32.xlu0 %v6695_v62, %s12268_s16 }
0x23b0   : > { %v6696_v63 = vld [vmem:[#allocation4 + $0x48] sm:$0xff] }
0x23b1   : > { %6707 = vrot.lane.b32.xlu1 %v6696_v63, %s12268_s16 }
0x241b   : > { %v6704_v0 = vpop.permute.xlu1 %6703 }
0x241c   : > { %v6702_v1 = vpop.permute.xlu0 %6701  ;;  %v6714_v6 = vadd.f32 %v6704_v0, %v6694_v19 }
0x241d   : > { %v6713_v5 = vadd.f32 %v6702_v1, %v6693_v61 }
0x241f   : > { %9296 = vmatprep.mubr.msk.f32.mxu0 %vm1205_vm7, %v6713_v5 }
0x2420   : > { %9297 = vmatmul.mubr.msk.f32.vlgmr.msra.gmra.mrb[50].mxu0 %vm1205_vm7, %v6714_v6  ;;  %v6706_v23 = vpop.permute.xlu0 %6705 }
0x2421   : > { %v6715_v8 = vadd.f32 %v6706_v23, %v6695_v62 }
0x2423   : > { %v6708_v13 = vpop.permute.xlu1 %6707  ;;  %9299 = vmatprep.mubr.msk.f32.mxu0 %vm1205_vm7, %v6715_v8 }
0x2424   : > { %v6716_v15 = vadd.f32 %v6708_v13, %v6696_v63 }
0x2426   : > { %9300 = vmatmul.mubr.msk.f32.gmra.mrb[52].mxu0 %vm1205_vm7, %v6716_v15 }
0x2427   : > { %7226 = vmatprep.mubr.f32.mxu0 %v7099_v39 }
0x24f3   : > { %v9298_v17 = vpop.f32.mrb[50].mxu0 }
0x24f4   : > { %6824 = vrot.lane.b32.xlu1 %v9298_v17, %s12290_s0  ;;  %v6799_v18 = vpop.f32.mrb[51].mxu0 }
0x24f5   : > { %6822 = vrot.lane.b32.xlu0 %v6799_v18, %s12290_s0 }
0x24f9   : > { %v9301_v21 = vpop.f32.mrb[52].mxu0 }
0x24fa   : > { %6828 = vrot.lane.b32.xlu1 %v9301_v21, %s12290_s0  ;;  %v6809_v24 = vpop.f32.mrb[53].mxu0 }
0x24fb   : > { %6826 = vrot.lane.b32.xlu0 %v6809_v24, %s12290_s0  ;;  %s12302_s0 = sld [smem:[#allocation13_spill]] }
0x2566   : > { %v6825_v33 = vpop.permute.xlu1 %6824 }
0x2567   : > { %6836 = vst.msk [vmem:[#allocation4 + $0x18] sm:$0xff] %vm6834_vm0, %v6825_v33  ;;  %v6823_v25 = vpop.permute.xlu0 %6822 }
0x2568   : > { %6835 = vst.msk [vmem:[#allocation4] sm:$0xff] %vm6834_vm0, %v6823_v25 }
0x256c   : > { %v6829_v35 = vpop.permute.xlu1 %6828 }
0x256d   : > { %6838 = vst.msk [vmem:[#allocation4 + $0x48] sm:$0xff] %vm6834_vm0, %v6829_v35  ;;  %v6827_v42 = vpop.permute.xlu0 %6826 }
0x256e   : > { %6837 = vst.msk [vmem:[#allocation4 + $0x30] sm:$0xff] %vm6834_vm0, %v6827_v42  ;;  %v6840_v46 = vld [vmem:[#allocation4 + $0x18] sm:$0xff] }
0x256f   : > { %6858 = vrot.lane.b32.xlu1 %v6840_v46, %s12268_s16  ;;  %v6839_v30 = vld [vmem:[#allocation4] sm:$0xff] }
0x2570   : > { %6856 = vrot.lane.b32.xlu0 %v6839_v30, %s12268_s16 }
0x2574   : > { %v6842_v34 = vld [vmem:[#allocation4 + $0x48] sm:$0xff] }
0x2575   : > { %6862 = vrot.lane.b32.xlu1 %v6842_v34, %s12268_s16  ;;  %v6841_v43 = vld [vmem:[#allocation4 + $0x30] sm:$0xff] }
0x2576   : > { %6860 = vrot.lane.b32.xlu0 %v6841_v43, %s12268_s16 }
0x25e1   : > { %v6859_v47 = vpop.permute.xlu1 %6858 }
0x25e2   : > { %6870 = vst.msk [vmem:[#allocation2 + $0x18] sm:$0xff] %vm6868_vm1, %v6859_v47  ;;  %v6857_v20 = vpop.permute.xlu0 %6856 }
0x25e3   : > { %6869 = vst.msk [vmem:[#allocation2] sm:$0xff] %vm6868_vm1, %v6857_v20 }
0x25e7   : > { %v6863_v50 = vpop.permute.xlu1 %6862 }
0x25e8   : > { %6872 = vst.msk [vmem:[#allocation2 + $0x48] sm:$0xff] %vm6868_vm1, %v6863_v50  ;;  %v6861_v48 = vpop.permute.xlu0 %6860 }
0x25e9   : > { %v6874_v28 = vld [vmem:[#allocation2 + $0x18] sm:$0xff]  ;;  %6871 = vst.msk [vmem:[#allocation2 + $0x30] sm:$0xff] %vm6868_vm1, %v6861_v48 }
0x25ea   : > { %v6878_v31 = vmul.f32 0.0, %v6874_v28  ;;  %v6873_v59 = vld [vmem:[#allocation2] sm:$0xff]  ;;  %6976 = vrot.lane.b32.xlu1 %v6874_v28, %s12268_s16  ;;  %7358 = vst.msk [vmem:[#allocation2 + $0x18] sm:$0xff] %vm1205_vm7, %v9951_v3 }
0x25eb   : > { %v6877_v32 = vmul.f32 0.0, %v6873_v59  ;;  %6974 = vrot.lane.b32.xlu0 %v6873_v59, %s12268_s16  ;;  %7357 = vst.msk [vmem:[#allocation2] sm:$0xff] %vm1205_vm7, %v9951_v3 }
0x25ec   : > { %7362 = vst.msk [vmem:[#allocation2 + $0x18] sm:$0xff] %vm6847_vm6, %v9951_v3  ;;  %7361 = vst.msk [vmem:[#allocation2] sm:$0xff] %vm6847_vm6, %v9951_v3 }
0x25ed   : > { %6883 = vst.msk [vmem:[#allocation3 + $0x10] sm:$0xff] %vm6881_vm3, %v6878_v31  ;;  %6882 = vst.msk [vmem:[#allocation3] sm:$0xff] %vm6881_vm3, %v6877_v32 }
0x25ee   : > { %6896 = vrot.lane.b32.xlu1 %v6874_v28, %s12276_s15 }
0x25ef   : > { %v6876_v37 = vld [vmem:[#allocation2 + $0x48] sm:$0xff]  ;;  %6894 = vrot.lane.b32.xlu0 %v6873_v59, %s12276_s15 }
0x25f0   : > { %v6880_v38 = vmul.f32 0.0, %v6876_v37  ;;  %v6875_v55 = vld [vmem:[#allocation2 + $0x30] sm:$0xff]  ;;  %7360 = vst.msk [vmem:[#allocation2 + $0x48] sm:$0xff] %vm1205_vm7, %v9951_v3 }
0x25f1   : > { %v6879_v9 = vmul.f32 0.0, %v6875_v55  ;;  %7359 = vst.msk [vmem:[#allocation2 + $0x30] sm:$0xff] %vm1205_vm7, %v9951_v3 }
0x25f2   : > { %7364 = vst.msk [vmem:[#allocation2 + $0x48] sm:$0xff] %vm6847_vm6, %v9951_v3  ;;  %7056 = vrot.lane.b32.xlu1 %v6874_v28, %s12294_s4  ;;  %7363 = vst.msk [vmem:[#allocation2 + $0x30] sm:$0xff] %vm6847_vm6, %v9951_v3 }
0x25f3   : > { %6885 = vst.msk [vmem:[#allocation3 + $0x30] sm:$0xff] %vm6881_vm3, %v6880_v38  ;;  %7054 = vrot.lane.b32.xlu0 %v6873_v59, %s12294_s4  ;;  %6884 = vst.msk [vmem:[#allocation3 + $0x20] sm:$0xff] %vm6881_vm3, %v6879_v9 }
0x25f4   : > { %v7110_v63 = vld [vmem:[#allocation3] sm:$0xff]  ;;  %v7111_v0 = vld [vmem:[#allocation3 + $0x10] sm:$0xff] }
0x25f5   : > { %v9672_v23 = vpack.c.bf16 %v7111_v0, %v7110_v63 }
0x25f6   : > { %7004 = vrot.lane.b32.xlu1 %v6878_v31, %s12294_s4 }
0x25f7   : > { %7002 = vrot.lane.b32.xlu0 %v6877_v32, %s12294_s4 }
0x25fa   : > { %7032 = vrot.lane.b32.xlu1 %v6878_v31, %s12268_s16  ;;  %v7112_v30 = vld [vmem:[#allocation3 + $0x20] sm:$0xff]  ;;  %v7113_v34 = vld [vmem:[#allocation3 + $0x30] sm:$0xff] }
0x25fb   : > { %7030 = vrot.lane.b32.xlu0 %v6877_v32, %s12268_s16  ;;  %v9676_v28 = vpack.c.bf16 %v7113_v34, %v7112_v30 }
0x25fe   : > { %6924 = vrot.lane.b32.xlu1 %v6878_v31, %s12268_s16 }
0x25ff   : > { %6922 = vrot.lane.b32.xlu0 %v6877_v32, %s12268_s16 }
0x2602   : > { %6980 = vrot.lane.b32.xlu1 %v6876_v37, %s12268_s16 }
0x2603   : > { %6978 = vrot.lane.b32.xlu0 %v6875_v55, %s12268_s16 }
0x2606   : > { %6900 = vrot.lane.b32.xlu1 %v6876_v37, %s12276_s15 }
0x2607   : > { %6898 = vrot.lane.b32.xlu0 %v6875_v55, %s12276_s15 }
0x260a   : > { %7008 = vrot.lane.b32.xlu1 %v6880_v38, %s12294_s4 }
0x260b   : > { %7006 = vrot.lane.b32.xlu0 %v6879_v9, %s12294_s4 }
0x260e   : > { %7036 = vrot.lane.b32.xlu1 %v6880_v38, %s12268_s16 }
0x260f   : > { %6950 = vrot.lane.b32.xlu0 %v6877_v32, %s12276_s15 }
0x2612   : > { %6928 = vrot.lane.b32.xlu1 %v6880_v38, %s12268_s16 }
0x2613   : > { %7034 = vrot.lane.b32.xlu0 %v6879_v9, %s12268_s16 }
0x2616   : > { %6952 = vrot.lane.b32.xlu1 %v6878_v31, %s12276_s15 }
0x2617   : > { %6926 = vrot.lane.b32.xlu0 %v6879_v9, %s12268_s16 }
0x261a   : > { %7060 = vrot.lane.b32.xlu1 %v6876_v37, %s12294_s4 }
0x261b   : > { %7058 = vrot.lane.b32.xlu0 %v6875_v55, %s12294_s4 }
0x261e   : > { %6956 = vrot.lane.b32.xlu1 %v6880_v38, %s12276_s15 }
0x261f   : > { %6954 = vrot.lane.b32.xlu0 %v6879_v9, %s12276_s15 }
0x2622   : > { %7084 = vrot.lane.b32.xlu1 %v6878_v31, %s12283_s6 }
0x2623   : > { %7082 = vrot.lane.b32.xlu0 %v6877_v32, %s12283_s6 }
0x2626   : > { %7088 = vrot.lane.b32.xlu1 %v6880_v38, %s12283_s6 }
0x2627   : > { %7086 = vrot.lane.b32.xlu0 %v6879_v9, %s12283_s6 }
0x265c   : > { %v6977_v45 = vpop.permute.xlu1 %6976 }
0x265d   : > { %6987 = vst.msk [vmem:[#allocation3 + $0x110] sm:$0xff] %vm6881_vm3, %v6977_v45  ;;  %v6975_v11 = vpop.permute.xlu0 %6974 }
0x265e   : > { %6986 = vst.msk [vmem:[#allocation3 + $0x100] sm:$0xff] %vm6881_vm3, %v6975_v11 }
0x2660   : > { %v6897_v60 = vpop.permute.xlu1 %6896 }
0x2661   : > { %6907 = vst.msk [vmem:[#allocation3 + $0x50] sm:$0xff] %vm6881_vm3, %v6897_v60  ;;  %v6895_v19 = vpop.permute.xlu0 %6894 }
0x2662   : > { %6906 = vst.msk [vmem:[#allocation3 + $0x40] sm:$0xff] %vm6881_vm3, %v6895_v19 }
0x2664   : > { %v7057_v61 = vpop.permute.xlu1 %7056  ;;  %v7127_v62 = vld [vmem:[#allocation3 + $0x110] sm:$0xff] }
0x2665   : > { %7067 = vst.msk [vmem:[#allocation3 + $0x1d0] sm:$0xff] %vm6881_vm3, %v7057_v61  ;;  %v7055_v1 = vpop.permute.xlu0 %7054  ;;  %v7126_v5 = vld [vmem:[#allocation3 + $0x100] sm:$0xff] }
0x2666   : > { %7066 = vst.msk [vmem:[#allocation3 + $0x1c0] sm:$0xff] %vm6881_vm3, %v7055_v1  ;;  %v9670_v6 = vpack.c.bf16 %v7127_v62, %v7126_v5 }
0x2668   : > { %v7005_v8 = vpop.permute.xlu1 %7004  ;;  %9671 = vmatprep.subr.bf16.mxu0 %v9670_v6  ;;  %v7115_v37 = vld [vmem:[#allocation3 + $0x50] sm:$0xff] }
0x2669   : > { %7015 = vst.msk [vmem:[#allocation3 + $0x150] sm:$0xff] %vm6881_vm3, %v7005_v8  ;;  %9673 = vmatpush3.bf16.msra.mxu0 %v9672_v23  ;;  %v7003_v13 = vpop.permute.xlu0 %7002  ;;  %v7114_v32 = vld [vmem:[#allocation3 + $0x40] sm:$0xff] }
0x266a   : > { %7014 = vst.msk [vmem:[#allocation3 + $0x140] sm:$0xff] %vm6881_vm3, %v7003_v13  ;;  %v9680_v55 = vpack.c.bf16 %v7115_v37, %v7114_v32 }
0x266c   : > { %v7033_v15 = vpop.permute.xlu1 %7032 }
0x266d   : > { %7043 = vst.msk [vmem:[#allocation3 + $0x190] sm:$0xff] %vm6881_vm3, %v7033_v15  ;;  %v7031_v17 = vpop.permute.xlu0 %7030 }
0x266e   : > { %7042 = vst.msk [vmem:[#allocation3 + $0x180] sm:$0xff] %vm6881_vm3, %v7031_v17 }
0x2670   : > { %v6925_v18 = vpop.permute.xlu1 %6924  ;;  %v7131_v50 = vld [vmem:[#allocation3 + $0x150] sm:$0xff] }
0x2671   : > { %6935 = vst.msk [vmem:[#allocation3 + $0x90] sm:$0xff] %vm6881_vm3, %v6925_v18  ;;  %v6923_v21 = vpop.permute.xlu0 %6922  ;;  %v7130_v20 = vld [vmem:[#allocation3 + $0x140] sm:$0xff] }
0x2672   : > { %6934 = vst.msk [vmem:[#allocation3 + $0x80] sm:$0xff] %vm6881_vm3, %v6923_v21  ;;  %v9678_v59 = vpack.c.bf16 %v7131_v50, %v7130_v20 }
0x2674   : > { %v6981_v24 = vpop.permute.xlu1 %6980  ;;  %v7135_v61 = vld [vmem:[#allocation3 + $0x190] sm:$0xff] }
0x2675   : > { %6989 = vst.msk [vmem:[#allocation3 + $0x130] sm:$0xff] %vm6881_vm3, %v6981_v24  ;;  %v6979_v33 = vpop.permute.xlu0 %6978  ;;  %v7134_v19 = vld [vmem:[#allocation3 + $0x180] sm:$0xff] }
0x2676   : > { %6988 = vst.msk [vmem:[#allocation3 + $0x120] sm:$0xff] %vm6881_vm3, %v6979_v33  ;;  %v9686_v1 = vpack.c.bf16 %v7135_v61, %v7134_v19  ;;  %v7138_v33 = vld [vmem:[#allocation3 + $0x1c0] sm:$0xff]  ;;  %v7101_v19 = vld [vmem:[%s12300_s23 + $0x18] sm:$0xff] }
0x2678   : > { %v6901_v25 = vpop.permute.xlu1 %6900  ;;  %v7119_v6 = vld [vmem:[#allocation3 + $0x90] sm:$0xff] }
0x2679   : > { %6909 = vst.msk [vmem:[#allocation3 + $0x70] sm:$0xff] %vm6881_vm3, %v6901_v25  ;;  %v6899_v35 = vpop.permute.xlu0 %6898  ;;  %v7118_v5 = vld [vmem:[#allocation3 + $0x80] sm:$0xff]  ;;  %v7139_v25 = vld [vmem:[#allocation3 + $0x1d0] sm:$0xff] }
0x267a   : > { %6908 = vst.msk [vmem:[#allocation3 + $0x60] sm:$0xff] %vm6881_vm3, %v6899_v35  ;;  %v9688_v8 = vpack.c.bf16 %v7119_v6, %v7118_v5  ;;  %v9694_v34 = vpack.c.bf16 %v7139_v25, %v7138_v33  ;;  %v7103_v5 = vld [vmem:[%s12300_s23 + $0x28] sm:$0xff]  ;;  %v7108_v6 = vld [vmem:[%s12300_s23 + $0x50] sm:$0xff] }
0x267b   : > { %v7147_v33 = vld [vmem:[%s12301_s28 + $0x8] sm:$0xff] }
0x267c   : > { %v7009_v42 = vpop.permute.xlu1 %7008  ;;  %v7129_v46 = vld [vmem:[#allocation3 + $0x130] sm:$0xff] }
0x267d   : > { %7017 = vst.msk [vmem:[#allocation3 + $0x170] sm:$0xff] %vm6881_vm3, %v7009_v42  ;;  %v7007_v43 = vpop.permute.xlu0 %7006  ;;  %v7128_v47 = vld [vmem:[#allocation3 + $0x120] sm:$0xff] }
0x267e   : > { %7016 = vst.msk [vmem:[#allocation3 + $0x160] sm:$0xff] %vm6881_vm3, %v7007_v43  ;;  %v9674_v48 = vpack.c.bf16 %v7129_v46, %v7128_v47 }
0x2680   : > { %v7037_v31 = vpop.permute.xlu1 %7036  ;;  %9675 = vmatprep.subr.bf16.mxu0 %v9674_v48  ;;  %v7117_v45 = vld [vmem:[#allocation3 + $0x70] sm:$0xff] }
0x2681   : > { %7045 = vst.msk [vmem:[#allocation3 + $0x1b0] sm:$0xff] %vm6881_vm3, %v7037_v31  ;;  %9677 = vmatpush3.bf16.msra.mxu0 %v9676_v28  ;;  %v6951_v38 = vpop.permute.xlu0 %6950  ;;  %v7116_v12 = vld [vmem:[#allocation3 + $0x60] sm:$0xff] }
0x2682   : > { %6962 = vst.msk [vmem:[#allocation3 + $0xc0] sm:$0xff] %vm6881_vm3, %v6951_v38  ;;  %9679 = vmatprep.subr.bf16.mxu0 %v9678_v59  ;;  %v9684_v63 = vpack.c.bf16 %v7117_v45, %v7116_v12 }
0x2684   : > { %v6929_v9 = vpop.permute.xlu1 %6928  ;;  %v7133_v39 = vld [vmem:[#allocation3 + $0x170] sm:$0xff] }
0x2685   : > { %6937 = vst.msk [vmem:[#allocation3 + $0xb0] sm:$0xff] %vm6881_vm3, %v6929_v9  ;;  %9681 = vmatpush3.bf16.msra.mxu0 %v9680_v55  ;;  %v7035_v11 = vpop.permute.xlu0 %7034  ;;  %v7132_v60 = vld [vmem:[#allocation3 + $0x160] sm:$0xff] }
0x2686   : > { %7044 = vst.msk [vmem:[#allocation3 + $0x1a0] sm:$0xff] %vm6881_vm3, %v7035_v11  ;;  %v9682_v62 = vpack.c.bf16 %v7133_v39, %v7132_v60  ;;  %v7098_v39 = vld [vmem:[%s12300_s23] sm:$0xff] }
0x2687   : > { %v7102_v11 = vld [vmem:[%s12300_s23 + $0x20] sm:$0xff] }
0x2688   : > { %v6953_v0 = vpop.permute.xlu1 %6952  ;;  %9683 = vmatprep.subr.bf16.mxu0 %v9682_v62  ;;  %v7137_v18 = vld [vmem:[#allocation3 + $0x1b0] sm:$0xff] }
0x2689   : > { %6963 = vst.msk [vmem:[#allocation3 + $0xd0] sm:$0xff] %vm6881_vm3, %v6953_v0  ;;  %9685 = vmatpush3.bf16.msra.mxu0 %v9684_v63  ;;  %v6927_v23 = vpop.permute.xlu0 %6926  ;;  %v7122_v48 = vld [vmem:[#allocation3 + $0xc0] sm:$0xff]  ;;  %v7105_v63 = vld [vmem:[%s12300_s23 + $0x38] sm:$0xff] }
0x268a   : > { %6936 = vst.msk [vmem:[#allocation3 + $0xa0] sm:$0xff] %vm6881_vm3, %v6927_v23  ;;  %9687 = vmatprep.subr.bf16.mxu0 %v9686_v1  ;;  %v7104_v1 = vld [vmem:[%s12300_s23 + $0x30] sm:$0xff]  ;;  %v7106_v23 = vld [vmem:[%s12300_s23 + $0x40] sm:$0xff] }
0x268c   : > { %v7061_v13 = vpop.permute.xlu1 %7060  ;;  %v7121_v46 = vld [vmem:[#allocation3 + $0xb0] sm:$0xff] }
0x268d   : > { %7069 = vst.msk [vmem:[#allocation3 + $0x1f0] sm:$0xff] %vm6881_vm3, %v7061_v13  ;;  %9689 = vmatpush3.bf16.msra.mxu0 %v9688_v8  ;;  %v7059_v15 = vpop.permute.xlu0 %7058  ;;  %v7136_v17 = vld [vmem:[#allocation3 + $0x1a0] sm:$0xff]  ;;  %v7107_v8 = vld [vmem:[%s12300_s23 + $0x48] sm:$0xff]  ;;  %v7109_v13 = vld [vmem:[%s12300_s23 + $0x58] sm:$0xff] }
0x268e   : > { %7068 = vst.msk [vmem:[#allocation3 + $0x1e0] sm:$0xff] %vm6881_vm3, %v7059_v15  ;;  %v9690_v21 = vpack.c.bf16 %v7137_v18, %v7136_v17 }
0x2690   : > { %v6957_v24 = vpop.permute.xlu1 %6956  ;;  %9691 = vmatprep.subr.bf16.mxu0 %v9690_v21  ;;  %v7123_v43 = vld [vmem:[#allocation3 + $0xd0] sm:$0xff] }
0x2691   : > { %6965 = vst.msk [vmem:[#allocation3 + $0xf0] sm:$0xff] %vm6881_vm3, %v6957_v24  ;;  %v6955_v35 = vpop.permute.xlu0 %6954  ;;  %v7120_v42 = vld [vmem:[#allocation3 + $0xa0] sm:$0xff]  ;;  %v9696_v31 = vpack.c.bf16 %v7123_v43, %v7122_v48 }
0x2692   : > { %6964 = vst.msk [vmem:[#allocation3 + $0xe0] sm:$0xff] %vm6881_vm3, %v6955_v35  ;;  %v9692_v30 = vpack.c.bf16 %v7121_v46, %v7120_v42  ;;  %v7146_v35 = vld [vmem:[%s12301_s28] sm:$0xff] }
0x2694   : > { %v7085_v47 = vpop.permute.xlu1 %7084  ;;  %9693 = vmatpush3.bf16.msra.mxu0 %v9692_v30  ;;  %v7141_v20 = vld [vmem:[#allocation3 + $0x1f0] sm:$0xff] }
0x2695   : > { %7095 = vst.msk [vmem:[#allocation3 + $0x210] sm:$0xff] %vm6881_vm3, %v7085_v47  ;;  %9695 = vmatprep.subr.bf16.mxu0 %v9694_v34  ;;  %v7083_v50 = vpop.permute.xlu0 %7082  ;;  %v7140_v28 = vld [vmem:[#allocation3 + $0x1e0] sm:$0xff]  ;;  %v7148_v47 = vld [vmem:[%s12301_s28 + $0x10] sm:$0xff] }
0x2696   : > { %7094 = vst.msk [vmem:[#allocation3 + $0x200] sm:$0xff] %vm6881_vm3, %v7083_v50  ;;  %v9698_v59 = vpack.c.bf16 %v7141_v20, %v7140_v28 }
0x2698   : > { %v7089_v32 = vpop.permute.xlu1 %7088  ;;  %9697 = vmatpush3.bf16.msra.mxu0 %v9696_v31  ;;  %v7125_v37 = vld [vmem:[#allocation3 + $0xf0] sm:$0xff] }
0x2699   : > { %7097 = vst.msk [vmem:[#allocation3 + $0x230] sm:$0xff] %vm6881_vm3, %v7089_v32  ;;  %9699 = vmatprep.subr.bf16.mxu0 %v9698_v59  ;;  %v7087_v38 = vpop.permute.xlu0 %7086  ;;  %v7124_v55 = vld [vmem:[#allocation3 + $0xe0] sm:$0xff] }
0x269a   : > { %7096 = vst.msk [vmem:[#allocation3 + $0x220] sm:$0xff] %vm6881_vm3, %v7087_v38  ;;  %v9700_v9 = vpack.c.bf16 %v7125_v37, %v7124_v55  ;;  %v7149_v55 = vld [vmem:[%s12301_s28 + $0x18] sm:$0xff] }
0x269c   : > { %9701 = vmatpush3.bf16.msra.mxu0 %v9700_v9  ;;  %v7143_v12 = vld [vmem:[#allocation3 + $0x210] sm:$0xff] }
0x269d   : > { %v7142_v45 = vld [vmem:[#allocation3 + $0x200] sm:$0xff] }
0x269e   : > { %v9702_v60 = vpack.c.bf16 %v7143_v12, %v7142_v45 }
0x269f   : > { %7227 = vmatmul.mubr.f32.vlgmr.msra.gmra.mrb[54].mxu0 %v7098_v39 }
0x26a0   : > { %9703 = vmatprep.subr.bf16.mxu1 %v9702_v60  ;;  %7231 = vmatprep.mubr.f32.mxu0 %v7102_v11  ;;  %v7145_v61 = vld [vmem:[#allocation3 + $0x230] sm:$0xff] }
0x26a1   : > { %9705 = vmatpush3.bf16.msra.mxu1 %v9702_v60  ;;  %v7144_v62 = vld [vmem:[#allocation3 + $0x220] sm:$0xff] }
0x26a2   : > { %v9706_v0 = vpack.c.bf16 %v7145_v61, %v7144_v62 }
0x26a3   : > { %7232 = vmatmul.mubr.f32.gmra.mrb[56].mxu0 %v7101_v19 }
0x26a4   : > { %9707 = vmatprep.subr.bf16.mxu1 %v9706_v0  ;;  %7236 = vmatprep.mubr.f32.mxu0 %v7105_v63 }
0x26a5   : > { %9709 = vmatpush3.bf16.msra.mxu1 %v9706_v0 }
0x26a7   : > { %7237 = vmatmul.mubr.f32.gmra.mrb[58].mxu0 %v7104_v1 }
0x26a8   : > { %9311 = vmatmul.mubr.msk.f32.vlgmr.msra.gmra.mrb[60].mxu1 %vm1319_vm10, %v7103_v5  ;;  %7241 = vmatprep.mubr.f32.mxu0 %v7108_v6 }
0x26a9   : > { %9313 = vmatprep.mubr.msk.f32.mxu1 %vm1319_vm10, %v7106_v23 }
0x26ab   : > { %7242 = vmatmul.mubr.f32.gmra.mrb[60].mxu0 %v7107_v8 }
0x26ac   : > { %9314 = vmatmul.mubr.msk.f32.gmra.mrb[62].mxu1 %vm1319_vm10, %v7109_v13 }
0x2772   : > { %v8987_v15 = vpop.f32.mrb[54].mxu0 }
0x2773   : > { %v8988_v17 = vpop.f32.mrb[55].mxu0 }
0x2774   : > { %v8989_v18 = vadd.f32 %v8988_v17, %v8987_v15 }
0x2776   : > { %v8990_v21 = vpop.f32.mrb[56].mxu0  ;;  %v7229_v34 = vadd.f32 %v8989_v18, %v7146_v35 }
0x2777   : > { %v8991_v24 = vpop.f32.mrb[57].mxu0 }
0x2778   : > { %v8992_v25 = vadd.f32 %v8991_v24, %v8990_v21  ;;  %v7611_v21 = vld [vmem:[%s12302_s0 + $0x10] sm:$0xff] }
0x2779   : > { %9324 = vmatprep.mubr.msk.f32.mxu0 %vm1319_vm10, %v7611_v21 }
0x277a   : > { %v7234_v42 = vadd.f32 %v8992_v25, %v7147_v33  ;;  %v8993_v46 = vpop.f32.mrb[58].mxu0 }
0x277b   : > { %v9312_v30 = vpop.f32.mrb[60].mxu1  ;;  %v8994_v43 = vpop.f32.mrb[59].mxu0 }
0x277c   : > { %v11830_v20 = vadd.f32 %v9312_v30, %v7234_v42  ;;  %v7313_v50 = vpop.f32.mrb[61].mxu1  ;;  %v8995_v48 = vadd.f32 %v8994_v43, %v8993_v46 }
0x277d   : > { %v11832_v28 = vadd.f32 %v7313_v50, %v7229_v34 }
0x277e   : > { %v7354_v31 = vmax.f32 %v11830_v20, 0.0  ;;  %v8996_v59 = vpop.f32.mrb[60].mxu0  ;;  %v7239_v32 = vadd.f32 %v8995_v48, %v7148_v47 }
0x277f   : > { %v7353_v37 = vmax.f32 %v11832_v28, 0.0  ;;  %v8997_v38 = vpop.f32.mrb[61].mxu0  ;;  %v9315_v9 = vpop.f32.mrb[62].mxu1 }
0x2780   : > { %7371 = vrot.lane.b32.xlu1 %v7354_v31, %s12263_s10  ;;  %v8998_v39 = vadd.f32 %v8997_v38, %v8996_v59  ;;  %v7323_v12 = vpop.f32.mrb[63].mxu1 }
0x2781   : > { %7369 = vrot.lane.b32.xlu0 %v7353_v37, %s12263_s10  ;;  %v11839_v45 = vadd.f32 %v7323_v12, %v7239_v32 }
0x2782   : > { %v7244_v11 = vadd.f32 %v8998_v39, %v7149_v55 }
0x2783   : > { %v7355_v60 = vmax.f32 %v11839_v45, 0.0 }
0x2784   : > { %v11842_v19 = vadd.f32 %v9315_v9, %v7244_v11 }
0x2785   : > { %7373 = vrot.lane.b32.xlu0 %v7355_v60, %s12263_s10 }
0x2786   : > { %v7356_v61 = vmax.f32 %v11842_v19, 0.0 }
0x2788   : > { %7375 = vrot.lane.b32.xlu1 %v7356_v61, %s12263_s10 }
0x27f2   : > { %v7372_v62 = vpop.permute.xlu1 %7371 }
0x27f3   : > { %7382 = vst.msk [vmem:[#allocation2 + $0x18] sm:$0xff] %vm6868_vm1, %v7372_v62  ;;  %v7370_v63 = vpop.permute.xlu0 %7369 }
0x27f4   : > { %7381 = vst.msk [vmem:[#allocation2] sm:$0xff] %vm6868_vm1, %v7370_v63 }
0x27f7   : > { %v7374_v0 = vpop.permute.xlu0 %7373 }
0x27f8   : > { %7383 = vst.msk [vmem:[#allocation2 + $0x30] sm:$0xff] %vm6868_vm1, %v7374_v0 }
0x27fa   : > { %v7386_v1 = vld [vmem:[#allocation2 + $0x18] sm:$0xff]  ;;  %v7376_v5 = vpop.permute.xlu1 %7375 }
0x27fb   : > { %v7390_v6 = vmul.f32 0.0, %v7386_v1  ;;  %v7385_v23 = vld [vmem:[#allocation2] sm:$0xff]  ;;  %7487 = vrot.lane.b32.xlu1 %v7386_v1, %s12268_s16  ;;  %7384 = vst.msk [vmem:[#allocation2 + $0x48] sm:$0xff] %vm6868_vm1, %v7376_v5 }
0x27fc   : > { %7869 = vst.msk [vmem:[#allocation2 + $0x18] sm:$0xff] %vm1205_vm7, %v9951_v3  ;;  %v7389_v8 = vmul.f32 0.0, %v7385_v23  ;;  %7485 = vrot.lane.b32.xlu0 %v7385_v23, %s12268_s16  ;;  %7868 = vst.msk [vmem:[#allocation2] sm:$0xff] %vm1205_vm7, %v9951_v3 }
0x27fd   : > { %7873 = vst.msk [vmem:[#allocation2 + $0x18] sm:$0xff] %vm6847_vm6, %v9951_v3  ;;  %7872 = vst.msk [vmem:[#allocation2] sm:$0xff] %vm6847_vm6, %v9951_v3 }
0x27fe   : > { %7394 = vst.msk [vmem:[#allocation3 + $0x10] sm:$0xff] %vm6881_vm3, %v7390_v6  ;;  %7393 = vst.msk [vmem:[#allocation3] sm:$0xff] %vm6881_vm3, %v7389_v8 }
0x27ff   : > { %7407 = vrot.lane.b32.xlu1 %v7386_v1, %s12276_s15  ;;  %v7387_v13 = vld [vmem:[#allocation2 + $0x30] sm:$0xff] }
0x2800   : > { %7405 = vrot.lane.b32.xlu0 %v7385_v23, %s12276_s15  ;;  %v7391_v15 = vmul.f32 0.0, %v7387_v13  ;;  %7870 = vst.msk [vmem:[#allocation2 + $0x30] sm:$0xff] %vm1205_vm7, %v9951_v3 }
0x2801   : > { %7874 = vst.msk [vmem:[#allocation2 + $0x30] sm:$0xff] %vm6847_vm6, %v9951_v3 }
0x2802   : > { %v7388_v17 = vld [vmem:[#allocation2 + $0x48] sm:$0xff]  ;;  %7395 = vst.msk [vmem:[#allocation3 + $0x20] sm:$0xff] %vm6881_vm3, %v7391_v15 }
0x2803   : > { %7567 = vrot.lane.b32.xlu1 %v7386_v1, %s12294_s4  ;;  %v7392_v18 = vmul.f32 0.0, %v7388_v17  ;;  %7871 = vst.msk [vmem:[#allocation2 + $0x48] sm:$0xff] %vm1205_vm7, %v9951_v3  ;;  %vm2932_vm7 = vcmask 1048064  }
0x2804   : > { %7565 = vrot.lane.b32.xlu0 %v7385_v23, %s12294_s4  ;;  %7875 = vst.msk [vmem:[#allocation2 + $0x48] sm:$0xff] %vm6847_vm6, %v9951_v3  ;;  %v7610_v3 = vld [vmem:[%s12302_s0 + $0x8] sm:$0xff] }
0x2805   : > { %7396 = vst.msk [vmem:[#allocation3 + $0x30] sm:$0xff] %vm6881_vm3, %v7392_v18  ;;  %7737 = vmatprep.mubr.f32.mxu1 %v7610_v3  ;;  %v7621_v30 = vld [vmem:[#allocation3] sm:$0xff]  ;;  %v7622_v34 = vld [vmem:[#allocation3 + $0x10] sm:$0xff] }
0x2806   : > { %v9712_v48 = vpack.c.bf16 %v7622_v34, %v7621_v30 }
0x2807   : > { %7515 = vrot.lane.b32.xlu1 %v7390_v6, %s12294_s4 }
0x2808   : > { %7513 = vrot.lane.b32.xlu0 %v7389_v8, %s12294_s4 }
0x2809   : > { %v7623_v62 = vld [vmem:[#allocation3 + $0x20] sm:$0xff] }
0x280b   : > { %7543 = vrot.lane.b32.xlu1 %v7390_v6, %s12268_s16 }
0x280c   : > { %7541 = vrot.lane.b32.xlu0 %v7389_v8, %s12268_s16  ;;  %v7624_v63 = vld [vmem:[#allocation3 + $0x30] sm:$0xff] }
0x280f   : > { %7435 = vrot.lane.b32.xlu1 %v7390_v6, %s12268_s16 }
0x2810   : > { %7433 = vrot.lane.b32.xlu0 %v7389_v8, %s12268_s16 }
0x2813   : > { %7491 = vrot.lane.b32.xlu1 %v7388_v17, %s12268_s16 }
0x2814   : > { %7489 = vrot.lane.b32.xlu0 %v7387_v13, %s12268_s16 }
0x2817   : > { %7411 = vrot.lane.b32.xlu1 %v7388_v17, %s12276_s15 }
0x2818   : > { %7409 = vrot.lane.b32.xlu0 %v7387_v13, %s12276_s15 }
0x281b   : > { %7519 = vrot.lane.b32.xlu1 %v7392_v18, %s12294_s4 }
0x281c   : > { %7517 = vrot.lane.b32.xlu0 %v7391_v15, %s12294_s4 }
0x281f   : > { %7463 = vrot.lane.b32.xlu1 %v7390_v6, %s12276_s15 }
0x2820   : > { %7461 = vrot.lane.b32.xlu0 %v7389_v8, %s12276_s15 }
0x2823   : > { %7547 = vrot.lane.b32.xlu1 %v7392_v18, %s12268_s16 }
0x2824   : > { %7545 = vrot.lane.b32.xlu0 %v7391_v15, %s12268_s16 }
0x2827   : > { %7439 = vrot.lane.b32.xlu1 %v7392_v18, %s12268_s16 }
0x2828   : > { %7437 = vrot.lane.b32.xlu0 %v7391_v15, %s12268_s16 }
0x282b   : > { %7571 = vrot.lane.b32.xlu1 %v7388_v17, %s12294_s4 }
0x282c   : > { %7569 = vrot.lane.b32.xlu0 %v7387_v13, %s12294_s4 }
0x282f   : > { %7467 = vrot.lane.b32.xlu1 %v7392_v18, %s12276_s15 }
0x2830   : > { %7465 = vrot.lane.b32.xlu0 %v7391_v15, %s12276_s15 }
0x2833   : > { %7595 = vrot.lane.b32.xlu1 %v7390_v6, %s12283_s6 }
0x2834   : > { %7593 = vrot.lane.b32.xlu0 %v7389_v8, %s12283_s6  ;;  %v9716_v8 = vpack.c.bf16 %v7624_v63, %v7623_v62 }
0x2837   : > { %7599 = vrot.lane.b32.xlu1 %v7392_v18, %s12283_s6 }
0x2838   : > { %7597 = vrot.lane.b32.xlu0 %v7391_v15, %s12283_s6 }
0x286d   : > { %v7488_v24 = vpop.permute.xlu1 %7487 }
0x286e   : > { %7498 = vst.msk [vmem:[#allocation3 + $0x110] sm:$0xff] %vm6881_vm3, %v7488_v24  ;;  %v7486_v33 = vpop.permute.xlu0 %7485 }
0x286f   : > { %7497 = vst.msk [vmem:[#allocation3 + $0x100] sm:$0xff] %vm6881_vm3, %v7486_v33 }
0x2871   : > { %v7408_v25 = vpop.permute.xlu1 %7407 }
0x2872   : > { %7418 = vst.msk [vmem:[#allocation3 + $0x50] sm:$0xff] %vm6881_vm3, %v7408_v25  ;;  %v7406_v35 = vpop.permute.xlu0 %7405 }
0x2873   : > { %7417 = vst.msk [vmem:[#allocation3 + $0x40] sm:$0xff] %vm6881_vm3, %v7406_v35 }
0x2875   : > { %v7568_v42 = vpop.permute.xlu1 %7567  ;;  %v7638_v46 = vld [vmem:[#allocation3 + $0x110] sm:$0xff] }
0x2876   : > { %7578 = vst.msk [vmem:[#allocation3 + $0x1d0] sm:$0xff] %vm6881_vm3, %v7568_v42  ;;  %v7566_v43 = vpop.permute.xlu0 %7565  ;;  %v7637_v47 = vld [vmem:[#allocation3 + $0x100] sm:$0xff] }
0x2877   : > { %7577 = vst.msk [vmem:[#allocation3 + $0x1c0] sm:$0xff] %vm6881_vm3, %v7566_v43  ;;  %v9710_v50 = vpack.c.bf16 %v7638_v46, %v7637_v47 }
0x2879   : > { %v7516_v31 = vpop.permute.xlu1 %7515  ;;  %9711 = vmatprep.subr.bf16.mxu1 %v9710_v50  ;;  %v7626_v18 = vld [vmem:[#allocation3 + $0x50] sm:$0xff] }
0x287a   : > { %7526 = vst.msk [vmem:[#allocation3 + $0x150] sm:$0xff] %vm6881_vm3, %v7516_v31  ;;  %9713 = vmatpush3.bf16.msra.mxu1 %v9712_v48  ;;  %v7514_v59 = vpop.permute.xlu0 %7513  ;;  %v7625_v17 = vld [vmem:[#allocation3 + $0x40] sm:$0xff] }
0x287b   : > { %7525 = vst.msk [vmem:[#allocation3 + $0x140] sm:$0xff] %vm6881_vm3, %v7514_v59  ;;  %v9720_v21 = vpack.c.bf16 %v7626_v18, %v7625_v17 }
0x287d   : > { %v7544_v32 = vpop.permute.xlu1 %7543  ;;  %v7650_v62 = vld [vmem:[#allocation3 + $0x1d0] sm:$0xff] }
0x287e   : > { %7554 = vst.msk [vmem:[#allocation3 + $0x190] sm:$0xff] %vm6881_vm3, %v7544_v32  ;;  %v7542_v37 = vpop.permute.xlu0 %7541 }
0x287f   : > { %7553 = vst.msk [vmem:[#allocation3 + $0x180] sm:$0xff] %vm6881_vm3, %v7542_v37 }
0x2881   : > { %v7436_v38 = vpop.permute.xlu1 %7435  ;;  %v7642_v6 = vld [vmem:[#allocation3 + $0x150] sm:$0xff] }
0x2882   : > { %7446 = vst.msk [vmem:[#allocation3 + $0x90] sm:$0xff] %vm6881_vm3, %v7436_v38  ;;  %v7434_v55 = vpop.permute.xlu0 %7433  ;;  %v7641_v5 = vld [vmem:[#allocation3 + $0x140] sm:$0xff] }
0x2883   : > { %7445 = vst.msk [vmem:[#allocation3 + $0x80] sm:$0xff] %vm6881_vm3, %v7434_v55  ;;  %v9718_v15 = vpack.c.bf16 %v7642_v6, %v7641_v5 }
0x2885   : > { %v7492_v9 = vpop.permute.xlu1 %7491  ;;  %v7646_v34 = vld [vmem:[#allocation3 + $0x190] sm:$0xff] }
0x2886   : > { %7500 = vst.msk [vmem:[#allocation3 + $0x130] sm:$0xff] %vm6881_vm3, %v7492_v9  ;;  %v7490_v39 = vpop.permute.xlu0 %7489  ;;  %v7645_v30 = vld [vmem:[#allocation3 + $0x180] sm:$0xff] }
0x2887   : > { %7499 = vst.msk [vmem:[#allocation3 + $0x120] sm:$0xff] %vm6881_vm3, %v7490_v39  ;;  %v9726_v48 = vpack.c.bf16 %v7646_v34, %v7645_v30  ;;  %v7613_v34 = vld [vmem:[%s12302_s0 + $0x20] sm:$0xff] }
0x2889   : > { %v7412_v12 = vpop.permute.xlu1 %7411  ;;  %v7630_v59 = vld [vmem:[#allocation3 + $0x90] sm:$0xff] }
0x288a   : > { %7420 = vst.msk [vmem:[#allocation3 + $0x70] sm:$0xff] %vm6881_vm3, %v7412_v12  ;;  %v7410_v11 = vpop.permute.xlu0 %7409  ;;  %v7629_v31 = vld [vmem:[#allocation3 + $0x80] sm:$0xff] }
0x288b   : > { %7419 = vst.msk [vmem:[#allocation3 + $0x60] sm:$0xff] %vm6881_vm3, %v7410_v11  ;;  %v9728_v37 = vpack.c.bf16 %v7630_v59, %v7629_v31  ;;  %v7616_v31 = vld [vmem:[%s12302_s0 + $0x38] sm:$0xff] }
0x288d   : > { %v7520_v60 = vpop.permute.xlu1 %7519  ;;  %v7640_v61 = vld [vmem:[#allocation3 + $0x130] sm:$0xff] }
0x288e   : > { %7528 = vst.msk [vmem:[#allocation3 + $0x170] sm:$0xff] %vm6881_vm3, %v7520_v60  ;;  %v7518_v0 = vpop.permute.xlu0 %7517  ;;  %v7639_v1 = vld [vmem:[#allocation3 + $0x120] sm:$0xff] }
0x288f   : > { %7527 = vst.msk [vmem:[#allocation3 + $0x160] sm:$0xff] %vm6881_vm3, %v7518_v0  ;;  %v9714_v23 = vpack.c.bf16 %v7640_v61, %v7639_v1  ;;  %v7649_v61 = vld [vmem:[#allocation3 + $0x1c0] sm:$0xff] }
0x2890   : > { %v9734_v5 = vpack.c.bf16 %v7650_v62, %v7649_v61 }
0x2891   : > { %v7464_v13 = vpop.permute.xlu1 %7463  ;;  %9715 = vmatprep.subr.bf16.mxu1 %v9714_v23  ;;  %v7628_v35 = vld [vmem:[#allocation3 + $0x70] sm:$0xff] }
0x2892   : > { %7474 = vst.msk [vmem:[#allocation3 + $0xd0] sm:$0xff] %vm6881_vm3, %v7464_v13  ;;  %9717 = vmatpush3.bf16.msra.mxu1 %v9716_v8  ;;  %v7462_v3 = vpop.permute.xlu0 %7461  ;;  %v7627_v25 = vld [vmem:[#allocation3 + $0x60] sm:$0xff] }
0x2893   : > { %7473 = vst.msk [vmem:[#allocation3 + $0xc0] sm:$0xff] %vm6881_vm3, %v7462_v3  ;;  %9719 = vmatprep.subr.bf16.mxu1 %v9718_v15  ;;  %v9724_v47 = vpack.c.bf16 %v7628_v35, %v7627_v25 }
0x2895   : > { %v7548_v24 = vpop.permute.xlu1 %7547  ;;  %v7644_v33 = vld [vmem:[#allocation3 + $0x170] sm:$0xff] }
0x2896   : > { %7556 = vst.msk [vmem:[#allocation3 + $0x1b0] sm:$0xff] %vm6881_vm3, %v7548_v24  ;;  %9721 = vmatpush3.bf16.msra.mxu1 %v9720_v21  ;;  %v7546_v42 = vpop.permute.xlu0 %7545  ;;  %v7643_v46 = vld [vmem:[#allocation3 + $0x160] sm:$0xff] }
0x2897   : > { %7555 = vst.msk [vmem:[#allocation3 + $0x1a0] sm:$0xff] %vm6881_vm3, %v7546_v42  ;;  %v9722_v43 = vpack.c.bf16 %v7644_v33, %v7643_v46  ;;  %v7609_v42 = vld [vmem:[%s12302_s0] sm:$0xff] }
0x2899   : > { %v7440_v50 = vpop.permute.xlu1 %7439  ;;  %9723 = vmatprep.subr.bf16.mxu1 %v9722_v43  ;;  %v7634_v23 = vld [vmem:[#allocation3 + $0xd0] sm:$0xff] }
0x289a   : > { %7448 = vst.msk [vmem:[#allocation3 + $0xb0] sm:$0xff] %vm6881_vm3, %v7440_v50  ;;  %9725 = vmatpush3.bf16.msra.mxu1 %v9724_v47  ;;  %v7438_v32 = vpop.permute.xlu0 %7437  ;;  %v7633_v6 = vld [vmem:[#allocation3 + $0xc0] sm:$0xff]  ;;  %v7612_v47 = vld [vmem:[%s12302_s0 + $0x18] sm:$0xff] }
0x289b   : > { %7447 = vst.msk [vmem:[#allocation3 + $0xa0] sm:$0xff] %vm6881_vm3, %v7438_v32  ;;  %9727 = vmatprep.subr.bf16.mxu1 %v9726_v48  ;;  %v9736_v18 = vpack.c.bf16 %v7634_v23, %v7633_v6  ;;  %v7615_v32 = vld [vmem:[%s12302_s0 + $0x30] sm:$0xff] }
0x289d   : > { %v7572_v38 = vpop.permute.xlu1 %7571  ;;  %v7648_v55 = vld [vmem:[#allocation3 + $0x1b0] sm:$0xff] }
0x289e   : > { %7580 = vst.msk [vmem:[#allocation3 + $0x1f0] sm:$0xff] %vm6881_vm3, %v7572_v38  ;;  %9729 = vmatpush3.bf16.msra.mxu1 %v9728_v37  ;;  %v7570_v9 = vpop.permute.xlu0 %7569  ;;  %v7647_v39 = vld [vmem:[#allocation3 + $0x1a0] sm:$0xff]  ;;  %v7614_v37 = vld [vmem:[%s12302_s0 + $0x28] sm:$0xff]  ;;  %v7619_v38 = vld [vmem:[%s12302_s0 + $0x50] sm:$0xff] }
0x289f   : > { %7579 = vst.msk [vmem:[#allocation3 + $0x1e0] sm:$0xff] %vm6881_vm3, %v7570_v9  ;;  %v9730_v12 = vpack.c.bf16 %v7648_v55, %v7647_v39  ;;  %v7617_v55 = vld [vmem:[%s12302_s0 + $0x40] sm:$0xff]  ;;  %v7618_v9 = vld [vmem:[%s12302_s0 + $0x48] sm:$0xff]  ;;  %v7620_v39 = vld [vmem:[%s12302_s0 + $0x58] sm:$0xff] }
0x28a1   : > { %v7468_v11 = vpop.permute.xlu1 %7467  ;;  %9731 = vmatprep.subr.bf16.mxu1 %v9730_v12  ;;  %v7632_v60 = vld [vmem:[#allocation3 + $0xb0] sm:$0xff] }
0x28a2   : > { %7476 = vst.msk [vmem:[#allocation3 + $0xf0] sm:$0xff] %vm6881_vm3, %v7468_v11  ;;  %v7466_v63 = vpop.permute.xlu0 %7465  ;;  %v7631_v0 = vld [vmem:[#allocation3 + $0xa0] sm:$0xff] }
0x28a3   : > { %7475 = vst.msk [vmem:[#allocation3 + $0xe0] sm:$0xff] %vm6881_vm3, %v7466_v63  ;;  %v9732_v1 = vpack.c.bf16 %v7632_v60, %v7631_v0  ;;  %v7658_v63 = vld [vmem:[%s12303_s3 + $0x8] sm:$0xff] }
0x28a5   : > { %v7596_v8 = vpop.permute.xlu1 %7595  ;;  %9733 = vmatpush3.bf16.msra.mxu1 %v9732_v1  ;;  %v7652_v13 = vld [vmem:[#allocation3 + $0x1f0] sm:$0xff]  ;;  %v7657_v1 = vld [vmem:[%s12303_s3] sm:$0xff] }
0x28a6   : > { %7606 = vst.msk [vmem:[#allocation3 + $0x210] sm:$0xff] %vm6881_vm3, %v7596_v8  ;;  %9735 = vmatprep.subr.bf16.mxu1 %v9734_v5  ;;  %v7594_v15 = vpop.permute.xlu0 %7593  ;;  %v7651_v17 = vld [vmem:[#allocation3 + $0x1e0] sm:$0xff] }
0x28a7   : > { %7605 = vst.msk [vmem:[#allocation3 + $0x200] sm:$0xff] %vm6881_vm3, %v7594_v15  ;;  %v9738_v3 = vpack.c.bf16 %v7652_v13, %v7651_v17  ;;  %v7659_v15 = vld [vmem:[%s12303_s3 + $0x10] sm:$0xff] }
0x28a9   : > { %v7600_v21 = vpop.permute.xlu1 %7599  ;;  %9737 = vmatpush3.bf16.msra.mxu1 %v9736_v18  ;;  %v7636_v24 = vld [vmem:[#allocation3 + $0xf0] sm:$0xff] }
0x28aa   : > { %7608 = vst.msk [vmem:[#allocation3 + $0x230] sm:$0xff] %vm6881_vm3, %v7600_v21  ;;  %9739 = vmatprep.subr.bf16.mxu1 %v9738_v3  ;;  %v7598_v33 = vpop.permute.xlu0 %7597  ;;  %v7635_v25 = vld [vmem:[#allocation3 + $0xe0] sm:$0xff] }
0x28ab   : > { %7607 = vst.msk [vmem:[#allocation3 + $0x220] sm:$0xff] %vm6881_vm3, %v7598_v33  ;;  %v9740_v35 = vpack.c.bf16 %v7636_v24, %v7635_v25 }
0x28ad   : > { %9741 = vmatpush3.bf16.msra.mxu1 %v9740_v35  ;;  %v7654_v46 = vld [vmem:[#allocation3 + $0x210] sm:$0xff] }
0x28ae   : > { %v7653_v30 = vld [vmem:[#allocation3 + $0x200] sm:$0xff] }
0x28af   : > { %v9742_v43 = vpack.c.bf16 %v7654_v46, %v7653_v30  ;;  %v7660_v46 = vld [vmem:[%s12303_s3 + $0x18] sm:$0xff] }
0x28b0   : > { %7738 = vmatmul.mubr.f32.vlgmr.msra.gmra.mrb[64].mxu1 %v7609_v42 }
0x28b1   : > { %9743 = vmatprep.subr.bf16.mxu0 %v9742_v43  ;;  %7742 = vmatprep.mubr.f32.mxu1 %v7613_v34  ;;  %v7656_v50 = vld [vmem:[#allocation3 + $0x230] sm:$0xff] }
0x28b2   : > { %9745 = vmatpush3.bf16.msra.mxu0 %v9742_v43  ;;  %v7655_v48 = vld [vmem:[#allocation3 + $0x220] sm:$0xff] }
0x28b3   : > { %v9746_v59 = vpack.c.bf16 %v7656_v50, %v7655_v48 }
0x28b4   : > { %7743 = vmatmul.mubr.f32.gmra.mrb[66].mxu1 %v7612_v47 }
0x28b5   : > { %9747 = vmatprep.subr.bf16.mxu0 %v9746_v59  ;;  %7747 = vmatprep.mubr.f32.mxu1 %v7616_v31 }
0x28b6   : > { %9749 = vmatpush3.bf16.msra.mxu0 %v9746_v59 }
0x28b8   : > { %7748 = vmatmul.mubr.f32.gmra.mrb[68].mxu1 %v7615_v32 }
0x28b9   : > { %9325 = vmatmul.mubr.msk.f32.vlgmr.msra.gmra.mrb[62].mxu0 %vm1319_vm10, %v7614_v37  ;;  %7752 = vmatprep.mubr.f32.mxu1 %v7619_v38 }
0x28ba   : > { %9327 = vmatprep.mubr.msk.f32.mxu0 %vm1319_vm10, %v7617_v55 }
0x28bc   : > { %7753 = vmatmul.mubr.f32.gmra.mrb[70].mxu1 %v7618_v9 }
0x28bd   : > { %9328 = vmatmul.mubr.msk.f32.gmra.mrb[64].mxu0 %vm1319_vm10, %v7620_v39 }
0x2983   : > { %v9039_v12 = vpop.f32.mrb[64].mxu1 }
0x2984   : > { %v9040_v11 = vpop.f32.mrb[65].mxu1 }
0x2985   : > { %v9041_v60 = vadd.f32 %v9040_v11, %v9039_v12 }
0x2987   : > { %v9042_v61 = vpop.f32.mrb[66].mxu1  ;;  %v7740_v8 = vadd.f32 %v9041_v60, %v7657_v1 }
0x2988   : > { %v9043_v62 = vpop.f32.mrb[67].mxu1 }
0x2989   : > { %v9044_v0 = vadd.f32 %v9043_v62, %v9042_v61 }
0x298b   : > { %v7745_v5 = vadd.f32 %v9044_v0, %v7658_v63  ;;  %v9045_v6 = vpop.f32.mrb[68].mxu1 }
0x298c   : > { %v9326_v23 = vpop.f32.mrb[62].mxu0  ;;  %v9046_v13 = vpop.f32.mrb[69].mxu1 }
0x298d   : > { %v11954_v17 = vadd.f32 %v9326_v23, %v7745_v5  ;;  %v7824_v18 = vpop.f32.mrb[63].mxu0  ;;  %v9047_v3 = vadd.f32 %v9046_v13, %v9045_v6 }
0x298e   : > { %v11956_v21 = vadd.f32 %v7824_v18, %v7740_v8 }
0x298f   : > { %v7865_v24 = vmax.f32 %v11954_v17, 0.0  ;;  %v9048_v33 = vpop.f32.mrb[70].mxu1  ;;  %v7750_v25 = vadd.f32 %v9047_v3, %v7659_v15 }
0x2990   : > { %v7864_v35 = vmax.f32 %v11956_v21, 0.0  ;;  %v9049_v42 = vpop.f32.mrb[71].mxu1  ;;  %v9329_v30 = vpop.f32.mrb[64].mxu0 }
0x2991   : > { %7882 = vrot.lane.b32.xlu1 %v7865_v24, %s12263_s10  ;;  %v9050_v34 = vadd.f32 %v9049_v42, %v9048_v33  ;;  %v7834_v43 = vpop.f32.mrb[65].mxu0 }
0x2992   : > { %7880 = vrot.lane.b32.xlu0 %v7864_v35, %s12263_s10  ;;  %v11963_v47 = vadd.f32 %v7834_v43, %v7750_v25 }
0x2993   : > { %v7755_v50 = vadd.f32 %v9050_v34, %v7660_v46 }
0x2994   : > { %v7866_v48 = vmax.f32 %v11963_v47, 0.0 }
0x2995   : > { %v11966_v31 = vadd.f32 %v9329_v30, %v7755_v50 }
0x2996   : > { %7884 = vrot.lane.b32.xlu0 %v7866_v48, %s12263_s10 }
0x2997   : > { %v7867_v59 = vmax.f32 %v11966_v31, 0.0 }
0x2999   : > { %7886 = vrot.lane.b32.xlu1 %v7867_v59, %s12263_s10  ;;  %s12304_s10 = sld [smem:[#allocation14_spill]] }
0x299f   : > { %v8121_v0 = vld [vmem:[%s12304_s10 + $0x8] sm:$0xff]  ;;  %v8122_v1 = vld [vmem:[%s12304_s10 + $0x10] sm:$0xff] }
0x29a0   : > { %8248 = vmatprep.mubr.f32.mxu0 %v8121_v0  ;;  %9338 = vmatprep.mubr.msk.f32.mxu1 %vm1319_vm10, %v8122_v1 }
0x2a03   : > { %v7883_v32 = vpop.permute.xlu1 %7882 }
0x2a04   : > { %7893 = vst.msk [vmem:[#allocation2 + $0x18] sm:$0xff] %vm6868_vm1, %v7883_v32  ;;  %v7881_v37 = vpop.permute.xlu0 %7880 }
0x2a05   : > { %7892 = vst.msk [vmem:[#allocation2] sm:$0xff] %vm6868_vm1, %v7881_v37 }
0x2a08   : > { %v7885_v38 = vpop.permute.xlu0 %7884 }
0x2a09   : > { %7894 = vst.msk [vmem:[#allocation2 + $0x30] sm:$0xff] %vm6868_vm1, %v7885_v38 }
0x2a0b   : > { %v7897_v55 = vld [vmem:[#allocation2 + $0x18] sm:$0xff]  ;;  %v7887_v9 = vpop.permute.xlu1 %7886 }
0x2a0c   : > { %v7901_v39 = vmul.f32 0.0, %v7897_v55  ;;  %v7896_v12 = vld [vmem:[#allocation2] sm:$0xff]  ;;  %7998 = vrot.lane.b32.xlu1 %v7897_v55, %s12268_s16  ;;  %7895 = vst.msk [vmem:[#allocation2 + $0x48] sm:$0xff] %vm6868_vm1, %v7887_v9 }
0x2a0d   : > { %v7900_v11 = vmul.f32 0.0, %v7896_v12  ;;  %7996 = vrot.lane.b32.xlu0 %v7896_v12, %s12268_s16 }
0x2a0e   : > { %7905 = vst.msk [vmem:[#allocation3 + $0x10] sm:$0xff] %vm6881_vm3, %v7901_v39 }
0x2a0f   : > { %7904 = vst.msk [vmem:[#allocation3] sm:$0xff] %vm6881_vm3, %v7900_v11 }
0x2a10   : > { %7918 = vrot.lane.b32.xlu1 %v7897_v55, %s12276_s15  ;;  %v7898_v60 = vld [vmem:[#allocation2 + $0x30] sm:$0xff] }
0x2a11   : > { %7916 = vrot.lane.b32.xlu0 %v7896_v12, %s12276_s15  ;;  %v7902_v61 = vmul.f32 0.0, %v7898_v60 }
0x2a13   : > { %v7899_v62 = vld [vmem:[#allocation2 + $0x48] sm:$0xff]  ;;  %7906 = vst.msk [vmem:[#allocation3 + $0x20] sm:$0xff] %vm6881_vm3, %v7902_v61 }
0x2a14   : > { %8078 = vrot.lane.b32.xlu1 %v7897_v55, %s12294_s4  ;;  %v7903_v63 = vmul.f32 0.0, %v7899_v62 }
0x2a15   : > { %8076 = vrot.lane.b32.xlu0 %v7896_v12, %s12294_s4 }
0x2a16   : > { %7907 = vst.msk [vmem:[#allocation3 + $0x30] sm:$0xff] %vm6881_vm3, %v7903_v63 }
0x2a18   : > { %8026 = vrot.lane.b32.xlu1 %v7901_v39, %s12294_s4 }
0x2a19   : > { %8024 = vrot.lane.b32.xlu0 %v7900_v11, %s12294_s4 }
0x2a1c   : > { %8054 = vrot.lane.b32.xlu1 %v7901_v39, %s12268_s16 }
0x2a1d   : > { %8052 = vrot.lane.b32.xlu0 %v7900_v11, %s12268_s16 }
0x2a20   : > { %7946 = vrot.lane.b32.xlu1 %v7901_v39, %s12268_s16 }
0x2a21   : > { %7944 = vrot.lane.b32.xlu0 %v7900_v11, %s12268_s16 }
0x2a24   : > { %8002 = vrot.lane.b32.xlu1 %v7899_v62, %s12268_s16 }
0x2a25   : > { %8000 = vrot.lane.b32.xlu0 %v7898_v60, %s12268_s16 }
0x2a28   : > { %7922 = vrot.lane.b32.xlu1 %v7899_v62, %s12276_s15 }
0x2a29   : > { %7920 = vrot.lane.b32.xlu0 %v7898_v60, %s12276_s15 }
0x2a2c   : > { %8030 = vrot.lane.b32.xlu1 %v7903_v63, %s12294_s4 }
0x2a2d   : > { %8028 = vrot.lane.b32.xlu0 %v7902_v61, %s12294_s4 }
0x2a30   : > { %7974 = vrot.lane.b32.xlu1 %v7901_v39, %s12276_s15 }
0x2a31   : > { %7972 = vrot.lane.b32.xlu0 %v7900_v11, %s12276_s15 }
0x2a34   : > { %8058 = vrot.lane.b32.xlu1 %v7903_v63, %s12268_s16 }
0x2a35   : > { %8056 = vrot.lane.b32.xlu0 %v7902_v61, %s12268_s16 }
0x2a38   : > { %7950 = vrot.lane.b32.xlu1 %v7903_v63, %s12268_s16 }
0x2a39   : > { %7948 = vrot.lane.b32.xlu0 %v7902_v61, %s12268_s16  ;;  %s9994_s16 = smov 60  }
0x2a3c   : > { %8082 = vrot.lane.b32.xlu1 %v7899_v62, %s12294_s4 }
0x2a3d   : > { %8080 = vrot.lane.b32.xlu0 %v7898_v60, %s12294_s4 }
0x2a40   : > { %7978 = vrot.lane.b32.xlu1 %v7903_v63, %s12276_s15 }
0x2a41   : > { %7976 = vrot.lane.b32.xlu0 %v7902_v61, %s12276_s15  ;;  %s9996_s15 = smov 62  }
0x2a44   : > { %8106 = vrot.lane.b32.xlu1 %v7901_v39, %s12283_s6 }
0x2a45   : > { %8104 = vrot.lane.b32.xlu0 %v7900_v11, %s12283_s6 }
0x2a48   : > { %8110 = vrot.lane.b32.xlu1 %v7903_v63, %s12283_s6 }
0x2a49   : > { %8108 = vrot.lane.b32.xlu0 %v7902_v61, %s12283_s6  ;;  %s12305_s6 = smov 48  }
0x2a4c   : > { %2928 = vrot.lane.b32.xlu1 %v10664_v22, %s12272_s11 }
0x2a4d   : > { %2926 = vrot.lane.b32.xlu0 %v10657_v14, %s12272_s11  ;;  %s9995_s11 = smov 61  }
0x2a50   : > { %4201 = vrot.lane.b32.xlu1 %v10988_v56, %s12262_s18 }
0x2a51   : > { %4199 = vrot.lane.b32.xlu0 %v10990_v40, %s12262_s18 }
0x2a54   : > { %4205 = vrot.lane.b32.xlu1 %v10994_v53, %s12262_s18 }
0x2a55   : > { %4203 = vrot.lane.b32.xlu0 %v10997_v58, %s12262_s18  ;;  %s9993_s18 = smov 52  }
0x2a58   : > { %4732 = vrot.lane.b32.xlu1 %v11120_v57, %s12261_s7  ;;  %v8132_v57 = vld [vmem:[#allocation3] sm:$0xff] }
0x2a59   : > { %4730 = vrot.lane.b32.xlu0 %v11123_v51, %s12261_s7  ;;  %v8133_v51 = vld [vmem:[#allocation3 + $0x10] sm:$0xff] }
0x2a5c   : > { %4736 = vrot.lane.b32.xlu1 %v11135_v54, %s12261_s7 }
0x2a5d   : > { %4734 = vrot.lane.b32.xlu0 %v11132_v49, %s12261_s7  ;;  %s12306_s7 = smov 56  }
0x2a60   : > { %5607 = vrot.lane.b32.xlu1 %v11361_v2, %s12305_s6 }
0x2a61   : > { %5605 = vrot.lane.b32.xlu0 %v11363_v7, %s12305_s6  ;;  %v9752_v7 = vpack.c.bf16 %v8133_v51, %v8132_v57 }
0x2a64   : > { %5611 = vrot.lane.b32.xlu1 %v11372_v36, %s12305_s6 }
0x2a65   : > { %5609 = vrot.lane.b32.xlu0 %v11368_v26, %s12305_s6 }
0x2a68   : > { %6138 = vrot.lane.b32.xlu1 %v11531_v44, %s9993_s18 }
0x2a69   : > { %6136 = vrot.lane.b32.xlu0 %v11533_v4, %s9993_s18 }
0x2a6c   : > { %6142 = vrot.lane.b32.xlu1 %v11542_v16, %s9993_s18 }
0x2a6d   : > { %6140 = vrot.lane.b32.xlu0 %v11538_v10, %s9993_s18 }
0x2a70   : > { %6669 = vrot.lane.b32.xlu1 %v11682_v27, %s12306_s7 }
0x2a71   : > { %6667 = vrot.lane.b32.xlu0 %v11685_v29, %s12306_s7 }
0x2a74   : > { %6673 = vrot.lane.b32.xlu1 %v11694_v52, %s12306_s7 }
0x2a75   : > { %6671 = vrot.lane.b32.xlu0 %v11691_v41, %s12306_s7 }
0x2a78   : > { %7338 = vrot.lane.b32.xlu1 %v11830_v20, %s9994_s16 }
0x2a79   : > { %7336 = vrot.lane.b32.xlu0 %v11832_v28, %s9994_s16 }
0x2a7c   : > { %7342 = vrot.lane.b32.xlu1 %v11842_v19, %s9994_s16  ;;  %v8135_v19 = vld [vmem:[#allocation3 + $0x30] sm:$0xff] }
0x2a7d   : > { %7340 = vrot.lane.b32.xlu0 %v11839_v45, %s9994_s16  ;;  %v8134_v45 = vld [vmem:[#allocation3 + $0x20] sm:$0xff] }
0x2a7e   : > { %v7999_v14 = vpop.permute.xlu1 %7998  ;;  %v9756_v15 = vpack.c.bf16 %v8135_v19, %v8134_v45  ;;  %v8123_v19 = vld [vmem:[%s12304_s10 + $0x18] sm:$0xff] }
0x2a7f   : > { %8009 = vst.msk [vmem:[#allocation3 + $0x110] sm:$0xff] %vm6881_vm3, %v7999_v14  ;;  %v7997_v22 = vpop.permute.xlu0 %7996 }
0x2a80   : > { %8008 = vst.msk [vmem:[#allocation3 + $0x100] sm:$0xff] %vm6881_vm3, %v7997_v22  ;;  %7849 = vrot.lane.b32.xlu1 %v11954_v17, %s9995_s11 }
0x2a81   : > { %7847 = vrot.lane.b32.xlu0 %v11956_v21, %s9995_s11 }
0x2a82   : > { %v7919_v56 = vpop.permute.xlu1 %7918 }
0x2a83   : > { %7929 = vst.msk [vmem:[#allocation3 + $0x50] sm:$0xff] %vm6881_vm3, %v7919_v56  ;;  %v7917_v40 = vpop.permute.xlu0 %7916 }
0x2a84   : > { %7928 = vst.msk [vmem:[#allocation3 + $0x40] sm:$0xff] %vm6881_vm3, %v7917_v40  ;;  %7853 = vrot.lane.b32.xlu1 %v11966_v31, %s9995_s11 }
0x2a85   : > { %7851 = vrot.lane.b32.xlu0 %v11963_v47, %s9995_s11 }
0x2a86   : > { %v8079_v53 = vpop.permute.xlu1 %8078  ;;  %v8149_v58 = vld [vmem:[#allocation3 + $0x110] sm:$0xff] }
0x2a87   : > { %8089 = vst.msk [vmem:[#allocation3 + $0x1d0] sm:$0xff] %vm6881_vm3, %v8079_v53  ;;  %v8077_v49 = vpop.permute.xlu0 %8076  ;;  %v8148_v54 = vld [vmem:[#allocation3 + $0x100] sm:$0xff] }
0x2a88   : > { %8088 = vst.msk [vmem:[#allocation3 + $0x1c0] sm:$0xff] %vm6881_vm3, %v8077_v49  ;;  %v9750_v2 = vpack.c.bf16 %v8149_v58, %v8148_v54 }
0x2a8a   : > { %v8027_v26 = vpop.permute.xlu1 %8026  ;;  %9751 = vmatprep.subr.bf16.mxu0 %v9750_v2  ;;  %v8137_v21 = vld [vmem:[#allocation3 + $0x50] sm:$0xff] }
0x2a8b   : > { %8037 = vst.msk [vmem:[#allocation3 + $0x150] sm:$0xff] %vm6881_vm3, %v8027_v26  ;;  %9753 = vmatpush3.bf16.msra.mxu0 %v9752_v7  ;;  %v8025_v36 = vpop.permute.xlu0 %8024  ;;  %v8136_v3 = vld [vmem:[#allocation3 + $0x40] sm:$0xff] }
0x2a8c   : > { %8036 = vst.msk [vmem:[#allocation3 + $0x140] sm:$0xff] %vm6881_vm3, %v8025_v36  ;;  %v9760_v33 = vpack.c.bf16 %v8137_v21, %v8136_v3  ;;  %v8130_v3 = vld [vmem:[%s12304_s10 + $0x50] sm:$0xff]  ;;  %v8128_v21 = vld [vmem:[%s12304_s10 + $0x40] sm:$0xff] }
0x2a8e   : > { %v8055_v44 = vpop.permute.xlu1 %8054  ;;  %v8161_v0 = vld [vmem:[#allocation3 + $0x1d0] sm:$0xff] }
0x2a8f   : > { %8065 = vst.msk [vmem:[#allocation3 + $0x190] sm:$0xff] %vm6881_vm3, %v8055_v44  ;;  %v8053_v4 = vpop.permute.xlu0 %8052  ;;  %v8160_v63 = vld [vmem:[#allocation3 + $0x1c0] sm:$0xff] }
0x2a90   : > { %8064 = vst.msk [vmem:[#allocation3 + $0x180] sm:$0xff] %vm6881_vm3, %v8053_v4  ;;  %v9774_v56 = vpack.c.bf16 %v8161_v0, %v8160_v63 }
0x2a92   : > { %v7947_v10 = vpop.permute.xlu1 %7946  ;;  %v8153_v8 = vld [vmem:[#allocation3 + $0x150] sm:$0xff] }
0x2a93   : > { %7957 = vst.msk [vmem:[#allocation3 + $0x90] sm:$0xff] %vm6881_vm3, %v7947_v10  ;;  %v7945_v16 = vpop.permute.xlu0 %7944  ;;  %v8152_v23 = vld [vmem:[#allocation3 + $0x140] sm:$0xff] }
0x2a94   : > { %7956 = vst.msk [vmem:[#allocation3 + $0x80] sm:$0xff] %vm6881_vm3, %v7945_v16  ;;  %v9758_v18 = vpack.c.bf16 %v8153_v8, %v8152_v23  ;;  %v8127_v23 = vld [vmem:[%s12304_s10 + $0x38] sm:$0xff] }
0x2a96   : > { %v8003_v27 = vpop.permute.xlu1 %8002  ;;  %v8157_v47 = vld [vmem:[#allocation3 + $0x190] sm:$0xff] }
0x2a97   : > { %8011 = vst.msk [vmem:[#allocation3 + $0x130] sm:$0xff] %vm6881_vm3, %v8003_v27  ;;  %v8001_v29 = vpop.permute.xlu0 %8000  ;;  %v8156_v43 = vld [vmem:[#allocation3 + $0x180] sm:$0xff] }
0x2a98   : > { %8010 = vst.msk [vmem:[#allocation3 + $0x120] sm:$0xff] %vm6881_vm3, %v8001_v29  ;;  %v9766_v59 = vpack.c.bf16 %v8157_v47, %v8156_v43  ;;  %v8120_v27 = vld [vmem:[%s12304_s10] sm:$0xff] }
0x2a9a   : > { %v7923_v41 = vpop.permute.xlu1 %7922  ;;  %v8141_v37 = vld [vmem:[#allocation3 + $0x90] sm:$0xff] }
0x2a9b   : > { %7931 = vst.msk [vmem:[#allocation3 + $0x70] sm:$0xff] %vm6881_vm3, %v7923_v41  ;;  %v7921_v52 = vpop.permute.xlu0 %7920  ;;  %v8140_v32 = vld [vmem:[#allocation3 + $0x80] sm:$0xff] }
0x2a9c   : > { %7930 = vst.msk [vmem:[#allocation3 + $0x60] sm:$0xff] %vm6881_vm3, %v7921_v52  ;;  %v9768_v55 = vpack.c.bf16 %v8141_v37, %v8140_v32  ;;  %v8124_v52 = vld [vmem:[%s12304_s10 + $0x20] sm:$0xff] }
0x2a9e   : > { %v8031_v20 = vpop.permute.xlu1 %8030  ;;  %v8151_v28 = vld [vmem:[#allocation3 + $0x130] sm:$0xff] }
0x2a9f   : > { %8039 = vst.msk [vmem:[#allocation3 + $0x170] sm:$0xff] %vm6881_vm3, %v8031_v20  ;;  %v8029_v5 = vpop.permute.xlu0 %8028  ;;  %v8150_v6 = vld [vmem:[#allocation3 + $0x120] sm:$0xff] }
0x2aa0   : > { %8038 = vst.msk [vmem:[#allocation3 + $0x160] sm:$0xff] %vm6881_vm3, %v8029_v5  ;;  %v9754_v13 = vpack.c.bf16 %v8151_v28, %v8150_v6 }
0x2aa2   : > { %v7975_v17 = vpop.permute.xlu1 %7974  ;;  %9755 = vmatprep.subr.bf16.mxu0 %v9754_v13  ;;  %v8139_v46 = vld [vmem:[#allocation3 + $0x70] sm:$0xff] }
0x2aa3   : > { %7985 = vst.msk [vmem:[#allocation3 + $0xd0] sm:$0xff] %vm6881_vm3, %v7975_v17  ;;  %9757 = vmatpush3.bf16.msra.mxu0 %v9756_v15  ;;  %v7973_v24 = vpop.permute.xlu0 %7972  ;;  %v8138_v42 = vld [vmem:[#allocation3 + $0x60] sm:$0xff]  ;;  %v8126_v15 = vld [vmem:[%s12304_s10 + $0x30] sm:$0xff] }
0x2aa4   : > { %7984 = vst.msk [vmem:[#allocation3 + $0xc0] sm:$0xff] %vm6881_vm3, %v7973_v24  ;;  %9759 = vmatprep.subr.bf16.mxu0 %v9758_v18  ;;  %v9764_v48 = vpack.c.bf16 %v8139_v46, %v8138_v42  ;;  %v8125_v18 = vld [vmem:[%s12304_s10 + $0x28] sm:$0xff] }
0x2aa6   : > { %v8059_v25 = vpop.permute.xlu1 %8058  ;;  %v8155_v35 = vld [vmem:[#allocation3 + $0x170] sm:$0xff] }
0x2aa7   : > { %8067 = vst.msk [vmem:[#allocation3 + $0x1b0] sm:$0xff] %vm6881_vm3, %v8059_v25  ;;  %9761 = vmatpush3.bf16.msra.mxu0 %v9760_v33  ;;  %v8057_v30 = vpop.permute.xlu0 %8056  ;;  %v8154_v34 = vld [vmem:[#allocation3 + $0x160] sm:$0xff]  ;;  %v8129_v33 = vld [vmem:[%s12304_s10 + $0x48] sm:$0xff] }
0x2aa8   : > { %8066 = vst.msk [vmem:[#allocation3 + $0x1a0] sm:$0xff] %vm6881_vm3, %v8057_v30  ;;  %v9762_v50 = vpack.c.bf16 %v8155_v35, %v8154_v34  ;;  %v8131_v35 = vld [vmem:[%s12304_s10 + $0x58] sm:$0xff] }
0x2aaa   : > { %v7951_v31 = vpop.permute.xlu1 %7950  ;;  %9763 = vmatprep.subr.bf16.mxu0 %v9762_v50  ;;  %v8145_v53 = vld [vmem:[#allocation3 + $0xd0] sm:$0xff] }
0x2aab   : > { %7959 = vst.msk [vmem:[#allocation3 + $0xb0] sm:$0xff] %vm6881_vm3, %v7951_v31  ;;  %9765 = vmatpush3.bf16.msra.mxu0 %v9764_v48  ;;  %v7949_v38 = vpop.permute.xlu0 %7948  ;;  %v8144_v40 = vld [vmem:[#allocation3 + $0xc0] sm:$0xff] }
0x2aac   : > { %7958 = vst.msk [vmem:[#allocation3 + $0xa0] sm:$0xff] %vm6881_vm3, %v7949_v38  ;;  %9767 = vmatprep.subr.bf16.mxu0 %v9766_v59  ;;  %v9776_v54 = vpack.c.bf16 %v8145_v53, %v8144_v40 }
0x2aae   : > { %v8083_v9 = vpop.permute.xlu1 %8082  ;;  %v8159_v39 = vld [vmem:[#allocation3 + $0x1b0] sm:$0xff] }
0x2aaf   : > { %8091 = vst.msk [vmem:[#allocation3 + $0x1f0] sm:$0xff] %vm6881_vm3, %v8083_v9  ;;  %9769 = vmatpush3.bf16.msra.mxu0 %v9768_v55  ;;  %v8081_v12 = vpop.permute.xlu0 %8080  ;;  %v8158_v11 = vld [vmem:[#allocation3 + $0x1a0] sm:$0xff] }
0x2ab0   : > { %8090 = vst.msk [vmem:[#allocation3 + $0x1e0] sm:$0xff] %vm6881_vm3, %v8081_v12  ;;  %v9770_v60 = vpack.c.bf16 %v8159_v39, %v8158_v11 }
0x2ab2   : > { %v7979_v61 = vpop.permute.xlu1 %7978  ;;  %9771 = vmatprep.subr.bf16.mxu0 %v9770_v60  ;;  %v8143_v62 = vld [vmem:[#allocation3 + $0xb0] sm:$0xff] }
0x2ab3   : > { %7987 = vst.msk [vmem:[#allocation3 + $0xf0] sm:$0xff] %vm6881_vm3, %v7979_v61  ;;  %v7977_v1 = vpop.permute.xlu0 %7976  ;;  %v8142_v14 = vld [vmem:[#allocation3 + $0xa0] sm:$0xff] }
0x2ab4   : > { %7986 = vst.msk [vmem:[#allocation3 + $0xe0] sm:$0xff] %vm6881_vm3, %v7977_v1  ;;  %v9772_v22 = vpack.c.bf16 %v8143_v62, %v8142_v14 }
0x2ab6   : > { %v8107_v58 = vpop.permute.xlu1 %8106  ;;  %9773 = vmatpush3.bf16.msra.mxu0 %v9772_v22  ;;  %v8163_v57 = vld [vmem:[#allocation3 + $0x1f0] sm:$0xff] }
0x2ab7   : > { %8117 = vst.msk [vmem:[#allocation3 + $0x210] sm:$0xff] %vm6881_vm3, %v8107_v58  ;;  %9775 = vmatprep.subr.bf16.mxu0 %v9774_v56  ;;  %v8105_v51 = vpop.permute.xlu0 %8104  ;;  %v8162_v49 = vld [vmem:[#allocation3 + $0x1e0] sm:$0xff] }
0x2ab8   : > { %8116 = vst.msk [vmem:[#allocation3 + $0x200] sm:$0xff] %vm6881_vm3, %v8105_v51  ;;  %v9778_v2 = vpack.c.bf16 %v8163_v57, %v8162_v49 }
0x2aba   : > { %v8111_v7 = vpop.permute.xlu1 %8110  ;;  %9777 = vmatpush3.bf16.msra.mxu0 %v9776_v54  ;;  %v8147_v26 = vld [vmem:[#allocation3 + $0xf0] sm:$0xff] }
0x2abb   : > { %8119 = vst.msk [vmem:[#allocation3 + $0x230] sm:$0xff] %vm6881_vm3, %v8111_v7  ;;  %9779 = vmatprep.subr.bf16.mxu0 %v9778_v2  ;;  %v8109_v36 = vpop.permute.xlu0 %8108  ;;  %v8146_v44 = vld [vmem:[#allocation3 + $0xe0] sm:$0xff] }
0x2abc   : > { %8118 = vst.msk [vmem:[#allocation3 + $0x220] sm:$0xff] %vm6881_vm3, %v8109_v36  ;;  %v9780_v4 = vpack.c.bf16 %v8147_v26, %v8146_v44 }
0x2abe   : > { %v2929_v10 = vpop.permute.xlu1 %2928  ;;  %9781 = vmatpush3.bf16.msra.mxu0 %v9780_v4  ;;  %v8165_v16 = vld [vmem:[#allocation3 + $0x210] sm:$0xff] }
0x2abf   : > { %2934 = vst.msk [vmem:[%s10585_s2 + $0x8] sm:$0xff] %vm2932_vm7, %v2929_v10  ;;  %v2927_v29 = vpop.permute.xlu0 %2926  ;;  %v8164_v41 = vld [vmem:[#allocation3 + $0x200] sm:$0xff] }
0x2ac0   : > { %2933 = vst.msk [vmem:[%s10585_s2] sm:$0xff] %vm2932_vm7, %v2927_v29  ;;  %v9782_v20 = vpack.c.bf16 %v8165_v16, %v8164_v41  ;;  %s12307_s2 = sld [smem:[#allocation24_spill]] }
0x2ac1   : > { %8249 = vmatmul.mubr.f32.vlgmr.msra.gmra.mrb[66].mxu0 %v8120_v27 }
0x2ac2   : > { %v4202_v28 = vpop.permute.xlu1 %4201  ;;  %9783 = vmatprep.subr.bf16.mxu1 %v9782_v20  ;;  %v8167_v45 = vld [vmem:[#allocation3 + $0x230] sm:$0xff]  ;;  %8253 = vmatprep.mubr.f32.mxu0 %v8124_v52 }
0x2ac3   : > { %4213 = vst.msk [vmem:[%s10820_s1 + $0x8] sm:$0xff] %vm4211_vm4, %v4202_v28  ;;  %9785 = vmatpush3.bf16.msra.mxu1 %v9782_v20  ;;  %v4200_v5 = vpop.permute.xlu0 %4199  ;;  %v8166_v6 = vld [vmem:[#allocation3 + $0x220] sm:$0xff] }
0x2ac4   : > { %4212 = vst.msk [vmem:[%s10820_s1] sm:$0xff] %vm4211_vm4, %v4200_v5  ;;  %v9786_v8 = vpack.c.bf16 %v8167_v45, %v8166_v6 }
0x2ac5   : > { %8254 = vmatmul.mubr.f32.gmra.mrb[68].mxu0 %v8123_v19 }
0x2ac6   : > { %v4206_v13 = vpop.permute.xlu1 %4205  ;;  %9787 = vmatprep.subr.bf16.mxu1 %v9786_v8  ;;  %8258 = vmatprep.mubr.f32.mxu0 %v8127_v23  ;;  %v8169_v56 = vld [vmem:[%s12307_s2 + $0x8] sm:$0xff]  ;;  %v8168_v58 = vld [vmem:[%s12307_s2] sm:$0xff]  ;;  %v8170_v7 = vld [vmem:[%s12307_s2 + $0x10] sm:$0xff] }
0x2ac7   : > { %4215 = vst.msk [vmem:[%s10820_s1 + $0x18] sm:$0xff] %vm4211_vm4, %v4206_v13  ;;  %9789 = vmatpush3.bf16.msra.mxu1 %v9786_v8  ;;  %v4204_v17 = vpop.permute.xlu0 %4203  ;;  %v8171_v29 = vld [vmem:[%s12307_s2 + $0x18] sm:$0xff] }
0x2ac8   : > { %4214 = vst.msk [vmem:[%s10820_s1 + $0x10] sm:$0xff] %vm4211_vm4, %v4204_v17 }
0x2ac9   : > { %8259 = vmatmul.mubr.f32.gmra.mrb[70].mxu0 %v8126_v15 }
0x2aca   : > { %v4733_v24 = vpop.permute.xlu1 %4732  ;;  %9339 = vmatmul.mubr.msk.f32.vlgmr.msra.gmra.mrb[72].mxu1 %vm1319_vm10, %v8125_v18  ;;  %8263 = vmatprep.mubr.f32.mxu0 %v8130_v3 }
0x2acb   : > { %4744 = vst.msk [vmem:[%s10820_s1 + $0x8] sm:$0xff] %vm4742_vm2, %v4733_v24  ;;  %v4731_v25 = vpop.permute.xlu0 %4730  ;;  %9341 = vmatprep.mubr.msk.f32.mxu1 %vm1319_vm10, %v8128_v21 }
0x2acc   : > { %4743 = vst.msk [vmem:[%s10820_s1] sm:$0xff] %vm4742_vm2, %v4731_v25 }
0x2acd   : > { %8264 = vmatmul.mubr.f32.gmra.mrb[72].mxu0 %v8129_v33 }
0x2ace   : > { %v4737_v42 = vpop.permute.xlu1 %4736  ;;  %9342 = vmatmul.mubr.msk.f32.gmra.mrb[74].mxu1 %vm1319_vm10, %v8131_v35  ;;  %vm6148_vm10 = vcmask 458144  }
0x2acf   : > { %4746 = vst.msk [vmem:[%s10820_s1 + $0x18] sm:$0xff] %vm4742_vm2, %v4737_v42  ;;  %v4735_v46 = vpop.permute.xlu0 %4734 }
0x2ad0   : > { %4745 = vst.msk [vmem:[%s10820_s1 + $0x10] sm:$0xff] %vm4742_vm2, %v4735_v46 }
0x2ad2   : > { %v5608_v30 = vpop.permute.xlu1 %5607 }
0x2ad3   : > { %5619 = vst.msk [vmem:[%s10820_s1 + $0x8] sm:$0xff] %vm5617_vm8, %v5608_v30  ;;  %v5606_v34 = vpop.permute.xlu0 %5605 }
0x2ad4   : > { %5618 = vst.msk [vmem:[%s10820_s1] sm:$0xff] %vm5617_vm8, %v5606_v34 }
0x2ad6   : > { %v5612_v43 = vpop.permute.xlu1 %5611 }
0x2ad7   : > { %5621 = vst.msk [vmem:[%s10820_s1 + $0x18] sm:$0xff] %vm5617_vm8, %v5612_v43  ;;  %v5610_v47 = vpop.permute.xlu0 %5609 }
0x2ad8   : > { %5620 = vst.msk [vmem:[%s10820_s1 + $0x10] sm:$0xff] %vm5617_vm8, %v5610_v47 }
0x2ada   : > { %v6139_v50 = vpop.permute.xlu1 %6138 }
0x2adb   : > { %6150 = vst.msk [vmem:[%s10820_s1 + $0x8] sm:$0xff] %vm6148_vm10, %v6139_v50  ;;  %v6137_v48 = vpop.permute.xlu0 %6136 }
0x2adc   : > { %6149 = vst.msk [vmem:[%s10820_s1] sm:$0xff] %vm6148_vm10, %v6137_v48 }
0x2ade   : > { %v6143_v31 = vpop.permute.xlu1 %6142 }
0x2adf   : > { %6152 = vst.msk [vmem:[%s10820_s1 + $0x18] sm:$0xff] %vm6148_vm10, %v6143_v31  ;;  %v6141_v59 = vpop.permute.xlu0 %6140 }
0x2ae0   : > { %6151 = vst.msk [vmem:[%s10820_s1 + $0x10] sm:$0xff] %vm6148_vm10, %v6141_v59 }
0x2ae2   : > { %v6670_v32 = vpop.permute.xlu1 %6669 }
0x2ae3   : > { %6681 = vst.msk [vmem:[%s10820_s1 + $0x8] sm:$0xff] %vm6679_vm9, %v6670_v32  ;;  %v6668_v37 = vpop.permute.xlu0 %6667 }
0x2ae4   : > { %6680 = vst.msk [vmem:[%s10820_s1] sm:$0xff] %vm6679_vm9, %v6668_v37 }
0x2ae6   : > { %v6674_v38 = vpop.permute.xlu1 %6673 }
0x2ae7   : > { %6683 = vst.msk [vmem:[%s10820_s1 + $0x18] sm:$0xff] %vm6679_vm9, %v6674_v38  ;;  %v6672_v55 = vpop.permute.xlu0 %6671 }
0x2ae8   : > { %6682 = vst.msk [vmem:[%s10820_s1 + $0x10] sm:$0xff] %vm6679_vm9, %v6672_v55 }
0x2aea   : > { %v7339_v9 = vpop.permute.xlu1 %7338 }
0x2aeb   : > { %7350 = vst.msk [vmem:[%s10820_s1 + $0x8] sm:$0xff] %vm7348_vm13, %v7339_v9  ;;  %v7337_v39 = vpop.permute.xlu0 %7336 }
0x2aec   : > { %7349 = vst.msk [vmem:[%s10820_s1] sm:$0xff] %vm7348_vm13, %v7337_v39 }
0x2aee   : > { %v7343_v12 = vpop.permute.xlu1 %7342 }
0x2aef   : > { %7352 = vst.msk [vmem:[%s10820_s1 + $0x18] sm:$0xff] %vm7348_vm13, %v7343_v12  ;;  %v7341_v11 = vpop.permute.xlu0 %7340 }
0x2af0   : > { %7351 = vst.msk [vmem:[%s10820_s1 + $0x10] sm:$0xff] %vm7348_vm13, %v7341_v11 }
0x2af2   : > { %v7850_v60 = vpop.permute.xlu1 %7849 }
0x2af3   : > { %7861 = vst.msk [vmem:[%s10820_s1 + $0x8] sm:$0xff] %vm7859_vm5, %v7850_v60  ;;  %v7848_v61 = vpop.permute.xlu0 %7847 }
0x2af4   : > { %7860 = vst.msk [vmem:[%s10820_s1] sm:$0xff] %vm7859_vm5, %v7848_v61 }
0x2af6   : > { %v7854_v62 = vpop.permute.xlu1 %7853 }
0x2af7   : > { %7863 = vst.msk [vmem:[%s10820_s1 + $0x18] sm:$0xff] %vm7859_vm5, %v7854_v62  ;;  %v7852_v63 = vpop.permute.xlu0 %7851 }
0x2af8   : > { %7862 = vst.msk [vmem:[%s10820_s1 + $0x10] sm:$0xff] %vm7859_vm5, %v7852_v63 }
0x2b94   : > { %v9091_v0 = vpop.f32.mrb[66].mxu0 }
0x2b95   : > { %v9092_v1 = vpop.f32.mrb[67].mxu0 }
0x2b96   : > { %v9093_v14 = vadd.f32 %v9092_v1, %v9091_v0 }
0x2b98   : > { %v9094_v22 = vpop.f32.mrb[68].mxu0  ;;  %v8251_v54 = vadd.f32 %v9093_v14, %v8168_v58 }
0x2b99   : > { %v9095_v40 = vpop.f32.mrb[69].mxu0 }
0x2b9a   : > { %v9096_v53 = vadd.f32 %v9095_v40, %v9094_v22 }
0x2b9c   : > { %v8256_v57 = vadd.f32 %v9096_v53, %v8169_v56  ;;  %v9097_v51 = vpop.f32.mrb[70].mxu0 }
0x2b9d   : > { %v9340_v49 = vpop.f32.mrb[72].mxu1  ;;  %v9098_v2 = vpop.f32.mrb[71].mxu0 }
0x2b9e   : > { %v8341_v26 = vadd.f32 %v9340_v49, %v8256_v57  ;;  %v8335_v36 = vpop.f32.mrb[73].mxu1  ;;  %v9099_v44 = vadd.f32 %v9098_v2, %v9097_v51 }
0x2b9f   : > { %v8336_v4 = vadd.f32 %v8335_v36, %v8251_v54 }
0x2ba0   : > { %v9100_v10 = vpop.f32.mrb[72].mxu0  ;;  %8360 = vrot.lane.b32.xlu1 %v8341_v26, %s9996_s15  ;;  %v8261_v16 = vadd.f32 %v9099_v44, %v8170_v7 }
0x2ba1   : > { %8358 = vrot.lane.b32.xlu0 %v8336_v4, %s9996_s15  ;;  %v9343_v27 = vpop.f32.mrb[74].mxu1  ;;  %v9101_v41 = vpop.f32.mrb[73].mxu0 }
0x2ba2   : > { %v9102_v52 = vadd.f32 %v9101_v41, %v9100_v10  ;;  %v8345_v20 = vpop.f32.mrb[75].mxu1 }
0x2ba3   : > { %v8346_v28 = vadd.f32 %v8345_v20, %v8261_v16 }
0x2ba4   : > { %v8266_v45 = vadd.f32 %v9102_v52, %v8171_v29 }
0x2ba5   : > { %8362 = vrot.lane.b32.xlu0 %v8346_v28, %s9996_s15 }
0x2ba6   : > { %v8351_v19 = vadd.f32 %v9343_v27, %v8266_v45 }
0x2ba8   : > { %8364 = vrot.lane.b32.xlu1 %v8351_v19, %s9996_s15 }
0x2c12   : > { %v8361_v5 = vpop.permute.xlu1 %8360 }
0x2c13   : > { %v8359_v6 = vpop.permute.xlu0 %8358  ;;  %8372 = vst.msk [vmem:[%s10820_s1 + $0x8] sm:$0xff] %vm8370_vm11, %v8361_v5 }
0x2c14   : > { %8371 = vst.msk [vmem:[%s10820_s1] sm:$0xff] %vm8370_vm11, %v8359_v6 }
0x2c17   : > { %v8363_v23 = vpop.permute.xlu0 %8362 }
0x2c18   : > { %8373 = vst.msk [vmem:[%s10820_s1 + $0x10] sm:$0xff] %vm8370_vm11, %v8363_v23 }
0x2c1a   : > { %v8365_v8 = vpop.permute.xlu1 %8364 }
0x2c1b   : > { %8374 = vst.msk [vmem:[%s10820_s1 + $0x18] sm:$0xff] %vm8370_vm11, %v8365_v8 }
0x2c1c PF: > { %s82_s22 = sadd.s32 1, %s9913_s22  }
0x2c1d   : > { %p79_p4 = scmp.ge.s32.totalorder %s82_s22, 4  }
0x2c1f   :  { %81 = sbr.rel (!%p79_p4) target bundleno = 65 (0x41), region = 241 }

</bundles_post_ra>
